<compile_context>
chip_gen: v5e
topology: v5e:2x2
jax: 0.10.0
libtpu: 0.0.40
codegen_flags: <defaults>
</compile_context>

<pallas_src>
import functools

import numpy as np
import jax
import jax.numpy as jnp
from jax.experimental import pallas as pl
from jax.experimental.pallas import tpu as pltpu

_SQRT_HALF = 0.7071067811865476


# ----------------------------------------------------------------------------
# in-kernel math helpers (Mosaic-safe: exp + arithmetic only)
# ----------------------------------------------------------------------------
def _erf(z):
    # Abramowitz & Stegun 7.1.26, |abs err| < 1.5e-7 -> f32-exact match of
    # torch's exact (erf-based) GELU.
    a = jnp.abs(z)
    t = 1.0 / (1.0 + 0.3275911 * a)
    poly = t * (0.254829592 + t * (-0.284496736 + t * (1.421413741
               + t * (-1.453152027 + t * 1.061405429))))
    e = 1.0 - poly * jnp.exp(-a * a)
    return jnp.where(z >= 0, e, -e)


def _gelu_exact(x):
    return 0.5 * x * (1.0 + _erf(x * _SQRT_HALF))


# ----------------------------------------------------------------------------
# fused DoubleConv kernel (one batch element per grid step)
# ----------------------------------------------------------------------------
def _double_conv_kernel(*refs, residual):
    if residual:
        (x_ref, xres_ref, w1_ref, g1_ref, b1_ref, w2t_ref, g2_ref, b2_ref,
         o_ref, pad1, col1, pad2, col2) = refs
    else:
        (x_ref, w1_ref, g1_ref, b1_ref, w2t_ref, g2_ref, b2_ref,
         o_ref, pad1, col1, pad2, col2) = refs

    _, H, W, Cin = x_ref.shape            # x_ref: (1, H, W, Cin)  NHWC tile
    Cmid = w1_ref.shape[1]                # w1_ref: (9*Cin, Cmid)
    Cout = w2t_ref.shape[0]               # w2t_ref: (Cout, 9*Cmid)
    HW = H * W

    # ---- conv1: zero-pad in VMEM, im2col once, single (HW,9Cin)@(9Cin,Cmid) dot
    pad1[...] = jnp.zeros_like(pad1)
    pad1[1:H + 1, 1:W + 1, :] = x_ref[0]
    for tap in range(9):
        dy, dx = tap // 3, tap % 3
        col1[:, tap * Cin:(tap + 1) * Cin] = (
            pad1[dy:dy + H, dx:dx + W, :].reshape(HW, Cin))
    y1 = jnp.dot(col1[...], w1_ref[...],
                 preferred_element_type=jnp.float32)          # (HW, Cmid)

    # ---- GroupNorm(1, Cmid) + GELU (one-pass stats, eps=1e-5)
    inv_n1 = 1.0 / float(HW * Cmid)
    mean1 = jnp.sum(y1) * inv_n1
    var1 = jnp.sum(y1 * y1) * inv_n1 - mean1 * mean1
    y1 = (y1 - mean1) * jax.lax.rsqrt(var1 + 1e-5)
    y1 = _gelu_exact(y1 * g1_ref[...] + b1_ref[...])          # g1/b1: (1, Cmid)

    # ---- conv2: pad + im2col in VMEM; compute as W2t @ col2^T so the result
    #      comes out as (Cout, HW) -- lane-dense for GN2 / residual / store.
    pad2[...] = jnp.zeros_like(pad2)
    pad2[1:H + 1, 1:W + 1, :] = y1.reshape(H, W, Cmid)
    for tap in range(9):
        dy, dx = tap // 3, tap % 3
        col2[:, tap * Cmid:(tap + 1) * Cmid] = (
            pad2[dy:dy + H, dx:dx + W, :].reshape(HW, Cmid))
    y2 = jax.lax.dot_general(                                  # (Cout, HW)
        w2t_ref[...], col2[...],
        dimension_numbers=(((1,), (1,)), ((), ())),
        preferred_element_type=jnp.float32)

    # ---- GroupNorm(1, Cout) (lane-dense), one-pass stats
    inv_n2 = 1.0 / float(HW * Cout)
    mean2 = jnp.sum(y2) * inv_n2
    var2 = jnp.sum(y2 * y2) * inv_n2 - mean2 * mean2
    y2 = (y2 - mean2) * jax.lax.rsqrt(var2 + 1e-5)
    y2 = y2 * g2_ref[...] + b2_ref[...]                        # g2/b2: (Cout, 1)

    if residual:
        y2 = _gelu_exact(xres_ref[0] + y2)                     # xres: (Cin, HW)

    o_ref[0] = y2                     # lane-dense (Cout, HW) store -> NCHW view


# ----------------------------------------------------------------------------
# wrapper
# ----------------------------------------------------------------------------
@functools.partial(jax.jit, static_argnames=("residual",))
def double_conv_forward(x_nchw, params, residual=False):
    B, Cin, H, W = x_nchw.shape
    Cmid = params["w1"].shape[-1]
    Cout = params["w2"].shape[-1]
    if residual:
        assert Cin == Cout, "residual DoubleConv requires in_channels == out_channels"
    HW = H * W

    # layout glue (HBM-side, cheap): NHWC view for the conv im2col, flat CHW
    # view for the residual path, reshaped/transposed weights.
    x_nhwc = jnp.transpose(x_nchw, (0, 2, 3, 1))
    w1r = params["w1"].reshape(9 * Cin, Cmid)                  # (9*Cin, Cmid)
    w2t = params["w2"].reshape(9 * Cmid, Cout).T               # (Cout, 9*Cmid)
    g1 = params["g1"].reshape(1, Cmid)
    b1 = params["b1"].reshape(1, Cmid)
    g2 = params["g2"].reshape(Cout, 1)
    b2 = params["b2"].reshape(Cout, 1)

    in_specs = [pl.BlockSpec((1, H, W, Cin), lambda b: (b, 0, 0, 0))]
    args = [x_nhwc]
    if residual:
        in_specs.append(pl.BlockSpec((1, Cin, HW), lambda b: (b, 0, 0)))
        args.append(x_nchw.reshape(B, Cin, HW))
    in_specs += [
        pl.BlockSpec((9 * Cin, Cmid), lambda b: (0, 0)),
        pl.BlockSpec((1, Cmid), lambda b: (0, 0)),
        pl.BlockSpec((1, Cmid), lambda b: (0, 0)),
        pl.BlockSpec((Cout, 9 * Cmid), lambda b: (0, 0)),
        pl.BlockSpec((Cout, 1), lambda b: (0, 0)),
        pl.BlockSpec((Cout, 1), lambda b: (0, 0)),
    ]
    args += [w1r, g1, b1, w2t, g2, b2]

    out = pl.pallas_call(
        functools.partial(_double_conv_kernel, residual=residual),
        out_shape=jax.ShapeDtypeStruct((B, Cout, HW), jnp.float32),
        grid=(B,),
        in_specs=in_specs,
        out_specs=pl.BlockSpec((1, Cout, HW), lambda b: (b, 0, 0)),
        scratch_shapes=[
            pltpu.VMEM((H + 2, W + 2, Cin), jnp.float32),      # padded input
            pltpu.VMEM((HW, 9 * Cin), jnp.float32),            # im2col #1
            pltpu.VMEM((H + 2, W + 2, Cmid), jnp.float32),     # padded mid
            pltpu.VMEM((HW, 9 * Cmid), jnp.float32),           # im2col #2
        ],
        compiler_params=pltpu.CompilerParams(
            dimension_semantics=("parallel",),
            vmem_limit_bytes=32 * 1024 * 1024,
        ),
    )(*args)

    return out.reshape(B, Cout, H, W)                          # NCHW


# ----------------------------------------------------------------------------
# pure-JAX reference (mirrors the PyTorch module) + params
# ----------------------------------------------------------------------------
def _reference(x_nchw, params, residual):
    x = jnp.transpose(x_nchw, (0, 2, 3, 1))

    def conv(h, w):
        return jax.lax.conv_general_dilated(
            h, w, (1, 1), "SAME",
            dimension_numbers=("NHWC", "HWIO", "NHWC"),
            precision=jax.lax.Precision.HIGHEST)

    def gn(h, g, b):
        mean = jnp.mean(h, axis=(1, 2, 3), keepdims=True)
        var = jnp.var(h, axis=(1, 2, 3), keepdims=True)
        hn = (h - mean) / jnp.sqrt(var + 1e-5)
        return hn * g.reshape(1, 1, 1, -1) + b.reshape(1, 1, 1, -1)

    y = conv(x, params["w1"])
    y = jax.nn.gelu(gn(y, params["g1"], params["b1"]), approximate=False)
    y = gn(conv(y, params["w2"]), params["g2"], params["b2"])
    if residual:
        y = jax.nn.gelu(x + y, approximate=False)
    return jnp.transpose(y, (0, 3, 1, 2))


def init_params(key, cin, cout, mid=None):
    if mid is None:
        mid = cout
    ks = jax.random.split(key, 6)

    def conv_w(k, ci, co):
        return jax.random.normal(k, (3, 3, ci, co), jnp.float32) * float(
            np.sqrt(2.0 / (9.0 * ci)))

    return dict(
        w1=conv_w(ks[0], cin, mid),
        g1=1.0 + 0.1 * jax.random.normal(ks[1], (mid,), jnp.float32),
        b1=0.1 * jax.random.normal(ks[2], (mid,), jnp.float32),
        w2=conv_w(ks[3], mid, cout),
        g2=1.0 + 0.1 * jax.random.normal(ks[4], (cout,), jnp.float32),
        b2=0.1 * jax.random.normal(ks[5], (cout,), jnp.float32),
    )


if __name__ == "__main__":
    B, H, W = 2, 16, 16
    key = jax.random.PRNGKey(0)
    kx, kp1, kp2 = jax.random.split(key, 3)

    C = 8
    x = jax.random.normal(kx, (B, C, H, W), jnp.float32)

    # Case 1: DoubleConv(8, 8, residual=True)
    params_res = init_params(kp1, C, C)
    out_res = jax.block_until_ready(double_conv_forward(x, params_res, residual=True))
    assert out_res.shape == (B, C, H, W), out_res.shape

    # Case 2: DoubleConv(8, 4)  (mid_channels = out_channels = 4)
    params_plain = init_params(kp2, C, 4)
    out_plain = jax.block_until_ready(double_conv_forward(x, params_plain, residual=False))
    assert out_plain.shape == (B, 4, H, W), out_plain.shape

    # correctness vs pure-JAX reference (generous tol: MXU f32 matmul precision)
    err_res = float(jnp.max(jnp.abs(out_res - _reference(x, params_res, True))))
    err_plain = float(jnp.max(jnp.abs(out_plain - _reference(x, params_plain, False))))
    assert np.isfinite(err_res) and err_res < 5e-2, err_res
    assert np.isfinite(err_plain) and err_plain < 5e-2, err_plain

    print("KERNEL_OK")
</pallas_src>

<mosaic_0001>
module attributes {stable_mosaic.version = 11 : i64} {
  func.func @_double_conv_kernel(%arg0: i32, %arg1: memref<1x16x16x8xf32, #tpu.memory_space<vmem>>, %arg2: memref<1x8x256xf32, #tpu.memory_space<vmem>>, %arg3: memref<72x8xf32, #tpu.memory_space<vmem>>, %arg4: memref<1x8xf32, #tpu.memory_space<vmem>>, %arg5: memref<1x8xf32, #tpu.memory_space<vmem>>, %arg6: memref<8x72xf32, #tpu.memory_space<vmem>>, %arg7: memref<8x1xf32, #tpu.memory_space<vmem>>, %arg8: memref<8x1xf32, #tpu.memory_space<vmem>>, %arg9: memref<1x8x256xf32, #tpu.memory_space<vmem>>, %arg10: memref<18x18x8xf32, #tpu.memory_space<vmem>>, %arg11: memref<256x72xf32, #tpu.memory_space<vmem>>, %arg12: memref<18x18x8xf32, #tpu.memory_space<vmem>>, %arg13: memref<256x72xf32, #tpu.memory_space<vmem>>) attributes {dimension_semantics = [#tpu.dimension_semantics<parallel>], iteration_bounds = array<i64: 2>, scalar_prefetch = 0 : i64, scratch_operands = 4 : i64, tpu.core_type = #tpu.core_type<tc>, window_params = [{transform_indices = @transform_0, window_bounds = array<i64: 1, 16, 16, 8>}, {transform_indices = @transform_1, window_bounds = array<i64: 1, 8, 256>}, {pipeline_mode = #tpu.pipeline_mode<synchronous>, transform_indices = @transform_2, window_bounds = array<i64: 72, 8>}, {pipeline_mode = #tpu.pipeline_mode<synchronous>, transform_indices = @transform_3, window_bounds = array<i64: 1, 8>}, {pipeline_mode = #tpu.pipeline_mode<synchronous>, transform_indices = @transform_4, window_bounds = array<i64: 1, 8>}, {pipeline_mode = #tpu.pipeline_mode<synchronous>, transform_indices = @transform_5, window_bounds = array<i64: 8, 72>}, {pipeline_mode = #tpu.pipeline_mode<synchronous>, transform_indices = @transform_6, window_bounds = array<i64: 8, 1>}, {pipeline_mode = #tpu.pipeline_mode<synchronous>, transform_indices = @transform_7, window_bounds = array<i64: 8, 1>}, {transform_indices = @transform_8, window_bounds = array<i64: 1, 8, 256>}]} {
    %cst = arith.constant 0.000000e+00 : f32
    %0 = vector.broadcast %cst : f32 to vector<18x18x8xf32>
    %c0 = arith.constant 0 : index
    %c0_0 = arith.constant 0 : index
    %c0_1 = arith.constant 0 : index
    %1 = vector.load %arg10[%c0, %c0_0, %c0_1] : memref<18x18x8xf32, #tpu.memory_space<vmem>>, vector<18x18x8xf32>
    tpu.vector_store %arg10[%c0, %c0_0, %c0_1], %0 {strides = array<i32>} : memref<18x18x8xf32, #tpu.memory_space<vmem>>, vector<18x18x8xf32>,
    %c0_2 = arith.constant 0 : index
    %c0_3 = arith.constant 0 : index
    %c0_4 = arith.constant 0 : index
    %c0_5 = arith.constant 0 : index
    %2 = vector.load %arg1[%c0_2, %c0_3, %c0_4, %c0_5] : memref<1x16x16x8xf32, #tpu.memory_space<vmem>>, vector<1x16x16x8xf32>
    %3 = vector.shape_cast %2 : vector<1x16x16x8xf32> to vector<16x16x8xf32>
    %c1 = arith.constant 1 : index
    %c1_6 = arith.constant 1 : index
    %c0_7 = arith.constant 0 : index
    %4 = vector.load %arg10[%c1, %c1_6, %c0_7] : memref<18x18x8xf32, #tpu.memory_space<vmem>>, vector<16x16x8xf32>
    tpu.vector_store %arg10[%c1, %c1_6, %c0_7], %3 {strides = array<i32>} : memref<18x18x8xf32, #tpu.memory_space<vmem>>, vector<16x16x8xf32>,
    %c0_8 = arith.constant 0 : index
    %c0_9 = arith.constant 0 : index
    %c0_10 = arith.constant 0 : index
    %5 = vector.load %arg10[%c0_8, %c0_9, %c0_10] : memref<18x18x8xf32, #tpu.memory_space<vmem>>, vector<16x16x8xf32>
    %6 = vector.shape_cast %5 : vector<16x16x8xf32> to vector<256x8xf32>
    %c0_11 = arith.constant 0 : index
    %c0_12 = arith.constant 0 : index
    %7 = vector.load %arg11[%c0_11, %c0_12] : memref<256x72xf32, #tpu.memory_space<vmem>>, vector<256x8xf32>
    tpu.vector_store %arg11[%c0_11, %c0_12], %6 {strides = array<i32>} : memref<256x72xf32, #tpu.memory_space<vmem>>, vector<256x8xf32>,
    %c0_13 = arith.constant 0 : index
    %c1_14 = arith.constant 1 : index
    %c0_15 = arith.constant 0 : index
    %8 = vector.load %arg10[%c0_13, %c1_14, %c0_15] : memref<18x18x8xf32, #tpu.memory_space<vmem>>, vector<16x16x8xf32>
    %9 = vector.shape_cast %8 : vector<16x16x8xf32> to vector<256x8xf32>
    %c0_16 = arith.constant 0 : index
    %c8 = arith.constant 8 : index
    %10 = vector.load %arg11[%c0_16, %c8] : memref<256x72xf32, #tpu.memory_space<vmem>>, vector<256x8xf32>
    tpu.vector_store %arg11[%c0_16, %c8], %9 {strides = array<i32>} : memref<256x72xf32, #tpu.memory_space<vmem>>, vector<256x8xf32>,
    %c0_17 = arith.constant 0 : index
    %c2 = arith.constant 2 : index
    %c0_18 = arith.constant 0 : index
    %11 = vector.load %arg10[%c0_17, %c2, %c0_18] : memref<18x18x8xf32, #tpu.memory_space<vmem>>, vector<16x16x8xf32>
    %12 = vector.shape_cast %11 : vector<16x16x8xf32> to vector<256x8xf32>
    %c0_19 = arith.constant 0 : index
    %c16 = arith.constant 16 : index
    %13 = vector.load %arg11[%c0_19, %c16] : memref<256x72xf32, #tpu.memory_space<vmem>>, vector<256x8xf32>
    tpu.vector_store %arg11[%c0_19, %c16], %12 {strides = array<i32>} : memref<256x72xf32, #tpu.memory_space<vmem>>, vector<256x8xf32>,
    %c1_20 = arith.constant 1 : index
    %c0_21 = arith.constant 0 : index
    %c0_22 = arith.constant 0 : index
    %14 = vector.load %arg10[%c1_20, %c0_21, %c0_22] : memref<18x18x8xf32, #tpu.memory_space<vmem>>, vector<16x16x8xf32>
    %15 = vector.shape_cast %14 : vector<16x16x8xf32> to vector<256x8xf32>
    %c0_23 = arith.constant 0 : index
    %c24 = arith.constant 24 : index
    %16 = vector.load %arg11[%c0_23, %c24] : memref<256x72xf32, #tpu.memory_space<vmem>>, vector<256x8xf32>
    tpu.vector_store %arg11[%c0_23, %c24], %15 {strides = array<i32>} : memref<256x72xf32, #tpu.memory_space<vmem>>, vector<256x8xf32>,
    %c1_24 = arith.constant 1 : index
    %c1_25 = arith.constant 1 : index
    %c0_26 = arith.constant 0 : index
    %17 = vector.load %arg10[%c1_24, %c1_25, %c0_26] : memref<18x18x8xf32, #tpu.memory_space<vmem>>, vector<16x16x8xf32>
    %18 = vector.shape_cast %17 : vector<16x16x8xf32> to vector<256x8xf32>
    %c0_27 = arith.constant 0 : index
    %c32 = arith.constant 32 : index
    %19 = vector.load %arg11[%c0_27, %c32] : memref<256x72xf32, #tpu.memory_space<vmem>>, vector<256x8xf32>
    tpu.vector_store %arg11[%c0_27, %c32], %18 {strides = array<i32>} : memref<256x72xf32, #tpu.memory_space<vmem>>, vector<256x8xf32>,
    %c1_28 = arith.constant 1 : index
    %c2_29 = arith.constant 2 : index
    %c0_30 = arith.constant 0 : index
    %20 = vector.load %arg10[%c1_28, %c2_29, %c0_30] : memref<18x18x8xf32, #tpu.memory_space<vmem>>, vector<16x16x8xf32>
    %21 = vector.shape_cast %20 : vector<16x16x8xf32> to vector<256x8xf32>
    %c0_31 = arith.constant 0 : index
    %c40 = arith.constant 40 : index
    %22 = vector.load %arg11[%c0_31, %c40] : memref<256x72xf32, #tpu.memory_space<vmem>>, vector<256x8xf32>
    tpu.vector_store %arg11[%c0_31, %c40], %21 {strides = array<i32>} : memref<256x72xf32, #tpu.memory_space<vmem>>, vector<256x8xf32>,
    %c2_32 = arith.constant 2 : index
    %c0_33 = arith.constant 0 : index
    %c0_34 = arith.constant 0 : index
    %23 = vector.load %arg10[%c2_32, %c0_33, %c0_34] : memref<18x18x8xf32, #tpu.memory_space<vmem>>, vector<16x16x8xf32>
    %24 = vector.shape_cast %23 : vector<16x16x8xf32> to vector<256x8xf32>
    %c0_35 = arith.constant 0 : index
    %c48 = arith.constant 48 : index
    %25 = vector.load %arg11[%c0_35, %c48] : memref<256x72xf32, #tpu.memory_space<vmem>>, vector<256x8xf32>
    tpu.vector_store %arg11[%c0_35, %c48], %24 {strides = array<i32>} : memref<256x72xf32, #tpu.memory_space<vmem>>, vector<256x8xf32>,
    %c2_36 = arith.constant 2 : index
    %c1_37 = arith.constant 1 : index
    %c0_38 = arith.constant 0 : index
    %26 = vector.load %arg10[%c2_36, %c1_37, %c0_38] : memref<18x18x8xf32, #tpu.memory_space<vmem>>, vector<16x16x8xf32>
    %27 = vector.shape_cast %26 : vector<16x16x8xf32> to vector<256x8xf32>
    %c0_39 = arith.constant 0 : index
    %c56 = arith.constant 56 : index
    %28 = vector.load %arg11[%c0_39, %c56] : memref<256x72xf32, #tpu.memory_space<vmem>>, vector<256x8xf32>
    tpu.vector_store %arg11[%c0_39, %c56], %27 {strides = array<i32>} : memref<256x72xf32, #tpu.memory_space<vmem>>, vector<256x8xf32>,
    %c2_40 = arith.constant 2 : index
    %c2_41 = arith.constant 2 : index
    %c0_42 = arith.constant 0 : index
    %29 = vector.load %arg10[%c2_40, %c2_41, %c0_42] : memref<18x18x8xf32, #tpu.memory_space<vmem>>, vector<16x16x8xf32>
    %30 = vector.shape_cast %29 : vector<16x16x8xf32> to vector<256x8xf32>
    %c0_43 = arith.constant 0 : index
    %c64 = arith.constant 64 : index
    %31 = vector.load %arg11[%c0_43, %c64] : memref<256x72xf32, #tpu.memory_space<vmem>>, vector<256x8xf32>
    tpu.vector_store %arg11[%c0_43, %c64], %30 {strides = array<i32>} : memref<256x72xf32, #tpu.memory_space<vmem>>, vector<256x8xf32>,
    %c0_44 = arith.constant 0 : index
    %c0_45 = arith.constant 0 : index
    %32 = vector.load %arg11[%c0_44, %c0_45] : memref<256x72xf32, #tpu.memory_space<vmem>>, vector<256x72xf32>
    %c0_46 = arith.constant 0 : index
    %c0_47 = arith.constant 0 : index
    %33 = vector.load %arg3[%c0_46, %c0_47] : memref<72x8xf32, #tpu.memory_space<vmem>>, vector<72x8xf32>
    %cst_48 = arith.constant dense<0.000000e+00> : vector<256x8xf32>
    %34 = tpu.matmul %32, %33, %cst_48 {dimension_numbers = #tpu.dot_dimension_numbers<[1], [0], [0], [1], [0, 0, 1, 1], [], []>} : vector<256x72xf32>, vector<72x8xf32>, vector<256x8xf32> -> vector<256x8xf32>
    %35 = vector.shape_cast %34 : vector<256x8xf32> to vector<1x256x8xf32>
    %cst_49 = arith.constant dense<0.000000e+00> : vector<1xf32>
    %36 = vector.multi_reduction <add>, %35, %cst_49 [1, 2] : vector<1x256x8xf32> to vector<1xf32>
    %37 = vector.shape_cast %36 : vector<1xf32> to vector<1x1x1xf32>
    %38 = vector.extract %37[0, 0, 0] : f32 from vector<1x1x1xf32>
    %cst_50 = arith.constant 4.8828125E-4 : f32
    %39 = arith.mulf %38, %cst_50 : f32
    %40 = arith.mulf %34, %34 : vector<256x8xf32>
    %41 = vector.shape_cast %40 : vector<256x8xf32> to vector<1x256x8xf32>
    %cst_51 = arith.constant dense<0.000000e+00> : vector<1xf32>
    %42 = vector.multi_reduction <add>, %41, %cst_51 [1, 2] : vector<1x256x8xf32> to vector<1xf32>
    %43 = vector.shape_cast %42 : vector<1xf32> to vector<1x1x1xf32>
    %44 = vector.extract %43[0, 0, 0] : f32 from vector<1x1x1xf32>
    %cst_52 = arith.constant 4.8828125E-4 : f32
    %45 = arith.mulf %44, %cst_52 : f32
    %46 = arith.mulf %39, %39 : f32
    %47 = arith.subf %45, %46 : f32
    %48 = vector.broadcast %39 : f32 to vector<256x8xf32>
    %49 = arith.subf %34, %48 : vector<256x8xf32>
    %cst_53 = arith.constant 9.99999974E-6 : f32
    %50 = arith.addf %47, %cst_53 : f32
    %51 = math.rsqrt %50 : f32
    %52 = vector.broadcast %51 : f32 to vector<256x8xf32>
    %53 = arith.mulf %49, %52 : vector<256x8xf32>
    %c0_54 = arith.constant 0 : index
    %c0_55 = arith.constant 0 : index
    %54 = vector.load %arg4[%c0_54, %c0_55] : memref<1x8xf32, #tpu.memory_space<vmem>>, vector<1x8xf32>
    %55 = vector.broadcast %54 : vector<1x8xf32> to vector<256x8xf32>
    %56 = arith.mulf %53, %55 : vector<256x8xf32>
    %c0_56 = arith.constant 0 : index
    %c0_57 = arith.constant 0 : index
    %57 = vector.load %arg5[%c0_56, %c0_57] : memref<1x8xf32, #tpu.memory_space<vmem>>, vector<1x8xf32>
    %58 = vector.broadcast %57 : vector<1x8xf32> to vector<256x8xf32>
    %59 = arith.addf %56, %58 : vector<256x8xf32>
    %cst_58 = arith.constant 5.000000e-01 : f32
    %60 = vector.broadcast %cst_58 : f32 to vector<256x8xf32>
    %61 = arith.mulf %60, %59 : vector<256x8xf32>
    %cst_59 = arith.constant 0.707106769 : f32
    %62 = vector.broadcast %cst_59 : f32 to vector<256x8xf32>
    %63 = arith.mulf %59, %62 : vector<256x8xf32>
    %64 = math.absf %63 : vector<256x8xf32>
    %cst_60 = arith.constant 0.327591091 : f32
    %65 = vector.broadcast %cst_60 : f32 to vector<256x8xf32>
    %66 = arith.mulf %65, %64 : vector<256x8xf32>
    %cst_61 = arith.constant 1.000000e+00 : f32
    %67 = vector.broadcast %cst_61 : f32 to vector<256x8xf32>
    %68 = arith.addf %67, %66 : vector<256x8xf32>
    %cst_62 = arith.constant 1.000000e+00 : f32
    %69 = vector.broadcast %cst_62 : f32 to vector<256x8xf32>
    %70 = arith.divf %69, %68 : vector<256x8xf32>
    %cst_63 = arith.constant 1.06140542 : f32
    %71 = vector.broadcast %cst_63 : f32 to vector<256x8xf32>
    %72 = arith.mulf %70, %71 : vector<256x8xf32>
    %cst_64 = arith.constant -1.45315206 : f32
    %73 = vector.broadcast %cst_64 : f32 to vector<256x8xf32>
    %74 = arith.addf %73, %72 : vector<256x8xf32>
    %75 = arith.mulf %70, %74 : vector<256x8xf32>
    %cst_65 = arith.constant 1.42141378 : f32
    %76 = vector.broadcast %cst_65 : f32 to vector<256x8xf32>
    %77 = arith.addf %76, %75 : vector<256x8xf32>
    %78 = arith.mulf %70, %77 : vector<256x8xf32>
    %cst_66 = arith.constant -0.284496725 : f32
    %79 = vector.broadcast %cst_66 : f32 to vector<256x8xf32>
    %80 = arith.addf %79, %78 : vector<256x8xf32>
    %81 = arith.mulf %70, %80 : vector<256x8xf32>
    %cst_67 = arith.constant 0.254829586 : f32
    %82 = vector.broadcast %cst_67 : f32 to vector<256x8xf32>
    %83 = arith.addf %82, %81 : vector<256x8xf32>
    %84 = arith.mulf %70, %83 : vector<256x8xf32>
    %cst_68 = arith.constant 0.000000e+00 : f32
    %85 = vector.broadcast %cst_68 : f32 to vector<256x8xf32>
    %86 = arith.subf %85, %64 : vector<256x8xf32>
    %87 = arith.mulf %86, %64 : vector<256x8xf32>
    %88 = math.exp %87 : vector<256x8xf32>
    %89 = arith.mulf %84, %88 : vector<256x8xf32>
    %cst_69 = arith.constant 1.000000e+00 : f32
    %90 = vector.broadcast %cst_69 : f32 to vector<256x8xf32>
    %91 = arith.subf %90, %89 : vector<256x8xf32>
    %cst_70 = arith.constant 0.000000e+00 : f32
    %92 = vector.broadcast %cst_70 : f32 to vector<256x8xf32>
    %93 = arith.cmpf oge, %63, %92 : vector<256x8xf32>
    %cst_71 = arith.constant 0.000000e+00 : f32
    %94 = vector.broadcast %cst_71 : f32 to vector<256x8xf32>
    %95 = arith.subf %94, %91 : vector<256x8xf32>
    %96 = arith.select %93, %91, %95 : vector<256x8xi1>, vector<256x8xf32>
    %cst_72 = arith.constant 1.000000e+00 : f32
    %97 = vector.broadcast %cst_72 : f32 to vector<256x8xf32>
    %98 = arith.addf %97, %96 : vector<256x8xf32>
    %99 = arith.mulf %61, %98 : vector<256x8xf32>
    %cst_73 = arith.constant 0.000000e+00 : f32
    %100 = vector.broadcast %cst_73 : f32 to vector<18x18x8xf32>
    %c0_74 = arith.constant 0 : index
    %c0_75 = arith.constant 0 : index
    %c0_76 = arith.constant 0 : index
    %101 = vector.load %arg12[%c0_74, %c0_75, %c0_76] : memref<18x18x8xf32, #tpu.memory_space<vmem>>, vector<18x18x8xf32>
    tpu.vector_store %arg12[%c0_74, %c0_75, %c0_76], %100 {strides = array<i32>} : memref<18x18x8xf32, #tpu.memory_space<vmem>>, vector<18x18x8xf32>,
    %102 = vector.shape_cast %99 : vector<256x8xf32> to vector<16x16x8xf32>
    %c1_77 = arith.constant 1 : index
    %c1_78 = arith.constant 1 : index
    %c0_79 = arith.constant 0 : index
    %103 = vector.load %arg12[%c1_77, %c1_78, %c0_79] : memref<18x18x8xf32, #tpu.memory_space<vmem>>, vector<16x16x8xf32>
    tpu.vector_store %arg12[%c1_77, %c1_78, %c0_79], %102 {strides = array<i32>} : memref<18x18x8xf32, #tpu.memory_space<vmem>>, vector<16x16x8xf32>,
    %c0_80 = arith.constant 0 : index
    %c0_81 = arith.constant 0 : index
    %c0_82 = arith.constant 0 : index
    %104 = vector.load %arg12[%c0_80, %c0_81, %c0_82] : memref<18x18x8xf32, #tpu.memory_space<vmem>>, vector<16x16x8xf32>
    %105 = vector.shape_cast %104 : vector<16x16x8xf32> to vector<256x8xf32>
    %c0_83 = arith.constant 0 : index
    %c0_84 = arith.constant 0 : index
    %106 = vector.load %arg13[%c0_83, %c0_84] : memref<256x72xf32, #tpu.memory_space<vmem>>, vector<256x8xf32>
    tpu.vector_store %arg13[%c0_83, %c0_84], %105 {strides = array<i32>} : memref<256x72xf32, #tpu.memory_space<vmem>>, vector<256x8xf32>,
    %c0_85 = arith.constant 0 : index
    %c1_86 = arith.constant 1 : index
    %c0_87 = arith.constant 0 : index
    %107 = vector.load %arg12[%c0_85, %c1_86, %c0_87] : memref<18x18x8xf32, #tpu.memory_space<vmem>>, vector<16x16x8xf32>
    %108 = vector.shape_cast %107 : vector<16x16x8xf32> to vector<256x8xf32>
    %c0_88 = arith.constant 0 : index
    %c8_89 = arith.constant 8 : index
    %109 = vector.load %arg13[%c0_88, %c8_89] : memref<256x72xf32, #tpu.memory_space<vmem>>, vector<256x8xf32>
    tpu.vector_store %arg13[%c0_88, %c8_89], %108 {strides = array<i32>} : memref<256x72xf32, #tpu.memory_space<vmem>>, vector<256x8xf32>,
    %c0_90 = arith.constant 0 : index
    %c2_91 = arith.constant 2 : index
    %c0_92 = arith.constant 0 : index
    %110 = vector.load %arg12[%c0_90, %c2_91, %c0_92] : memref<18x18x8xf32, #tpu.memory_space<vmem>>, vector<16x16x8xf32>
    %111 = vector.shape_cast %110 : vector<16x16x8xf32> to vector<256x8xf32>
    %c0_93 = arith.constant 0 : index
    %c16_94 = arith.constant 16 : index
    %112 = vector.load %arg13[%c0_93, %c16_94] : memref<256x72xf32, #tpu.memory_space<vmem>>, vector<256x8xf32>
    tpu.vector_store %arg13[%c0_93, %c16_94], %111 {strides = array<i32>} : memref<256x72xf32, #tpu.memory_space<vmem>>, vector<256x8xf32>,
    %c1_95 = arith.constant 1 : index
    %c0_96 = arith.constant 0 : index
    %c0_97 = arith.constant 0 : index
    %113 = vector.load %arg12[%c1_95, %c0_96, %c0_97] : memref<18x18x8xf32, #tpu.memory_space<vmem>>, vector<16x16x8xf32>
    %114 = vector.shape_cast %113 : vector<16x16x8xf32> to vector<256x8xf32>
    %c0_98 = arith.constant 0 : index
    %c24_99 = arith.constant 24 : index
    %115 = vector.load %arg13[%c0_98, %c24_99] : memref<256x72xf32, #tpu.memory_space<vmem>>, vector<256x8xf32>
    tpu.vector_store %arg13[%c0_98, %c24_99], %114 {strides = array<i32>} : memref<256x72xf32, #tpu.memory_space<vmem>>, vector<256x8xf32>,
    %c1_100 = arith.constant 1 : index
    %c1_101 = arith.constant 1 : index
    %c0_102 = arith.constant 0 : index
    %116 = vector.load %arg12[%c1_100, %c1_101, %c0_102] : memref<18x18x8xf32, #tpu.memory_space<vmem>>, vector<16x16x8xf32>
    %117 = vector.shape_cast %116 : vector<16x16x8xf32> to vector<256x8xf32>
    %c0_103 = arith.constant 0 : index
    %c32_104 = arith.constant 32 : index
    %118 = vector.load %arg13[%c0_103, %c32_104] : memref<256x72xf32, #tpu.memory_space<vmem>>, vector<256x8xf32>
    tpu.vector_store %arg13[%c0_103, %c32_104], %117 {strides = array<i32>} : memref<256x72xf32, #tpu.memory_space<vmem>>, vector<256x8xf32>,
    %c1_105 = arith.constant 1 : index
    %c2_106 = arith.constant 2 : index
    %c0_107 = arith.constant 0 : index
    %119 = vector.load %arg12[%c1_105, %c2_106, %c0_107] : memref<18x18x8xf32, #tpu.memory_space<vmem>>, vector<16x16x8xf32>
    %120 = vector.shape_cast %119 : vector<16x16x8xf32> to vector<256x8xf32>
    %c0_108 = arith.constant 0 : index
    %c40_109 = arith.constant 40 : index
    %121 = vector.load %arg13[%c0_108, %c40_109] : memref<256x72xf32, #tpu.memory_space<vmem>>, vector<256x8xf32>
    tpu.vector_store %arg13[%c0_108, %c40_109], %120 {strides = array<i32>} : memref<256x72xf32, #tpu.memory_space<vmem>>, vector<256x8xf32>,
    %c2_110 = arith.constant 2 : index
    %c0_111 = arith.constant 0 : index
    %c0_112 = arith.constant 0 : index
    %122 = vector.load %arg12[%c2_110, %c0_111, %c0_112] : memref<18x18x8xf32, #tpu.memory_space<vmem>>, vector<16x16x8xf32>
    %123 = vector.shape_cast %122 : vector<16x16x8xf32> to vector<256x8xf32>
    %c0_113 = arith.constant 0 : index
    %c48_114 = arith.constant 48 : index
    %124 = vector.load %arg13[%c0_113, %c48_114] : memref<256x72xf32, #tpu.memory_space<vmem>>, vector<256x8xf32>
    tpu.vector_store %arg13[%c0_113, %c48_114], %123 {strides = array<i32>} : memref<256x72xf32, #tpu.memory_space<vmem>>, vector<256x8xf32>,
    %c2_115 = arith.constant 2 : index
    %c1_116 = arith.constant 1 : index
    %c0_117 = arith.constant 0 : index
    %125 = vector.load %arg12[%c2_115, %c1_116, %c0_117] : memref<18x18x8xf32, #tpu.memory_space<vmem>>, vector<16x16x8xf32>
    %126 = vector.shape_cast %125 : vector<16x16x8xf32> to vector<256x8xf32>
    %c0_118 = arith.constant 0 : index
    %c56_119 = arith.constant 56 : index
    %127 = vector.load %arg13[%c0_118, %c56_119] : memref<256x72xf32, #tpu.memory_space<vmem>>, vector<256x8xf32>
    tpu.vector_store %arg13[%c0_118, %c56_119], %126 {strides = array<i32>} : memref<256x72xf32, #tpu.memory_space<vmem>>, vector<256x8xf32>,
    %c2_120 = arith.constant 2 : index
    %c2_121 = arith.constant 2 : index
    %c0_122 = arith.constant 0 : index
    %128 = vector.load %arg12[%c2_120, %c2_121, %c0_122] : memref<18x18x8xf32, #tpu.memory_space<vmem>>, vector<16x16x8xf32>
    %129 = vector.shape_cast %128 : vector<16x16x8xf32> to vector<256x8xf32>
    %c0_123 = arith.constant 0 : index
    %c64_124 = arith.constant 64 : index
    %130 = vector.load %arg13[%c0_123, %c64_124] : memref<256x72xf32, #tpu.memory_space<vmem>>, vector<256x8xf32>
    tpu.vector_store %arg13[%c0_123, %c64_124], %129 {strides = array<i32>} : memref<256x72xf32, #tpu.memory_space<vmem>>, vector<256x8xf32>,
    %c0_125 = arith.constant 0 : index
    %c0_126 = arith.constant 0 : index
    %131 = vector.load %arg6[%c0_125, %c0_126] : memref<8x72xf32, #tpu.memory_space<vmem>>, vector<8x72xf32>
    %c0_127 = arith.constant 0 : index
    %c0_128 = arith.constant 0 : index
    %132 = vector.load %arg13[%c0_127, %c0_128] : memref<256x72xf32, #tpu.memory_space<vmem>>, vector<256x72xf32>
    %cst_129 = arith.constant dense<0.000000e+00> : vector<8x256xf32>
    %133 = tpu.matmul %131, %132, %cst_129 {dimension_numbers = #tpu.dot_dimension_numbers<[1], [1], [0], [0], [0, 0, 1, 0], [], []>} : vector<8x72xf32>, vector<256x72xf32>, vector<8x256xf32> -> vector<8x256xf32>
    %134 = vector.shape_cast %133 : vector<8x256xf32> to vector<1x8x256xf32>
    %cst_130 = arith.constant dense<0.000000e+00> : vector<1xf32>
    %135 = vector.multi_reduction <add>, %134, %cst_130 [1, 2] : vector<1x8x256xf32> to vector<1xf32>
    %136 = vector.shape_cast %135 : vector<1xf32> to vector<1x1x1xf32>
    %137 = vector.extract %136[0, 0, 0] : f32 from vector<1x1x1xf32>
    %cst_131 = arith.constant 4.8828125E-4 : f32
    %138 = arith.mulf %137, %cst_131 : f32
    %139 = arith.mulf %133, %133 : vector<8x256xf32>
    %140 = vector.shape_cast %139 : vector<8x256xf32> to vector<1x8x256xf32>
    %cst_132 = arith.constant dense<0.000000e+00> : vector<1xf32>
    %141 = vector.multi_reduction <add>, %140, %cst_132 [1, 2] : vector<1x8x256xf32> to vector<1xf32>
    %142 = vector.shape_cast %141 : vector<1xf32> to vector<1x1x1xf32>
    %143 = vector.extract %142[0, 0, 0] : f32 from vector<1x1x1xf32>
    %cst_133 = arith.constant 4.8828125E-4 : f32
    %144 = arith.mulf %143, %cst_133 : f32
    %145 = arith.mulf %138, %138 : f32
    %146 = arith.subf %144, %145 : f32
    %147 = vector.broadcast %138 : f32 to vector<8x256xf32>
    %148 = arith.subf %133, %147 : vector<8x256xf32>
    %cst_134 = arith.constant 9.99999974E-6 : f32
    %149 = arith.addf %146, %cst_134 : f32
    %150 = math.rsqrt %149 : f32
    %151 = vector.broadcast %150 : f32 to vector<8x256xf32>
    %152 = arith.mulf %148, %151 : vector<8x256xf32>
    %c0_135 = arith.constant 0 : index
    %c0_136 = arith.constant 0 : index
    %153 = vector.load %arg7[%c0_135, %c0_136] : memref<8x1xf32, #tpu.memory_space<vmem>>, vector<8x1xf32>
    %154 = vector.broadcast %153 : vector<8x1xf32> to vector<8x256xf32>
    %155 = arith.mulf %152, %154 : vector<8x256xf32>
    %c0_137 = arith.constant 0 : index
    %c0_138 = arith.constant 0 : index
    %156 = vector.load %arg8[%c0_137, %c0_138] : memref<8x1xf32, #tpu.memory_space<vmem>>, vector<8x1xf32>
    %157 = vector.broadcast %156 : vector<8x1xf32> to vector<8x256xf32>
    %158 = arith.addf %155, %157 : vector<8x256xf32>
    %c0_139 = arith.constant 0 : index
    %c0_140 = arith.constant 0 : index
    %c0_141 = arith.constant 0 : index
    %159 = vector.load %arg2[%c0_139, %c0_140, %c0_141] : memref<1x8x256xf32, #tpu.memory_space<vmem>>, vector<1x8x256xf32>
    %160 = vector.shape_cast %159 : vector<1x8x256xf32> to vector<8x256xf32>
    %161 = arith.addf %160, %158 : vector<8x256xf32>
    %cst_142 = arith.constant 5.000000e-01 : f32
    %162 = vector.broadcast %cst_142 : f32 to vector<8x256xf32>
    %163 = arith.mulf %162, %161 : vector<8x256xf32>
    %cst_143 = arith.constant 0.707106769 : f32
    %164 = vector.broadcast %cst_143 : f32 to vector<8x256xf32>
    %165 = arith.mulf %161, %164 : vector<8x256xf32>
    %166 = math.absf %165 : vector<8x256xf32>
    %cst_144 = arith.constant 0.327591091 : f32
    %167 = vector.broadcast %cst_144 : f32 to vector<8x256xf32>
    %168 = arith.mulf %167, %166 : vector<8x256xf32>
    %cst_145 = arith.constant 1.000000e+00 : f32
    %169 = vector.broadcast %cst_145 : f32 to vector<8x256xf32>
    %170 = arith.addf %169, %168 : vector<8x256xf32>
    %cst_146 = arith.constant 1.000000e+00 : f32
    %171 = vector.broadcast %cst_146 : f32 to vector<8x256xf32>
    %172 = arith.divf %171, %170 : vector<8x256xf32>
    %cst_147 = arith.constant 1.06140542 : f32
    %173 = vector.broadcast %cst_147 : f32 to vector<8x256xf32>
    %174 = arith.mulf %172, %173 : vector<8x256xf32>
    %cst_148 = arith.constant -1.45315206 : f32
    %175 = vector.broadcast %cst_148 : f32 to vector<8x256xf32>
    %176 = arith.addf %175, %174 : vector<8x256xf32>
    %177 = arith.mulf %172, %176 : vector<8x256xf32>
    %cst_149 = arith.constant 1.42141378 : f32
    %178 = vector.broadcast %cst_149 : f32 to vector<8x256xf32>
    %179 = arith.addf %178, %177 : vector<8x256xf32>
    %180 = arith.mulf %172, %179 : vector<8x256xf32>
    %cst_150 = arith.constant -0.284496725 : f32
    %181 = vector.broadcast %cst_150 : f32 to vector<8x256xf32>
    %182 = arith.addf %181, %180 : vector<8x256xf32>
    %183 = arith.mulf %172, %182 : vector<8x256xf32>
    %cst_151 = arith.constant 0.254829586 : f32
    %184 = vector.broadcast %cst_151 : f32 to vector<8x256xf32>
    %185 = arith.addf %184, %183 : vector<8x256xf32>
    %186 = arith.mulf %172, %185 : vector<8x256xf32>
    %cst_152 = arith.constant 0.000000e+00 : f32
    %187 = vector.broadcast %cst_152 : f32 to vector<8x256xf32>
    %188 = arith.subf %187, %166 : vector<8x256xf32>
    %189 = arith.mulf %188, %166 : vector<8x256xf32>
    %190 = math.exp %189 : vector<8x256xf32>
    %191 = arith.mulf %186, %190 : vector<8x256xf32>
    %cst_153 = arith.constant 1.000000e+00 : f32
    %192 = vector.broadcast %cst_153 : f32 to vector<8x256xf32>
    %193 = arith.subf %192, %191 : vector<8x256xf32>
    %cst_154 = arith.constant 0.000000e+00 : f32
    %194 = vector.broadcast %cst_154 : f32 to vector<8x256xf32>
    %195 = arith.cmpf oge, %165, %194 : vector<8x256xf32>
    %cst_155 = arith.constant 0.000000e+00 : f32
    %196 = vector.broadcast %cst_155 : f32 to vector<8x256xf32>
    %197 = arith.subf %196, %193 : vector<8x256xf32>
    %198 = arith.select %195, %193, %197 : vector<8x256xi1>, vector<8x256xf32>
    %cst_156 = arith.constant 1.000000e+00 : f32
    %199 = vector.broadcast %cst_156 : f32 to vector<8x256xf32>
    %200 = arith.addf %199, %198 : vector<8x256xf32>
    %201 = arith.mulf %163, %200 : vector<8x256xf32>
    %c0_157 = arith.constant 0 : index
    %c0_158 = arith.constant 0 : index
    %c0_159 = arith.constant 0 : index
    %202 = vector.load %arg9[%c0_157, %c0_158, %c0_159] : memref<1x8x256xf32, #tpu.memory_space<vmem>>, vector<1x8x256xf32>
    %203 = vector.shape_cast %202 : vector<1x8x256xf32> to vector<8x256xf32>
    %204 = vector.shape_cast %201 : vector<8x256xf32> to vector<1x8x256xf32>
    tpu.vector_store %arg9[%c0_157, %c0_158, %c0_159], %204 {strides = array<i32>} : memref<1x8x256xf32, #tpu.memory_space<vmem>>, vector<1x8x256xf32>,
    return
  }
  func.func @transform_0(%arg0: i32) -> (i32, i32, i32, i32) {
    %c0_i32 = arith.constant 0 : i32
    %c0_i32_0 = arith.constant 0 : i32
    %c0_i32_1 = arith.constant 0 : i32
    %c0_i32_2 = arith.constant 0 : i32
    return %arg0, %c0_i32, %c0_i32_0, %c0_i32_1 : i32, i32, i32, i32
  }
  func.func @transform_1(%arg0: i32) -> (i32, i32, i32) {
    %c0_i32 = arith.constant 0 : i32
    %c0_i32_0 = arith.constant 0 : i32
    %c0_i32_1 = arith.constant 0 : i32
    return %arg0, %c0_i32, %c0_i32_0 : i32, i32, i32
  }
  func.func @transform_2(%arg0: i32) -> (i32, i32) {
    %c0_i32 = arith.constant 0 : i32
    %c0_i32_0 = arith.constant 0 : i32
    %c0_i32_1 = arith.constant 0 : i32
    return %c0_i32, %c0_i32_0 : i32, i32
  }
  func.func @transform_3(%arg0: i32) -> (i32, i32) {
    %c0_i32 = arith.constant 0 : i32
    %c0_i32_0 = arith.constant 0 : i32
    %c0_i32_1 = arith.constant 0 : i32
    return %c0_i32, %c0_i32_0 : i32, i32
  }
  func.func @transform_4(%arg0: i32) -> (i32, i32) {
    %c0_i32 = arith.constant 0 : i32
    %c0_i32_0 = arith.constant 0 : i32
    %c0_i32_1 = arith.constant 0 : i32
    return %c0_i32, %c0_i32_0 : i32, i32
  }
  func.func @transform_5(%arg0: i32) -> (i32, i32) {
    %c0_i32 = arith.constant 0 : i32
    %c0_i32_0 = arith.constant 0 : i32
    %c0_i32_1 = arith.constant 0 : i32
    return %c0_i32, %c0_i32_0 : i32, i32
  }
  func.func @transform_6(%arg0: i32) -> (i32, i32) {
    %c0_i32 = arith.constant 0 : i32
    %c0_i32_0 = arith.constant 0 : i32
    %c0_i32_1 = arith.constant 0 : i32
    return %c0_i32, %c0_i32_0 : i32, i32
  }
  func.func @transform_7(%arg0: i32) -> (i32, i32) {
    %c0_i32 = arith.constant 0 : i32
    %c0_i32_0 = arith.constant 0 : i32
    %c0_i32_1 = arith.constant 0 : i32
    return %c0_i32, %c0_i32_0 : i32, i32
  }
  func.func @transform_8(%arg0: i32) -> (i32, i32, i32) {
    %c0_i32 = arith.constant 0 : i32
    %c0_i32_0 = arith.constant 0 : i32
    %c0_i32_1 = arith.constant 0 : i32
    return %arg0, %c0_i32, %c0_i32_0 : i32, i32, i32
  }
}

</mosaic_0001>

<bundles_post_ra>
// kernel: double_conv_forward.1
= control target key start
LH: loop header
LB: loop body
LE: loop exit
PB: predicated region body
PF: predicated region fallthrough
CT: control target
= control target key end

     0   :  { %s6328_s27 = smov 0   ;;  %s11428_s0 = inlined_call_operand.vmem [shape: f32[2,16,16,8], index: 0, kind: input, shape index: {}]   ;;  %s11429_s1 = inlined_call_operand.vmem [shape: f32[2,8,256], index: 1, kind: input, shape index: {}]   ;;  %s11430_s2 = inlined_call_operand.vmem [shape: f32[72,8], index: 2, kind: input, shape index: {}]   ;;  %s11431_s3 = inlined_call_operand.vmem [shape: f32[1,8], index: 3, kind: input, shape index: {}]   ;;  %s11432_s4 = inlined_call_operand.vmem [shape: f32[1,8], index: 4, kind: input, shape index: {}]   ;;  %s11433_s5 = inlined_call_operand.vmem [shape: f32[8,72], index: 5, kind: input, shape index: {}]   ;;  %s11434_s6 = inlined_call_operand.vmem [shape: f32[8,1], index: 6, kind: input, shape index: {}]   ;;  %s11435_s7 = inlined_call_operand.vmem [shape: f32[8,1], index: 7, kind: input, shape index: {}]   ;;  %s11436_s8 = inlined_call_operand.vmem [shape: f32[2,8,256], index: 8, kind: output, shape index: {}]  }
   0x1 LB: > { %s5992_s28 = sadd.s32 4294967295, %s6271_s27   ;;  %p5996_p0 = scmp.ge.s32.totalorder %s6271_s27, 1  ;;  %s6271_s27 = sphi %s6328_s27, %s18_s27  }
   0x2   : > { %p272_p1 = scmp.lt.s32.totalorder %s6271_s27, 3 }
   0x4   : > { %p273_p2 = pnand %p5996_p0, %p272_p1 }
   0x6   : > { %276 = sbr.rel (%p273_p2) target bundleno = 2943 (0xb7f), region = 52 }
   0xb   : > { %vm11626_vm0 = vcmask 64512   ;;  %v6273_v0 = vmov 0.0   ;;  %s6274_s29 = smov 8   ;;  %p311_p3 = scmp.lt.s32.totalorder %s5992_s28, 1  ;;  %vm329_vm1 = vcmask 58368   ;;  %vm11625_vm2 = vcmask 130112  }
   0xc   : > { %327 = vst.msk [vmem:[#allocation2] sm:$0xff] %vm11626_vm0, %v6273_v0  ;;  %s6275_s12 = smov 16   ;;  %s6276_s13 = smov 24   ;;  %vm11624_vm3 = vcmask 195712   ;;  %vm11623_vm4 = vcmask 261312   ;;  %vm11622_vm5 = vcmask 326912  }
   0xd   : > { %328 = vst.msk [vmem:[#allocation2 + $0x8] sm:$0xff] %vm11626_vm0, %v6273_v0  ;;  %s12765_s28 = smov (!%p311_p3, %s5992_s28), 1  ;;  %s6277_s14 = smov 32   ;;  %vm11621_vm6 = vcmask 392512   ;;  %vm11620_vm7 = vcmask 458112   ;;  %vm11619_vm8 = vcmask 523712  }
   0xe   : > { %331 = vst.msk [vmem:[#allocation2 + $0x18] sm:$0xff] %vm11626_vm0, %v6273_v0  ;;  %s6071_s30 = sshll.u32 %s12765_s28, 8  ;;  %s6278_s15 = smov 40   ;;  %vm11618_vm9 = vcmask 589312   ;;  %vm11617_vm10 = vcmask 588800  }
   0xf   : > { %332 = vst.msk [vmem:[#allocation2 + $0x20] sm:$0xff] %vm11626_vm0, %v6273_v0  ;;  %s6481_s11 = scalar_lea.vmem %s11428_s0, %s6071_s30  ;;  %s6279_s16 = smov 48  }
  0x10   : > { %334 = vst.msk [vmem:[#allocation2 + $0x30] sm:$0xff] %vm11626_vm0, %v6273_v0  ;;  %v382_v2 = vld [vmem:[%s6481_s11] sm:$0xff]  ;;  %v383_v5 = vld [vmem:[%s6481_s11 + $0x8] sm:$0xff]  ;;  %v389_v8 = vld [vmem:[%s6481_s11 + $0x38] sm:$0xff]  ;;  %s6280_s17 = smov 56   ;;  %s6281_s18 = smov 64  }
  0x11   : > { %335 = vst.msk [vmem:[#allocation2 + $0x38] sm:$0xff] %vm11626_vm0, %v6273_v0  ;;  %v386_v6 = vld [vmem:[%s6481_s11 + $0x20] sm:$0xff]  ;;  %v387_v7 = vld [vmem:[%s6481_s11 + $0x28] sm:$0xff]  ;;  %v384_v10 = vld [vmem:[%s6481_s11 + $0x10] sm:$0xff] }
  0x12   : > { %337 = vst.msk [vmem:[#allocation2 + $0x48] sm:$0xff] %vm11626_vm0, %v6273_v0  ;;  %v390_v9 = vld [vmem:[%s6481_s11 + $0x40] sm:$0xff]  ;;  %v392_v11 = vld [vmem:[%s6481_s11 + $0x50] sm:$0xff]  ;;  %v393_v12 = vld [vmem:[%s6481_s11 + $0x58] sm:$0xff] }
  0x13   : > { %338 = vst.msk [vmem:[#allocation2 + $0x50] sm:$0xff] %vm11626_vm0, %v6273_v0  ;;  %v385_v13 = vld [vmem:[%s6481_s11 + $0x18] sm:$0xff]  ;;  %v395_v14 = vld [vmem:[%s6481_s11 + $0x68] sm:$0xff]  ;;  %v396_v16 = vld [vmem:[%s6481_s11 + $0x70] sm:$0xff] }
  0x14   : > { %v511_v1 = vld [vmem:[#allocation2 + $0x1] sm:$0xff]  ;;  %340 = vst.msk [vmem:[#allocation2 + $0x60] sm:$0xff] %vm11626_vm0, %v6273_v0  ;;  %v388_v18 = vld [vmem:[%s6481_s11 + $0x30] sm:$0xff]  ;;  %v401_v23 = vld [vmem:[%s6481_s11 + $0x98] sm:$0xff] }
  0x15   : > { %575 = vrot.lane.b32.xlu0 %v511_v1, %s6274_s29  ;;  %341 = vst.msk [vmem:[#allocation2 + $0x68] sm:$0xff] %vm11626_vm0, %v6273_v0  ;;  %v398_v19 = vld [vmem:[%s6481_s11 + $0x80] sm:$0xff]  ;;  %v399_v20 = vld [vmem:[%s6481_s11 + $0x88] sm:$0xff]  ;;  %v404_v28 = vld [vmem:[%s6481_s11 + $0xb0] sm:$0xff] }
  0x16   : > { %343 = vst.msk [vmem:[#allocation2 + $0x78] sm:$0xff] %vm11626_vm0, %v6273_v0  ;;  %v391_v21 = vld [vmem:[%s6481_s11 + $0x48] sm:$0xff]  ;;  %v402_v26 = vld [vmem:[%s6481_s11 + $0xa0] sm:$0xff]  ;;  %v405_v32 = vld [vmem:[%s6481_s11 + $0xb8] sm:$0xff] }
  0x17   : > { %344 = vst.msk [vmem:[#allocation2 + $0x80] sm:$0xff] %vm11626_vm0, %v6273_v0  ;;  %v394_v27 = vld [vmem:[%s6481_s11 + $0x60] sm:$0xff]  ;;  %v397_v33 = vld [vmem:[%s6481_s11 + $0x78] sm:$0xff]  ;;  %v407_v34 = vld [vmem:[%s6481_s11 + $0xc8] sm:$0xff] }
  0x18   : > { %346 = vst.msk [vmem:[#allocation2 + $0x90] sm:$0xff] %vm11626_vm0, %v6273_v0  ;;  %v408_v38 = vld [vmem:[%s6481_s11 + $0xd0] sm:$0xff]  ;;  %v410_v40 = vld [vmem:[%s6481_s11 + $0xe0] sm:$0xff]  ;;  %v411_v44 = vld [vmem:[%s6481_s11 + $0xe8] sm:$0xff] }
  0x19   : > { %347 = vst.msk [vmem:[#allocation2 + $0x98] sm:$0xff] %vm11626_vm0, %v6273_v0  ;;  %v400_v39 = vld [vmem:[%s6481_s11 + $0x90] sm:$0xff]  ;;  %v403_v45 = vld [vmem:[%s6481_s11 + $0xa8] sm:$0xff]  ;;  %v406_v49 = vld [vmem:[%s6481_s11 + $0xc0] sm:$0xff] }
  0x1a   : > { %349 = vst.msk [vmem:[#allocation2 + $0xa8] sm:$0xff] %vm11626_vm0, %v6273_v0  ;;  %v409_v53 = vld [vmem:[%s6481_s11 + $0xd8] sm:$0xff]  ;;  %v447_v61 = vld [vmem:[#allocation2] sm:$0xff] }
  0x1b   : > { %350 = vst.msk [vmem:[#allocation2 + $0xb0] sm:$0xff] %vm11626_vm0, %v6273_v0 }
  0x1c   : > { %352 = vst.msk [vmem:[#allocation2 + $0xc0] sm:$0xff] %vm11626_vm0, %v6273_v0 }
  0x1d   : > { %353 = vst.msk [vmem:[#allocation2 + $0xc8] sm:$0xff] %vm11626_vm0, %v6273_v0 }
  0x1e   : > { %355 = vst.msk [vmem:[#allocation2 + $0xd8] sm:$0xff] %vm11626_vm0, %v6273_v0 }
  0x1f   : > { %356 = vst.msk [vmem:[#allocation2 + $0xe0] sm:$0xff] %vm11626_vm0, %v6273_v0 }
  0x20   : > { %358 = vst.msk [vmem:[#allocation2 + $0xf0] sm:$0xff] %vm11626_vm0, %v6273_v0 }
  0x21   : > { %359 = vst.msk [vmem:[#allocation2 + $0xf8] sm:$0xff] %vm11626_vm0, %v6273_v0 }
  0x22   : > { %361 = vst.msk [vmem:[#allocation2 + $0x108] sm:$0xff] %vm11626_vm0, %v6273_v0 }
  0x23   : > { %362 = vst.msk [vmem:[#allocation2 + $0x110] sm:$0xff] %vm11626_vm0, %v6273_v0 }
  0x24   : > { %364 = vst.msk [vmem:[#allocation2 + $0x120] sm:$0xff] %vm11626_vm0, %v6273_v0 }
  0x25   : > { %365 = vst.msk [vmem:[#allocation2 + $0x128] sm:$0xff] %vm11626_vm0, %v6273_v0 }
  0x26   : > { %367 = vst.msk [vmem:[#allocation2 + $0x138] sm:$0xff] %vm11626_vm0, %v6273_v0 }
  0x27   : > { %368 = vst.msk [vmem:[#allocation2 + $0x140] sm:$0xff] %vm11626_vm0, %v6273_v0 }
  0x28   : > { %370 = vst.msk [vmem:[#allocation2 + $0x150] sm:$0xff] %vm11626_vm0, %v6273_v0 }
  0x29   : > { %371 = vst.msk [vmem:[#allocation2 + $0x158] sm:$0xff] %vm11626_vm0, %v6273_v0 }
  0x2a   : > { %373 = vst.msk [vmem:[#allocation2 + $0x168] sm:$0xff] %vm11626_vm0, %v6273_v0 }
  0x2b   : > { %374 = vst.msk [vmem:[#allocation2 + $0x170] sm:$0xff] %vm11626_vm0, %v6273_v0 }
  0x2c   : > { %376 = vst.msk [vmem:[#allocation2 + $0x180] sm:$0xff] %vm11626_vm0, %v6273_v0 }
  0x2d   : > { %377 = vst.msk [vmem:[#allocation2 + $0x188] sm:$0xff] %vm11626_vm0, %v6273_v0 }
  0x2e   : > { %379 = vst.msk [vmem:[#allocation2 + $0x198] sm:$0xff] %vm11626_vm0, %v6273_v0 }
  0x2f   : > { %380 = vst.msk [vmem:[#allocation2 + $0x1a0] sm:$0xff] %vm11626_vm0, %v6273_v0 }
  0x30   : > { %3918 = vst.msk [vmem:[#allocation4] sm:$0xff] %vm11626_vm0, %v6273_v0 }
  0x31   : > { %3919 = vst.msk [vmem:[#allocation4 + $0x8] sm:$0xff] %vm11626_vm0, %v6273_v0 }
  0x32   : > { %3921 = vst.msk [vmem:[#allocation4 + $0x18] sm:$0xff] %vm11626_vm0, %v6273_v0 }
  0x33   : > { %3922 = vst.msk [vmem:[#allocation4 + $0x20] sm:$0xff] %vm11626_vm0, %v6273_v0 }
  0x34   : > { %3924 = vst.msk [vmem:[#allocation4 + $0x30] sm:$0xff] %vm11626_vm0, %v6273_v0 }
  0x35   : > { %3925 = vst.msk [vmem:[#allocation4 + $0x38] sm:$0xff] %vm11626_vm0, %v6273_v0 }
  0x36   : > { %3927 = vst.msk [vmem:[#allocation4 + $0x48] sm:$0xff] %vm11626_vm0, %v6273_v0 }
  0x37   : > { %3928 = vst.msk [vmem:[#allocation4 + $0x50] sm:$0xff] %vm11626_vm0, %v6273_v0 }
  0x38   : > { %3930 = vst.msk [vmem:[#allocation4 + $0x60] sm:$0xff] %vm11626_vm0, %v6273_v0 }
  0x39   : > { %3931 = vst.msk [vmem:[#allocation4 + $0x68] sm:$0xff] %vm11626_vm0, %v6273_v0 }
  0x3a   : > { %3933 = vst.msk [vmem:[#allocation4 + $0x78] sm:$0xff] %vm11626_vm0, %v6273_v0 }
  0x3b   : > { %3934 = vst.msk [vmem:[#allocation4 + $0x80] sm:$0xff] %vm11626_vm0, %v6273_v0 }
  0x3c   : > { %3936 = vst.msk [vmem:[#allocation4 + $0x90] sm:$0xff] %vm11626_vm0, %v6273_v0 }
  0x3d   : > { %3937 = vst.msk [vmem:[#allocation4 + $0x98] sm:$0xff] %vm11626_vm0, %v6273_v0 }
  0x3e   : > { %3939 = vst.msk [vmem:[#allocation4 + $0xa8] sm:$0xff] %vm11626_vm0, %v6273_v0 }
  0x3f   : > { %3940 = vst.msk [vmem:[#allocation4 + $0xb0] sm:$0xff] %vm11626_vm0, %v6273_v0 }
  0x40   : > { %3942 = vst.msk [vmem:[#allocation4 + $0xc0] sm:$0xff] %vm11626_vm0, %v6273_v0 }
  0x41   : > { %3943 = vst.msk [vmem:[#allocation4 + $0xc8] sm:$0xff] %vm11626_vm0, %v6273_v0 }
  0x42   : > { %3945 = vst.msk [vmem:[#allocation4 + $0xd8] sm:$0xff] %vm11626_vm0, %v6273_v0 }
  0x43   : > { %3946 = vst.msk [vmem:[#allocation4 + $0xe0] sm:$0xff] %vm11626_vm0, %v6273_v0 }
  0x44   : > { %3948 = vst.msk [vmem:[#allocation4 + $0xf0] sm:$0xff] %vm11626_vm0, %v6273_v0 }
  0x45   : > { %3949 = vst.msk [vmem:[#allocation4 + $0xf8] sm:$0xff] %vm11626_vm0, %v6273_v0 }
  0x46   : > { %3951 = vst.msk [vmem:[#allocation4 + $0x108] sm:$0xff] %vm11626_vm0, %v6273_v0 }
  0x47   : > { %3952 = vst.msk [vmem:[#allocation4 + $0x110] sm:$0xff] %vm11626_vm0, %v6273_v0 }
  0x48   : > { %3954 = vst.msk [vmem:[#allocation4 + $0x120] sm:$0xff] %vm11626_vm0, %v6273_v0 }
  0x49   : > { %3955 = vst.msk [vmem:[#allocation4 + $0x128] sm:$0xff] %vm11626_vm0, %v6273_v0 }
  0x4a   : > { %3957 = vst.msk [vmem:[#allocation4 + $0x138] sm:$0xff] %vm11626_vm0, %v6273_v0 }
  0x4b   : > { %3958 = vst.msk [vmem:[#allocation4 + $0x140] sm:$0xff] %vm11626_vm0, %v6273_v0 }
  0x4c   : > { %3960 = vst.msk [vmem:[#allocation4 + $0x150] sm:$0xff] %vm11626_vm0, %v6273_v0 }
  0x4d   : > { %3961 = vst.msk [vmem:[#allocation4 + $0x158] sm:$0xff] %vm11626_vm0, %v6273_v0 }
  0x4e   : > { %3963 = vst.msk [vmem:[#allocation4 + $0x168] sm:$0xff] %vm11626_vm0, %v6273_v0 }
  0x4f   : > { %3964 = vst.msk [vmem:[#allocation4 + $0x170] sm:$0xff] %vm11626_vm0, %v6273_v0 }
  0x50   : > { %3966 = vst.msk [vmem:[#allocation4 + $0x180] sm:$0xff] %vm11626_vm0, %v6273_v0 }
  0x51   : > { %3967 = vst.msk [vmem:[#allocation4 + $0x188] sm:$0xff] %vm11626_vm0, %v6273_v0 }
  0x52   : > { %3969 = vst.msk [vmem:[#allocation4 + $0x198] sm:$0xff] %vm11626_vm0, %v6273_v0 }
  0x53   : > { %3970 = vst.msk [vmem:[#allocation4 + $0x1a0] sm:$0xff] %vm11626_vm0, %v6273_v0 }
  0x54   : > { %415 = vst.msk [vmem:[#allocation2 + $0x19] sm:$0xff] %vm11626_vm0, %v382_v2 }
  0x55   : > { %330 = vst.msk [vmem:[#allocation2 + $0x10] sm:$0x3] %vm329_vm1, %v6273_v0 }
  0x56   : > { %333 = vst.msk [vmem:[#allocation2 + $0x28] sm:$0x3] %vm329_vm1, %v6273_v0 }
  0x57   : > { %336 = vst.msk [vmem:[#allocation2 + $0x40] sm:$0x3] %vm329_vm1, %v6273_v0 }
  0x58   : > { %339 = vst.msk [vmem:[#allocation2 + $0x58] sm:$0x3] %vm329_vm1, %v6273_v0 }
  0x59   : > { %342 = vst.msk [vmem:[#allocation2 + $0x70] sm:$0x3] %vm329_vm1, %v6273_v0 }
  0x5a   : > { %345 = vst.msk [vmem:[#allocation2 + $0x88] sm:$0x3] %vm329_vm1, %v6273_v0 }
  0x5b   : > { %v6507_v3 = vld [vmem:[#allocation2 + $0x19] sm:$0xff]  ;;  %348 = vst.msk [vmem:[#allocation2 + $0xa0] sm:$0x3] %vm329_vm1, %v6273_v0 }
  0x5c   : > { %579 = vrot.lane.b32.xlu1 %v6507_v3, %s6274_s29  ;;  %v512_v4 = vld [vmem:[#allocation2 + $0x9] sm:$0xff]  ;;  %351 = vst.msk [vmem:[#allocation2 + $0xb8] sm:$0x3] %vm329_vm1, %v6273_v0  ;;  %v6745_v1 = vld [vmem:[#allocation2 + $0x18] sm:$0xff] }
  0x5d   : > { %577 = vrot.lane.b32.xlu0 %v512_v4, %s6274_s29  ;;  %354 = vst.msk [vmem:[#allocation2 + $0xd0] sm:$0x3] %vm329_vm1, %v6273_v0  ;;  %v448_v4 = vld [vmem:[#allocation2 + $0x8] sm:$0xff] }
  0x5e   : > { %357 = vst.msk [vmem:[#allocation2 + $0xe8] sm:$0x3] %vm329_vm1, %v6273_v0 }
  0x5f   : > { %360 = vst.msk [vmem:[#allocation2 + $0x100] sm:$0x3] %vm329_vm1, %v6273_v0 }
  0x60   : > { %363 = vst.msk [vmem:[#allocation2 + $0x118] sm:$0x3] %vm329_vm1, %v6273_v0 }
  0x61   : > { %366 = vst.msk [vmem:[#allocation2 + $0x130] sm:$0x3] %vm329_vm1, %v6273_v0 }
  0x62   : > { %369 = vst.msk [vmem:[#allocation2 + $0x148] sm:$0x3] %vm329_vm1, %v6273_v0 }
  0x63   : > { %372 = vst.msk [vmem:[#allocation2 + $0x160] sm:$0x3] %vm329_vm1, %v6273_v0 }
  0x64   : > { %375 = vst.msk [vmem:[#allocation2 + $0x178] sm:$0x3] %vm329_vm1, %v6273_v0 }
  0x65   : > { %378 = vst.msk [vmem:[#allocation2 + $0x190] sm:$0x3] %vm329_vm1, %v6273_v0 }
  0x66   : > { %381 = vst.msk [vmem:[#allocation2 + $0x1a8] sm:$0x3] %vm329_vm1, %v6273_v0 }
  0x67   : > { %3920 = vst.msk [vmem:[#allocation4 + $0x10] sm:$0x3] %vm329_vm1, %v6273_v0 }
  0x68   : > { %3923 = vst.msk [vmem:[#allocation4 + $0x28] sm:$0x3] %vm329_vm1, %v6273_v0 }
  0x69   : > { %3926 = vst.msk [vmem:[#allocation4 + $0x40] sm:$0x3] %vm329_vm1, %v6273_v0 }
  0x6a   : > { %3929 = vst.msk [vmem:[#allocation4 + $0x58] sm:$0x3] %vm329_vm1, %v6273_v0 }
  0x6b   : > { %3932 = vst.msk [vmem:[#allocation4 + $0x70] sm:$0x3] %vm329_vm1, %v6273_v0 }
  0x6c   : > { %3935 = vst.msk [vmem:[#allocation4 + $0x88] sm:$0x3] %vm329_vm1, %v6273_v0 }
  0x6d   : > { %3938 = vst.msk [vmem:[#allocation4 + $0xa0] sm:$0x3] %vm329_vm1, %v6273_v0 }
  0x6e   : > { %3941 = vst.msk [vmem:[#allocation4 + $0xb8] sm:$0x3] %vm329_vm1, %v6273_v0 }
  0x6f   : > { %3944 = vst.msk [vmem:[#allocation4 + $0xd0] sm:$0x3] %vm329_vm1, %v6273_v0 }
  0x70   : > { %3947 = vst.msk [vmem:[#allocation4 + $0xe8] sm:$0x3] %vm329_vm1, %v6273_v0 }
  0x71   : > { %3950 = vst.msk [vmem:[#allocation4 + $0x100] sm:$0x3] %vm329_vm1, %v6273_v0 }
  0x72   : > { %3953 = vst.msk [vmem:[#allocation4 + $0x118] sm:$0x3] %vm329_vm1, %v6273_v0 }
  0x73   : > { %3956 = vst.msk [vmem:[#allocation4 + $0x130] sm:$0x3] %vm329_vm1, %v6273_v0 }
  0x74   : > { %3959 = vst.msk [vmem:[#allocation4 + $0x148] sm:$0x3] %vm329_vm1, %v6273_v0 }
  0x75   : > { %3962 = vst.msk [vmem:[#allocation4 + $0x160] sm:$0x3] %vm329_vm1, %v6273_v0 }
  0x76   : > { %3965 = vst.msk [vmem:[#allocation4 + $0x178] sm:$0x3] %vm329_vm1, %v6273_v0 }
  0x77   : > { %3968 = vst.msk [vmem:[#allocation4 + $0x190] sm:$0x3] %vm329_vm1, %v6273_v0 }
  0x78   : > { %3971 = vst.msk [vmem:[#allocation4 + $0x1a8] sm:$0x3] %vm329_vm1, %v6273_v0  ;;  %v705_v0 = vld [vmem:[#allocation2 + $0xa] sm:$0xff] }
  0x79   : > { %416 = vst.msk [vmem:[#allocation2 + $0x21] sm:$0xff] %vm11626_vm0, %v383_v5 }
  0x7a   : > { %419 = vst.msk [vmem:[#allocation2 + $0x49] sm:$0xff] %vm11626_vm0, %v386_v6 }
  0x7b   : > { %420 = vst.msk [vmem:[#allocation2 + $0x51] sm:$0xff] %vm11626_vm0, %v387_v7 }
  0x7c   : > { %422 = vst.msk [vmem:[#allocation2 + $0x69] sm:$0xff] %vm11626_vm0, %v389_v8 }
  0x7d   : > { %423 = vst.msk [vmem:[#allocation2 + $0x79] sm:$0xff] %vm11626_vm0, %v390_v9 }
  0x7e   : > { %417 = vst.msk [vmem:[#allocation2 + $0x31] sm:$0xff] %vm11626_vm0, %v384_v10 }
  0x7f   : > { %425 = vst.msk [vmem:[#allocation2 + $0x91] sm:$0xff] %vm11626_vm0, %v392_v11  ;;  %v704_v11 = vld [vmem:[#allocation2 + $0x2] sm:$0xff] }
  0x80   : > { %v6589_v15 = vld [vmem:[#allocation2 + $0x21] sm:$0xff]  ;;  %426 = vst.msk [vmem:[#allocation2 + $0x99] sm:$0xff] %vm11626_vm0, %v393_v12 }
  0x81   : > { %581 = vrot.lane.b32.xlu1 %v6589_v15, %s6274_s29  ;;  %v6595_v17 = vld [vmem:[#allocation2 + $0x49] sm:$0xff]  ;;  %418 = vst.msk [vmem:[#allocation2 + $0x39] sm:$0xff] %vm11626_vm0, %v385_v13  ;;  %v6756_v6 = vld [vmem:[#allocation2 + $0x1a] sm:$0xff] }
  0x82   : > { %587 = vrot.lane.b32.xlu0 %v6595_v17, %s6274_s29  ;;  %428 = vst.msk [vmem:[#allocation2 + $0xb1] sm:$0xff] %vm11626_vm0, %v395_v14  ;;  %v6611_v24 = vld [vmem:[#allocation2 + $0x51] sm:$0xff]  ;;  %v6768_v10 = vld [vmem:[#allocation2 + $0x20] sm:$0xff]  ;;  %v6776_v13 = vld [vmem:[#allocation2 + $0x48] sm:$0xff] }
  0x83   : > { %429 = vst.msk [vmem:[#allocation2 + $0xc1] sm:$0xff] %vm11626_vm0, %v396_v16  ;;  %v6616_v25 = vld [vmem:[#allocation2 + $0x69] sm:$0xff]  ;;  %v6783_v16 = vld [vmem:[#allocation2 + $0x52] sm:$0xff] }
  0x84   : > { %421 = vst.msk [vmem:[#allocation2 + $0x61] sm:$0xff] %vm11626_vm0, %v388_v18  ;;  %v6632_v30 = vld [vmem:[#allocation2 + $0x79] sm:$0xff]  ;;  %v6789_v18 = vld [vmem:[#allocation2 + $0x50] sm:$0xff] }
  0x85   : > { %v6607_v22 = vld [vmem:[#allocation2 + $0x31] sm:$0xff]  ;;  %431 = vst.msk [vmem:[#allocation2 + $0xd9] sm:$0xff] %vm11626_vm0, %v398_v19  ;;  %v6791_v19 = vld [vmem:[#allocation2 + $0x22] sm:$0xff] }
  0x86   : > { %583 = vrot.lane.b32.xlu2 %v6607_v22, %s6274_s29  ;;  %432 = vst.msk [vmem:[#allocation2 + $0xe1] sm:$0xff] %vm11626_vm0, %v399_v20  ;;  %v6636_v31 = vld [vmem:[#allocation2 + $0x91] sm:$0xff] }
  0x87   : > { %424 = vst.msk [vmem:[#allocation2 + $0x81] sm:$0xff] %vm11626_vm0, %v391_v21  ;;  %v6650_v36 = vld [vmem:[#allocation2 + $0x99] sm:$0xff]  ;;  %v576_v60 = vpop.permute.xlu0 %575  ;;  %v6747_v2 = vld [vmem:[#allocation2 + $0x30] sm:$0xff] }
  0x88   : > { %434 = vst.msk [vmem:[#allocation2 + $0xf9] sm:$0xff] %vm11626_vm0, %v401_v23  ;;  %v6629_v29 = vld [vmem:[#allocation2 + $0x39] sm:$0xff] }
  0x89   : > { %589 = vrot.lane.b32.xlu1 %v6611_v24, %s6274_s29  ;;  %435 = vst.msk [vmem:[#allocation2 + $0x109] sm:$0xff] %vm11626_vm0, %v402_v26  ;;  %v6654_v37 = vld [vmem:[#allocation2 + $0xb1] sm:$0xff]  ;;  %v6780_v14 = vld [vmem:[#allocation2 + $0x3a] sm:$0xff] }
  0x8a   : > { %593 = vrot.lane.b32.xlu0 %v6616_v25, %s6274_s29  ;;  %427 = vst.msk [vmem:[#allocation2 + $0xa9] sm:$0xff] %vm11626_vm0, %v394_v27  ;;  %v6668_v42 = vld [vmem:[#allocation2 + $0xc1] sm:$0xff]  ;;  %v6760_v8 = vld [vmem:[#allocation2 + $0x32] sm:$0xff] }
  0x8b   : > { %437 = vst.msk [vmem:[#allocation2 + $0x121] sm:$0xff] %vm11626_vm0, %v404_v28  ;;  %v6647_v35 = vld [vmem:[#allocation2 + $0x61] sm:$0xff]  ;;  %v6772_v12 = vld [vmem:[#allocation2 + $0x38] sm:$0xff] }
  0x8c   : > { %438 = vst.msk [vmem:[#allocation2 + $0x129] sm:$0xff] %vm11626_vm0, %v405_v32  ;;  %v6672_v43 = vld [vmem:[#allocation2 + $0xd9] sm:$0xff]  ;;  %v6799_v21 = vld [vmem:[#allocation2 + $0x68] sm:$0xff] }
  0x8d   : > { %430 = vst.msk [vmem:[#allocation2 + $0xc9] sm:$0xff] %vm11626_vm0, %v397_v33  ;;  %v6684_v47 = vld [vmem:[#allocation2 + $0xe1] sm:$0xff]  ;;  %v6814_v28 = vld [vmem:[#allocation2 + $0x78] sm:$0xff]  ;;  %v6816_v32 = vld [vmem:[#allocation2 + $0x4a] sm:$0xff] }
  0x8e   : > { %585 = vrot.lane.b32.xlu2 %v6629_v29, %s6274_s29  ;;  %440 = vst.msk [vmem:[#allocation2 + $0x141] sm:$0xff] %vm11626_vm0, %v407_v34  ;;  %v6665_v41 = vld [vmem:[#allocation2 + $0x81] sm:$0xff]  ;;  %v6824_v34 = vld [vmem:[#allocation2 + $0x90] sm:$0xff] }
  0x8f   : > { %441 = vst.msk [vmem:[#allocation2 + $0x151] sm:$0xff] %vm11626_vm0, %v408_v38  ;;  %v6688_v48 = vld [vmem:[#allocation2 + $0xf9] sm:$0xff]  ;;  %v6803_v23 = vld [vmem:[#allocation2 + $0x62] sm:$0xff] }
  0x90   : > { %433 = vst.msk [vmem:[#allocation2 + $0xf1] sm:$0xff] %vm11626_vm0, %v400_v39  ;;  %v6698_v51 = vld [vmem:[#allocation2 + $0x109] sm:$0xff]  ;;  %v6795_v20 = vld [vmem:[#allocation2 + $0x60] sm:$0xff] }
  0x91   : > { %595 = vrot.lane.b32.xlu1 %v6632_v30, %s6274_s29  ;;  %443 = vst.msk [vmem:[#allocation2 + $0x169] sm:$0xff] %vm11626_vm0, %v410_v40  ;;  %v6682_v46 = vld [vmem:[#allocation2 + $0xa9] sm:$0xff]  ;;  %v6807_v26 = vld [vmem:[#allocation2 + $0x7a] sm:$0xff] }
  0x92   : > { %599 = vrot.lane.b32.xlu0 %v6636_v31, %s6274_s29  ;;  %444 = vst.msk [vmem:[#allocation2 + $0x171] sm:$0xff] %vm11626_vm0, %v411_v44  ;;  %v6702_v52 = vld [vmem:[#allocation2 + $0x121] sm:$0xff]  ;;  %v6839_v44 = vld [vmem:[#allocation2 + $0x98] sm:$0xff] }
  0x93   : > { %436 = vst.msk [vmem:[#allocation2 + $0x111] sm:$0xff] %vm11626_vm0, %v403_v45  ;;  %v6712_v55 = vld [vmem:[#allocation2 + $0x129] sm:$0xff]  ;;  %v6820_v33 = vld [vmem:[#allocation2 + $0x80] sm:$0xff] }
  0x94   : > { %439 = vst.msk [vmem:[#allocation2 + $0x139] sm:$0xff] %vm11626_vm0, %v406_v49  ;;  %v6696_v50 = vld [vmem:[#allocation2 + $0xc9] sm:$0xff]  ;;  %v6832_v39 = vld [vmem:[#allocation2 + $0x9a] sm:$0xff] }
  0x95   : > { %442 = vst.msk [vmem:[#allocation2 + $0x159] sm:$0xff] %vm11626_vm0, %v409_v53  ;;  %v6716_v56 = vld [vmem:[#allocation2 + $0x141] sm:$0xff]  ;;  %v6841_v45 = vld [vmem:[#allocation2 + $0x6a] sm:$0xff] }
  0x96   : > { %591 = vrot.lane.b32.xlu2 %v6647_v35, %s6274_s29  ;;  %v6724_v58 = vld [vmem:[#allocation2 + $0x151] sm:$0xff]  ;;  %479 = vst.msk [vmem:[#allocation3] sm:$0xff] %vm11626_vm0, %v447_v61  ;;  %v6828_v38 = vld [vmem:[#allocation2 + $0x82] sm:$0xff] }
  0x97   : > { %v6710_v54 = vld [vmem:[#allocation2 + $0xf1] sm:$0xff]  ;;  %11665 = vst [vmem:[#allocation6_spill] sm:$0xff] %v6724_v58  ;;  %v6845_v49 = vld [vmem:[#allocation2 + $0xa8] sm:$0xff] }
  0x98   : > { %v6728_v59 = vld [vmem:[#allocation2 + $0x169] sm:$0xff]  ;;  %672 = vst.msk [vmem:[#allocation3] sm:$0xff] %vm11625_vm2, %v576_v60 }
  0x99   : > { %601 = vrot.lane.b32.xlu1 %v6650_v36, %s6274_s29  ;;  %v6738_v63 = vld [vmem:[#allocation2 + $0x171] sm:$0xff]  ;;  %481 = vst.msk [vmem:[#allocation3 + $0x10] sm:$0xff] %vm11626_vm0, %v6745_v1  ;;  %v6857_v61 = vld [vmem:[#allocation2 + $0xc2] sm:$0xff] }
  0x9a   : > { %605 = vrot.lane.b32.xlu0 %v6654_v37, %s6274_s29  ;;  %v6722_v57 = vld [vmem:[#allocation2 + $0x111] sm:$0xff]  ;;  %11666 = vst [vmem:[#allocation7_spill] sm:$0xff] %v6738_v63 }
  0x9b   : > { %v6734_v62 = vld [vmem:[#allocation2 + $0x139] sm:$0xff]  ;;  %483 = vst.msk [vmem:[#allocation3 + $0x20] sm:$0xff] %vm11626_vm0, %v6747_v2  ;;  %v6849_v53 = vld [vmem:[#allocation2 + $0xb0] sm:$0xff] }
  0x9c   : > { %v6749_v5 = vld [vmem:[#allocation2 + $0x159] sm:$0xff]  ;;  %480 = vst.msk [vmem:[#allocation3 + $0x8] sm:$0xff] %vm11626_vm0, %v448_v4  ;;  %v6853_v60 = vld [vmem:[#allocation2 + $0xaa] sm:$0xff] }
  0x9d   : > { %11667 = vst [vmem:[#allocation8_spill] sm:$0xff] %v6756_v6  ;;  %v6864_v4 = vld [vmem:[#allocation2 + $0xc0] sm:$0xff] }
  0x9e   : > { %597 = vrot.lane.b32.xlu2 %v6665_v41, %s6274_s29  ;;  %11668 = vst [vmem:[#allocation9_spill] sm:$0xff] %v6760_v8 }
  0x9f   : > { %482 = vst.msk [vmem:[#allocation3 + $0x18] sm:$0xff] %vm11626_vm0, %v6768_v10 }
  0xa0   : > { %484 = vst.msk [vmem:[#allocation3 + $0x28] sm:$0xff] %vm11626_vm0, %v6772_v12 }
  0xa1   : > { %607 = vrot.lane.b32.xlu1 %v6668_v42, %s6274_s29  ;;  %485 = vst.msk [vmem:[#allocation3 + $0x30] sm:$0xff] %vm11626_vm0, %v6776_v13 }
  0xa2   : > { %611 = vrot.lane.b32.xlu0 %v6672_v43, %s6274_s29  ;;  %11669 = vst [vmem:[#allocation10_spill] sm:$0xff] %v6780_v14 }
  0xa3   : > { %11670 = vst [vmem:[#allocation11_spill] sm:$0xff] %v6783_v16 }
  0xa4   : > { %11671 = vst [vmem:[#allocation12_spill] sm:$0xff] %v6791_v19 }
  0xa5   : > { %486 = vst.msk [vmem:[#allocation3 + $0x38] sm:$0xff] %vm11626_vm0, %v6789_v18 }
  0xa6   : > { %603 = vrot.lane.b32.xlu2 %v6682_v46, %s6274_s29  ;;  %487 = vst.msk [vmem:[#allocation3 + $0x40] sm:$0xff] %vm11626_vm0, %v6795_v20 }
  0xa7   : > { %488 = vst.msk [vmem:[#allocation3 + $0x48] sm:$0xff] %vm11626_vm0, %v6799_v21 }
  0xa8   : > { %11672 = vst [vmem:[#allocation13_spill] sm:$0xff] %v6803_v23 }
  0xa9   : > { %613 = vrot.lane.b32.xlu1 %v6684_v47, %s6274_s29  ;;  %11673 = vst [vmem:[#allocation14_spill] sm:$0xff] %v6807_v26 }
  0xaa   : > { %617 = vrot.lane.b32.xlu0 %v6688_v48, %s6274_s29  ;;  %11674 = vst [vmem:[#allocation15_spill] sm:$0xff] %v6816_v32 }
  0xab   : > { %489 = vst.msk [vmem:[#allocation3 + $0x50] sm:$0xff] %vm11626_vm0, %v6814_v28 }
  0xac   : > { %490 = vst.msk [vmem:[#allocation3 + $0x58] sm:$0xff] %vm11626_vm0, %v6820_v33 }
  0xad   : > { %491 = vst.msk [vmem:[#allocation3 + $0x60] sm:$0xff] %vm11626_vm0, %v6824_v34 }
  0xae   : > { %609 = vrot.lane.b32.xlu2 %v6696_v50, %s6274_s29  ;;  %11675 = vst [vmem:[#allocation16_spill] sm:$0xff] %v6828_v38 }
  0xaf   : > { %11676 = vst [vmem:[#allocation17_spill] sm:$0xff] %v6832_v39 }
  0xb0   : > { %11677 = vst [vmem:[#allocation18_spill] sm:$0xff] %v6841_v45 }
  0xb1   : > { %619 = vrot.lane.b32.xlu1 %v6698_v51, %s6274_s29  ;;  %492 = vst.msk [vmem:[#allocation3 + $0x68] sm:$0xff] %vm11626_vm0, %v6839_v44 }
  0xb2   : > { %623 = vrot.lane.b32.xlu0 %v6702_v52, %s6274_s29  ;;  %493 = vst.msk [vmem:[#allocation3 + $0x70] sm:$0xff] %vm11626_vm0, %v6845_v49 }
  0xb3   : > { %494 = vst.msk [vmem:[#allocation3 + $0x78] sm:$0xff] %vm11626_vm0, %v6849_v53 }
  0xb4   : > { %11678 = vst [vmem:[#allocation19_spill] sm:$0xff] %v6853_v60 }
  0xb5   : > { %11679 = vst [vmem:[#allocation20_spill] sm:$0xff] %v6857_v61 }
  0xb6   : > { %615 = vrot.lane.b32.xlu2 %v6710_v54, %s6274_s29  ;;  %495 = vst.msk [vmem:[#allocation3 + $0x80] sm:$0xff] %vm11626_vm0, %v6864_v4 }
  0xb9   : > { %625 = vrot.lane.b32.xlu1 %v6712_v55, %s6274_s29 }
  0xba   : > { %629 = vrot.lane.b32.xlu0 %v6716_v56, %s6274_s29 }
  0xbe   : > { %621 = vrot.lane.b32.xlu2 %v6722_v57, %s6274_s29 }
  0xc1   : > { %631 = vrot.lane.b32.xlu1 %v6724_v58, %s6274_s29 }
  0xc2   : > { %635 = vrot.lane.b32.xlu0 %v6728_v59, %s6274_s29 }
  0xc6   : > { %627 = vrot.lane.b32.xlu2 %v6734_v62, %s6274_s29 }
  0xc9   : > { %637 = vrot.lane.b32.xlu1 %v6738_v63, %s6274_s29 }
  0xca   : > { %770 = vrot.lane.b32.xlu0 %v705_v0, %s6275_s12 }
  0xce   : > { %633 = vrot.lane.b32.xlu2 %v6749_v5, %s6274_s29  ;;  %v580_v7 = vpop.permute.xlu1 %579 }
  0xcf   : > { %674 = vst.msk [vmem:[#allocation3 + $0x10] sm:$0xff] %vm11625_vm2, %v580_v7  ;;  %v578_v9 = vpop.permute.xlu0 %577 }
  0xd0   : > { %673 = vst.msk [vmem:[#allocation3 + $0x8] sm:$0xff] %vm11625_vm2, %v578_v9  ;;  %v6866_v9 = vld [vmem:[#allocation2 + $0x92] sm:$0xff] }
  0xd1   : > { %772 = vrot.lane.b32.xlu1 %v6756_v6, %s6275_s12  ;;  %11680 = vst [vmem:[#allocation21_spill] sm:$0xff] %v6866_v9 }
  0xd2   : > { %776 = vrot.lane.b32.xlu0 %v6760_v8, %s6275_s12  ;;  %v6978_v8 = vld [vmem:[#allocation2 + $0x158] sm:$0xff] }
  0xd3   : > { %508 = vst.msk [vmem:[#allocation3 + $0xe8] sm:$0xff] %vm11626_vm0, %v6978_v8 }
  0xd6   : > { %768 = vrot.lane.b32.xlu2 %v704_v11, %s6275_s12  ;;  %v6870_v11 = vld [vmem:[#allocation2 + $0xc8] sm:$0xff] }
  0xd7   : > { %496 = vst.msk [vmem:[#allocation3 + $0x88] sm:$0xff] %vm11626_vm0, %v6870_v11 }
  0xd9   : > { %778 = vrot.lane.b32.xlu1 %v6780_v14, %s6275_s12 }
  0xda   : > { %782 = vrot.lane.b32.xlu0 %v6783_v16, %s6275_s12  ;;  %v6951_v16 = vld [vmem:[#allocation2 + $0x138] sm:$0xff] }
  0xdb   : > { %505 = vst.msk [vmem:[#allocation3 + $0xd0] sm:$0xff] %vm11626_vm0, %v6951_v16 }
  0xde   : > { %774 = vrot.lane.b32.xlu2 %v6791_v19, %s6275_s12  ;;  %v6981_v19 = vld [vmem:[#allocation2 + $0x168] sm:$0xff] }
  0xdf   : > { %509 = vst.msk [vmem:[#allocation3 + $0xf0] sm:$0xff] %vm11626_vm0, %v6981_v19 }
  0xe0   : > { %v584_v27 = vpop.permute.xlu2 %583 }
  0xe1   : > { %784 = vrot.lane.b32.xlu1 %v6803_v23, %s6275_s12  ;;  %676 = vst.msk [vmem:[#allocation3 + $0x20] sm:$0xff] %vm11625_vm2, %v584_v27 }
  0xe2   : > { %788 = vrot.lane.b32.xlu0 %v6807_v26, %s6275_s12  ;;  %v6924_v26 = vld [vmem:[#allocation2 + $0x110] sm:$0xff] }
  0xe3   : > { %502 = vst.msk [vmem:[#allocation3 + $0xb8] sm:$0xff] %vm11626_vm0, %v6924_v26 }
  0xe6   : > { %780 = vrot.lane.b32.xlu2 %v6816_v32, %s6275_s12  ;;  %v6954_v32 = vld [vmem:[#allocation2 + $0x140] sm:$0xff] }
  0xe7   : > { %506 = vst.msk [vmem:[#allocation3 + $0xd8] sm:$0xff] %vm11626_vm0, %v6954_v32 }
  0xe8   : > { %v586_v40 = vpop.permute.xlu2 %585 }
  0xe9   : > { %790 = vrot.lane.b32.xlu1 %v6828_v38, %s6275_s12  ;;  %677 = vst.msk [vmem:[#allocation3 + $0x28] sm:$0xff] %vm11625_vm2, %v586_v40  ;;  %v6873_v40 = vld [vmem:[#allocation2 + $0xd8] sm:$0xff] }
  0xea   : > { %794 = vrot.lane.b32.xlu0 %v6832_v39, %s6275_s12  ;;  %497 = vst.msk [vmem:[#allocation3 + $0x90] sm:$0xff] %vm11626_vm0, %v6873_v40  ;;  %v6893_v38 = vld [vmem:[#allocation2 + $0xb2] sm:$0xff] }
  0xeb   : > { %11683 = vst [vmem:[#allocation24_spill] sm:$0xff] %v6893_v38  ;;  %v6897_v39 = vld [vmem:[#allocation2 + $0xf0] sm:$0xff] }
  0xec   : > { %499 = vst.msk [vmem:[#allocation3 + $0xa0] sm:$0xff] %vm11626_vm0, %v6897_v39 }
  0xee   : > { %786 = vrot.lane.b32.xlu2 %v6841_v45, %s6275_s12  ;;  %v6927_v45 = vld [vmem:[#allocation2 + $0x120] sm:$0xff] }
  0xef   : > { %503 = vst.msk [vmem:[#allocation3 + $0xc0] sm:$0xff] %vm11626_vm0, %v6927_v45 }
  0xf0   : > { %v592_v0 = vpop.permute.xlu2 %591 }
  0xf1   : > { %796 = vrot.lane.b32.xlu1 %v6853_v60, %s6275_s12  ;;  %680 = vst.msk [vmem:[#allocation3 + $0x40] sm:$0xff] %vm11625_vm2, %v592_v0  ;;  %v6876_v0 = vld [vmem:[#allocation2 + $0xca] sm:$0xff]  ;;  %v6882_v60 = vld [vmem:[#allocation2 + $0xe2] sm:$0xff] }
  0xf2   : > { %800 = vrot.lane.b32.xlu0 %v6857_v61, %s6275_s12  ;;  %11681 = vst [vmem:[#allocation22_spill] sm:$0xff] %v6876_v0 }
  0xf3   : > { %v582_v7 = vpop.permute.xlu1 %581  ;;  %11682 = vst [vmem:[#allocation23_spill] sm:$0xff] %v6882_v60 }
  0xf4   : > { %675 = vst.msk [vmem:[#allocation3 + $0x18] sm:$0xff] %vm11625_vm2, %v582_v7  ;;  %v588_v27 = vpop.permute.xlu0 %587  ;;  %v6891_v7 = vld [vmem:[#allocation2 + $0xe0] sm:$0xff] }
  0xf5   : > { %678 = vst.msk [vmem:[#allocation3 + $0x30] sm:$0xff] %vm11625_vm2, %v588_v27 }
  0xf6   : > { %792 = vrot.lane.b32.xlu2 %v6866_v9, %s6275_s12  ;;  %498 = vst.msk [vmem:[#allocation3 + $0x98] sm:$0xff] %vm11626_vm0, %v6891_v7  ;;  %v6900_v9 = vld [vmem:[#allocation2 + $0xf8] sm:$0xff] }
  0xf7   : > { %500 = vst.msk [vmem:[#allocation3 + $0xa8] sm:$0xff] %vm11626_vm0, %v6900_v9 }
  0xf8   : > { %v598_v61 = vpop.permute.xlu2 %597 }
  0xf9   : > { %802 = vrot.lane.b32.xlu1 %v6876_v0, %s6275_s12  ;;  %683 = vst.msk [vmem:[#allocation3 + $0x58] sm:$0xff] %vm11625_vm2, %v598_v61  ;;  %v6903_v61 = vld [vmem:[#allocation2 + $0xf2] sm:$0xff]  ;;  %v6909_v0 = vld [vmem:[#allocation2 + $0x10a] sm:$0xff] }
  0xfa   : > { %806 = vrot.lane.b32.xlu0 %v6882_v60, %s6275_s12  ;;  %11684 = vst [vmem:[#allocation25_spill] sm:$0xff] %v6903_v61 }
  0xfb   : > { %v590_v27 = vpop.permute.xlu1 %589  ;;  %11685 = vst [vmem:[#allocation26_spill] sm:$0xff] %v6909_v0 }
  0xfc   : > { %679 = vst.msk [vmem:[#allocation3 + $0x38] sm:$0xff] %vm11625_vm2, %v590_v27  ;;  %v594_v23 = vpop.permute.xlu0 %593 }
  0xfd   : > { %681 = vst.msk [vmem:[#allocation3 + $0x48] sm:$0xff] %vm11625_vm2, %v594_v23  ;;  %v6918_v23 = vld [vmem:[#allocation2 + $0x108] sm:$0xff] }
  0xfe   : > { %798 = vrot.lane.b32.xlu2 %v6893_v38, %s6275_s12  ;;  %v6920_v38 = vld [vmem:[#allocation2 + $0xda] sm:$0xff]  ;;  %501 = vst.msk [vmem:[#allocation3 + $0xb0] sm:$0xff] %vm11626_vm0, %v6918_v23 }
  0xff   : > { %11686 = vst [vmem:[#allocation27_spill] sm:$0xff] %v6920_v38 }
 0x100   : > { %v604_v60 = vpop.permute.xlu2 %603 }
 0x101   : > { %808 = vrot.lane.b32.xlu1 %v6903_v61, %s6275_s12  ;;  %686 = vst.msk [vmem:[#allocation3 + $0x70] sm:$0xff] %vm11625_vm2, %v604_v60  ;;  %v6930_v60 = vld [vmem:[#allocation2 + $0x112] sm:$0xff]  ;;  %v6936_v61 = vld [vmem:[#allocation2 + $0x12a] sm:$0xff] }
 0x102   : > { %812 = vrot.lane.b32.xlu0 %v6909_v0, %s6275_s12  ;;  %11687 = vst [vmem:[#allocation28_spill] sm:$0xff] %v6930_v60 }
 0x103   : > { %v596_v27 = vpop.permute.xlu1 %595  ;;  %11688 = vst [vmem:[#allocation29_spill] sm:$0xff] %v6936_v61 }
 0x104   : > { %682 = vst.msk [vmem:[#allocation3 + $0x50] sm:$0xff] %vm11625_vm2, %v596_v27  ;;  %v600_v14 = vpop.permute.xlu0 %599 }
 0x105   : > { %684 = vst.msk [vmem:[#allocation3 + $0x60] sm:$0xff] %vm11625_vm2, %v600_v14  ;;  %v6945_v14 = vld [vmem:[#allocation2 + $0x128] sm:$0xff] }
 0x106   : > { %804 = vrot.lane.b32.xlu2 %v6920_v38, %s6275_s12  ;;  %v6947_v38 = vld [vmem:[#allocation2 + $0xfa] sm:$0xff]  ;;  %504 = vst.msk [vmem:[#allocation3 + $0xc8] sm:$0xff] %vm11626_vm0, %v6945_v14 }
 0x107   : > { %11689 = vst [vmem:[#allocation30_spill] sm:$0xff] %v6947_v38 }
 0x108   : > { %v610_v0 = vpop.permute.xlu2 %609 }
 0x109   : > { %814 = vrot.lane.b32.xlu1 %v6930_v60, %s6275_s12  ;;  %689 = vst.msk [vmem:[#allocation3 + $0x88] sm:$0xff] %vm11625_vm2, %v610_v0  ;;  %v6957_v0 = vld [vmem:[#allocation2 + $0x13a] sm:$0xff]  ;;  %v6963_v60 = vld [vmem:[#allocation2 + $0x152] sm:$0xff] }
 0x10a   : > { %818 = vrot.lane.b32.xlu0 %v6936_v61, %s6275_s12  ;;  %11690 = vst [vmem:[#allocation31_spill] sm:$0xff] %v6957_v0 }
 0x10b   : > { %v602_v27 = vpop.permute.xlu1 %601  ;;  %11691 = vst [vmem:[#allocation32_spill] sm:$0xff] %v6963_v60 }
 0x10c   : > { %685 = vst.msk [vmem:[#allocation3 + $0x68] sm:$0xff] %vm11625_vm2, %v602_v27  ;;  %v606_v6 = vpop.permute.xlu0 %605 }
 0x10d   : > { %687 = vst.msk [vmem:[#allocation3 + $0x78] sm:$0xff] %vm11625_vm2, %v606_v6  ;;  %v6972_v6 = vld [vmem:[#allocation2 + $0x150] sm:$0xff] }
 0x10e   : > { %810 = vrot.lane.b32.xlu2 %v6947_v38, %s6275_s12  ;;  %v6974_v38 = vld [vmem:[#allocation2 + $0x122] sm:$0xff]  ;;  %507 = vst.msk [vmem:[#allocation3 + $0xe0] sm:$0xff] %vm11626_vm0, %v6972_v6 }
 0x10f   : > { %11692 = vst [vmem:[#allocation33_spill] sm:$0xff] %v6974_v38 }
 0x110   : > { %v616_v61 = vpop.permute.xlu2 %615 }
 0x111   : > { %820 = vrot.lane.b32.xlu1 %v6957_v0, %s6275_s12  ;;  %692 = vst.msk [vmem:[#allocation3 + $0xa0] sm:$0xff] %vm11625_vm2, %v616_v61  ;;  %v6984_v61 = vld [vmem:[#allocation2 + $0x15a] sm:$0xff]  ;;  %v6990_v0 = vld [vmem:[#allocation2 + $0x172] sm:$0xff] }
 0x112   : > { %824 = vrot.lane.b32.xlu0 %v6963_v60, %s6275_s12  ;;  %11693 = vst [vmem:[#allocation34_spill] sm:$0xff] %v6984_v61 }
 0x113   : > { %v608_v27 = vpop.permute.xlu1 %607  ;;  %11694 = vst [vmem:[#allocation35_spill] sm:$0xff] %v6990_v0 }
 0x114   : > { %688 = vst.msk [vmem:[#allocation3 + $0x80] sm:$0xff] %vm11625_vm2, %v608_v27  ;;  %v612_v63 = vpop.permute.xlu0 %611 }
 0x115   : > { %690 = vst.msk [vmem:[#allocation3 + $0x90] sm:$0xff] %vm11625_vm2, %v612_v63  ;;  %v6999_v63 = vld [vmem:[#allocation2 + $0x170] sm:$0xff] }
 0x116   : > { %816 = vrot.lane.b32.xlu2 %v6974_v38, %s6275_s12  ;;  %v7001_v38 = vld [vmem:[#allocation2 + $0x142] sm:$0xff]  ;;  %510 = vst.msk [vmem:[#allocation3 + $0xf8] sm:$0xff] %vm11626_vm0, %v6999_v63 }
 0x118   : > { %v622_v60 = vpop.permute.xlu2 %621 }
 0x119   : > { %826 = vrot.lane.b32.xlu1 %v6984_v61, %s6275_s12  ;;  %695 = vst.msk [vmem:[#allocation3 + $0xb8] sm:$0xff] %vm11625_vm2, %v622_v60 }
 0x11a   : > { %830 = vrot.lane.b32.xlu0 %v6990_v0, %s6275_s12  ;;  %v7014_v0 = vld [vmem:[#allocation2 + $0x16a] sm:$0xff] }
 0x11b   : > { %v614_v27 = vpop.permute.xlu1 %613 }
 0x11c   : > { %691 = vst.msk [vmem:[#allocation3 + $0x98] sm:$0xff] %vm11625_vm2, %v614_v27  ;;  %v618_v58 = vpop.permute.xlu0 %617 }
 0x11d   : > { %693 = vst.msk [vmem:[#allocation3 + $0xa8] sm:$0xff] %vm11625_vm2, %v618_v58 }
 0x11e   : > { %822 = vrot.lane.b32.xlu2 %v7001_v38, %s6275_s12 }
 0x120   : > { %v628_v60 = vpop.permute.xlu2 %627 }
 0x121   : > { %961 = vrot.lane.b32.xlu1 %v6745_v1, %s6276_s13  ;;  %698 = vst.msk [vmem:[#allocation3 + $0xd0] sm:$0xff] %vm11625_vm2, %v628_v60 }
 0x122   : > { %965 = vrot.lane.b32.xlu0 %v6747_v2, %s6276_s13 }
 0x123   : > { %v620_v61 = vpop.permute.xlu1 %619 }
 0x124   : > { %694 = vst.msk [vmem:[#allocation3 + $0xb0] sm:$0xff] %vm11625_vm2, %v620_v61  ;;  %v624_v27 = vpop.permute.xlu0 %623 }
 0x125   : > { %696 = vst.msk [vmem:[#allocation3 + $0xc0] sm:$0xff] %vm11625_vm2, %v624_v27 }
 0x126   : > { %828 = vrot.lane.b32.xlu2 %v7014_v0, %s6275_s12 }
 0x128   : > { %v634_v58 = vpop.permute.xlu2 %633 }
 0x129   : > { %967 = vrot.lane.b32.xlu1 %v6772_v12, %s6276_s13  ;;  %701 = vst.msk [vmem:[#allocation3 + $0xe8] sm:$0xff] %vm11625_vm2, %v634_v58 }
 0x12a   : > { %971 = vrot.lane.b32.xlu0 %v6789_v18, %s6276_s13 }
 0x12b   : > { %v626_v1 = vpop.permute.xlu1 %625 }
 0x12c   : > { %697 = vst.msk [vmem:[#allocation3 + $0xc8] sm:$0xff] %vm11625_vm2, %v626_v1  ;;  %v630_v2 = vpop.permute.xlu0 %629 }
 0x12d   : > { %699 = vst.msk [vmem:[#allocation3 + $0xd8] sm:$0xff] %vm11625_vm2, %v630_v2 }
 0x12e   : > { %963 = vrot.lane.b32.xlu2 %v6768_v10, %s6276_s13 }
 0x130   : > { %v769_v61 = vpop.permute.xlu2 %768 }
 0x131   : > { %973 = vrot.lane.b32.xlu1 %v6795_v20, %s6276_s13  ;;  %865 = vst.msk [vmem:[#allocation3] sm:$0xff] %vm11624_vm3, %v769_v61  ;;  %v412_v61 = vld [vmem:[%s6481_s11 + $0xf0] sm:$0xff] }
 0x132   : > { %977 = vrot.lane.b32.xlu0 %v6814_v28, %s6276_s13  ;;  %445 = vst.msk [vmem:[#allocation2 + $0x181] sm:$0xff] %vm11626_vm0, %v412_v61 }
 0x133   : > { %v632_v12 = vpop.permute.xlu1 %631 }
 0x134   : > { %700 = vst.msk [vmem:[#allocation3 + $0xe0] sm:$0xff] %vm11625_vm2, %v632_v12  ;;  %v636_v60 = vpop.permute.xlu0 %635 }
 0x135   : > { %702 = vst.msk [vmem:[#allocation3 + $0xf0] sm:$0xff] %vm11625_vm2, %v636_v60 }
 0x136   : > { %969 = vrot.lane.b32.xlu2 %v6776_v13, %s6276_s13 }
 0x138   : > { %v775_v10 = vpop.permute.xlu2 %774 }
 0x139   : > { %979 = vrot.lane.b32.xlu1 %v6820_v33, %s6276_s13  ;;  %868 = vst.msk [vmem:[#allocation3 + $0x18] sm:$0xff] %vm11624_vm3, %v775_v10 }
 0x13a   : > { %983 = vrot.lane.b32.xlu0 %v6839_v44, %s6276_s13 }
 0x13b   : > { %v638_v20 = vpop.permute.xlu1 %637 }
 0x13c   : > { %703 = vst.msk [vmem:[#allocation3 + $0xf8] sm:$0xff] %vm11625_vm2, %v638_v20  ;;  %v771_v27 = vpop.permute.xlu0 %770 }
 0x13d   : > { %866 = vst.msk [vmem:[#allocation3 + $0x8] sm:$0xff] %vm11624_vm3, %v771_v27 }
 0x13e   : > { %975 = vrot.lane.b32.xlu2 %v6799_v21, %s6276_s13 }
 0x140   : > { %v781_v58 = vpop.permute.xlu2 %780 }
 0x141   : > { %985 = vrot.lane.b32.xlu1 %v6845_v49, %s6276_s13  ;;  %871 = vst.msk [vmem:[#allocation3 + $0x30] sm:$0xff] %vm11624_vm3, %v781_v58 }
 0x142   : > { %989 = vrot.lane.b32.xlu0 %v6864_v4, %s6276_s13 }
 0x143   : > { %v773_v33 = vpop.permute.xlu1 %772 }
 0x144   : > { %867 = vst.msk [vmem:[#allocation3 + $0x10] sm:$0xff] %vm11624_vm3, %v773_v33  ;;  %v777_v1 = vpop.permute.xlu0 %776 }
 0x145   : > { %869 = vst.msk [vmem:[#allocation3 + $0x20] sm:$0xff] %vm11624_vm3, %v777_v1 }
 0x146   : > { %981 = vrot.lane.b32.xlu2 %v6824_v34, %s6276_s13 }
 0x148   : > { %v787_v2 = vpop.permute.xlu2 %786 }
 0x149   : > { %991 = vrot.lane.b32.xlu1 %v6870_v11, %s6276_s13  ;;  %874 = vst.msk [vmem:[#allocation3 + $0x48] sm:$0xff] %vm11624_vm3, %v787_v2 }
 0x14a   : > { %995 = vrot.lane.b32.xlu0 %v6891_v7, %s6276_s13 }
 0x14b   : > { %v779_v49 = vpop.permute.xlu1 %778 }
 0x14c   : > { %870 = vst.msk [vmem:[#allocation3 + $0x28] sm:$0xff] %vm11624_vm3, %v779_v49  ;;  %v783_v12 = vpop.permute.xlu0 %782 }
 0x14d   : > { %872 = vst.msk [vmem:[#allocation3 + $0x38] sm:$0xff] %vm11624_vm3, %v783_v12  ;;  %v927_v12 = vld [vmem:[#allocation2 + $0x180] sm:$0xff] }
 0x14e   : > { %987 = vrot.lane.b32.xlu2 %v6849_v53, %s6276_s13 }
 0x150   : > { %v793_v60 = vpop.permute.xlu2 %792 }
 0x151   : > { %997 = vrot.lane.b32.xlu1 %v6897_v39, %s6276_s13  ;;  %877 = vst.msk [vmem:[#allocation3 + $0x60] sm:$0xff] %vm11624_vm3, %v793_v60 }
 0x152   : > { %1001 = vrot.lane.b32.xlu0 %v6918_v23, %s6276_s13 }
 0x153   : > { %v785_v11 = vpop.permute.xlu1 %784 }
 0x154   : > { %873 = vst.msk [vmem:[#allocation3 + $0x40] sm:$0xff] %vm11624_vm3, %v785_v11  ;;  %v789_v10 = vpop.permute.xlu0 %788 }
 0x155   : > { %875 = vst.msk [vmem:[#allocation3 + $0x50] sm:$0xff] %vm11624_vm3, %v789_v10 }
 0x156   : > { %993 = vrot.lane.b32.xlu2 %v6873_v40, %s6276_s13 }
 0x158   : > { %v799_v20 = vpop.permute.xlu2 %798 }
 0x159   : > { %1003 = vrot.lane.b32.xlu1 %v6924_v26, %s6276_s13  ;;  %880 = vst.msk [vmem:[#allocation3 + $0x78] sm:$0xff] %vm11624_vm3, %v799_v20  ;;  %v413_v26 = vld [vmem:[%s6481_s11 + $0xf8] sm:$0xff] }
 0x15a   : > { %1007 = vrot.lane.b32.xlu0 %v6945_v14, %s6276_s13  ;;  %446 = vst.msk [vmem:[#allocation2 + $0x189] sm:$0xff] %vm11626_vm0, %v413_v26 }
 0x15b   : > { %v791_v39 = vpop.permute.xlu1 %790 }
 0x15c   : > { %876 = vst.msk [vmem:[#allocation3 + $0x58] sm:$0xff] %vm11624_vm3, %v791_v39  ;;  %v795_v27 = vpop.permute.xlu0 %794 }
 0x15d   : > { %878 = vst.msk [vmem:[#allocation3 + $0x68] sm:$0xff] %vm11624_vm3, %v795_v27 }
 0x15e   : > { %999 = vrot.lane.b32.xlu2 %v6900_v9, %s6276_s13 }
 0x160   : > { %v805_v58 = vpop.permute.xlu2 %804 }
 0x161   : > { %1009 = vrot.lane.b32.xlu1 %v6951_v16, %s6276_s13  ;;  %883 = vst.msk [vmem:[#allocation3 + $0x90] sm:$0xff] %vm11624_vm3, %v805_v58  ;;  %v1121_v58 = vld [vmem:[#allocation2 + $0x189] sm:$0xff] }
 0x162   : > { %1013 = vrot.lane.b32.xlu0 %v6972_v6, %s6276_s13 }
 0x163   : > { %v797_v33 = vpop.permute.xlu1 %796 }
 0x164   : > { %879 = vst.msk [vmem:[#allocation3 + $0x70] sm:$0xff] %vm11624_vm3, %v797_v33  ;;  %v801_v1 = vpop.permute.xlu0 %800 }
 0x165   : > { %881 = vst.msk [vmem:[#allocation3 + $0x80] sm:$0xff] %vm11624_vm3, %v801_v1 }
 0x166   : > { %1005 = vrot.lane.b32.xlu2 %v6927_v45, %s6276_s13 }
 0x168   : > { %v811_v2 = vpop.permute.xlu2 %810 }
 0x169   : > { %1015 = vrot.lane.b32.xlu1 %v6978_v8, %s6276_s13  ;;  %886 = vst.msk [vmem:[#allocation3 + $0xa8] sm:$0xff] %vm11624_vm3, %v811_v2  ;;  %v11697_v2 = vld [vmem:[#allocation7_spill] sm:$0xff] }
 0x16a   : > { %1019 = vrot.lane.b32.xlu0 %v6999_v63, %s6276_s13 }
 0x16b   : > { %v803_v61 = vpop.permute.xlu1 %802 }
 0x16c   : > { %882 = vst.msk [vmem:[#allocation3 + $0x88] sm:$0xff] %vm11624_vm3, %v803_v61  ;;  %v807_v49 = vpop.permute.xlu0 %806 }
 0x16d   : > { %884 = vst.msk [vmem:[#allocation3 + $0x98] sm:$0xff] %vm11624_vm3, %v807_v49  ;;  %v11698_v49 = vld [vmem:[#allocation9_spill] sm:$0xff] }
 0x16e   : > { %1011 = vrot.lane.b32.xlu2 %v6954_v32, %s6276_s13 }
 0x170   : > { %v817_v60 = vpop.permute.xlu2 %816 }
 0x171   : > { %1021 = vrot.lane.b32.xlu1 %v927_v12, %s6276_s13  ;;  %889 = vst.msk [vmem:[#allocation3 + $0xc0] sm:$0xff] %vm11624_vm3, %v817_v60  ;;  %v11699_v12 = vld [vmem:[#allocation15_spill] sm:$0xff] }
 0x172   : > { %1154 = vrot.lane.b32.xlu0 %v6507_v3, %s6277_s14  ;;  %v928_v3 = vld [vmem:[#allocation2 + $0x188] sm:$0xff] }
 0x173   : > { %v809_v63 = vpop.permute.xlu1 %808 }
 0x174   : > { %885 = vst.msk [vmem:[#allocation3 + $0xa0] sm:$0xff] %vm11624_vm3, %v809_v63  ;;  %v813_v11 = vpop.permute.xlu0 %812 }
 0x175   : > { %887 = vst.msk [vmem:[#allocation3 + $0xb0] sm:$0xff] %vm11624_vm3, %v813_v11  ;;  %v11700_v11 = vld [vmem:[#allocation8_spill] sm:$0xff] }
 0x176   : > { %1017 = vrot.lane.b32.xlu2 %v6981_v19, %s6276_s13 }
 0x178   : > { %v823_v10 = vpop.permute.xlu2 %822 }
 0x179   : > { %1156 = vrot.lane.b32.xlu1 %v6589_v15, %s6277_s14  ;;  %892 = vst.msk [vmem:[#allocation3 + $0xd8] sm:$0xff] %vm11624_vm3, %v823_v10 }
 0x17a   : > { %1160 = vrot.lane.b32.xlu0 %v6629_v29, %s6277_s14 }
 0x17b   : > { %v815_v32 = vpop.permute.xlu1 %814 }
 0x17c   : > { %888 = vst.msk [vmem:[#allocation3 + $0xb8] sm:$0xff] %vm11624_vm3, %v815_v32  ;;  %v819_v20 = vpop.permute.xlu0 %818  ;;  %v11701_v32 = vld [vmem:[#allocation11_spill] sm:$0xff] }
 0x17d   : > { %890 = vst.msk [vmem:[#allocation3 + $0xc8] sm:$0xff] %vm11624_vm3, %v819_v20 }
 0x17e   : > { %1023 = vrot.lane.b32.xlu2 %v928_v3, %s6276_s13  ;;  %v11702_v3 = vld [vmem:[#allocation18_spill] sm:$0xff] }
 0x180   : > { %v829_v39 = vpop.permute.xlu2 %828 }
 0x181   : > { %1162 = vrot.lane.b32.xlu1 %v6595_v17, %s6277_s14  ;;  %895 = vst.msk [vmem:[#allocation3 + $0xf0] sm:$0xff] %vm11624_vm3, %v829_v39 }
 0x182   : > { %1166 = vrot.lane.b32.xlu0 %v6647_v35, %s6277_s14 }
 0x183   : > { %v821_v15 = vpop.permute.xlu1 %820 }
 0x184   : > { %891 = vst.msk [vmem:[#allocation3 + $0xd0] sm:$0xff] %vm11624_vm3, %v821_v15  ;;  %v825_v29 = vpop.permute.xlu0 %824  ;;  %v11703_v15 = vld [vmem:[#allocation10_spill] sm:$0xff] }
 0x185   : > { %893 = vst.msk [vmem:[#allocation3 + $0xe0] sm:$0xff] %vm11624_vm3, %v825_v29 }
 0x186   : > { %1158 = vrot.lane.b32.xlu2 %v6607_v22, %s6277_s14 }
 0x188   : > { %v964_v19 = vpop.permute.xlu2 %963 }
 0x189   : > { %1168 = vrot.lane.b32.xlu1 %v6616_v25, %s6277_s14  ;;  %1059 = vst.msk [vmem:[#allocation3 + $0x8] sm:$0xff] %vm11623_vm4, %v964_v19  ;;  %v11704_v19 = vld [vmem:[#allocation14_spill] sm:$0xff] }
 0x18a   : > { %1172 = vrot.lane.b32.xlu0 %v6665_v41, %s6277_s14 }
 0x18b   : > { %v827_v17 = vpop.permute.xlu1 %826 }
 0x18c   : > { %894 = vst.msk [vmem:[#allocation3 + $0xe8] sm:$0xff] %vm11624_vm3, %v827_v17  ;;  %v831_v35 = vpop.permute.xlu0 %830  ;;  %v11705_v17 = vld [vmem:[#allocation21_spill] sm:$0xff] }
 0x18d   : > { %896 = vst.msk [vmem:[#allocation3 + $0xf8] sm:$0xff] %vm11624_vm3, %v831_v35 }
 0x18e   : > { %1164 = vrot.lane.b32.xlu2 %v6611_v24, %s6277_s14 }
 0x190   : > { %v970_v22 = vpop.permute.xlu2 %969 }
 0x191   : > { %1174 = vrot.lane.b32.xlu1 %v6636_v31, %s6277_s14  ;;  %1062 = vst.msk [vmem:[#allocation3 + $0x20] sm:$0xff] %vm11623_vm4, %v970_v22 }
 0x192   : > { %1178 = vrot.lane.b32.xlu0 %v6682_v46, %s6277_s14 }
 0x193   : > { %v962_v25 = vpop.permute.xlu1 %961 }
 0x194   : > { %1058 = vst.msk [vmem:[#allocation3] sm:$0xff] %vm11623_vm4, %v962_v25  ;;  %v966_v41 = vpop.permute.xlu0 %965  ;;  %v11706_v25 = vld [vmem:[#allocation13_spill] sm:$0xff] }
 0x195   : > { %1060 = vst.msk [vmem:[#allocation3 + $0x10] sm:$0xff] %vm11623_vm4, %v966_v41 }
 0x196   : > { %1170 = vrot.lane.b32.xlu2 %v6632_v30, %s6277_s14 }
 0x198   : > { %v976_v27 = vpop.permute.xlu2 %975 }
 0x199   : > { %1180 = vrot.lane.b32.xlu1 %v6654_v37, %s6277_s14  ;;  %1065 = vst.msk [vmem:[#allocation3 + $0x38] sm:$0xff] %vm11623_vm4, %v976_v27  ;;  %v11707_v27 = vld [vmem:[#allocation17_spill] sm:$0xff] }
 0x19a   : > { %1184 = vrot.lane.b32.xlu0 %v6696_v50, %s6277_s14 }
 0x19b   : > { %v968_v24 = vpop.permute.xlu1 %967 }
 0x19c   : > { %1061 = vst.msk [vmem:[#allocation3 + $0x18] sm:$0xff] %vm11623_vm4, %v968_v24  ;;  %v972_v31 = vpop.permute.xlu0 %971  ;;  %v11708_v24 = vld [vmem:[#allocation24_spill] sm:$0xff] }
 0x19d   : > { %1063 = vst.msk [vmem:[#allocation3 + $0x28] sm:$0xff] %vm11623_vm4, %v972_v31 }
 0x19e   : > { %1176 = vrot.lane.b32.xlu2 %v6650_v36, %s6277_s14 }
 0x1a0   : > { %v982_v46 = vpop.permute.xlu2 %981 }
 0x1a1   : > { %1186 = vrot.lane.b32.xlu1 %v6672_v43, %s6277_s14  ;;  %1068 = vst.msk [vmem:[#allocation3 + $0x50] sm:$0xff] %vm11623_vm4, %v982_v46 }
 0x1a2   : > { %1190 = vrot.lane.b32.xlu0 %v6710_v54, %s6277_s14 }
 0x1a3   : > { %v974_v30 = vpop.permute.xlu1 %973 }
 0x1a4   : > { %1064 = vst.msk [vmem:[#allocation3 + $0x30] sm:$0xff] %vm11623_vm4, %v974_v30  ;;  %v978_v37 = vpop.permute.xlu0 %977  ;;  %v11709_v30 = vld [vmem:[#allocation16_spill] sm:$0xff] }
 0x1a5   : > { %1066 = vst.msk [vmem:[#allocation3 + $0x40] sm:$0xff] %vm11623_vm4, %v978_v37 }
 0x1a6   : > { %1182 = vrot.lane.b32.xlu2 %v6668_v42, %s6277_s14 }
 0x1a8   : > { %v988_v50 = vpop.permute.xlu2 %987 }
 0x1a9   : > { %1192 = vrot.lane.b32.xlu1 %v6688_v48, %s6277_s14  ;;  %1071 = vst.msk [vmem:[#allocation3 + $0x68] sm:$0xff] %vm11623_vm4, %v988_v50  ;;  %v11710_v50 = vld [vmem:[#allocation20_spill] sm:$0xff] }
 0x1aa   : > { %1196 = vrot.lane.b32.xlu0 %v6722_v57, %s6277_s14 }
 0x1ab   : > { %v980_v36 = vpop.permute.xlu1 %979 }
 0x1ac   : > { %1067 = vst.msk [vmem:[#allocation3 + $0x48] sm:$0xff] %vm11623_vm4, %v980_v36  ;;  %v984_v43 = vpop.permute.xlu0 %983  ;;  %v11711_v36 = vld [vmem:[#allocation27_spill] sm:$0xff] }
 0x1ad   : > { %1069 = vst.msk [vmem:[#allocation3 + $0x58] sm:$0xff] %vm11623_vm4, %v984_v43 }
 0x1ae   : > { %1188 = vrot.lane.b32.xlu2 %v6684_v47, %s6277_s14 }
 0x1b0   : > { %v994_v54 = vpop.permute.xlu2 %993 }
 0x1b1   : > { %1198 = vrot.lane.b32.xlu1 %v6702_v52, %s6277_s14  ;;  %1074 = vst.msk [vmem:[#allocation3 + $0x80] sm:$0xff] %vm11623_vm4, %v994_v54 }
 0x1b2   : > { %1202 = vrot.lane.b32.xlu0 %v6734_v62, %s6277_s14  ;;  %v7193_v62 = vld [vmem:[#allocation2 + $0x181] sm:$0xff] }
 0x1b3   : > { %v986_v42 = vpop.permute.xlu1 %985 }
 0x1b4   : > { %1070 = vst.msk [vmem:[#allocation3 + $0x60] sm:$0xff] %vm11623_vm4, %v986_v42  ;;  %v990_v48 = vpop.permute.xlu0 %989  ;;  %v11712_v42 = vld [vmem:[#allocation19_spill] sm:$0xff] }
 0x1b5   : > { %1072 = vst.msk [vmem:[#allocation3 + $0x70] sm:$0xff] %vm11623_vm4, %v990_v48 }
 0x1b6   : > { %1194 = vrot.lane.b32.xlu2 %v6698_v51, %s6277_s14 }
 0x1b8   : > { %v1000_v57 = vpop.permute.xlu2 %999 }
 0x1b9   : > { %1204 = vrot.lane.b32.xlu1 %v6716_v56, %s6277_s14  ;;  %1077 = vst.msk [vmem:[#allocation3 + $0x98] sm:$0xff] %vm11623_vm4, %v1000_v57  ;;  %v11713_v57 = vld [vmem:[#allocation23_spill] sm:$0xff] }
 0x1ba   : > { %1208 = vrot.lane.b32.xlu0 %v6749_v5, %s6277_s14 }
 0x1bb   : > { %v992_v47 = vpop.permute.xlu1 %991 }
 0x1bc   : > { %1073 = vst.msk [vmem:[#allocation3 + $0x78] sm:$0xff] %vm11623_vm4, %v992_v47  ;;  %v996_v52 = vpop.permute.xlu0 %995  ;;  %v11714_v47 = vld [vmem:[#allocation30_spill] sm:$0xff] }
 0x1bd   : > { %1075 = vst.msk [vmem:[#allocation3 + $0x88] sm:$0xff] %vm11623_vm4, %v996_v52 }
 0x1be   : > { %1200 = vrot.lane.b32.xlu2 %v6712_v55, %s6277_s14  ;;  %v11695_v55 = vld [vmem:[#allocation6_spill] sm:$0xff] }
 0x1c0   : > { %v1006_v51 = vpop.permute.xlu2 %1005 }
 0x1c1   : > { %1210 = vrot.lane.b32.xlu1 %v6728_v59, %s6277_s14  ;;  %1080 = vst.msk [vmem:[#allocation3 + $0xb0] sm:$0xff] %vm11623_vm4, %v1006_v51  ;;  %v11696_v59 = vld [vmem:[#allocation12_spill] sm:$0xff] }
 0x1c2   : > { %1214 = vrot.lane.b32.xlu0 %v7193_v62, %s6277_s14 }
 0x1c3   : > { %v998_v56 = vpop.permute.xlu1 %997 }
 0x1c4   : > { %1076 = vst.msk [vmem:[#allocation3 + $0x90] sm:$0xff] %vm11623_vm4, %v998_v56  ;;  %v1002_v5 = vpop.permute.xlu0 %1001  ;;  %v11715_v56 = vld [vmem:[#allocation22_spill] sm:$0xff] }
 0x1c5   : > { %1078 = vst.msk [vmem:[#allocation3 + $0xa0] sm:$0xff] %vm11623_vm4, %v1002_v5 }
 0x1c6   : > { %1206 = vrot.lane.b32.xlu2 %v11695_v55, %s6277_s14  ;;  %v11717_v55 = vld [vmem:[#allocation33_spill] sm:$0xff] }
 0x1c8   : > { %v1012_v26 = vpop.permute.xlu2 %1011 }
 0x1c9   : > { %1216 = vrot.lane.b32.xlu1 %v1121_v58, %s6277_s14  ;;  %1083 = vst.msk [vmem:[#allocation3 + $0xc8] sm:$0xff] %vm11623_vm4, %v1012_v26  ;;  %v11716_v58 = vld [vmem:[#allocation26_spill] sm:$0xff] }
 0x1ca   : > { %1349 = vrot.lane.b32.xlu0 %v11696_v59, %s6278_s15 }
 0x1cb   : > { %v1004_v33 = vpop.permute.xlu1 %1003 }
 0x1cc   : > { %1079 = vst.msk [vmem:[#allocation3 + $0xa8] sm:$0xff] %vm11623_vm4, %v1004_v33  ;;  %v1008_v1 = vpop.permute.xlu0 %1007  ;;  %v11718_v33 = vld [vmem:[#allocation25_spill] sm:$0xff] }
 0x1cd   : > { %1081 = vst.msk [vmem:[#allocation3 + $0xb8] sm:$0xff] %vm11623_vm4, %v1008_v1 }
 0x1ce   : > { %1212 = vrot.lane.b32.xlu2 %v11697_v2, %s6277_s14  ;;  %v11719_v2 = vld [vmem:[#allocation29_spill] sm:$0xff] }
 0x1d0   : > { %v1018_v61 = vpop.permute.xlu2 %1017 }
 0x1d1   : > { %1351 = vrot.lane.b32.xlu1 %v11698_v49, %s6278_s15  ;;  %1086 = vst.msk [vmem:[#allocation3 + $0xe0] sm:$0xff] %vm11623_vm4, %v1018_v61 }
 0x1d2   : > { %1355 = vrot.lane.b32.xlu0 %v11699_v12, %s6278_s15  ;;  %v11720_v12 = vld [vmem:[#allocation28_spill] sm:$0xff] }
 0x1d3   : > { %v1010_v60 = vpop.permute.xlu1 %1009 }
 0x1d4   : > { %1082 = vst.msk [vmem:[#allocation3 + $0xc0] sm:$0xff] %vm11623_vm4, %v1010_v60  ;;  %v1014_v63 = vpop.permute.xlu0 %1013 }
 0x1d5   : > { %1084 = vst.msk [vmem:[#allocation3 + $0xd0] sm:$0xff] %vm11623_vm4, %v1014_v63  ;;  %v11721_v63 = vld [vmem:[#allocation32_spill] sm:$0xff] }
 0x1d6   : > { %1347 = vrot.lane.b32.xlu2 %v11700_v11, %s6278_s15 }
 0x1d8   : > { %v1024_v10 = vpop.permute.xlu2 %1023 }
 0x1d9   : > { %1357 = vrot.lane.b32.xlu1 %v11701_v32, %s6278_s15  ;;  %1089 = vst.msk [vmem:[#allocation3 + $0xf8] sm:$0xff] %vm11623_vm4, %v1024_v10  ;;  %v11722_v10 = vld [vmem:[#allocation31_spill] sm:$0xff] }
 0x1da   : > { %1361 = vrot.lane.b32.xlu0 %v11702_v3, %s6278_s15  ;;  %v7293_v32 = vld [vmem:[#allocation2 + $0x18a] sm:$0xff] }
 0x1db   : > { %v1016_v20 = vpop.permute.xlu1 %1015 }
 0x1dc   : > { %1085 = vst.msk [vmem:[#allocation3 + $0xd8] sm:$0xff] %vm11623_vm4, %v1016_v20  ;;  %v1020_v39 = vpop.permute.xlu0 %1019  ;;  %v11723_v20 = vld [vmem:[#allocation35_spill] sm:$0xff] }
 0x1dd   : > { %1087 = vst.msk [vmem:[#allocation3 + $0xe8] sm:$0xff] %vm11623_vm4, %v1020_v39 }
 0x1de   : > { %1353 = vrot.lane.b32.xlu2 %v11703_v15, %s6278_s15  ;;  %v1477_v15 = vld [vmem:[#allocation2 + $0x30] sm:$0xff] }
 0x1e0   : > { %v1159_v29 = vpop.permute.xlu2 %1158 }
 0x1e1   : > { %1363 = vrot.lane.b32.xlu1 %v11704_v19, %s6278_s15  ;;  %1253 = vst.msk [vmem:[#allocation3 + $0x10] sm:$0xff] %vm11622_vm5, %v1159_v29  ;;  %v11724_v29 = vld [vmem:[#allocation34_spill] sm:$0xff] }
 0x1e2   : > { %1367 = vrot.lane.b32.xlu0 %v11705_v17, %s6278_s15 }
 0x1e3   : > { %v1022_v35 = vpop.permute.xlu1 %1021 }
 0x1e4   : > { %1088 = vst.msk [vmem:[#allocation3 + $0xf0] sm:$0xff] %vm11623_vm4, %v1022_v35  ;;  %v1155_v22 = vpop.permute.xlu0 %1154  ;;  %v7308_v35 = vld [vmem:[#allocation2 + $0x182] sm:$0xff] }
 0x1e5   : > { %1251 = vst.msk [vmem:[#allocation3] sm:$0xff] %vm11622_vm5, %v1155_v22 }
 0x1e6   : > { %1359 = vrot.lane.b32.xlu2 %v11706_v25, %s6278_s15 }
 0x1e8   : > { %v1165_v41 = vpop.permute.xlu2 %1164 }
 0x1e9   : > { %1369 = vrot.lane.b32.xlu1 %v11707_v27, %s6278_s15  ;;  %1256 = vst.msk [vmem:[#allocation3 + $0x28] sm:$0xff] %vm11622_vm5, %v1165_v41  ;;  %v1478_v41 = vld [vmem:[#allocation2 + $0x38] sm:$0xff] }
 0x1ea   : > { %1373 = vrot.lane.b32.xlu0 %v11708_v24, %s6278_s15 }
 0x1eb   : > { %v1157_v31 = vpop.permute.xlu1 %1156 }
 0x1ec   : > { %1252 = vst.msk [vmem:[#allocation3 + $0x8] sm:$0xff] %vm11622_vm5, %v1157_v31  ;;  %v1161_v46 = vpop.permute.xlu0 %1160 }
 0x1ed   : > { %1254 = vst.msk [vmem:[#allocation3 + $0x18] sm:$0xff] %vm11622_vm5, %v1161_v46 }
 0x1ee   : > { %1365 = vrot.lane.b32.xlu2 %v11709_v30, %s6278_s15 }
 0x1f0   : > { %v1171_v37 = vpop.permute.xlu2 %1170 }
 0x1f1   : > { %1375 = vrot.lane.b32.xlu1 %v11710_v50, %s6278_s15  ;;  %1259 = vst.msk [vmem:[#allocation3 + $0x40] sm:$0xff] %vm11622_vm5, %v1171_v37 }
 0x1f2   : > { %1379 = vrot.lane.b32.xlu0 %v11711_v36, %s6278_s15 }
 0x1f3   : > { %v1163_v43 = vpop.permute.xlu1 %1162 }
 0x1f4   : > { %1255 = vst.msk [vmem:[#allocation3 + $0x20] sm:$0xff] %vm11622_vm5, %v1163_v43  ;;  %v1167_v54 = vpop.permute.xlu0 %1166 }
 0x1f5   : > { %1257 = vst.msk [vmem:[#allocation3 + $0x30] sm:$0xff] %vm11622_vm5, %v1167_v54 }
 0x1f6   : > { %1371 = vrot.lane.b32.xlu2 %v11712_v42, %s6278_s15 }
 0x1f8   : > { %v1177_v48 = vpop.permute.xlu2 %1176 }
 0x1f9   : > { %1381 = vrot.lane.b32.xlu1 %v11713_v57, %s6278_s15  ;;  %1262 = vst.msk [vmem:[#allocation3 + $0x58] sm:$0xff] %vm11622_vm5, %v1177_v48  ;;  %v1670_v48 = vld [vmem:[#allocation2 + $0x31] sm:$0xff] }
 0x1fa   : > { %1385 = vrot.lane.b32.xlu0 %v11714_v47, %s6278_s15 }
 0x1fb   : > { %v1169_v52 = vpop.permute.xlu1 %1168 }
 0x1fc   : > { %1258 = vst.msk [vmem:[#allocation3 + $0x38] sm:$0xff] %vm11622_vm5, %v1169_v52  ;;  %v1173_v51 = vpop.permute.xlu0 %1172  ;;  %v1863_v52 = vld [vmem:[#allocation2 + $0x32] sm:$0xff] }
 0x1fd   : > { %1260 = vst.msk [vmem:[#allocation3 + $0x48] sm:$0xff] %vm11622_vm5, %v1173_v51  ;;  %v1671_v51 = vld [vmem:[#allocation2 + $0x39] sm:$0xff] }
 0x1fe   : > { %1377 = vrot.lane.b32.xlu2 %v11715_v56, %s6278_s15 }
 0x200   : > { %v1183_v5 = vpop.permute.xlu2 %1182 }
 0x201   : > { %1387 = vrot.lane.b32.xlu1 %v11716_v58, %s6278_s15  ;;  %1265 = vst.msk [vmem:[#allocation3 + $0x70] sm:$0xff] %vm11622_vm5, %v1183_v5  ;;  %v1864_v58 = vld [vmem:[#allocation2 + $0x3a] sm:$0xff] }
 0x202   : > { %1391 = vrot.lane.b32.xlu0 %v11717_v55, %s6278_s15  ;;  %v1865_v55 = vld [vmem:[#allocation2 + $0x4a] sm:$0xff] }
 0x203   : > { %v1175_v26 = vpop.permute.xlu1 %1174 }
 0x204   : > { %1261 = vst.msk [vmem:[#allocation3 + $0x50] sm:$0xff] %vm11622_vm5, %v1175_v26  ;;  %v1179_v59 = vpop.permute.xlu0 %1178 }
 0x205   : > { %1263 = vst.msk [vmem:[#allocation3 + $0x60] sm:$0xff] %vm11622_vm5, %v1179_v59 }
 0x206   : > { %1383 = vrot.lane.b32.xlu2 %v11718_v33, %s6278_s15  ;;  %v1500_v33 = vld [vmem:[#allocation2 + $0x140] sm:$0xff] }
 0x208   : > { %v1189_v1 = vpop.permute.xlu2 %1188 }
 0x209   : > { %1393 = vrot.lane.b32.xlu1 %v11719_v2, %s6278_s15  ;;  %1268 = vst.msk [vmem:[#allocation3 + $0x88] sm:$0xff] %vm11622_vm5, %v1189_v1  ;;  %v1866_v2 = vld [vmem:[#allocation2 + $0x52] sm:$0xff] }
 0x20a   : > { %1397 = vrot.lane.b32.xlu0 %v7001_v38, %s6278_s15 }
 0x20b   : > { %v1181_v61 = vpop.permute.xlu1 %1180 }
 0x20c   : > { %1264 = vst.msk [vmem:[#allocation3 + $0x68] sm:$0xff] %vm11622_vm5, %v1181_v61  ;;  %v1185_v49 = vpop.permute.xlu0 %1184 }
 0x20d   : > { %1266 = vst.msk [vmem:[#allocation3 + $0x78] sm:$0xff] %vm11622_vm5, %v1185_v49  ;;  %v1672_v49 = vld [vmem:[#allocation2 + $0x49] sm:$0xff] }
 0x20e   : > { %1389 = vrot.lane.b32.xlu2 %v11720_v12, %s6278_s15 }
 0x210   : > { %v1195_v60 = vpop.permute.xlu2 %1194 }
 0x211   : > { %1399 = vrot.lane.b32.xlu1 %v11721_v63, %s6278_s15  ;;  %1271 = vst.msk [vmem:[#allocation3 + $0xa0] sm:$0xff] %vm11622_vm5, %v1195_v60  ;;  %v1867_v60 = vld [vmem:[#allocation2 + $0x62] sm:$0xff] }
 0x212   : > { %1403 = vrot.lane.b32.xlu0 %v7014_v0, %s6278_s15 }
 0x213   : > { %v1187_v11 = vpop.permute.xlu1 %1186 }
 0x214   : > { %1267 = vst.msk [vmem:[#allocation3 + $0x80] sm:$0xff] %vm11622_vm5, %v1187_v11  ;;  %v1191_v38 = vpop.permute.xlu0 %1190  ;;  %v1673_v11 = vld [vmem:[#allocation2 + $0x51] sm:$0xff] }
 0x215   : > { %1269 = vst.msk [vmem:[#allocation3 + $0x90] sm:$0xff] %vm11622_vm5, %v1191_v38 }
 0x216   : > { %1395 = vrot.lane.b32.xlu2 %v11722_v10, %s6278_s15  ;;  %v1682_v10 = vld [vmem:[#allocation2 + $0xc1] sm:$0xff] }
 0x218   : > { %v1201_v3 = vpop.permute.xlu2 %1200 }
 0x219   : > { %1405 = vrot.lane.b32.xlu1 %v11723_v20, %s6278_s15  ;;  %1274 = vst.msk [vmem:[#allocation3 + $0xb8] sm:$0xff] %vm11622_vm5, %v1201_v3  ;;  %v1675_v3 = vld [vmem:[#allocation2 + $0x69] sm:$0xff] }
 0x21a   : > { %1409 = vrot.lane.b32.xlu0 %v7293_v32, %s6278_s15 }
 0x21b   : > { %v1193_v0 = vpop.permute.xlu1 %1192 }
 0x21c   : > { %1270 = vst.msk [vmem:[#allocation3 + $0x98] sm:$0xff] %vm11622_vm5, %v1193_v0  ;;  %v1197_v39 = vpop.permute.xlu0 %1196  ;;  %v1674_v0 = vld [vmem:[#allocation2 + $0x61] sm:$0xff] }
 0x21d   : > { %1272 = vst.msk [vmem:[#allocation3 + $0xa8] sm:$0xff] %vm11622_vm5, %v1197_v39 }
 0x21e   : > { %1401 = vrot.lane.b32.xlu2 %v11724_v29, %s6278_s15  ;;  %v1876_v29 = vld [vmem:[#allocation2 + $0xca] sm:$0xff] }
 0x220   : > { %v1207_v19 = vpop.permute.xlu2 %1206 }
 0x221   : > { %1541 = vrot.lane.b32.xlu1 %v1477_v15, %s6279_s16  ;;  %1277 = vst.msk [vmem:[#allocation3 + $0xd0] sm:$0xff] %vm11622_vm5, %v1207_v19  ;;  %v1868_v15 = vld [vmem:[#allocation2 + $0x6a] sm:$0xff] }
 0x222   : > { %1545 = vrot.lane.b32.xlu0 %v6776_v13, %s6279_s16 }
 0x223   : > { %v1199_v17 = vpop.permute.xlu1 %1198 }
 0x224   : > { %1273 = vst.msk [vmem:[#allocation3 + $0xb0] sm:$0xff] %vm11622_vm5, %v1199_v17  ;;  %v1203_v22 = vpop.permute.xlu0 %1202 }
 0x225   : > { %1275 = vst.msk [vmem:[#allocation3 + $0xc0] sm:$0xff] %vm11622_vm5, %v1203_v22  ;;  %v1875_v22 = vld [vmem:[#allocation2 + $0xc2] sm:$0xff] }
 0x226   : > { %1407 = vrot.lane.b32.xlu2 %v7308_v35, %s6278_s15 }
 0x228   : > { %v1213_v25 = vpop.permute.xlu2 %1212 }
 0x229   : > { %1547 = vrot.lane.b32.xlu1 %v6789_v18, %s6279_s16  ;;  %1280 = vst.msk [vmem:[#allocation3 + $0xe8] sm:$0xff] %vm11622_vm5, %v1213_v25 }
 0x22a   : > { %1551 = vrot.lane.b32.xlu0 %v6799_v21, %s6279_s16  ;;  %v1481_v21 = vld [vmem:[#allocation2 + $0x60] sm:$0xff] }
 0x22b   : > { %v1205_v13 = vpop.permute.xlu1 %1204 }
 0x22c   : > { %1276 = vst.msk [vmem:[#allocation3 + $0xc8] sm:$0xff] %vm11622_vm5, %v1205_v13  ;;  %v1209_v27 = vpop.permute.xlu0 %1208  ;;  %v1676_v13 = vld [vmem:[#allocation2 + $0x79] sm:$0xff] }
 0x22d   : > { %1278 = vst.msk [vmem:[#allocation3 + $0xd8] sm:$0xff] %vm11622_vm5, %v1209_v27 }
 0x22e   : > { %1543 = vrot.lane.b32.xlu2 %v1478_v41, %s6279_s16  ;;  %v1692_v41 = vld [vmem:[#allocation2 + $0x139] sm:$0xff] }
 0x230   : > { %v1348_v24 = vpop.permute.xlu2 %1347 }
 0x231   : > { %1553 = vrot.lane.b32.xlu1 %v6814_v28, %s6279_s16  ;;  %1444 = vst.msk [vmem:[#allocation3] sm:$0xff] %vm11621_vm6, %v1348_v24 }
 0x232   : > { %1557 = vrot.lane.b32.xlu0 %v6824_v34, %s6279_s16  ;;  %v1484_v34 = vld [vmem:[#allocation2 + $0x80] sm:$0xff] }
 0x233   : > { %v1211_v18 = vpop.permute.xlu1 %1210 }
 0x234   : > { %1279 = vst.msk [vmem:[#allocation3 + $0xe0] sm:$0xff] %vm11622_vm5, %v1211_v18  ;;  %v1215_v31 = vpop.permute.xlu0 %1214  ;;  %v1683_v18 = vld [vmem:[#allocation2 + $0xc9] sm:$0xff] }
 0x235   : > { %1281 = vst.msk [vmem:[#allocation3 + $0xf0] sm:$0xff] %vm11622_vm5, %v1215_v31  ;;  %v1885_v31 = vld [vmem:[#allocation2 + $0x13a] sm:$0xff] }
 0x236   : > { %1549 = vrot.lane.b32.xlu2 %v1481_v21, %s6279_s16 }
 0x238   : > { %v1354_v46 = vpop.permute.xlu2 %1353 }
 0x239   : > { %1559 = vrot.lane.b32.xlu1 %v6839_v44, %s6279_s16  ;;  %1447 = vst.msk [vmem:[#allocation3 + $0x18] sm:$0xff] %vm11621_vm6, %v1354_v46  ;;  %v1877_v46 = vld [vmem:[#allocation2 + $0xda] sm:$0xff] }
 0x23a   : > { %1563 = vrot.lane.b32.xlu0 %v6849_v53, %s6279_s16  ;;  %v1487_v53 = vld [vmem:[#allocation2 + $0xa8] sm:$0xff] }
 0x23b   : > { %v1217_v28 = vpop.permute.xlu1 %1216 }
 0x23c   : > { %1282 = vst.msk [vmem:[#allocation3 + $0xf8] sm:$0xff] %vm11622_vm5, %v1217_v28  ;;  %v1350_v30 = vpop.permute.xlu0 %1349 }
 0x23d   : > { %1445 = vst.msk [vmem:[#allocation3 + $0x8] sm:$0xff] %vm11621_vm6, %v1350_v30  ;;  %v1869_v30 = vld [vmem:[#allocation2 + $0x7a] sm:$0xff] }
 0x23e   : > { %1555 = vrot.lane.b32.xlu2 %v1484_v34, %s6279_s16 }
 0x240   : > { %v1360_v37 = vpop.permute.xlu2 %1359 }
 0x241   : > { %1565 = vrot.lane.b32.xlu1 %v6864_v4, %s6279_s16  ;;  %1450 = vst.msk [vmem:[#allocation3 + $0x30] sm:$0xff] %vm11621_vm6, %v1360_v37 }
 0x242   : > { %1569 = vrot.lane.b32.xlu0 %v6873_v40, %s6279_s16  ;;  %v1490_v40 = vld [vmem:[#allocation2 + $0xc8] sm:$0xff] }
 0x243   : > { %v1352_v44 = vpop.permute.xlu1 %1351 }
 0x244   : > { %1446 = vst.msk [vmem:[#allocation3 + $0x10] sm:$0xff] %vm11621_vm6, %v1352_v44  ;;  %v1356_v50 = vpop.permute.xlu0 %1355  ;;  %v1677_v44 = vld [vmem:[#allocation2 + $0x81] sm:$0xff] }
 0x245   : > { %1448 = vst.msk [vmem:[#allocation3 + $0x20] sm:$0xff] %vm11621_vm6, %v1356_v50 }
 0x246   : > { %1561 = vrot.lane.b32.xlu2 %v1487_v53, %s6279_s16  ;;  %v1693_v53 = vld [vmem:[#allocation2 + $0x141] sm:$0xff] }
 0x248   : > { %v1366_v36 = vpop.permute.xlu2 %1365 }
 0x249   : > { %1571 = vrot.lane.b32.xlu1 %v6891_v7, %s6279_s16  ;;  %1453 = vst.msk [vmem:[#allocation3 + $0x48] sm:$0xff] %vm11621_vm6, %v1366_v36 }
 0x24a   : > { %1575 = vrot.lane.b32.xlu0 %v6900_v9, %s6279_s16  ;;  %v1493_v9 = vld [vmem:[#allocation2 + $0xf0] sm:$0xff] }
 0x24b   : > { %v1358_v4 = vpop.permute.xlu1 %1357 }
 0x24c   : > { %1449 = vst.msk [vmem:[#allocation3 + $0x28] sm:$0xff] %vm11621_vm6, %v1358_v4  ;;  %v1362_v43 = vpop.permute.xlu0 %1361  ;;  %v1684_v4 = vld [vmem:[#allocation2 + $0xd9] sm:$0xff] }
 0x24d   : > { %1451 = vst.msk [vmem:[#allocation3 + $0x38] sm:$0xff] %vm11621_vm6, %v1362_v43  ;;  %v1886_v43 = vld [vmem:[#allocation2 + $0x142] sm:$0xff] }
 0x24e   : > { %1567 = vrot.lane.b32.xlu2 %v1490_v40, %s6279_s16 }
 0x250   : > { %v1372_v54 = vpop.permute.xlu2 %1371 }
 0x251   : > { %1577 = vrot.lane.b32.xlu1 %v6918_v23, %s6279_s16  ;;  %1456 = vst.msk [vmem:[#allocation3 + $0x60] sm:$0xff] %vm11621_vm6, %v1372_v54  ;;  %v1496_v23 = vld [vmem:[#allocation2 + $0x110] sm:$0xff]  ;;  %v1878_v54 = vld [vmem:[#allocation2 + $0xe2] sm:$0xff] }
 0x252   : > { %1581 = vrot.lane.b32.xlu0 %v6927_v45, %s6279_s16 }
 0x253   : > { %v1364_v7 = vpop.permute.xlu1 %1363 }
 0x254   : > { %1452 = vst.msk [vmem:[#allocation3 + $0x40] sm:$0xff] %vm11621_vm6, %v1364_v7  ;;  %v1368_v42 = vpop.permute.xlu0 %1367 }
 0x255   : > { %1454 = vst.msk [vmem:[#allocation3 + $0x50] sm:$0xff] %vm11621_vm6, %v1368_v42 }
 0x256   : > { %1573 = vrot.lane.b32.xlu2 %v1493_v9, %s6279_s16  ;;  %v2096_v9 = vld [vmem:[%s11430_s2 + $0x40] sm:$0xff] }
 0x257   : > { %2201 = vmatpush.msra.mxu0 %v2096_v9  ;;  %6074 = vmatpush.msra.mxu1 %v2096_v9 }
 0x258   : > { %v1378_v57 = vpop.permute.xlu2 %1377  ;;  %6075 = vmatpush.msra.mxu3 %v2096_v9  ;;  %v1681_v9 = vld [vmem:[#allocation2 + $0xb1] sm:$0xff] }
 0x259   : > { %1583 = vrot.lane.b32.xlu1 %v6945_v14, %s6279_s16  ;;  %1459 = vst.msk [vmem:[#allocation3 + $0x78] sm:$0xff] %vm11621_vm6, %v1378_v57 }
 0x25a   : > { %1734 = vrot.lane.b32.xlu0 %v1670_v48, %s6280_s17  ;;  %v1870_v48 = vld [vmem:[#allocation2 + $0x82] sm:$0xff] }
 0x25b   : > { %v1370_v45 = vpop.permute.xlu1 %1369 }
 0x25c   : > { %1455 = vst.msk [vmem:[#allocation3 + $0x58] sm:$0xff] %vm11621_vm6, %v1370_v45  ;;  %v1374_v47 = vpop.permute.xlu0 %1373  ;;  %v2095_v45 = vld [vmem:[%s11430_s2 + $0x38] sm:$0xff] }
 0x25d   : > { %1457 = vst.msk [vmem:[#allocation3 + $0x68] sm:$0xff] %vm11621_vm6, %v1374_v47  ;;  %2202 = vmatpush.msra.mxu0 %v2095_v45  ;;  %6076 = vmatpush.msra.mxu1 %v2095_v45  ;;  %v1678_v47 = vld [vmem:[#allocation2 + $0x91] sm:$0xff] }
 0x25e   : > { %1579 = vrot.lane.b32.xlu2 %v1496_v23, %s6279_s16  ;;  %v2094_v23 = vld [vmem:[%s11430_s2 + $0x30] sm:$0xff]  ;;  %6077 = vmatpush.msra.mxu3 %v2095_v45 }
 0x25f   : > { %2203 = vmatpush.msra.mxu0 %v2094_v23  ;;  %6078 = vmatpush.msra.mxu1 %v2094_v23 }
 0x260   : > { %v1384_v56 = vpop.permute.xlu2 %1383  ;;  %6079 = vmatpush.msra.mxu3 %v2094_v23 }
 0x261   : > { %1927 = vrot.lane.b32.xlu1 %v1863_v52, %s6281_s18  ;;  %1462 = vst.msk [vmem:[#allocation3 + $0x90] sm:$0xff] %vm11621_vm6, %v1384_v56  ;;  %v2093_v52 = vld [vmem:[%s11430_s2 + $0x28] sm:$0xff] }
 0x262   : > { %1736 = vrot.lane.b32.xlu0 %v1671_v51, %s6280_s17  ;;  %v1694_v51 = vld [vmem:[#allocation2 + $0x151] sm:$0xff]  ;;  %2204 = vmatpush.msra.mxu0 %v2093_v52 }
 0x263   : > { %v1376_v14 = vpop.permute.xlu1 %1375  ;;  %6080 = vmatpush.msra.mxu1 %v2093_v52  ;;  %6081 = vmatpush.msra.mxu3 %v2093_v52  ;;  %v1697_v52 = vld [vmem:[#allocation2 + $0x171] sm:$0xff] }
 0x264   : > { %1458 = vst.msk [vmem:[#allocation3 + $0x70] sm:$0xff] %vm11621_vm6, %v1376_v14  ;;  %v1380_v5 = vpop.permute.xlu0 %1379  ;;  %v2092_v14 = vld [vmem:[%s11430_s2 + $0x20] sm:$0xff] }
 0x265   : > { %1460 = vst.msk [vmem:[#allocation3 + $0x80] sm:$0xff] %vm11621_vm6, %v1380_v5  ;;  %2205 = vmatpush.msra.mxu0 %v2092_v14  ;;  %6082 = vmatpush.msra.mxu1 %v2092_v14 }
 0x266   : > { %1585 = vrot.lane.b32.xlu2 %v6951_v16, %s6279_s16  ;;  %6083 = vmatpush.msra.mxu3 %v2092_v14 }
 0x268   : > { %v1390_v26 = vpop.permute.xlu2 %1389 }
 0x269   : > { %1929 = vrot.lane.b32.xlu1 %v1864_v58, %s6281_s18  ;;  %1465 = vst.msk [vmem:[#allocation3 + $0xa8] sm:$0xff] %vm11621_vm6, %v1390_v26  ;;  %v1685_v58 = vld [vmem:[#allocation2 + $0xe1] sm:$0xff]  ;;  %v2091_v26 = vld [vmem:[%s11430_s2 + $0x18] sm:$0xff] }
 0x26a   : > { %1931 = vrot.lane.b32.xlu0 %v1865_v55, %s6281_s18  ;;  %2206 = vmatpush.msra.mxu0 %v2091_v26 }
 0x26b   : > { %v1382_v59 = vpop.permute.xlu1 %1381  ;;  %6084 = vmatpush.msra.mxu1 %v2091_v26  ;;  %6085 = vmatpush.msra.mxu3 %v2091_v26 }
 0x26c   : > { %1461 = vst.msk [vmem:[#allocation3 + $0x88] sm:$0xff] %vm11621_vm6, %v1382_v59  ;;  %v1386_v1 = vpop.permute.xlu0 %1385  ;;  %v2090_v59 = vld [vmem:[%s11430_s2 + $0x10] sm:$0xff] }
 0x26d   : > { %1463 = vst.msk [vmem:[#allocation3 + $0x98] sm:$0xff] %vm11621_vm6, %v1386_v1  ;;  %v2089_v1 = vld [vmem:[%s11430_s2 + $0x8] sm:$0xff]  ;;  %2207 = vmatpush.msra.mxu0 %v2090_v59  ;;  %6086 = vmatpush.msra.mxu1 %v2090_v59 }
 0x26e   : > { %1587 = vrot.lane.b32.xlu2 %v1500_v33, %s6279_s16  ;;  %v1887_v33 = vld [vmem:[#allocation2 + $0x152] sm:$0xff]  ;;  %6087 = vmatpush.msra.mxu3 %v2090_v59 }
 0x26f   : > { %2208 = vmatpush.msra.mxu0 %v2089_v1  ;;  %6088 = vmatpush.msra.mxu1 %v2089_v1 }
 0x270   : > { %v1396_v61 = vpop.permute.xlu2 %1395  ;;  %6089 = vmatpush.msra.mxu3 %v2089_v1  ;;  %v1699_v1 = vld [vmem:[#allocation2 + $0x189] sm:$0xff] }
 0x271   : > { %1589 = vrot.lane.b32.xlu1 %v6972_v6, %s6279_s16  ;;  %1468 = vst.msk [vmem:[#allocation3 + $0xc0] sm:$0xff] %vm11621_vm6, %v1396_v61 }
 0x272   : > { %1933 = vrot.lane.b32.xlu0 %v1866_v2, %s6281_s18  ;;  %v1879_v2 = vld [vmem:[#allocation2 + $0xf2] sm:$0xff] }
 0x273   : > { %v1388_v16 = vpop.permute.xlu1 %1387 }
 0x274   : > { %1464 = vst.msk [vmem:[#allocation3 + $0xa0] sm:$0xff] %vm11621_vm6, %v1388_v16  ;;  %v1392_v12 = vpop.permute.xlu0 %1391  ;;  %v2088_v16 = vld [vmem:[%s11430_s2] sm:$0xff] }
 0x275   : > { %1466 = vst.msk [vmem:[#allocation3 + $0xb0] sm:$0xff] %vm11621_vm6, %v1392_v12  ;;  %v1871_v12 = vld [vmem:[#allocation2 + $0x92] sm:$0xff]  ;;  %2209 = vmatpush.msra.mxu0 %v2088_v16  ;;  %6090 = vmatpush.msra.mxu1 %v2088_v16 }
 0x276   : > { %1738 = vrot.lane.b32.xlu2 %v1672_v49, %s6280_s17  ;;  %6091 = vmatpush.msra.mxu3 %v2088_v16 }
 0x278   : > { %v1402_v63 = vpop.permute.xlu2 %1401 }
 0x279   : > { %1591 = vrot.lane.b32.xlu1 %v6978_v8, %s6279_s16  ;;  %1471 = vst.msk [vmem:[#allocation3 + $0xd8] sm:$0xff] %vm11621_vm6, %v1402_v63  ;;  %v1679_v63 = vld [vmem:[#allocation2 + $0x99] sm:$0xff] }
 0x27a   : > { %1935 = vrot.lane.b32.xlu0 %v1867_v60, %s6281_s18 }
 0x27b   : > { %v1394_v6 = vpop.permute.xlu1 %1393 }
 0x27c   : > { %1467 = vst.msk [vmem:[#allocation3 + $0xb8] sm:$0xff] %vm11621_vm6, %v1394_v6  ;;  %v1398_v38 = vpop.permute.xlu0 %1397  ;;  %v1695_v6 = vld [vmem:[#allocation2 + $0x159] sm:$0xff] }
 0x27d   : > { %1469 = vst.msk [vmem:[#allocation3 + $0xc8] sm:$0xff] %vm11621_vm6, %v1398_v38 }
 0x27e   : > { %1740 = vrot.lane.b32.xlu2 %v1673_v11, %s6280_s17 }
 0x280   : > { %v1408_v20 = vpop.permute.xlu2 %1407 }
 0x281   : > { %1758 = vrot.lane.b32.xlu1 %v1682_v10, %s6280_s17  ;;  %1474 = vst.msk [vmem:[#allocation3 + $0xf0] sm:$0xff] %vm11621_vm6, %v1408_v20  ;;  %v1686_v10 = vld [vmem:[#allocation2 + $0xf1] sm:$0xff]  ;;  %v1888_v20 = vld [vmem:[#allocation2 + $0x15a] sm:$0xff] }
 0x282   : > { %1744 = vrot.lane.b32.xlu0 %v1675_v3, %s6280_s17 }
 0x283   : > { %v1400_v8 = vpop.permute.xlu1 %1399 }
 0x284   : > { %1470 = vst.msk [vmem:[#allocation3 + $0xd0] sm:$0xff] %vm11621_vm6, %v1400_v8  ;;  %v1404_v39 = vpop.permute.xlu0 %1403  ;;  %v1880_v8 = vld [vmem:[#allocation2 + $0xfa] sm:$0xff] }
 0x285   : > { %1472 = vst.msk [vmem:[#allocation3 + $0xe0] sm:$0xff] %vm11621_vm6, %v1404_v39 }
 0x286   : > { %1742 = vrot.lane.b32.xlu2 %v1674_v0, %s6280_s17 }
 0x288   : > { %v1544_v19 = vpop.permute.xlu2 %1543 }
 0x289   : > { %1937 = vrot.lane.b32.xlu1 %v1868_v15, %s6281_s18  ;;  %1639 = vst.msk [vmem:[#allocation3 + $0x8] sm:$0xff] %vm11620_vm7, %v1544_v19  ;;  %v1872_v15 = vld [vmem:[#allocation2 + $0x9a] sm:$0xff]  ;;  %v1680_v19 = vld [vmem:[#allocation2 + $0xa9] sm:$0xff] }
 0x28a   : > { %1953 = vrot.lane.b32.xlu0 %v1876_v29, %s6281_s18 }
 0x28b   : > { %v1406_v17 = vpop.permute.xlu1 %1405 }
 0x28c   : > { %1473 = vst.msk [vmem:[#allocation3 + $0xe8] sm:$0xff] %vm11621_vm6, %v1406_v17  ;;  %v1410_v25 = vpop.permute.xlu0 %1409  ;;  %v1873_v17 = vld [vmem:[#allocation2 + $0xaa] sm:$0xff] }
 0x28d   : > { %1475 = vst.msk [vmem:[#allocation3 + $0xf8] sm:$0xff] %vm11621_vm6, %v1410_v25 }
 0x28e   : > { %1951 = vrot.lane.b32.xlu2 %v1875_v22, %s6281_s18 }
 0x290   : > { %v1550_v27 = vpop.permute.xlu2 %1549 }
 0x291   : > { %1746 = vrot.lane.b32.xlu1 %v1676_v13, %s6280_s17  ;;  %1642 = vst.msk [vmem:[#allocation3 + $0x20] sm:$0xff] %vm11620_vm7, %v1550_v27  ;;  %v1687_v13 = vld [vmem:[#allocation2 + $0xf9] sm:$0xff]  ;;  %v1696_v27 = vld [vmem:[#allocation2 + $0x169] sm:$0xff] }
 0x292   : > { %1778 = vrot.lane.b32.xlu0 %v1692_v41, %s6280_s17 }
 0x293   : > { %v1542_v24 = vpop.permute.xlu1 %1541 }
 0x294   : > { %1638 = vst.msk [vmem:[#allocation3] sm:$0xff] %vm11620_vm7, %v1542_v24  ;;  %v1546_v21 = vpop.permute.xlu0 %1545  ;;  %v1688_v24 = vld [vmem:[#allocation2 + $0x109] sm:$0xff] }
 0x295   : > { %1640 = vst.msk [vmem:[#allocation3 + $0x10] sm:$0xff] %vm11620_vm7, %v1546_v21 }
 0x296   : > { %1760 = vrot.lane.b32.xlu2 %v1683_v18, %s6280_s17 }
 0x298   : > { %v1556_v28 = vpop.permute.xlu2 %1555 }
 0x299   : > { %1971 = vrot.lane.b32.xlu1 %v1885_v31, %s6281_s18  ;;  %1645 = vst.msk [vmem:[#allocation3 + $0x38] sm:$0xff] %vm11620_vm7, %v1556_v28 }
 0x29a   : > { %1955 = vrot.lane.b32.xlu0 %v1877_v46, %s6281_s18  ;;  %v1503_v46 = vld [vmem:[#allocation2 + $0x168] sm:$0xff] }
 0x29b   : > { %v1548_v34 = vpop.permute.xlu1 %1547 }
 0x29c   : > { %1641 = vst.msk [vmem:[#allocation3 + $0x18] sm:$0xff] %vm11620_vm7, %v1548_v34  ;;  %v1552_v37 = vpop.permute.xlu0 %1551  ;;  %v1881_v34 = vld [vmem:[#allocation2 + $0x10a] sm:$0xff] }
 0x29d   : > { %1643 = vst.msk [vmem:[#allocation3 + $0x28] sm:$0xff] %vm11620_vm7, %v1552_v37 }
 0x29e   : > { %1939 = vrot.lane.b32.xlu2 %v1869_v30, %s6281_s18  ;;  %v1504_v30 = vld [vmem:[#allocation2 + $0x170] sm:$0xff] }
 0x2a0   : > { %v1562_v50 = vpop.permute.xlu2 %1561 }
 0x2a1   : > { %1748 = vrot.lane.b32.xlu1 %v1677_v44, %s6280_s17  ;;  %1648 = vst.msk [vmem:[#allocation3 + $0x50] sm:$0xff] %vm11620_vm7, %v1562_v50  ;;  %v1889_v50 = vld [vmem:[#allocation2 + $0x16a] sm:$0xff] }
 0x2a2   : > { %1780 = vrot.lane.b32.xlu0 %v1693_v53, %s6280_s17 }
 0x2a3   : > { %v1554_v36 = vpop.permute.xlu1 %1553 }
 0x2a4   : > { %1644 = vst.msk [vmem:[#allocation3 + $0x30] sm:$0xff] %vm11620_vm7, %v1554_v36  ;;  %v1558_v40 = vpop.permute.xlu0 %1557 }
 0x2a5   : > { %1646 = vst.msk [vmem:[#allocation3 + $0x40] sm:$0xff] %vm11620_vm7, %v1558_v40  ;;  %v1890_v40 = vld [vmem:[#allocation2 + $0x172] sm:$0xff] }
 0x2a6   : > { %1762 = vrot.lane.b32.xlu2 %v1684_v4, %s6280_s17  ;;  %v1874_v4 = vld [vmem:[#allocation2 + $0xb2] sm:$0xff] }
 0x2a8   : > { %v1568_v7 = vpop.permute.xlu2 %1567 }
 0x2a9   : > { %1973 = vrot.lane.b32.xlu1 %v1886_v43, %s6281_s18  ;;  %1651 = vst.msk [vmem:[#allocation3 + $0x68] sm:$0xff] %vm11620_vm7, %v1568_v7 }
 0x2aa   : > { %1957 = vrot.lane.b32.xlu0 %v1878_v54, %s6281_s18 }
 0x2ab   : > { %v1560_v42 = vpop.permute.xlu1 %1559 }
 0x2ac   : > { %1647 = vst.msk [vmem:[#allocation3 + $0x48] sm:$0xff] %vm11620_vm7, %v1560_v42  ;;  %v1564_v57 = vpop.permute.xlu0 %1563 }
 0x2ad   : > { %1649 = vst.msk [vmem:[#allocation3 + $0x58] sm:$0xff] %vm11620_vm7, %v1564_v57  ;;  %v1505_v57 = vld [vmem:[#allocation2 + $0x180] sm:$0xff] }
 0x2ae   : > { %1941 = vrot.lane.b32.xlu2 %v1870_v48, %s6281_s18  ;;  %v1689_v48 = vld [vmem:[#allocation2 + $0x111] sm:$0xff] }
 0x2b0   : > { %v1574_v56 = vpop.permute.xlu2 %1573 }
 0x2b1   : > { %1750 = vrot.lane.b32.xlu1 %v1678_v47, %s6280_s17  ;;  %1654 = vst.msk [vmem:[#allocation3 + $0x80] sm:$0xff] %vm11620_vm7, %v1574_v56  ;;  %v1690_v56 = vld [vmem:[#allocation2 + $0x121] sm:$0xff] }
 0x2b2   : > { %1782 = vrot.lane.b32.xlu0 %v1694_v51, %s6280_s17 }
 0x2b3   : > { %v1566_v5 = vpop.permute.xlu1 %1565 }
 0x2b4   : > { %1650 = vst.msk [vmem:[#allocation3 + $0x60] sm:$0xff] %vm11620_vm7, %v1566_v5  ;;  %v1570_v55 = vpop.permute.xlu0 %1569 }
 0x2b5   : > { %1652 = vst.msk [vmem:[#allocation3 + $0x70] sm:$0xff] %vm11620_vm7, %v1570_v55  ;;  %v1882_v55 = vld [vmem:[#allocation2 + $0x112] sm:$0xff] }
 0x2b6   : > { %1764 = vrot.lane.b32.xlu2 %v1685_v58, %s6280_s17 }
 0x2b8   : > { %v1580_v61 = vpop.permute.xlu2 %1579 }
 0x2b9   : > { %1975 = vrot.lane.b32.xlu1 %v1887_v33, %s6281_s18  ;;  %1657 = vst.msk [vmem:[#allocation3 + $0x98] sm:$0xff] %vm11620_vm7, %v1580_v61  ;;  %v1883_v33 = vld [vmem:[#allocation2 + $0x122] sm:$0xff] }
 0x2ba   : > { %1959 = vrot.lane.b32.xlu0 %v1879_v2, %s6281_s18 }
 0x2bb   : > { %v1572_v49 = vpop.permute.xlu1 %1571 }
 0x2bc   : > { %1653 = vst.msk [vmem:[#allocation3 + $0x78] sm:$0xff] %vm11620_vm7, %v1572_v49  ;;  %v1576_v60 = vpop.permute.xlu0 %1575 }
 0x2bd   : > { %1655 = vst.msk [vmem:[#allocation3 + $0x88] sm:$0xff] %vm11620_vm7, %v1576_v60 }
 0x2be   : > { %1943 = vrot.lane.b32.xlu2 %v1871_v12, %s6281_s18  ;;  %v1884_v12 = vld [vmem:[#allocation2 + $0x12a] sm:$0xff] }
 0x2c0   : > { %v1586_v11 = vpop.permute.xlu2 %1585 }
 0x2c1   : > { %1752 = vrot.lane.b32.xlu1 %v1679_v63, %s6280_s17  ;;  %1660 = vst.msk [vmem:[#allocation3 + $0xb0] sm:$0xff] %vm11620_vm7, %v1586_v11 }
 0x2c2   : > { %1784 = vrot.lane.b32.xlu0 %v1695_v6, %s6280_s17  ;;  %v1506_v6 = vld [vmem:[#allocation2 + $0x188] sm:$0xff] }
 0x2c3   : > { %v1578_v38 = vpop.permute.xlu1 %1577 }
 0x2c4   : > { %1656 = vst.msk [vmem:[#allocation3 + $0x90] sm:$0xff] %vm11620_vm7, %v1578_v38  ;;  %v1582_v3 = vpop.permute.xlu0 %1581 }
 0x2c5   : > { %1658 = vst.msk [vmem:[#allocation3 + $0xa0] sm:$0xff] %vm11620_vm7, %v1582_v3 }
 0x2c6   : > { %1766 = vrot.lane.b32.xlu2 %v1686_v10, %s6280_s17  ;;  %v1507_v10 = vld [vmem:[#allocation2 + $0x198] sm:$0xff] }
 0x2c8   : > { %v1588_v0 = vpop.permute.xlu2 %1587 }
 0x2c9   : > { %1977 = vrot.lane.b32.xlu1 %v1888_v20, %s6281_s18  ;;  %1661 = vst.msk [vmem:[#allocation3 + $0xb8] sm:$0xff] %vm11620_vm7, %v1588_v0 }
 0x2ca   : > { %1961 = vrot.lane.b32.xlu0 %v1880_v8, %s6281_s18  ;;  %v1691_v8 = vld [vmem:[#allocation2 + $0x129] sm:$0xff] }
 0x2cb   : > { %v1584_v39 = vpop.permute.xlu1 %1583 }
 0x2cc   : > { %1659 = vst.msk [vmem:[#allocation3 + $0xa8] sm:$0xff] %vm11620_vm7, %v1584_v39  ;;  %v1735_v29 = vpop.permute.xlu0 %1734 }
 0x2cd   : > { %1831 = vst.msk [vmem:[#allocation3] sm:$0xff] %vm11619_vm8, %v1735_v29  ;;  %v1894_v29 = vld [vmem:[#allocation2 + $0x1a2] sm:$0xff] }
 0x2ce   : > { %1945 = vrot.lane.b32.xlu2 %v1872_v15, %s6281_s18  ;;  %v1508_v15 = vld [vmem:[#allocation2 + $0x1a0] sm:$0xff] }
 0x2d0   : > { %v1739_v22 = vpop.permute.xlu2 %1738 }
 0x2d1   : > { %1754 = vrot.lane.b32.xlu1 %v1680_v19, %s6280_s17  ;;  %1833 = vst.msk [vmem:[#allocation3 + $0x10] sm:$0xff] %vm11619_vm8, %v1739_v22  ;;  %v1700_v22 = vld [vmem:[#allocation2 + $0x199] sm:$0xff] }
 0x2d2   : > { %1947 = vrot.lane.b32.xlu0 %v1873_v17, %s6281_s18 }
 0x2d3   : > { %v1928_v25 = vpop.permute.xlu1 %1927 }
 0x2d4   : > { %2024 = vst.msk [vmem:[#allocation3] sm:$0xff] %vm11618_vm9, %v1928_v25  ;;  %v1737_v41 = vpop.permute.xlu0 %1736 }
 0x2d5   : > { %1832 = vst.msk [vmem:[#allocation3 + $0x8] sm:$0xff] %vm11619_vm8, %v1737_v41 }
 0x2d6   : > { %1768 = vrot.lane.b32.xlu2 %v1687_v13, %s6280_s17 }
 0x2d8   : > { %v1741_v18 = vpop.permute.xlu2 %1740 }
 0x2d9   : > { %1786 = vrot.lane.b32.xlu1 %v1696_v27, %s6280_s17  ;;  %1834 = vst.msk [vmem:[#allocation3 + $0x18] sm:$0xff] %vm11619_vm8, %v1741_v18  ;;  %v1701_v18 = vld [vmem:[#allocation2 + $0x1a1] sm:$0xff] }
 0x2da   : > { %1770 = vrot.lane.b32.xlu0 %v1688_v24, %s6280_s17 }
 0x2db   : > { %v1930_v21 = vpop.permute.xlu1 %1929  ;;  %v2056_v31 = vld [vmem:[#allocation3] sm:$0xff] }
 0x2dc   : > { %2025 = vst.msk [vmem:[#allocation3 + $0x8] sm:$0xff] %vm11618_vm9, %v1930_v21  ;;  %6003 = vmatmul.msk.f32.vlgmr.msra.gmra.mxu0 %vm11617_vm10, %v2056_v31  ;;  %v1932_v28 = vpop.permute.xlu0 %1931 }
 0x2dd   : > { %2026 = vst.msk [vmem:[#allocation3 + $0x10] sm:$0xff] %vm11618_vm9, %v1932_v28 }
 0x2de   : > { %1593 = vrot.lane.b32.xlu2 %v1503_v46, %s6279_s16 }
 0x2e0   : > { %v1743_v37 = vpop.permute.xlu2 %1742 }
 0x2e1   : > { %1963 = vrot.lane.b32.xlu1 %v1881_v34, %s6281_s18  ;;  %1835 = vst.msk [vmem:[#allocation3 + $0x20] sm:$0xff] %vm11619_vm8, %v1743_v37 }
 0x2e2   : > { %1595 = vrot.lane.b32.xlu0 %v1504_v30, %s6279_s16 }
 0x2e3   : > { %v1590_v44 = vpop.permute.xlu1 %1589  ;;  %v2057_v53 = vld [vmem:[#allocation3 + $0x8] sm:$0xff] }
 0x2e4   : > { %1662 = vst.msk [vmem:[#allocation3 + $0xc0] sm:$0xff] %vm11620_vm7, %v1590_v44  ;;  %6004 = vmatmul.msk.f32.gmra.mxu0 %vm11617_vm10, %v2057_v53  ;;  %v1934_v36 = vpop.permute.xlu0 %1933  ;;  %v2058_v7 = vld [vmem:[#allocation3 + $0x10] sm:$0xff] }
 0x2e5   : > { %2027 = vst.msk [vmem:[#allocation3 + $0x18] sm:$0xff] %vm11618_vm9, %v1934_v36 }
 0x2e6   : > { %1979 = vrot.lane.b32.xlu2 %v1889_v50, %s6281_s18 }
 0x2e8   : > { %v1952_v43 = vpop.permute.xlu2 %1951 }
 0x2e9   : > { %1949 = vrot.lane.b32.xlu1 %v1874_v4, %s6281_s18 }
 0x2ea   : > { %1981 = vrot.lane.b32.xlu0 %v1890_v40, %s6281_s18 }
 0x2eb   : > { %v1592_v54 = vpop.permute.xlu1 %1591 }
 0x2ec   : > { %1663 = vst.msk [vmem:[#allocation3 + $0xc8] sm:$0xff] %vm11620_vm7, %v1592_v54  ;;  %6005 = vmatmul.msk.f32.gmra.mxu0 %vm11617_vm10, %v2058_v7  ;;  %v1936_v42 = vpop.permute.xlu0 %1935  ;;  %v2059_v47 = vld [vmem:[#allocation3 + $0x18] sm:$0xff] }
 0x2ed   : > { %2028 = vst.msk [vmem:[#allocation3 + $0x20] sm:$0xff] %vm11618_vm9, %v1936_v42 }
 0x2ee   : > { %1756 = vrot.lane.b32.xlu2 %v1681_v9, %s6280_s17 }
 0x2f0   : > { %v1761_v45 = vpop.permute.xlu2 %1760 }
 0x2f1   : > { %1772 = vrot.lane.b32.xlu1 %v1689_v48, %s6280_s17  ;;  %1844 = vst.msk [vmem:[#allocation3 + $0x68] sm:$0xff] %vm11619_vm8, %v1761_v45 }
 0x2f2   : > { %1597 = vrot.lane.b32.xlu0 %v1505_v57, %s6279_s16 }
 0x2f3   : > { %v1759_v23 = vpop.permute.xlu1 %1758 }
 0x2f4   : > { %1843 = vst.msk [vmem:[#allocation3 + $0x60] sm:$0xff] %vm11619_vm8, %v1759_v23  ;;  %6006 = vmatmul.msk.f32.gmra.mxu0 %vm11617_vm10, %v2059_v47  ;;  %v1745_v51 = vpop.permute.xlu0 %1744  ;;  %v2060_v58 = vld [vmem:[#allocation3 + $0x20] sm:$0xff] }
 0x2f5   : > { %2036 = vst.msk [vmem:[#allocation3 + $0x60] sm:$0xff] %vm11618_vm9, %v1952_v43 }
 0x2f6   : > { %1836 = vst.msk [vmem:[#allocation3 + $0x28] sm:$0xff] %vm11619_vm8, %v1745_v51  ;;  %1788 = vrot.lane.b32.xlu2 %v1697_v52, %s6280_s17 }
 0x2f8   : > { %v1940_v14 = vpop.permute.xlu2 %1939 }
 0x2f9   : > { %1790 = vrot.lane.b32.xlu1 %v7193_v62, %s6280_s17 }
 0x2fa   : > { %1774 = vrot.lane.b32.xlu0 %v1690_v56, %s6280_s17 }
 0x2fb   : > { %v1938_v5 = vpop.permute.xlu1 %1937 }
 0x2fc   : > { %2029 = vst.msk [vmem:[#allocation3 + $0x28] sm:$0xff] %vm11618_vm9, %v1938_v5  ;;  %6007 = vmatmul.msk.f32.gmra.mxu0 %vm11617_vm10, %v2060_v58  ;;  %v1954_v26 = vpop.permute.xlu0 %1953  ;;  %v2068_v59 = vld [vmem:[#allocation3 + $0x60] sm:$0xff] }
 0x2fd   : > { %2037 = vst.msk [vmem:[#allocation3 + $0x68] sm:$0xff] %vm11618_vm9, %v1954_v26  ;;  %6015 = vmatmul.msk.f32.vlgmr.msra.gmra.mxu1 %vm11617_vm10, %v2068_v59 }
 0x2fe   : > { %1965 = vrot.lane.b32.xlu2 %v1882_v55, %s6281_s18 }
 0x300   : > { %v1763_v62 = vpop.permute.xlu2 %1762 }
 0x301   : > { %1967 = vrot.lane.b32.xlu1 %v1883_v33, %s6281_s18  ;;  %1845 = vst.msk [vmem:[#allocation3 + $0x70] sm:$0xff] %vm11619_vm8, %v1763_v62 }
 0x302   : > { %1792 = vrot.lane.b32.xlu0 %v1699_v1, %s6280_s17 }
 0x303   : > { %v1747_v2 = vpop.permute.xlu1 %1746  ;;  %v2061_v61 = vld [vmem:[#allocation3 + $0x28] sm:$0xff] }
 0x304   : > { %1837 = vst.msk [vmem:[#allocation3 + $0x30] sm:$0xff] %vm11619_vm8, %v1747_v2  ;;  %6008 = vmatmul.msk.f32.gmra.mxu0 %vm11617_vm10, %v2061_v61  ;;  %v1779_v16 = vpop.permute.xlu0 %1778  ;;  %v2069_v49 = vld [vmem:[#allocation3 + $0x68] sm:$0xff] }
 0x305   : > { %2030 = vst.msk [vmem:[#allocation3 + $0x30] sm:$0xff] %vm11618_vm9, %v1940_v14  ;;  %6016 = vmatmul.msk.f32.gmra.mxu1 %vm11617_vm10, %v2069_v49 }
 0x306   : > { %1853 = vst.msk [vmem:[#allocation3 + $0xb0] sm:$0xff] %vm11619_vm8, %v1779_v16  ;;  %1983 = vrot.lane.b32.xlu2 %v7308_v35, %s6281_s18  ;;  %v1893_v35 = vld [vmem:[#allocation2 + $0x19a] sm:$0xff] }
 0x308   : > { %v1942_v60 = vpop.permute.xlu2 %1941 }
 0x309   : > { %1985 = vrot.lane.b32.xlu1 %v7293_v32, %s6281_s18 }
 0x30a   : > { %1969 = vrot.lane.b32.xlu0 %v1884_v12, %s6281_s18 }
 0x30b   : > { %v1972_v63 = vpop.permute.xlu1 %1971 }
 0x30c   : > { %2046 = vst.msk [vmem:[#allocation3 + $0xb0] sm:$0xff] %vm11618_vm9, %v1972_v63  ;;  %v1956_v11 = vpop.permute.xlu0 %1955  ;;  %v2062_v38 = vld [vmem:[#allocation3 + $0x30] sm:$0xff] }
 0x30d   : > { %2038 = vst.msk [vmem:[#allocation3 + $0x70] sm:$0xff] %vm11618_vm9, %v1956_v11  ;;  %6009 = vmatmul.msk.f32.gmra.mxu0 %vm11617_vm10, %v2062_v38 }
 0x30e   : > { %1599 = vrot.lane.b32.xlu2 %v1506_v6, %s6279_s16 }
 0x310   : > { %v1765_v3 = vpop.permute.xlu2 %1764 }
 0x311   : > { %1601 = vrot.lane.b32.xlu1 %v1507_v10, %s6279_s16  ;;  %1846 = vst.msk [vmem:[#allocation3 + $0x78] sm:$0xff] %vm11619_vm8, %v1765_v3 }
 0x312   : > { %1987 = vrot.lane.b32.xlu0 %v1893_v35, %s6281_s18 }
 0x313   : > { %v1749_v32 = vpop.permute.xlu1 %1748  ;;  %v2078_v20 = vld [vmem:[#allocation3 + $0xb0] sm:$0xff] }
 0x314   : > { %1838 = vst.msk [vmem:[#allocation3 + $0x38] sm:$0xff] %vm11619_vm8, %v1749_v32  ;;  %6025 = vmatmul.msk.f32.vlgmr.msra.gmra.mxu3 %vm11617_vm10, %v2078_v20  ;;  %v1781_v0 = vpop.permute.xlu0 %1780  ;;  %v2070_v39 = vld [vmem:[#allocation3 + $0x70] sm:$0xff] }
 0x315   : > { %2031 = vst.msk [vmem:[#allocation3 + $0x38] sm:$0xff] %vm11618_vm9, %v1942_v60  ;;  %6017 = vmatmul.msk.f32.gmra.mxu1 %vm11617_vm10, %v2070_v39 }
 0x316   : > { %1854 = vst.msk [vmem:[#allocation3 + $0xb8] sm:$0xff] %vm11619_vm8, %v1781_v0  ;;  %1776 = vrot.lane.b32.xlu2 %v1691_v8, %s6280_s17 }
 0x318   : > { %v1944_v19 = vpop.permute.xlu2 %1943 }
 0x319   : > { %1603 = vrot.lane.b32.xlu1 %v1508_v15, %s6279_s16 }
 0x31a   : > { %1989 = vrot.lane.b32.xlu0 %v1894_v29, %s6281_s18 }
 0x31b   : > { %v1974_v17 = vpop.permute.xlu1 %1973 }
 0x31c   : > { %2047 = vst.msk [vmem:[#allocation3 + $0xb8] sm:$0xff] %vm11618_vm9, %v1974_v17  ;;  %v1958_v25 = vpop.permute.xlu0 %1957  ;;  %v2063_v13 = vld [vmem:[#allocation3 + $0x38] sm:$0xff] }
 0x31d   : > { %2039 = vst.msk [vmem:[#allocation3 + $0x78] sm:$0xff] %vm11618_vm9, %v1958_v25  ;;  %6010 = vmatmul.msk.f32.gmra.mxu0 %vm11617_vm10, %v2063_v13 }
 0x31e   : > { %1794 = vrot.lane.b32.xlu2 %v1700_v22, %s6280_s17 }
 0x320   : > { %v1767_v41 = vpop.permute.xlu2 %1766 }
 0x321   : > { %1847 = vst.msk [vmem:[#allocation3 + $0x80] sm:$0xff] %vm11619_vm8, %v1767_v41 }
 0x323   : > { %v1751_v27 = vpop.permute.xlu1 %1750  ;;  %v2079_v24 = vld [vmem:[#allocation3 + $0xb8] sm:$0xff] }
 0x324   : > { %1839 = vst.msk [vmem:[#allocation3 + $0x40] sm:$0xff] %vm11619_vm8, %v1751_v27  ;;  %6026 = vmatmul.msk.f32.gmra.mxu3 %vm11617_vm10, %v2079_v24  ;;  %v1783_v21 = vpop.permute.xlu0 %1782  ;;  %v2071_v31 = vld [vmem:[#allocation3 + $0x78] sm:$0xff] }
 0x325   : > { %2032 = vst.msk [vmem:[#allocation3 + $0x40] sm:$0xff] %vm11618_vm9, %v1944_v19  ;;  %6018 = vmatmul.msk.f32.gmra.mxu1 %vm11617_vm10, %v2071_v31 }
 0x326   : > { %1855 = vst.msk [vmem:[#allocation3 + $0xc0] sm:$0xff] %vm11619_vm8, %v1783_v21  ;;  %1796 = vrot.lane.b32.xlu2 %v1701_v18, %s6280_s17 }
 0x328   : > { %v1946_v46 = vpop.permute.xlu2 %1945 }
 0x32b   : > { %v1976_v28 = vpop.permute.xlu1 %1975 }
 0x32c   : > { %2048 = vst.msk [vmem:[#allocation3 + $0xc0] sm:$0xff] %vm11618_vm9, %v1976_v28  ;;  %v1960_v34 = vpop.permute.xlu0 %1959  ;;  %v2064_v30 = vld [vmem:[#allocation3 + $0x40] sm:$0xff] }
 0x32d   : > { %2040 = vst.msk [vmem:[#allocation3 + $0x80] sm:$0xff] %vm11618_vm9, %v1960_v34  ;;  %6011 = vmatmul.msk.f32.gmra.mxu0 %vm11617_vm10, %v2064_v30 }
 0x330   : > { %v1769_v37 = vpop.permute.xlu2 %1768 }
 0x331   : > { %1848 = vst.msk [vmem:[#allocation3 + $0x88] sm:$0xff] %vm11619_vm8, %v1769_v37 }
 0x333   : > { %v1753_v44 = vpop.permute.xlu1 %1752  ;;  %v2080_v53 = vld [vmem:[#allocation3 + $0xc0] sm:$0xff] }
 0x334   : > { %1840 = vst.msk [vmem:[#allocation3 + $0x48] sm:$0xff] %vm11619_vm8, %v1753_v44  ;;  %6027 = vmatmul.msk.f32.gmra.mxu3 %vm11617_vm10, %v2080_v53  ;;  %v1785_v50 = vpop.permute.xlu0 %1784  ;;  %v2072_v36 = vld [vmem:[#allocation3 + $0x80] sm:$0xff] }
 0x335   : > { %2033 = vst.msk [vmem:[#allocation3 + $0x48] sm:$0xff] %vm11618_vm9, %v1946_v46  ;;  %6019 = vmatmul.msk.f32.gmra.mxu1 %vm11617_vm10, %v2072_v36 }
 0x336   : > { %1856 = vst.msk [vmem:[#allocation3 + $0xc8] sm:$0xff] %vm11619_vm8, %v1785_v50 }
 0x338   : > { %v1594_v4 = vpop.permute.xlu2 %1593 }
 0x339   : > { %1664 = vst.msk [vmem:[#allocation3 + $0xd0] sm:$0xff] %vm11620_vm7, %v1594_v4 }
 0x33b   : > { %v1978_v40 = vpop.permute.xlu1 %1977 }
 0x33c   : > { %2049 = vst.msk [vmem:[#allocation3 + $0xc8] sm:$0xff] %vm11618_vm9, %v1978_v40  ;;  %v1962_v43 = vpop.permute.xlu0 %1961  ;;  %v2065_v54 = vld [vmem:[#allocation3 + $0x48] sm:$0xff] }
 0x33d   : > { %2041 = vst.msk [vmem:[#allocation3 + $0x88] sm:$0xff] %vm11618_vm9, %v1962_v43  ;;  %6012 = vmatmul.msk.f32.gmra.mxu0 %vm11617_vm10, %v2065_v54 }
 0x340   : > { %v1980_v7 = vpop.permute.xlu2 %1979 }
 0x343   : > { %v1755_v9 = vpop.permute.xlu1 %1754  ;;  %v2081_v42 = vld [vmem:[#allocation3 + $0xc8] sm:$0xff] }
 0x344   : > { %1841 = vst.msk [vmem:[#allocation3 + $0x50] sm:$0xff] %vm11619_vm8, %v1755_v9  ;;  %6028 = vmatmul.msk.f32.gmra.mxu3 %vm11617_vm10, %v2081_v42  ;;  %v1948_v48 = vpop.permute.xlu0 %1947  ;;  %v2073_v57 = vld [vmem:[#allocation3 + $0x88] sm:$0xff] }
 0x345   : > { %2034 = vst.msk [vmem:[#allocation3 + $0x50] sm:$0xff] %vm11618_vm9, %v1948_v48  ;;  %6020 = vmatmul.msk.f32.gmra.mxu1 %vm11617_vm10, %v2073_v57 }
 0x348   : > { %v1757_v45 = vpop.permute.xlu2 %1756 }
 0x349   : > { %1842 = vst.msk [vmem:[#allocation3 + $0x58] sm:$0xff] %vm11619_vm8, %v1757_v45 }
 0x34b   : > { %v1787_v23 = vpop.permute.xlu1 %1786 }
 0x34c   : > { %1857 = vst.msk [vmem:[#allocation3 + $0xd0] sm:$0xff] %vm11619_vm8, %v1787_v23  ;;  %v1771_v47 = vpop.permute.xlu0 %1770  ;;  %v2066_v52 = vld [vmem:[#allocation3 + $0x50] sm:$0xff] }
 0x34d   : > { %2050 = vst.msk [vmem:[#allocation3 + $0xd0] sm:$0xff] %vm11618_vm9, %v1980_v7  ;;  %6013 = vmatmul.msk.f32.gmra.mxu0 %vm11617_vm10, %v2066_v52 }
 0x34e   : > { %1849 = vst.msk [vmem:[#allocation3 + $0x90] sm:$0xff] %vm11619_vm8, %v1771_v47 }
 0x350   : > { %v1789_v51 = vpop.permute.xlu2 %1788 }
 0x353   : > { %v1964_v56 = vpop.permute.xlu1 %1963 }
 0x354   : > { %2042 = vst.msk [vmem:[#allocation3 + $0x90] sm:$0xff] %vm11618_vm9, %v1964_v56  ;;  %v1596_v14 = vpop.permute.xlu0 %1595  ;;  %v2082_v5 = vld [vmem:[#allocation3 + $0xd0] sm:$0xff] }
 0x355   : > { %1665 = vst.msk [vmem:[#allocation3 + $0xd8] sm:$0xff] %vm11620_vm7, %v1596_v14  ;;  %6029 = vmatmul.msk.f32.gmra.mxu3 %vm11617_vm10, %v2082_v5 }
 0x356   : > { %1858 = vst.msk [vmem:[#allocation3 + $0xd8] sm:$0xff] %vm11619_vm8, %v1789_v51 }
 0x358   : > { %v1966_v58 = vpop.permute.xlu2 %1965 }
 0x359   : > { %v7609_v32 = vpop.f32.mrf.mxu0 }
 0x35a   : > { %v2380_v44 = vmul.f32 %v7609_v32, %v7609_v32  ;;  %v2307_v36 = vsel %vm11626_vm0, %v7609_v32, 0.0 }
 0x35b   : > { %v1950_v55 = vpop.permute.xlu1 %1949  ;;  %v2074_v26 = vld [vmem:[#allocation3 + $0x90] sm:$0xff] }
 0x35c   : > { %2035 = vst.msk [vmem:[#allocation3 + $0x58] sm:$0xff] %vm11618_vm9, %v1950_v55  ;;  %6021 = vmatmul.msk.f32.gmra.mxu1 %vm11617_vm10, %v2074_v26  ;;  %v1982_v59 = vpop.permute.xlu0 %1981  ;;  %v2412_v7 = vsel %vm11626_vm0, %v2380_v44, 0.0 }
 0x35d   : > { %2051 = vst.msk [vmem:[#allocation3 + $0xd8] sm:$0xff] %vm11618_vm9, %v1982_v59 }
 0x360   : > { %v1984_v33 = vpop.permute.xlu2 %1983 }
 0x361   : > { %v7617_v29 = vpop.f32.mrf.mxu0 }
 0x362   : > { %v2381_v30 = vmul.f32 %v7617_v29, %v7617_v29  ;;  %v2308_v53 = vsel %vm11626_vm0, %v7617_v29, 0.0 }
 0x363   : > { %v1773_v1 = vpop.permute.xlu1 %1772  ;;  %v2067_v62 = vld [vmem:[#allocation3 + $0x58] sm:$0xff]  ;;  %v2309_v54 = vadd.f32 %v2308_v53, %v2307_v36 }
 0x364   : > { %1850 = vst.msk [vmem:[#allocation3 + $0x98] sm:$0xff] %vm11619_vm8, %v1773_v1  ;;  %6014 = vmatmul.msk.f32.gmra.mxu0 %vm11617_vm10, %v2067_v62  ;;  %v1598_v2 = vpop.permute.xlu0 %1597  ;;  %v2083_v61 = vld [vmem:[#allocation3 + $0xd8] sm:$0xff]  ;;  %v2413_v4 = vsel %vm11626_vm0, %v2381_v30, 0.0 }
 0x365   : > { %2043 = vst.msk [vmem:[#allocation3 + $0x98] sm:$0xff] %vm11618_vm9, %v1966_v58  ;;  %6030 = vmatmul.msk.f32.gmra.mxu3 %vm11617_vm10, %v2083_v61  ;;  %v2414_v57 = vadd.f32 %v2413_v4, %v2412_v7 }
 0x366   : > { %1666 = vst.msk [vmem:[#allocation3 + $0xe0] sm:$0xff] %vm11620_vm7, %v1598_v2 }
 0x368   : > { %v1600_v16 = vpop.permute.xlu2 %1599 }
 0x369   : > { %1667 = vst.msk [vmem:[#allocation3 + $0xe8] sm:$0xff] %vm11620_vm7, %v1600_v16  ;;  %v7623_v13 = vpop.f32.mrf.mxu0 }
 0x36a   : > { %v2382_v50 = vmul.f32 %v7623_v13, %v7623_v13  ;;  %v2310_v40 = vsel %vm11626_vm0, %v7623_v13, 0.0 }
 0x36b   : > { %v1791_v49 = vpop.permute.xlu1 %1790  ;;  %v2311_v45 = vadd.f32 %v2310_v40, %v2309_v54 }
 0x36c   : > { %1859 = vst.msk [vmem:[#allocation3 + $0xe0] sm:$0xff] %vm11619_vm8, %v1791_v49  ;;  %v1775_v12 = vpop.permute.xlu0 %1774  ;;  %v2075_v60 = vld [vmem:[#allocation3 + $0x98] sm:$0xff]  ;;  %v2415_v9 = vsel %vm11626_vm0, %v2382_v50, 0.0 }
 0x36d   : > { %2052 = vst.msk [vmem:[#allocation3 + $0xe0] sm:$0xff] %vm11618_vm9, %v1984_v33  ;;  %6022 = vmatmul.msk.f32.gmra.mxu1 %vm11617_vm10, %v2075_v60  ;;  %v2416_v5 = vadd.f32 %v2415_v9, %v2414_v57 }
 0x36e   : > { %1851 = vst.msk [vmem:[#allocation3 + $0xa0] sm:$0xff] %vm11619_vm8, %v1775_v12 }
 0x370   : > { %v1777_v63 = vpop.permute.xlu2 %1776 }
 0x371   : > { %1852 = vst.msk [vmem:[#allocation3 + $0xa8] sm:$0xff] %vm11619_vm8, %v1777_v63  ;;  %v7626_v27 = vpop.f32.mrf.mxu0 }
 0x372   : > { %v2383_v43 = vmul.f32 %v7626_v27, %v7626_v27  ;;  %v2312_v42 = vsel %vm11626_vm0, %v7626_v27, 0.0 }
 0x373   : > { %v1968_v6 = vpop.permute.xlu1 %1967  ;;  %v2313_v58 = vadd.f32 %v2312_v42, %v2311_v45 }
 0x374   : > { %2044 = vst.msk [vmem:[#allocation3 + $0xa0] sm:$0xff] %vm11618_vm9, %v1968_v6  ;;  %v1793_v11 = vpop.permute.xlu0 %1792  ;;  %v2084_v38 = vld [vmem:[#allocation3 + $0xe0] sm:$0xff]  ;;  %v2417_v52 = vsel %vm11626_vm0, %v2383_v43, 0.0 }
 0x375   : > { %1860 = vst.msk [vmem:[#allocation3 + $0xe8] sm:$0xff] %vm11619_vm8, %v1793_v11  ;;  %6031 = vmatmul.msk.f32.gmra.mxu3 %vm11617_vm10, %v2084_v38  ;;  %v2418_v33 = vadd.f32 %v2417_v52, %v2416_v5 }
 0x378   : > { %v1795_v20 = vpop.permute.xlu2 %1794 }
 0x379   : > { %v7628_v24 = vpop.f32.mrf.mxu0 }
 0x37a   : > { %v7632_v21 = vpop.f32.mrf.mxu1  ;;  %v2384_v48 = vmul.f32 %v7628_v24, %v7628_v24  ;;  %v2314_v51 = vsel %vm11626_vm0, %v7628_v24, 0.0 }
 0x37b   : > { %v1986_v10 = vpop.permute.xlu1 %1985  ;;  %v2076_v35 = vld [vmem:[#allocation3 + $0xa0] sm:$0xff]  ;;  %v2315_v1 = vadd.f32 %v2314_v51, %v2313_v58  ;;  %v2392_v54 = vmul.f32 %v7632_v21, %v7632_v21  ;;  %v2330_v45 = vsel %vm11626_vm0, %v7632_v21, 0.0 }
 0x37c   : > { %2053 = vst.msk [vmem:[#allocation3 + $0xe8] sm:$0xff] %vm11618_vm9, %v1986_v10  ;;  %6023 = vmatmul.msk.f32.gmra.mxu1 %vm11617_vm10, %v2076_v35  ;;  %v1970_v3 = vpop.permute.xlu0 %1969  ;;  %v2419_v55 = vsel %vm11626_vm0, %v2384_v48, 0.0 }
 0x37d   : > { %2045 = vst.msk [vmem:[#allocation3 + $0xa8] sm:$0xff] %vm11618_vm9, %v1970_v3  ;;  %v2420_v16 = vadd.f32 %v2419_v55, %v2418_v33  ;;  %v2435_v58 = vsel %vm11626_vm0, %v2392_v54, 0.0 }
 0x380   : > { %v1797_v19 = vpop.permute.xlu2 %1796 }
 0x381   : > { %v7630_v18 = vpop.f32.mrf.mxu0 }
 0x382   : > { %v7638_v28 = vpop.f32.mrf.mxu1  ;;  %v2385_v56 = vmul.f32 %v7630_v18, %v7630_v18  ;;  %v2316_v26 = vsel %vm11626_vm0, %v7630_v18, 0.0 }
 0x383   : > { %v1602_v8 = vpop.permute.xlu1 %1601  ;;  %v2085_v0 = vld [vmem:[#allocation3 + $0xe8] sm:$0xff]  ;;  %v2317_v49 = vadd.f32 %v2316_v26, %v2315_v1  ;;  %v2393_v51 = vmul.f32 %v7638_v28, %v7638_v28  ;;  %v2332_v55 = vsel %vm11626_vm0, %v7638_v28, 0.0 }
 0x384   : > { %1668 = vst.msk [vmem:[#allocation3 + $0xf0] sm:$0xff] %vm11620_vm7, %v1602_v8  ;;  %6032 = vmatmul.msk.f32.gmra.mxu3 %vm11617_vm10, %v2085_v0  ;;  %v1988_v39 = vpop.permute.xlu0 %1987  ;;  %v2077_v15 = vld [vmem:[#allocation3 + $0xa8] sm:$0xff]  ;;  %v2421_v62 = vsel %vm11626_vm0, %v2385_v56, 0.0 }
 0x385   : > { %1861 = vst.msk [vmem:[#allocation3 + $0xf0] sm:$0xff] %vm11619_vm8, %v1795_v20  ;;  %6024 = vmatmul.msk.f32.gmra.mxu1 %vm11617_vm10, %v2077_v15  ;;  %v2422_v6 = vadd.f32 %v2421_v62, %v2420_v16  ;;  %v2437_v33 = vsel %vm11626_vm0, %v2393_v51, 0.0 }
 0x386   : > { %2054 = vst.msk [vmem:[#allocation3 + $0xf0] sm:$0xff] %vm11618_vm9, %v1988_v39 }
 0x38a   : > { %v7634_v31 = vpop.f32.mrf.mxu0 }
 0x38b   : > { %v1604_v17 = vpop.permute.xlu1 %1603  ;;  %v2386_v59 = vmul.f32 %v7634_v31, %v7634_v31  ;;  %v2318_v2 = vsel %vm11626_vm0, %v7634_v31, 0.0 }
 0x38c   : > { %1669 = vst.msk [vmem:[#allocation3 + $0xf8] sm:$0xff] %vm11620_vm7, %v1604_v17  ;;  %v1990_v22 = vpop.permute.xlu0 %1989  ;;  %v2319_v11 = vadd.f32 %v2318_v2, %v2317_v49 }
 0x38d   : > { %1862 = vst.msk [vmem:[#allocation3 + $0xf8] sm:$0xff] %vm11619_vm8, %v1797_v19  ;;  %v2086_v25 = vld [vmem:[#allocation3 + $0xf0] sm:$0xff]  ;;  %v2423_v12 = vsel %vm11626_vm0, %v2386_v59, 0.0 }
 0x38e   : > { %2055 = vst.msk [vmem:[#allocation3 + $0xf8] sm:$0xff] %vm11618_vm9, %v1990_v22  ;;  %6033 = vmatmul.msk.f32.gmra.mxu3 %vm11617_vm10, %v2086_v25  ;;  %v2424_v0 = vadd.f32 %v2423_v12, %v2422_v6 }
 0x392   : > { %v7644_v37 = vpop.f32.mrf.mxu1 }
 0x393   : > { %v2394_v1 = vmul.f32 %v7644_v37, %v7644_v37  ;;  %v2334_v16 = vsel %vm11626_vm0, %v7644_v37, 0.0 }
 0x395   : > { %v2087_v41 = vld [vmem:[#allocation3 + $0xf8] sm:$0xff]  ;;  %v2439_v12 = vsel %vm11626_vm0, %v2394_v1, 0.0 }
 0x396   : > { %6034 = vmatmul.msk.f32.gmra.mxu3 %vm11617_vm10, %v2087_v41 }
 0x397   : > { %v7665_v23 = vpop.f32.mrf.mxu3 }
 0x398   : > { %v2402_v1 = vmul.f32 %v7665_v23, %v7665_v23 }
 0x39a   : > { %v7636_v46 = vpop.f32.mrf.mxu0 }
 0x39b   : > { %v2387_v61 = vmul.f32 %v7636_v46, %v7636_v46  ;;  %v2320_v60 = vsel %vm11626_vm0, %v7636_v46, 0.0 }
 0x39c   : > { %v2321_v39 = vadd.f32 %v2320_v60, %v2319_v11 }
 0x39d   : > { %v2425_v35 = vsel %vm11626_vm0, %v2387_v61, 0.0 }
 0x39e   : > { %v2426_v22 = vadd.f32 %v2425_v35, %v2424_v0 }
 0x3a2   : > { %v7674_v14 = vpop.f32.mrf.mxu1 }
 0x3a3   : > { %v2395_v60 = vmul.f32 %v7674_v14, %v7674_v14  ;;  %v2336_v6 = vsel %vm11626_vm0, %v7674_v14, 0.0 }
 0x3a5   : > { %v2441_v35 = vsel %vm11626_vm0, %v2395_v60, 0.0  ;;  %v2350_v60 = vsel %vm11626_vm0, %v7665_v23, 0.0 }
 0x3a7   : > { %v7691_v38 = vpop.f32.mrf.mxu3 }
 0x3aa   : > { %v7640_v34 = vpop.f32.mrf.mxu0 }
 0x3ab   : > { %v2388_v63 = vmul.f32 %v7640_v34, %v7640_v34  ;;  %v2322_v3 = vsel %vm11626_vm0, %v7640_v34, 0.0 }
 0x3ac   : > { %v2323_v25 = vadd.f32 %v2322_v3, %v2321_v39 }
 0x3ad   : > { %v2427_v15 = vsel %vm11626_vm0, %v2388_v63, 0.0 }
 0x3ae   : > { %v2428_v44 = vadd.f32 %v2427_v15, %v2426_v22 }
 0x3b2   : > { %v7698_v20 = vpop.f32.mrf.mxu1 }
 0x3b3   : > { %v2396_v3 = vmul.f32 %v7698_v20, %v7698_v20  ;;  %v2338_v15 = vsel %vm11626_vm0, %v7698_v20, 0.0 }
 0x3b7   : > { %v7711_v36 = vpop.f32.mrf.mxu3 }
 0x3ba   : > { %v7667_v47 = vpop.f32.mrf.mxu0 }
 0x3bb   : > { %v2389_v8 = vmul.f32 %v7667_v47, %v7667_v47  ;;  %v2324_v19 = vsel %vm11626_vm0, %v7667_v47, 0.0 }
 0x3bc   : > { %v2325_v53 = vadd.f32 %v2324_v19, %v2323_v25 }
 0x3bd   : > { %v2429_v41 = vsel %vm11626_vm0, %v2389_v8, 0.0 }
 0x3be   : > { %v2430_v4 = vadd.f32 %v2429_v41, %v2428_v44 }
 0x3c2   : > { %v7717_v7 = vpop.f32.mrf.mxu1 }
 0x3c3   : > { %v2397_v22 = vmul.f32 %v7717_v7, %v7717_v7  ;;  %v2340_v41 = vsel %vm11626_vm0, %v7717_v7, 0.0 }
 0x3c5   : > { %v2445_v44 = vsel %vm11626_vm0, %v2397_v22, 0.0 }
 0x3c7   : > { %v7734_v62 = vpop.f32.mrf.mxu3 }
 0x3ca   : > { %v7693_v10 = vpop.f32.mrf.mxu0 }
 0x3cb   : > { %v2390_v17 = vmul.f32 %v7693_v10, %v7693_v10  ;;  %v2326_v30 = vsel %vm11626_vm0, %v7693_v10, 0.0 }
 0x3cc   : > { %v2327_v40 = vadd.f32 %v2326_v30, %v2325_v53 }
 0x3cd   : > { %v2431_v50 = vsel %vm11626_vm0, %v2390_v17, 0.0  ;;  %v2443_v17 = vsel %vm11626_vm0, %v2396_v3, 0.0  ;;  %v2455_v3 = vsel %vm11626_vm0, %v2402_v1, 0.0 }
 0x3ce   : > { %v2432_v48 = vadd.f32 %v2431_v50, %v2430_v4 }
 0x3d8   : > { %v7748_v8 = vpop.f32.mrf.mxu3 }
 0x3d9   : > { %v7736_v2 = vpop.f32.mrf.mxu1 }
 0x3da   : > { %v2398_v53 = vmul.f32 %v7736_v2, %v7736_v2  ;;  %v2342_v54 = vsel %vm11626_vm0, %v7736_v2, 0.0 }
 0x3e1   : > { %v7713_v43 = vpop.f32.mrf.mxu0 }
 0x3e2   : > { %v2328_v9 = vsel %vm11626_vm0, %v7713_v43, 0.0  ;;  %v2391_v42 = vmul.f32 %v7713_v43, %v7713_v43 }
 0x3e3   : > { %v2329_v57 = vadd.f32 %v2328_v9, %v2327_v40 }
 0x3e4   : > { %v2433_v52 = vsel %vm11626_vm0, %v2391_v42, 0.0  ;;  %v2447_v42 = vsel %vm11626_vm0, %v2398_v53, 0.0 }
 0x3e5   : > { %v2331_v56 = vadd.f32 %v2330_v45, %v2329_v57  ;;  %v2434_v5 = vadd.f32 %v2433_v52, %v2432_v48 }
 0x3e7   : > { %v2436_v26 = vadd.f32 %v2435_v58, %v2434_v5  ;;  %v2333_v59 = vadd.f32 %v2332_v55, %v2331_v56 }
 0x3e8   : > { %v7762_v50 = vpop.f32.mrf.mxu3 }
 0x3e9   : > { %v2438_v61 = vadd.f32 %v2437_v33, %v2436_v26  ;;  %v2335_v49 = vadd.f32 %v2334_v16, %v2333_v59 }
 0x3ea   : > { %v7750_v39 = vpop.f32.mrf.mxu1 }
 0x3eb   : > { %v2440_v63 = vadd.f32 %v2439_v12, %v2438_v61  ;;  %v2337_v11 = vadd.f32 %v2336_v6, %v2335_v49  ;;  %v2399_v48 = vmul.f32 %v7750_v39, %v7750_v39  ;;  %v2344_v52 = vsel %vm11626_vm0, %v7750_v39, 0.0 }
 0x3ed   : > { %v2442_v0 = vadd.f32 %v2441_v35, %v2440_v63  ;;  %v2339_v19 = vadd.f32 %v2338_v15, %v2337_v11  ;;  %v2449_v5 = vsel %vm11626_vm0, %v2399_v48, 0.0  ;;  %v2403_v63 = vmul.f32 %v7691_v38, %v7691_v38 }
 0x3ee   : > { %v2404_v15 = vmul.f32 %v7711_v36, %v7711_v36 }
 0x3ef   : > { %v2444_v25 = vadd.f32 %v2443_v17, %v2442_v0  ;;  %v2341_v30 = vadd.f32 %v2340_v41, %v2339_v19  ;;  %v2352_v0 = vsel %vm11626_vm0, %v7691_v38, 0.0  ;;  %v2457_v22 = vsel %vm11626_vm0, %v2403_v63, 0.0 }
 0x3f0   : > { %v2405_v41 = vmul.f32 %v7734_v62, %v7734_v62 }
 0x3f1   : > { %v2446_v4 = vadd.f32 %v2445_v44, %v2444_v25  ;;  %v2343_v9 = vadd.f32 %v2342_v54, %v2341_v30  ;;  %v2354_v25 = vsel %vm11626_vm0, %v7711_v36, 0.0  ;;  %v2356_v54 = vsel %vm11626_vm0, %v7734_v62, 0.0 }
 0x3f3   : > { %v2448_v45 = vadd.f32 %v2447_v42, %v2446_v4  ;;  %v2345_v56 = vadd.f32 %v2344_v52, %v2343_v9  ;;  %v2459_v4 = vsel %vm11626_vm0, %v2404_v15, 0.0  ;;  %v2406_v9 = vmul.f32 %v7748_v8, %v7748_v8 }
 0x3f4   : > { %v2407_v52 = vmul.f32 %v7762_v50, %v7762_v50 }
 0x3f5   : > { %v2450_v26 = vadd.f32 %v2449_v5, %v2448_v45  ;;  %v2358_v45 = vsel %vm11626_vm0, %v7748_v8, 0.0  ;;  %v2463_v5 = vsel %vm11626_vm0, %v2406_v9, 0.0 }
 0x3f8   : > { %v7778_v58 = vpop.f32.mrf.mxu3 }
 0x3f9   : > { %v7764_v40 = vpop.f32.mrf.mxu1 }
 0x3fa   : > { %v2400_v57 = vmul.f32 %v7764_v40, %v7764_v40  ;;  %v2346_v51 = vsel %vm11626_vm0, %v7764_v40, 0.0 }
 0x3fb   : > { %v2347_v59 = vadd.f32 %v2346_v51, %v2345_v56 }
 0x3fc   : > { %v2451_v55 = vsel %vm11626_vm0, %v2400_v57, 0.0  ;;  %v2461_v57 = vsel %vm11626_vm0, %v2405_v41, 0.0 }
 0x3fd   : > { %v2452_v49 = vadd.f32 %v2451_v55, %v2450_v26  ;;  %v2360_v55 = vsel %vm11626_vm0, %v7762_v50, 0.0  ;;  %v2408_v26 = vmul.f32 %v7778_v58, %v7778_v58 }
 0x402   : > { %v7781_v33 = vpop.f32.mrf.mxu1 }
 0x403   : > { %v2348_v61 = vsel %vm11626_vm0, %v7781_v33, 0.0  ;;  %v2401_v16 = vmul.f32 %v7781_v33, %v7781_v33 }
 0x404   : > { %v2349_v12 = vadd.f32 %v2348_v61, %v2347_v59  ;;  %v2465_v61 = vsel %vm11626_vm0, %v2407_v52, 0.0 }
 0x405   : > { %v2453_v6 = vsel %vm11626_vm0, %v2401_v16, 0.0  ;;  %v2362_v16 = vsel %vm11626_vm0, %v7778_v58, 0.0 }
 0x406   : > { %v2351_v11 = vadd.f32 %v2350_v60, %v2349_v12  ;;  %v2454_v35 = vadd.f32 %v2453_v6, %v2452_v49  ;;  %v2467_v6 = vsel %vm11626_vm0, %v2408_v26, 0.0 }
 0x407   : > { %v7804_v30 = vpop.f32.mrf.mxu3 }
 0x408   : > { %v2353_v19 = vadd.f32 %v2352_v0, %v2351_v11  ;;  %v2456_v17 = vadd.f32 %v2455_v3, %v2454_v35  ;;  %v2409_v60 = vmul.f32 %v7804_v30, %v7804_v30  ;;  %v2364_v11 = vsel %vm11626_vm0, %v7804_v30, 0.0 }
 0x40a   : > { %v2355_v44 = vadd.f32 %v2354_v25, %v2353_v19  ;;  %v2458_v53 = vadd.f32 %v2457_v22, %v2456_v17  ;;  %v2469_v0 = vsel %vm11626_vm0, %v2409_v60, 0.0 }
 0x40c   : > { %v2460_v42 = vadd.f32 %v2459_v4, %v2458_v53  ;;  %v2357_v48 = vadd.f32 %v2356_v54, %v2355_v44 }
 0x40e   : > { %v2359_v51 = vadd.f32 %v2358_v45, %v2357_v48  ;;  %v2462_v56 = vadd.f32 %v2461_v57, %v2460_v42 }
 0x410   : > { %v2361_v59 = vadd.f32 %v2360_v55, %v2359_v51  ;;  %v2464_v1 = vadd.f32 %v2463_v5, %v2462_v56 }
 0x411   : > { %v7824_v49 = vpop.f32.mrf.mxu3 }
 0x412   : > { %v2363_v12 = vadd.f32 %v2362_v16, %v2361_v59  ;;  %v2466_v63 = vadd.f32 %v2465_v61, %v2464_v1  ;;  %v2410_v15 = vmul.f32 %v7824_v49, %v7824_v49  ;;  %v2366_v17 = vsel %vm11626_vm0, %v7824_v49, 0.0 }
 0x414   : > { %v2468_v35 = vadd.f32 %v2467_v6, %v2466_v63  ;;  %v2365_v3 = vadd.f32 %v2364_v11, %v2363_v12  ;;  %v2471_v41 = vsel %vm11626_vm0, %v2410_v15, 0.0 }
 0x416   : > { %v2470_v19 = vadd.f32 %v2469_v0, %v2468_v35  ;;  %v2367_v22 = vadd.f32 %v2366_v17, %v2365_v3  ;;  %v4070_v17 = vld [vmem:[#allocation4 + $0x9] sm:$0xff] }
 0x418   : > { %v2472_v54 = vadd.f32 %v2471_v41, %v2470_v19  ;;  %v4069_v19 = vld [vmem:[#allocation4 + $0x1] sm:$0xff] }
 0x419   : > { %v7836_v25 = vpop.f32.mrf.mxu3  ;;  %4133 = vrot.lane.b32.xlu0 %v4069_v19, %s6274_s29 }
 0x41a   : > { %v2368_v44 = vsel %vm11626_vm0, %v7836_v25, 0.0  ;;  %v2411_v53 = vmul.f32 %v7836_v25, %v7836_v25 }
 0x41b   : > { %v2369_v4 = vadd.f32 %v2368_v44, %v2367_v22 }
 0x41c   : > { %v2473_v9 = vsel %vm11626_vm0, %v2411_v53, 0.0 }
 0x41d   : > { %2370 = vadd.xlane.f32.xlu1 %v2369_v4  ;;  %v2474_v42 = vadd.f32 %v2473_v9, %v2472_v54 }
 0x41f   : > { %2475 = vadd.xlane.f32.xlu2 %v2474_v42 }
 0x421   : > { %4135 = vrot.lane.b32.xlu0 %v4070_v17, %s6274_s29 }
 0x490   : > { %v2371_v48 = vpop.xlane.xlu1 %2370 }
 0x491   : > { %v2372_v57 = vrot.slane %v2371_v48, 4 }
 0x492   : > { %v2476_v45 = vpop.xlane.xlu2 %2475 }
 0x493   : > { %v2373_v52 = vadd.f32 %v2372_v57, %v2371_v48  ;;  %v2477_v51 = vrot.slane %v2476_v45, 4 }
 0x495   : > { %v2478_v56 = vadd.f32 %v2477_v51, %v2476_v45  ;;  %v2374_v5 = vrot.slane %v2373_v52, 2 }
 0x497   : > { %v2375_v55 = vadd.f32 %v2374_v5, %v2373_v52  ;;  %v2479_v26 = vrot.slane %v2478_v56, 2 }
 0x499   : > { %v2376_v59 = vrot.slane %v2375_v55, 1  ;;  %v2480_v1 = vadd.f32 %v2479_v26, %v2478_v56  ;;  %v7927_v26 = vld [vmem:[%s11431_s3] ss:$0 sm:$0xff] }
 0x49b   : > { %v2377_v61 = vadd.f32 %v2376_v59, %v2375_v55  ;;  %v2481_v16 = vrot.slane %v2480_v1, 1 }
 0x49d   : > { %6092 = vpush %v2377_v61  ;;  %v2482_v12 = vadd.f32 %v2481_v16, %v2480_v1 }
 0x49f   : > { %6094 = vpush %v2482_v12 }
 0x4ce   : > { %s6093_s25 = spop %6092 }
 0x4cf   : > { %s2379_s26 = smul.f32 0.00048828125, %s6093_s25 }
 0x4d0   : > { %s6095_s30 = spop %6094 }
 0x4d1   : > { %s2485_s9 = smul.f32 %s2379_s26, %s2379_s26  ;;  %v7846_v22 = vstv %s2379_s26 }
 0x4d2   : > { %s2484_s10 = smul.f32 0.00048828125, %s6095_s30  ;;  %v2489_v41 = vsub.f32 %v7617_v29, %v7846_v22  ;;  %v2490_v44 = vsub.f32 %v7623_v13, %v7846_v22  ;;  %v2492_v53 = vsub.f32 %v7628_v24, %v7846_v22  ;;  %v2493_v4 = vsub.f32 %v7630_v18, %v7846_v22 }
 0x4d3   : > { %v2494_v54 = vsub.f32 %v7634_v31, %v7846_v22  ;;  %v2495_v9 = vsub.f32 %v7636_v46, %v7846_v22  ;;  %v2496_v42 = vsub.f32 %v7640_v34, %v7846_v22  ;;  %v2497_v29 = vsub.f32 %v7667_v47, %v7846_v22 }
 0x4d4   : > { %s2486_s11 = ssub.f32 %s2484_s10, %s2485_s9  ;;  %v2498_v13 = vsub.f32 %v7693_v10, %v7846_v22  ;;  %v2499_v24 = vsub.f32 %v7713_v43, %v7846_v22  ;;  %v2500_v18 = vsub.f32 %v7632_v21, %v7846_v22  ;;  %v2501_v31 = vsub.f32 %v7638_v28, %v7846_v22 }
 0x4d5   : > { %v2502_v46 = vsub.f32 %v7644_v37, %v7846_v22  ;;  %v2503_v34 = vsub.f32 %v7674_v14, %v7846_v22  ;;  %v2504_v47 = vsub.f32 %v7698_v20, %v7846_v22  ;;  %v2505_v10 = vsub.f32 %v7717_v7, %v7846_v22 }
 0x4d6   : > { %s2520_s19 = sadd.f32 1e-05, %s2486_s11  ;;  %v2506_v43 = vsub.f32 %v7736_v2, %v7846_v22  ;;  %v2507_v21 = vsub.f32 %v7750_v39, %v7846_v22  ;;  %v2508_v28 = vsub.f32 %v7764_v40, %v7846_v22  ;;  %v2509_v37 = vsub.f32 %v7781_v33, %v7846_v22  ;;  %s6072_s11 = sshll.u32 %s12765_s28, 4 }
 0x4d7   : > { %v2510_v14 = vsub.f32 %v7665_v23, %v7846_v22  ;;  %v2511_v20 = vsub.f32 %v7691_v38, %v7846_v22  ;;  %v2512_v7 = vsub.f32 %v7711_v36, %v7846_v22  ;;  %v2513_v2 = vsub.f32 %v7734_v62, %v7846_v22  ;;  %s320_s22 = scalar_lea.vmem %s11429_s1, %s6072_s11 }
 0x4d8   : > { %v2521_v60 = vstv %s2520_s19  ;;  %v2514_v39 = vsub.f32 %v7748_v8, %v7846_v22  ;;  %v2515_v40 = vsub.f32 %v7762_v50, %v7846_v22  ;;  %v2516_v33 = vsub.f32 %v7778_v58, %v7846_v22 }
 0x4d9   : > { %6125 = vrsqrt.f32 %v2521_v60  ;;  %vm2528_vm12 = vweird.f32 %v2521_v60  ;;  %v2517_v23 = vsub.f32 %v7804_v30, %v7846_v22  ;;  %v2518_v36 = vsub.f32 %v7824_v49, %v7846_v22 }
 0x4da   : > { %v2519_v62 = vsub.f32 %v7836_v25, %v7846_v22 }
 0x4df   : > { %v6126_v63 = vpop.eup %6125 }
 0x4e0   : > { %v2523_v6 = vmul.f32 %v6126_v63, %v2521_v60  ;;  %vm2529_vm11 = vweird.f32 %v6126_v63 }
 0x4e1   : > { %vm2530_vm13 = vmor %vm2528_vm12, %vm2529_vm11 }
 0x4e2   : > { %v2524_v11 = vmul.f32 %v6126_v63, %v2523_v6 }
 0x4e4   : > { %v2525_v35 = vmul.f32 0.5, %v2524_v11 }
 0x4e6   : > { %v2526_v3 = vsub.f32 1.5, %v2525_v35 }
 0x4e8   : > { %v2527_v0 = vmul.f32 %v6126_v63, %v2526_v3 }
 0x4ea   : > { %v2531_v15 = vsel %vm2530_vm13, %v6126_v63, %v2527_v0 }
 0x4eb   : > { %6096 = vpush %v2531_v15 }
 0x51c   : > { %s6097_s20 = spop %6096 }
 0x51d   : > { %v7904_v38 = vstv %s6097_s20 }
 0x51e   : > { %v2535_v8 = vmul.f32 %v7904_v38, %v2489_v41  ;;  %v2536_v48 = vmul.f32 %v7904_v38, %v2490_v44  ;;  %v2538_v50 = vmul.f32 %v7904_v38, %v2492_v53  ;;  %v2539_v57 = vmul.f32 %v7904_v38, %v2493_v4 }
 0x51f   : > { %v2540_v58 = vmul.f32 %v7904_v38, %v2494_v54  ;;  %v2541_v30 = vmul.f32 %v7904_v38, %v2495_v9  ;;  %v2542_v45 = vmul.f32 %v7904_v38, %v2496_v42  ;;  %v2543_v52 = vmul.f32 %v7904_v38, %v2497_v29 }
 0x520   : > { %v2544_v49 = vmul.f32 %v7904_v38, %v2498_v13  ;;  %v2545_v25 = vmul.f32 %v7904_v38, %v2499_v24  ;;  %v2546_v51 = vmul.f32 %v7904_v38, %v2500_v18  ;;  %v2547_v56 = vmul.f32 %v7904_v38, %v2501_v31 }
 0x521   : > { %v2548_v5 = vmul.f32 %v7904_v38, %v2502_v46  ;;  %v2549_v55 = vmul.f32 %v7904_v38, %v2503_v34  ;;  %v2550_v59 = vmul.f32 %v7904_v38, %v2504_v47  ;;  %v2551_v1 = vmul.f32 %v7904_v38, %v2505_v10  ;;  %v7962_v10 = vld [vmem:[%s11432_s4] ss:$0 sm:$0xff] }
 0x522   : > { %v2552_v61 = vmul.f32 %v7904_v38, %v2506_v43  ;;  %v2553_v16 = vmul.f32 %v7904_v38, %v2507_v21  ;;  %v2554_v12 = vmul.f32 %v7904_v38, %v2508_v28  ;;  %v2555_v60 = vmul.f32 %v7904_v38, %v2509_v37 }
 0x523   : > { %v2556_v63 = vmul.f32 %v7904_v38, %v2510_v14  ;;  %v2557_v6 = vmul.f32 %v7904_v38, %v2511_v20  ;;  %v2558_v11 = vmul.f32 %v7904_v38, %v2512_v7  ;;  %v2559_v35 = vmul.f32 %v7904_v38, %v2513_v2 }
 0x524   : > { %v2560_v3 = vmul.f32 %v7904_v38, %v2514_v39  ;;  %v2561_v0 = vmul.f32 %v7904_v38, %v2515_v40  ;;  %v2562_v15 = vmul.f32 %v7904_v38, %v2516_v33  ;;  %v2563_v19 = vmul.f32 %v7904_v38, %v2517_v23 }
 0x525   : > { %v2564_v17 = vmul.f32 %v7904_v38, %v2518_v36  ;;  %v2565_v41 = vmul.f32 %v7904_v38, %v2519_v62  ;;  %v2571_v44 = vmul.f32 %v7927_v26, %v2535_v8  ;;  %v2572_v53 = vmul.f32 %v7927_v26, %v2536_v48 }
 0x526   : > { %v2574_v4 = vmul.f32 %v7927_v26, %v2538_v50  ;;  %v2575_v54 = vmul.f32 %v7927_v26, %v2539_v57  ;;  %v2576_v9 = vmul.f32 %v7927_v26, %v2540_v58  ;;  %v2577_v42 = vmul.f32 %v7927_v26, %v2541_v30 }
 0x527   : > { %v2578_v29 = vmul.f32 %v7927_v26, %v2542_v45  ;;  %v2579_v13 = vmul.f32 %v7927_v26, %v2543_v52  ;;  %v2580_v24 = vmul.f32 %v7927_v26, %v2544_v49  ;;  %v2581_v18 = vmul.f32 %v7927_v26, %v2545_v25 }
 0x528   : > { %v2582_v31 = vmul.f32 %v7927_v26, %v2546_v51  ;;  %v2583_v46 = vmul.f32 %v7927_v26, %v2547_v56  ;;  %v2584_v34 = vmul.f32 %v7927_v26, %v2548_v5  ;;  %v2585_v47 = vmul.f32 %v7927_v26, %v2549_v55 }
 0x529   : > { %v2586_v43 = vmul.f32 %v7927_v26, %v2550_v59  ;;  %v2587_v21 = vmul.f32 %v7927_v26, %v2551_v1  ;;  %v2588_v28 = vmul.f32 %v7927_v26, %v2552_v61  ;;  %v2589_v37 = vmul.f32 %v7927_v26, %v2553_v16 }
 0x52a   : > { %v2590_v14 = vmul.f32 %v7927_v26, %v2554_v12  ;;  %v2591_v20 = vmul.f32 %v7927_v26, %v2555_v60  ;;  %v2592_v7 = vmul.f32 %v7927_v26, %v2556_v63  ;;  %v2593_v2 = vmul.f32 %v7927_v26, %v2557_v6 }
 0x52b   : > { %v2594_v39 = vmul.f32 %v7927_v26, %v2558_v11  ;;  %v2595_v40 = vmul.f32 %v7927_v26, %v2559_v35  ;;  %v2596_v33 = vmul.f32 %v7927_v26, %v2560_v3  ;;  %v2597_v23 = vmul.f32 %v7927_v26, %v2561_v0 }
 0x52c   : > { %v2598_v36 = vmul.f32 %v7927_v26, %v2562_v15  ;;  %v2599_v62 = vmul.f32 %v7927_v26, %v2563_v19  ;;  %v2600_v8 = vmul.f32 %v7927_v26, %v2564_v17  ;;  %v2601_v48 = vmul.f32 %v7927_v26, %v2565_v41 }
 0x52d   : > { %v7981_v50 = vadd.f32 %v7962_v10, %v2571_v44  ;;  %v7984_v57 = vadd.f32 %v7962_v10, %v2572_v53  ;;  %v7987_v58 = vadd.f32 %v7962_v10, %v2574_v4  ;;  %v7990_v30 = vadd.f32 %v7962_v10, %v2575_v54 }
 0x52e   : > { %v7993_v45 = vadd.f32 %v7962_v10, %v2576_v9  ;;  %v7996_v52 = vadd.f32 %v7962_v10, %v2577_v42  ;;  %v7999_v49 = vadd.f32 %v7962_v10, %v2578_v29  ;;  %v8002_v25 = vadd.f32 %v7962_v10, %v2579_v13 }
 0x52f   : > { %v8005_v51 = vadd.f32 %v7962_v10, %v2580_v24  ;;  %v8008_v56 = vadd.f32 %v7962_v10, %v2581_v18  ;;  %v8011_v5 = vadd.f32 %v7962_v10, %v2582_v31  ;;  %v8014_v55 = vadd.f32 %v7962_v10, %v2583_v46 }
 0x530   : > { %v8017_v59 = vadd.f32 %v7962_v10, %v2584_v34  ;;  %v8020_v1 = vadd.f32 %v7962_v10, %v2585_v47  ;;  %v8023_v61 = vadd.f32 %v7962_v10, %v2586_v43  ;;  %v8026_v16 = vadd.f32 %v7962_v10, %v2587_v21 }
 0x531   : > { %v8029_v12 = vadd.f32 %v7962_v10, %v2588_v28  ;;  %v8032_v60 = vadd.f32 %v7962_v10, %v2589_v37  ;;  %v8035_v63 = vadd.f32 %v7962_v10, %v2590_v14  ;;  %v8038_v6 = vadd.f32 %v7962_v10, %v2591_v20 }
 0x532   : > { %v8041_v11 = vadd.f32 %v7962_v10, %v2592_v7  ;;  %v8044_v35 = vadd.f32 %v7962_v10, %v2593_v2  ;;  %v8047_v3 = vadd.f32 %v7962_v10, %v2594_v39  ;;  %v8050_v0 = vadd.f32 %v7962_v10, %v2595_v40 }
 0x533   : > { %v8053_v15 = vadd.f32 %v7962_v10, %v2596_v33  ;;  %v8056_v19 = vadd.f32 %v7962_v10, %v2597_v23  ;;  %v8059_v17 = vadd.f32 %v7962_v10, %v2598_v36  ;;  %v8062_v41 = vadd.f32 %v7962_v10, %v2599_v62 }
 0x534   : > { %11725 = vst [vmem:[#allocation6_spill] sm:$0xff] %v8050_v0  ;;  %v8065_v44 = vadd.f32 %v7962_v10, %v2600_v8  ;;  %v8068_v53 = vadd.f32 %v7962_v10, %v2601_v48  ;;  %v8071_v4 = vmul.f32 0.70710677, %v7987_v58  ;;  %v2491_v9 = vsub.f32 %v7626_v27, %v7846_v22 }
 0x535   : > { %11726 = vst [vmem:[#allocation12_spill] sm:$0xff] %v8059_v17  ;;  %v2488_v33 = vsub.f32 %v7609_v32, %v7846_v22 }
 0x536   : > { %11727 = vst [vmem:[#allocation7_spill] sm:$0xff] %v8062_v41  ;;  %v2706_v54 = vand.u32 2147483647, %v8071_v4  ;;  %v2537_v29 = vmul.f32 %v7904_v38, %v2491_v9 }
 0x537   : > { %11728 = vst [vmem:[#allocation9_spill] sm:$0xff] %v8065_v44  ;;  %v2534_v62 = vmul.f32 %v7904_v38, %v2488_v33 }
 0x538   : > { %11729 = vst [vmem:[#allocation15_spill] sm:$0xff] %v8068_v53  ;;  %v2738_v42 = vmul.f32 0.3275911, %v2706_v54  ;;  %v2573_v24 = vmul.f32 %v7927_v26, %v2537_v29  ;;  %v3570_v2 = vsub.f32 0.0, %v2706_v54 }
 0x53a   : > { %v2770_v13 = vadd.f32 1.0, %v2738_v42  ;;  %v2609_v31 = vadd.f32 %v7962_v10, %v2573_v24  ;;  %v3602_v8 = vmul.f32 %v3570_v2, %v2706_v54  ;;  %v2570_v42 = vmul.f32 %v7927_v26, %v2534_v62 }
 0x53c   : > { %6127 = vrcp.f32 %v2770_v13  ;;  %v2869_v47 = vand.u32 2147483648, %v2770_v13  ;;  %v8079_v43 = vmul.f32 0.70710677, %v2609_v31  ;;  %v2867_v28 = vand.u32 2147483647, %v2770_v13 }
 0x53d   : > { %vm2863_vm15 = vweird.f32 %v2770_v13  ;;  %v3638_v29 = vmul.f32 1.442695, %v3602_v8 }
 0x53e   : > { %v2870_v27 = vor.u32 1.1754944e-38, %v2869_v47  ;;  %v2705_v14 = vand.u32 2147483647, %v8079_v43  ;;  %vm2868_vm11 = vcmp.eq.f32.partialorder %v2867_v28, 8.507059e+37 }
 0x540   : > { %v2737_v39 = vmul.f32 0.3275911, %v2705_v14 }
 0x542   : > { %v6128_v18 = vpop.eup %6127  ;;  %v2769_v23 = vadd.f32 1.0, %v2737_v39 }
 0x543   : > { %v2859_v46 = vmul.f32 %v6128_v18, %v2770_v13  ;;  %vm2864_vm14 = vweird.f32 %v6128_v18 }
 0x544   : > { %vm2865_vm1 = vmor %vm2863_vm15, %vm2864_vm14  ;;  %6129 = vrcp.f32 %v2769_v23  ;;  %v2854_v22 = vand.u32 2147483648, %v2769_v23  ;;  %v2852_v38 = vand.u32 2147483647, %v2769_v23  ;;  %vm2848_vm13 = vweird.f32 %v2769_v23 }
 0x545   : > { %v2860_v34 = vsub.f32 1.0, %v2859_v46  ;;  %6131 = vpow2.f32 %v3638_v29 }
 0x546   : > { %vm2853_vm15 = vcmp.eq.f32.partialorder %v2852_v38, 8.507059e+37 }
 0x547   : > { %v2861_v21 = vmul.f32 %v6128_v18, %v2860_v34  ;;  %v2606_v34 = vadd.f32 %v7962_v10, %v2570_v42  ;;  %v8107_v42 = vmul.f32 0.5, %v7990_v30 }
 0x549   : > { %v2862_v37 = vadd.f32 %v6128_v18, %v2861_v21  ;;  %v8087_v54 = vmul.f32 0.70710677, %v2606_v34  ;;  %v8095_v8 = vmul.f32 0.5, %v2606_v34  ;;  %11732 = vst [vmem:[#allocation18_spill] sm:$0xff] %v8107_v42 }
 0x54a   : > { %v6130_v24 = vpop.eup %6129 }
 0x54b   : > { %v2866_v20 = vsel %vm2865_vm1, %v6128_v18, %v2862_v37  ;;  %v2844_v46 = vmul.f32 %v6130_v24, %v2769_v23  ;;  %vm2849_vm12 = vweird.f32 %v6130_v24  ;;  %v6132_v26 = vpop.eup %6131  ;;  %v8092_v33 = vand.u32 2147483647, %v8087_v54 }
 0x54c   : > { %v2871_v7 = vsel %vm2868_vm11, %v2870_v27, %v2866_v20  ;;  %vm2850_vm14 = vmor %vm2848_vm13, %vm2849_vm12  ;;  %v2855_v20 = vor.u32 1.1754944e-38, %v2854_v22  ;;  %v8099_v23 = vmul.f32 0.5, %v7981_v50  ;;  %vm3762_vm1 = vcmp.ge.f32.partialorder %v8071_v4, 0.0 }
 0x54d   : > { %v3282_v40 = vmul.f32 1.0614054, %v2871_v7  ;;  %v2845_v32 = vsub.f32 1.0, %v2844_v46  ;;  %v8124_v4 = vmul.f32 0.5, %v8005_v51  ;;  %vm3761_vm13 = vcmp.ge.f32.partialorder %v8079_v43, 0.0 }
 0x54e   : > { %11730 = vst [vmem:[#allocation8_spill] sm:$0xff] %v8099_v23 }
 0x54f   : > { %v3314_v36 = vadd.f32 -1.4531521, %v3282_v40  ;;  %v2846_v28 = vmul.f32 %v6130_v24, %v2845_v32  ;;  %v3569_v40 = vsub.f32 0.0, %v2705_v14  ;;  %11737 = vst [vmem:[#allocation17_spill] sm:$0xff] %v8124_v4 }
 0x551   : > { %v3346_v48 = vmul.f32 %v3314_v36, %v2871_v7  ;;  %v2847_v27 = vadd.f32 %v6130_v24, %v2846_v28  ;;  %v2642_v36 = vmul.f32 0.5, %v7987_v58  ;;  %v8111_v58 = vmul.f32 0.5, %v7993_v45 }
 0x552   : > { %v3601_v46 = vmul.f32 %v3569_v40, %v2705_v14  ;;  %v8131_v28 = vmul.f32 0.5, %v8011_v5  ;;  %v8136_v14 = vmul.f32 0.5, %v8014_v55  ;;  %v8149_v40 = vmul.f32 0.5, %v8026_v16 }
 0x553   : > { %v3378_v9 = vadd.f32 1.4214138, %v3346_v48  ;;  %v2851_v39 = vsel %vm2850_vm14, %v6130_v24, %v2847_v27  ;;  %v8102_v48 = vmul.f32 0.5, %v7984_v57  ;;  %11733 = vst [vmem:[#allocation10_spill] sm:$0xff] %v8111_v58  ;;  %v8114_v24 = vmul.f32 0.5, %v7996_v52 }
 0x554   : > { %v8089_v10 = vsel %vm2853_vm15, %v2855_v20, %v2851_v39  ;;  %11739 = vst [vmem:[#allocation16_spill] sm:$0xff] %v8131_v28  ;;  %v8142_v27 = vmul.f32 0.5, %v8020_v1  ;;  %v3636_v39 = vmul.f32 1.442695, %v3601_v46  ;;  %v8166_v46 = vmul.f32 0.5, %v8041_v11 }
 0x555   : > { %v3410_v13 = vmul.f32 %v3378_v9, %v2871_v7  ;;  %11731 = vst [vmem:[#allocation11_spill] sm:$0xff] %v8102_v48  ;;  %v8104_v9 = vmul.f32 0.5, %v2609_v31  ;;  %v2734_v31 = vmul.f32 0.3275911, %v8092_v33 }
 0x556   : > { %11734 = vst [vmem:[#allocation14_spill] sm:$0xff] %v8114_v24 }
 0x557   : > { %v3442_v18 = vadd.f32 -0.28449672, %v3410_v13  ;;  %v8133_v38 = vadd.f32 1.0, %v2734_v31  ;;  %11740 = vst [vmem:[#allocation20_spill] sm:$0xff] %v8136_v14  ;;  %v8169_v31 = vmul.f32 0.70710677, %v7981_v50 }
 0x558   : > { %11742 = vst [vmem:[#allocation19_spill] sm:$0xff] %v8142_v27  ;;  %v8187_v50 = vmul.f32 0.70710677, %v8002_v25 }
 0x559   : > { %v3474_v47 = vmul.f32 %v3442_v18, %v2871_v7  ;;  %v8117_v18 = vmul.f32 0.5, %v7999_v49  ;;  %6133 = vrcp.f32 %v8133_v38  ;;  %11744 = vst [vmem:[#allocation30_spill] sm:$0xff] %v8149_v40  ;;  %vm2803_vm12 = vweird.f32 %v8133_v38 }
 0x55a   : > { %11749 = vst [vmem:[#allocation29_spill] sm:$0xff] %v8166_v46  ;;  %6135 = vpow2.f32 %v3636_v39  ;;  %v8197_v46 = vmul.f32 0.70710677, %v8011_v5  ;;  %v8216_v5 = vmul.f32 0.70710677, %v8029_v12 }
 0x55b   : > { %v3506_v21 = vadd.f32 0.2548296, %v3474_v47  ;;  %11735 = vst [vmem:[#allocation21_spill] sm:$0xff] %v8117_v18  ;;  %v8121_v47 = vmul.f32 0.5, %v8002_v25  ;;  %v8206_v25 = vmul.f32 0.70710677, %v8020_v1 }
 0x55c   : > { %11750 = vst [vmem:[#allocation28_spill] sm:$0xff] %v8169_v31  ;;  %v8225_v1 = vmul.f32 0.70710677, %v8038_v6  ;;  %v8273_v43 = vand.u32 2147483647, %v8169_v31 }
 0x55d   : > { %v3538_v37 = vmul.f32 %v3506_v21, %v2871_v7  ;;  %v3281_v7 = vmul.f32 1.0614054, %v8089_v10  ;;  %11736 = vst [vmem:[#allocation13_spill] sm:$0xff] %v8121_v47  ;;  %v8128_v21 = vmul.f32 0.5, %v8008_v56  ;;  %v8304_v58 = vand.u32 2147483647, %v8197_v46 }
 0x55e   : > { %11758 = vst [vmem:[#allocation39_spill] sm:$0xff] %v8197_v46 }
 0x55f   : > { %v3698_v2 = vmul.f32 %v6132_v26, %v3538_v37  ;;  %v3313_v13 = vadd.f32 -1.4531521, %v3281_v7  ;;  %11738 = vst [vmem:[#allocation24_spill] sm:$0xff] %v8128_v21  ;;  %v8139_v37 = vmul.f32 0.5, %v8017_v59  ;;  %v8155_v7 = vmul.f32 0.5, %v8032_v60 }
 0x560   : > { %11761 = vst [vmem:[#allocation42_spill] sm:$0xff] %v8206_v25 }
 0x561   : > { %v3730_v62 = vsub.f32 1.0, %v3698_v2  ;;  %v3345_v32 = vmul.f32 %v3313_v13, %v8089_v10  ;;  %11741 = vst [vmem:[#allocation27_spill] sm:$0xff] %v8139_v37  ;;  %v8145_v2 = vmul.f32 0.5, %v8023_v61  ;;  %v8163_v13 = vmul.f32 0.5, %v8038_v6 }
 0x562   : > { %11746 = vst [vmem:[#allocation26_spill] sm:$0xff] %v8155_v7  ;;  %v8184_v7 = vmul.f32 0.70710677, %v7999_v49  ;;  %v8203_v49 = vmul.f32 0.70710677, %v8017_v59 }
 0x563   : > { %v3794_v29 = vsub.f32 0.0, %v3730_v62  ;;  %v3377_v26 = vadd.f32 1.4214138, %v3345_v32  ;;  %11743 = vst [vmem:[#allocation23_spill] sm:$0xff] %v8145_v2  ;;  %v8175_v32 = vmul.f32 0.70710677, %v7990_v30 }
 0x564   : > { %11748 = vst [vmem:[#allocation25_spill] sm:$0xff] %v8163_v13  ;;  %v8193_v30 = vmul.f32 0.70710677, %v8008_v56  ;;  %v8222_v2 = vmul.f32 0.70710677, %v8035_v63 }
 0x565   : > { %v3826_v34 = vsel %vm3762_vm1, %v3730_v62, %v3794_v29  ;;  %v8152_v62 = vmul.f32 0.5, %v8029_v12  ;;  %v3409_v29 = vmul.f32 %v3377_v26, %v8089_v10  ;;  %11752 = vst [vmem:[#allocation31_spill] sm:$0xff] %v8175_v32  ;;  %v8178_v26 = vmul.f32 0.70710677, %v7993_v45  ;;  %v6134_v45 = vpop.eup %6133 }
 0x566   : > { %v3858_v22 = vadd.f32 1.0, %v3826_v34  ;;  %v8172_v34 = vmul.f32 0.70710677, %v7984_v57  ;;  %11755 = vst [vmem:[#allocation36_spill] sm:$0xff] %v8184_v7  ;;  %v8190_v57 = vmul.f32 0.70710677, %v8005_v51  ;;  %v2799_v39 = vmul.f32 %v6134_v45, %v8133_v38  ;;  %v6136_v14 = vpop.eup %6135 }
 0x567   : > { %11745 = vst [vmem:[#allocation22_spill] sm:$0xff] %v8152_v62  ;;  %v8209_v51 = vmul.f32 0.70710677, %v8023_v61  ;;  %v8233_v12 = vmul.f32 0.70710677, %v8041_v11  ;;  %vm2804_vm11 = vweird.f32 %v6134_v45  ;;  %vm3758_vm1 = vcmp.ge.f32.partialorder %v8087_v54, 0.0 }
 0x568   : > { %v3890_v20 = vmul.f32 %v3858_v22, %v2642_v36  ;;  %v8160_v36 = vmul.f32 0.5, %v8035_v63  ;;  %11751 = vst [vmem:[#allocation32_spill] sm:$0xff] %v8172_v34  ;;  %v3441_v22 = vadd.f32 -0.28449672, %v3409_v29  ;;  %v2809_v63 = vand.u32 2147483648, %v8133_v38  ;;  %vm2805_vm14 = vmor %vm2803_vm12, %vm2804_vm11 }
 0x569   : > { %11753 = vst [vmem:[#allocation35_spill] sm:$0xff] %v8178_v26  ;;  %v8404_v37 = vmul.f32 0.3275911, %v8304_v58 }
 0x56a   : > { %3977 = vst.msk [vmem:[#allocation4 + $0x49] sm:$0xff] %vm11626_vm0, %v3890_v20  ;;  %v8181_v20 = vmul.f32 0.70710677, %v7996_v52  ;;  %v3473_v29 = vmul.f32 %v3441_v22, %v8089_v10  ;;  %v8200_v52 = vmul.f32 0.70710677, %v8014_v55 }
 0x56b   : > { %11747 = vst [vmem:[#allocation33_spill] sm:$0xff] %v8160_v36  ;;  %v8213_v22 = vmul.f32 0.70710677, %v8026_v16  ;;  %v8219_v55 = vmul.f32 0.70710677, %v8032_v60  ;;  %v8230_v16 = vmul.f32 0.5, %v8044_v35 }
 0x56c   : > { %11754 = vst [vmem:[#allocation34_spill] sm:$0xff] %v8181_v20  ;;  %v3505_v56 = vadd.f32 0.2548296, %v3473_v29  ;;  %v2800_v29 = vsub.f32 1.0, %v2799_v39  ;;  %v8236_v60 = vmul.f32 0.70710677, %v8044_v35 }
 0x56d   : > { %11756 = vst [vmem:[#allocation37_spill] sm:$0xff] %v8190_v57  ;;  %v8244_v39 = vmul.f32 0.70710677, %v8050_v0  ;;  %v8250_v35 = vand.u32 2147483647, %v8187_v50 }
 0x56e   : > { %11757 = vst [vmem:[#allocation38_spill] sm:$0xff] %v8193_v30  ;;  %v3537_v61 = vmul.f32 %v3505_v56, %v8089_v10  ;;  %v2801_v6 = vmul.f32 %v6134_v45, %v2800_v29  ;;  %v2807_v10 = vand.u32 2147483647, %v8133_v38  ;;  %v8241_v56 = vmul.f32 0.70710677, %v8047_v3 }
 0x56f   : > { %11759 = vst [vmem:[#allocation40_spill] sm:$0xff] %v8200_v52  ;;  %v2810_v29 = vor.u32 1.1754944e-38, %v2809_v63  ;;  %v8261_v0 = vmul.f32 0.70710677, %v8062_v41  ;;  %v8267_v38 = vmul.f32 0.70710677, %v8068_v53 }
 0x570   : > { %11760 = vst [vmem:[#allocation41_spill] sm:$0xff] %v8203_v49  ;;  %v3697_v4 = vmul.f32 %v6136_v14, %v3537_v61  ;;  %v8254_v14 = vmul.f32 0.70710677, %v8056_v19  ;;  %v8257_v61 = vmul.f32 0.70710677, %v8059_v17  ;;  %vm2808_vm15 = vcmp.eq.f32.partialorder %v2807_v10, 8.507059e+37 }
 0x571   : > { %11762 = vst [vmem:[#allocation43_spill] sm:$0xff] %v8209_v51  ;;  %v4075_v59 = vld [vmem:[#allocation4 + $0x49] sm:$0xff]  ;;  %v3566_v17 = vsub.f32 0.0, %v8092_v33  ;;  %v2743_v41 = vmul.f32 0.3275911, %v8250_v35 }
 0x572   : > { %11763 = vst [vmem:[#allocation44_spill] sm:$0xff] %v8213_v22  ;;  %4145 = vrot.lane.b32.xlu1 %v4075_v59, %s6274_s29  ;;  %v8247_v59 = vmul.f32 0.70710677, %v8053_v15  ;;  %v3729_v11 = vsub.f32 1.0, %v3697_v4  ;;  %v8281_v10 = vand.u32 2147483647, %v8172_v34 }
 0x573   : > { %11764 = vst [vmem:[#allocation45_spill] sm:$0xff] %v8216_v5  ;;  %v8307_v40 = vadd.f32 1.0, %v2743_v41  ;;  %v8330_v41 = vand.u32 2147483647, %v8216_v5  ;;  %v8346_v62 = vand.u32 2147483647, %v8236_v60 }
 0x574   : > { %11765 = vst [vmem:[#allocation46_spill] sm:$0xff] %v8219_v55  ;;  %v3793_v4 = vsub.f32 0.0, %v3729_v11 }
 0x575   : > { %11766 = vst [vmem:[#allocation47_spill] sm:$0xff] %v8222_v2  ;;  %6137 = vrcp.f32 %v8307_v40  ;;  %v8424_v28 = vmul.f32 0.3275911, %v8330_v41  ;;  %vm2938_vm12 = vweird.f32 %v8307_v40  ;;  %v8445_v47 = vmul.f32 0.3275911, %v8346_v62 }
 0x576   : > { %11767 = vst [vmem:[#allocation48_spill] sm:$0xff] %v8225_v1  ;;  %v3825_v13 = vsel %vm3761_vm13, %v3729_v11, %v3793_v4  ;;  %v8290_v11 = vand.u32 2147483647, %v8181_v20 }
 0x577   : > { %11768 = vst [vmem:[#allocation49_spill] sm:$0xff] %v8230_v16  ;;  %v2802_v16 = vadd.f32 %v6134_v45, %v2801_v6  ;;  %v8264_v6 = vmul.f32 0.70710677, %v8065_v44  ;;  %v8294_v44 = vand.u32 2147483647, %v8184_v7 }
 0x578   : > { %11769 = vst [vmem:[#allocation50_spill] sm:$0xff] %v8233_v12 }
 0x579   : > { %11770 = vst [vmem:[#allocation51_spill] sm:$0xff] %v8236_v60  ;;  %v2806_v24 = vsel %vm2805_vm14, %v6134_v45, %v2802_v16  ;;  %v8278_v45 = vmul.f32 0.5, %v8047_v3  ;;  %v3857_v16 = vadd.f32 1.0, %v3825_v13  ;;  %v8297_v3 = vand.u32 2147483647, %v8190_v57 }
 0x57a   : > { %11771 = vst [vmem:[#allocation52_spill] sm:$0xff] %v8241_v56  ;;  %v8269_v36 = vsel %vm2808_vm15, %v2810_v29, %v2806_v24  ;;  %v8284_v24 = vand.u32 2147483647, %v8175_v32  ;;  %v8287_v29 = vand.u32 2147483647, %v8178_v26  ;;  %v3598_v13 = vmul.f32 %v3566_v17, %v8092_v33 }
 0x57b   : > { %11772 = vst [vmem:[#allocation53_spill] sm:$0xff] %v8244_v39  ;;  %v3278_v63 = vmul.f32 1.0614054, %v8269_v36  ;;  %v3889_v53 = vmul.f32 %v3857_v16, %v8104_v9  ;;  %v8310_v9 = vmul.f32 0.5, %v8053_v15  ;;  %v8317_v17 = vand.u32 2147483647, %v8203_v49  ;;  %v6138_v60 = vpop.eup %6137 }
 0x57c   : > { %11773 = vst [vmem:[#allocation54_spill] sm:$0xff] %v8247_v59  ;;  %v8320_v33 = vand.u32 2147483647, %v8206_v25  ;;  %v8323_v16 = vand.u32 2147483647, %v8209_v51  ;;  %v2944_v32 = vand.u32 2147483648, %v8307_v40  ;;  %vm2939_vm11 = vweird.f32 %v6138_v60 }
 0x57d   : > { %11774 = vst [vmem:[#allocation55_spill] sm:$0xff] %v8254_v14  ;;  %v3310_v4 = vadd.f32 -1.4531521, %v3278_v63  ;;  %v8314_v63 = vand.u32 2147483647, %v8200_v52  ;;  %vm2940_vm13 = vmor %vm2938_vm12, %vm2939_vm11 }
 0x57e   : > { %11775 = vst [vmem:[#allocation56_spill] sm:$0xff] %v8257_v61  ;;  %v8327_v15 = vand.u32 2147483647, %v8213_v22  ;;  %v8336_v52 = vand.u32 2147483647, %v8222_v2  ;;  %v2945_v46 = vor.u32 1.1754944e-38, %v2944_v32 }
 0x57f   : > { %11776 = vst [vmem:[#allocation57_spill] sm:$0xff] %v8261_v0  ;;  %v3342_v20 = vmul.f32 %v3310_v4, %v8269_v36  ;;  %v8339_v57 = vand.u32 2147483647, %v8225_v1  ;;  %v8343_v51 = vand.u32 2147483647, %v8233_v12 }
 0x580   : > { %11777 = vst [vmem:[#allocation58_spill] sm:$0xff] %v8264_v6  ;;  %v8349_v26 = vand.u32 2147483647, %v8241_v56  ;;  %v8358_v1 = vand.u32 2147483647, %v8254_v14  ;;  %v8367_v56 = vmul.f32 0.5, %v8056_v19 }
 0x581   : > { %11778 = vst [vmem:[#allocation59_spill] sm:$0xff] %v8267_v38  ;;  %v3374_v4 = vadd.f32 1.4214138, %v3342_v20  ;;  %v8364_v12 = vand.u32 2147483647, %v8261_v0  ;;  %v3567_v14 = vsub.f32 0.0, %v8273_v43 }
 0x582   : > { %11779 = vst [vmem:[#allocation60_spill] sm:$0xff] %v8278_v45  ;;  %v8301_v45 = vand.u32 2147483647, %v8193_v30  ;;  %v8370_v22 = vand.u32 2147483647, %v8264_v6 }
 0x583   : > { %11780 = vst [vmem:[#allocation61_spill] sm:$0xff] %v8310_v9  ;;  %v8333_v9 = vand.u32 2147483647, %v8219_v55  ;;  %v3406_v20 = vmul.f32 %v3374_v4, %v8269_v36  ;;  %v8355_v55 = vand.u32 2147483647, %v8247_v59 }
 0x584   : > { %3976 = vst.msk [vmem:[#allocation4 + $0x39] sm:$0xff] %vm11626_vm0, %v3889_v53  ;;  %v3630_v53 = vmul.f32 1.442695, %v3598_v13  ;;  %v8352_v13 = vand.u32 2147483647, %v8244_v39 }
 0x585   : > { %11781 = vst [vmem:[#allocation62_spill] sm:$0xff] %v8343_v51  ;;  %v3438_v2 = vadd.f32 -0.28449672, %v3406_v20  ;;  %v8361_v4 = vand.u32 2147483647, %v8257_v61 }
 0x586   : > { %11782 = vst [vmem:[#allocation63_spill] sm:$0xff] %v8349_v26  ;;  %6139 = vpow2.f32 %v3630_v53  ;;  %v8373_v20 = vand.u32 2147483647, %v8267_v38  ;;  %v8378_v61 = vmul.f32 0.3275911, %v8273_v43 }
 0x587   : > { %11783 = vst [vmem:[#allocation64_spill] sm:$0xff] %v8367_v56  ;;  %v3470_v59 = vmul.f32 %v3438_v2, %v8269_v36  ;;  %v8381_v53 = vmul.f32 0.3275911, %v8281_v10  ;;  %v8384_v19 = vmul.f32 0.3275911, %v8284_v24  ;;  %v2934_v56 = vmul.f32 %v6138_v60, %v8307_v40 }
 0x588   : > { %v8388_v0 = vmul.f32 0.3275911, %v8287_v29  ;;  %v8391_v38 = vmul.f32 0.3275911, %v8290_v11  ;;  %v2742_v2 = vmul.f32 0.3275911, %v8294_v44 }
 0x589   : > { %v3502_v6 = vadd.f32 0.2548296, %v3470_v59  ;;  %v2935_v42 = vsub.f32 1.0, %v2934_v56  ;;  %v8401_v59 = vmul.f32 0.3275911, %v8301_v45  ;;  %11785 = vst [vmem:[#allocation66_spill] sm:$0xff] %v8445_v47 }
 0x58a   : > { %v8408_v49 = vmul.f32 0.3275911, %v8314_v63  ;;  %v2942_v25 = vand.u32 2147483647, %v8307_v40  ;;  %v8412_v56 = vmul.f32 0.3275911, %v8317_v17 }
 0x58b   : > { %v4074_v39 = vld [vmem:[#allocation4 + $0x39] sm:$0xff]  ;;  %v3534_v5 = vmul.f32 %v3502_v6, %v8269_v36  ;;  %v2936_v48 = vmul.f32 %v6138_v60, %v2935_v42  ;;  %v8415_v36 = vmul.f32 0.3275911, %v8320_v33  ;;  %v8418_v6 = vmul.f32 0.3275911, %v8323_v16 }
 0x58c   : > { %4143 = vrot.lane.b32.xlu2 %v4074_v39, %s6274_s29  ;;  %v8396_v39 = vmul.f32 0.3275911, %v8297_v3  ;;  %v6140_v27 = vpop.eup %6139  ;;  %v8421_v34 = vmul.f32 0.3275911, %v8327_v15  ;;  %v8434_v23 = vmul.f32 0.3275911, %v8339_v57 }
 0x58d   : > { %v3694_v21 = vmul.f32 %v6140_v27, %v3534_v5  ;;  %v2937_v42 = vadd.f32 %v6138_v60, %v2936_v48  ;;  %v8428_v27 = vmul.f32 0.3275911, %v8333_v9  ;;  %v8431_v5 = vmul.f32 0.3275911, %v8336_v52 }
 0x58e   : > { %11784 = vst [vmem:[#allocation65_spill] sm:$0xff] %v8434_v23  ;;  %vm2943_vm14 = vcmp.eq.f32.partialorder %v2942_v25, 8.507059e+37  ;;  %v8436_v18 = vadd.f32 1.0, %v2742_v2  ;;  %v8439_v48 = vmul.f32 0.3275911, %v8343_v51  ;;  %v8452_v25 = vmul.f32 %v3567_v14, %v8273_v43 }
 0x58f   : > { %v3726_v30 = vsub.f32 1.0, %v3694_v21  ;;  %v2941_v31 = vsel %vm2940_vm13, %v6138_v60, %v2937_v42  ;;  %v3575_v21 = vsub.f32 0.0, %v8250_v35  ;;  %v8448_v32 = vmul.f32 0.3275911, %v8349_v26 }
 0x590   : > { %v8442_v40 = vsel %vm2943_vm14, %v2945_v46, %v2941_v31  ;;  %11787 = vst [vmem:[#allocation68_spill] sm:$0xff] %v8452_v25  ;;  %v8457_v2 = vmul.f32 0.3275911, %v8352_v13  ;;  %v8460_v46 = vmul.f32 0.3275911, %v8355_v55  ;;  %6141 = vrcp.f32 %v8436_v18 }
 0x591   : > { %v3790_v7 = vsub.f32 0.0, %v3726_v30  ;;  %11786 = vst [vmem:[#allocation67_spill] sm:$0xff] %v8448_v32  ;;  %v3287_v23 = vmul.f32 1.0614054, %v8442_v40  ;;  %v8463_v31 = vmul.f32 0.3275911, %v8358_v1  ;;  %vm2923_vm11 = vweird.f32 %v8436_v18 }
 0x592   : > { %v8466_v32 = vmul.f32 0.3275911, %v8361_v4  ;;  %v8470_v14 = vmul.f32 0.3275911, %v8364_v12  ;;  %v8473_v54 = vmul.f32 0.3275911, %v8370_v22 }
 0x593   : > { %v3822_v60 = vsel %vm3758_vm1, %v3726_v30, %v3790_v7  ;;  %11788 = vst [vmem:[#allocation69_spill] sm:$0xff] %v8463_v31  ;;  %v3319_v47 = vadd.f32 -1.4531521, %v3287_v23  ;;  %v8476_v7 = vmul.f32 0.3275911, %v8373_v20  ;;  %v3607_v30 = vmul.f32 %v3575_v21, %v8250_v35 }
 0x594   : > { %v3854_v42 = vadd.f32 1.0, %v3822_v60  ;;  %11789 = vst [vmem:[#allocation70_spill] sm:$0xff] %v8466_v32  ;;  %v2929_v51 = vand.u32 2147483648, %v8436_v18  ;;  %vm3767_vm1 = vcmp.ge.f32.partialorder %v8187_v50, 0.0 }
 0x595   : > { %11790 = vst [vmem:[#allocation71_spill] sm:$0xff] %v8470_v14  ;;  %v3351_v23 = vmul.f32 %v3319_v47, %v8442_v40  ;;  %v3648_v14 = vmul.f32 1.442695, %v3607_v30 }
 0x596   : > { %11791 = vst [vmem:[#allocation72_spill] sm:$0xff] %v8473_v54  ;;  %v3886_v43 = vmul.f32 %v3854_v42, %v8095_v8  ;;  %v6142_v60 = vpop.eup %6141  ;;  %v8516_v8 = vadd.f32 1.0, %v8378_v61  ;;  %v8534_v61 = vadd.f32 1.0, %v8396_v39 }
 0x597   : > { %v3383_v42 = vadd.f32 1.4214138, %v3351_v23  ;;  %v2919_v47 = vmul.f32 %v6142_v60, %v8436_v18  ;;  %6143 = vpow2.f32 %v3648_v14  ;;  %vm2924_vm15 = vweird.f32 %v6142_v60 }
 0x598   : > { %3973 = vst.msk [vmem:[#allocation4 + $0x19] sm:$0xff] %vm11626_vm0, %v3886_v43  ;;  %v8519_v23 = vadd.f32 1.0, %v8381_v53  ;;  %vm2925_vm12 = vmor %vm2923_vm11, %vm2924_vm15  ;;  %v2930_v53 = vor.u32 1.1754944e-38, %v2929_v51  ;;  %v8552_v51 = vadd.f32 1.0, %v8415_v36  ;;  %v11807_v36 = vld [vmem:[#allocation65_spill] sm:$0xff]  ;;  %vm2818_vm15 = vweird.f32 %v8516_v8 }
 0x599   : > { %v3415_v35 = vmul.f32 %v3383_v42, %v8442_v40  ;;  %v2920_v42 = vsub.f32 1.0, %v2919_v47  ;;  %11796 = vst [vmem:[#allocation77_spill] sm:$0xff] %v8534_v61 }
 0x59a   : > { %11792 = vst [vmem:[#allocation73_spill] sm:$0xff] %v8519_v23 }
 0x59b   : > { %v3447_v21 = vadd.f32 -0.28449672, %v3415_v35  ;;  %v2921_v26 = vmul.f32 %v6142_v60, %v2920_v42  ;;  %v2927_v35 = vand.u32 2147483647, %v8436_v18  ;;  %v8526_v42 = vadd.f32 1.0, %v8388_v0  ;;  %11801 = vst [vmem:[#allocation82_spill] sm:$0xff] %v8552_v51 }
 0x59c   : > { %v8541_v0 = vadd.f32 1.0, %v8404_v37  ;;  %v8558_v37 = vadd.f32 1.0, %v8421_v34  ;;  %v11810_v34 = vld [vmem:[#allocation66_spill] sm:$0xff] }
 0x59d   : > { %v3479_v25 = vmul.f32 %v3447_v21, %v8442_v40  ;;  %v8523_v21 = vadd.f32 1.0, %v8384_v19  ;;  %11794 = vst [vmem:[#allocation75_spill] sm:$0xff] %v8526_v42  ;;  %v2922_v30 = vadd.f32 %v6142_v60, %v2921_v26  ;;  %v6144_v14 = vpop.eup %6143  ;;  %v8538_v19 = vadd.f32 1.0, %v8401_v59 }
 0x59e   : > { %11798 = vst [vmem:[#allocation79_spill] sm:$0xff] %v8541_v0  ;;  %vm2928_vm13 = vcmp.eq.f32.partialorder %v2927_v35, 8.507059e+37  ;;  %v8555_v59 = vadd.f32 1.0, %v8418_v6  ;;  %v8568_v35 = vadd.f32 1.0, %v8431_v5  ;;  %v8574_v6 = vadd.f32 1.0, %v8439_v48 }
 0x59f   : > { %v4071_v32 = vld [vmem:[#allocation4 + $0x19] sm:$0xff]  ;;  %v3511_v47 = vadd.f32 0.2548296, %v3479_v25  ;;  %11793 = vst [vmem:[#allocation74_spill] sm:$0xff] %v8523_v21  ;;  %v8531_v25 = vadd.f32 1.0, %v8391_v38  ;;  %v2926_v26 = vsel %vm2925_vm12, %v6142_v60, %v2922_v30  ;;  %v8547_v38 = vadd.f32 1.0, %v8412_v56 }
 0x5a0   : > { %4137 = vrot.lane.b32.xlu0 %v4071_v32, %s6274_s29  ;;  %11797 = vst [vmem:[#allocation78_spill] sm:$0xff] %v8538_v19  ;;  %v8549_v39 = vsel %vm2928_vm13, %v2930_v53, %v2926_v26  ;;  %v8565_v56 = vadd.f32 1.0, %v8428_v27  ;;  %v11812_v26 = vld [vmem:[#allocation67_spill] sm:$0xff]  ;;  %v8583_v27 = vadd.f32 1.0, %v8457_v2  ;;  %v11815_v5 = vsub.f32 0.0, %v8294_v44 }
 0x5a1   : > { %v3543_v32 = vmul.f32 %v3511_v47, %v8442_v40  ;;  %11795 = vst [vmem:[#allocation76_spill] sm:$0xff] %v8531_v25  ;;  %v8544_v40 = vadd.f32 1.0, %v8408_v49  ;;  %v3286_v60 = vmul.f32 1.0614054, %v8549_v39  ;;  %v8562_v49 = vadd.f32 1.0, %v8424_v28  ;;  %v11821_v2 = vld [vmem:[#allocation71_spill] sm:$0xff] }
 0x5a2   : > { %11800 = vst [vmem:[#allocation81_spill] sm:$0xff] %v8547_v38  ;;  %v8577_v47 = vadd.f32 1.0, %v11810_v34  ;;  %v8580_v28 = vadd.f32 1.0, %v11812_v26  ;;  %v11817_v48 = vmov %v8463_v31  ;;  %v11819_v34 = vld [vmem:[#allocation70_spill] sm:$0xff]  ;;  %v8601_v31 = vadd.f32 1.0, %v11821_v2 }
 0x5a3   : > { %v3703_v18 = vmul.f32 %v6144_v14, %v3543_v32  ;;  %11799 = vst [vmem:[#allocation80_spill] sm:$0xff] %v8544_v40  ;;  %v8571_v14 = vadd.f32 1.0, %v11807_v36  ;;  %v3318_v32 = vadd.f32 -1.4531521, %v3286_v60  ;;  %v8589_v36 = vadd.f32 1.0, %v8460_v46 }
 0x5a4   : > { %11802 = vst [vmem:[#allocation83_spill] sm:$0xff] %v8555_v59  ;;  %v8592_v43 = vadd.f32 1.0, %v11817_v48  ;;  %v8595_v54 = vadd.f32 1.0, %v11819_v34 }
 0x5a5   : > { %11803 = vst [vmem:[#allocation84_spill] sm:$0xff] %v8558_v37  ;;  %v3735_v30 = vsub.f32 1.0, %v3703_v18  ;;  %v3606_v18 = vmul.f32 %v11815_v5, %v8294_v44  ;;  %v3350_v60 = vmul.f32 %v3318_v32, %v8549_v39  ;;  %v8607_v44 = vadd.f32 1.0, %v8476_v7 }
 0x5a6   : > { %11804 = vst [vmem:[#allocation85_spill] sm:$0xff] %v8562_v49  ;;  %v11826_v5 = vsub.f32 0.0, %v8281_v10  ;;  %v11827_v32 = vsub.f32 0.0, %v8284_v24  ;;  %v11829_v7 = vsub.f32 0.0, %v8290_v11 }
 0x5a7   : > { %11805 = vst [vmem:[#allocation86_spill] sm:$0xff] %v8565_v56  ;;  %v3799_v53 = vsub.f32 0.0, %v3735_v30  ;;  %v3646_v2 = vmul.f32 1.442695, %v3606_v18  ;;  %v11835_v18 = vsub.f32 0.0, %v8317_v17 }
 0x5a8   : > { %11806 = vst [vmem:[#allocation87_spill] sm:$0xff] %v8568_v35  ;;  %v8612_v48 = vmul.f32 %v11826_v5, %v8281_v10  ;;  %v8617_v50 = vmul.f32 %v11827_v32, %v8284_v24  ;;  %v8627_v34 = vmul.f32 %v11829_v7, %v8290_v11  ;;  %v11830_v10 = vsub.f32 0.0, %v8297_v3  ;;  %v11831_v5 = vld [vmem:[#allocation13_spill] sm:$0xff] }
 0x5a9   : > { %11808 = vst [vmem:[#allocation65_spill] sm:$0xff] %v8571_v14  ;;  %v3831_v26 = vsel %vm3767_vm1, %v3735_v30, %v3799_v53  ;;  %v3382_v30 = vadd.f32 1.4214138, %v3350_v60  ;;  %v11828_v53 = vsub.f32 0.0, %v8287_v29  ;;  %v11832_v60 = vsub.f32 0.0, %v8301_v45 }
 0x5aa   : > { %11809 = vst [vmem:[#allocation88_spill] sm:$0xff] %v8574_v6  ;;  %v3863_v46 = vadd.f32 1.0, %v3831_v26  ;;  %v8632_v26 = vmul.f32 %v11830_v10, %v8297_v3  ;;  %v11834_v7 = vsub.f32 0.0, %v8314_v63  ;;  %6145 = vpow2.f32 %v3646_v2 }
 0x5ab   : > { %11811 = vst [vmem:[#allocation66_spill] sm:$0xff] %v8577_v47  ;;  %v8638_v32 = vmul.f32 %v11832_v60, %v8301_v45  ;;  %v3414_v11 = vmul.f32 %v3382_v30, %v8549_v39  ;;  %v11836_v45 = vsub.f32 0.0, %v8320_v33  ;;  %6147 = vrcp.f32 %v8516_v8 }
 0x5ac   : > { %11813 = vst [vmem:[#allocation67_spill] sm:$0xff] %v8580_v28  ;;  %v3895_v24 = vmul.f32 %v3863_v46, %v11831_v5  ;;  %v8649_v3 = vmul.f32 %v11834_v7, %v8314_v63  ;;  %v8654_v46 = vmul.f32 %v11835_v18, %v8317_v17  ;;  %v11838_v63 = vsub.f32 0.0, %v8327_v15 }
 0x5ad   : > { %11814 = vst [vmem:[#allocation89_spill] sm:$0xff] %v8583_v27  ;;  %v11823_v27 = vld [vmem:[#allocation72_spill] sm:$0xff]  ;;  %v8659_v10 = vmul.f32 %v11836_v45, %v8320_v33  ;;  %v11839_v17 = vsub.f32 0.0, %v8330_v41  ;;  %v11840_v33 = vsub.f32 0.0, %v8333_v9  ;;  %v3446_v7 = vadd.f32 -0.28449672, %v3414_v11 }
 0x5ae   : > { %11816 = vst [vmem:[#allocation90_spill] sm:$0xff] %v8589_v36  ;;  %v8604_v28 = vadd.f32 1.0, %v11823_v27  ;;  %v8622_v27 = vmul.f32 %v11828_v53, %v8287_v29  ;;  %v11833_v29 = vsub.f32 0.0, %v8304_v58  ;;  %v8670_v30 = vmul.f32 %v11838_v63, %v8327_v15  ;;  %v11843_v45 = vld [vmem:[#allocation62_spill] sm:$0xff]  ;;  %v11846_v63 = vld [vmem:[#allocation63_spill] sm:$0xff] }
 0x5af   : > { %11818 = vst [vmem:[#allocation69_spill] sm:$0xff] %v8592_v43  ;;  %v8675_v60 = vmul.f32 %v11839_v17, %v8330_v41  ;;  %v11842_v15 = vsub.f32 0.0, %v8339_v57  ;;  %v11844_v41 = vsub.f32 0.0, %v11843_v45  ;;  %v11849_v2 = vsub.f32 0.0, %v8355_v55 }
 0x5b0   : > { %11820 = vst [vmem:[#allocation70_spill] sm:$0xff] %v8595_v54  ;;  %v8643_v53 = vmul.f32 %v11833_v29, %v8304_v58  ;;  %v11837_v58 = vsub.f32 0.0, %v8323_v16  ;;  %v8680_v29 = vmul.f32 %v11840_v33, %v8333_v9  ;;  %v11845_v9 = vsub.f32 0.0, %v8346_v62 }
 0x5b1   : > { %11822 = vst [vmem:[#allocation71_spill] sm:$0xff] %v8601_v31  ;;  %v8690_v18 = vmul.f32 %v11842_v15, %v8339_v57  ;;  %v3478_v33 = vmul.f32 %v3446_v7, %v8549_v39  ;;  %v11848_v57 = vsub.f32 0.0, %v8352_v13  ;;  %v8717_v15 = vmul.f32 %v11849_v2, %v8355_v55 }
 0x5b2   : > { %11824 = vst [vmem:[#allocation72_spill] sm:$0xff] %v8604_v28  ;;  %v8664_v5 = vmul.f32 %v11837_v58, %v8323_v16  ;;  %v11841_v16 = vsub.f32 0.0, %v8336_v52  ;;  %v8695_v58 = vmul.f32 %v11844_v41, %v11843_v45  ;;  %v8700_v11 = vmul.f32 %v11845_v9, %v8346_v62 }
 0x5b3   : > { %11825 = vst [vmem:[#allocation91_spill] sm:$0xff] %v8607_v44  ;;  %v11850_v62 = vsub.f32 0.0, %v8358_v1  ;;  %v11851_v7 = vsub.f32 0.0, %v8361_v4  ;;  %v11852_v9 = vsub.f32 0.0, %v8364_v12  ;;  %6149 = vrcp.f32 %v8519_v23 }
 0x5b4   : > { %3982 = vst.msk [vmem:[#allocation4 + $0x81] sm:$0xff] %vm11626_vm0, %v3895_v24  ;;  %v8685_v24 = vmul.f32 %v11841_v16, %v8336_v52  ;;  %v11847_v52 = vsub.f32 0.0, %v11846_v63  ;;  %v8712_v16 = vmul.f32 %v11848_v57, %v8352_v13  ;;  %v11855_v57 = vsub.f32 0.0, %v8373_v20 }
 0x5b5   : > { %v8722_v45 = vmul.f32 %v11850_v62, %v8358_v1  ;;  %v8727_v41 = vmul.f32 %v11851_v7, %v8361_v4  ;;  %v8732_v13 = vmul.f32 %v11852_v9, %v8364_v12  ;;  %v11854_v1 = vld [vmem:[#allocation36_spill] sm:$0xff]  ;;  %6151 = vrcp.f32 %v8523_v21  ;;  %v6146_v7 = vpop.eup %6145 }
 0x5b6   : > { %v8705_v17 = vmul.f32 %v11847_v52, %v11846_v63  ;;  %v11853_v63 = vsub.f32 0.0, %v8370_v22  ;;  %v3510_v52 = vadd.f32 0.2548296, %v3478_v33  ;;  %vm3766_vm14 = vcmp.ge.f32.partialorder %v11854_v1, 0.0  ;;  %v8757_v2 = vpop.eup %6147 }
 0x5b7   : > { %v8744_v4 = vmul.f32 %v11855_v57, %v8373_v20  ;;  %6153 = vrcp.f32 %v8526_v42  ;;  %vm2819_vm1 = vweird.f32 %v8757_v2 }
 0x5b8   : > { %v8737_v55 = vmul.f32 %v11853_v63, %v8370_v22  ;;  %v3542_v62 = vmul.f32 %v3510_v52, %v8549_v39  ;;  %6155 = vrcp.f32 %v8531_v25  ;;  %v2814_v63 = vmul.f32 %v8757_v2, %v8516_v8  ;;  %vm2820_vm11 = vmor %vm2818_vm15, %vm2819_vm1 }
 0x5b9   : > { %6157 = vrcp.f32 %v8534_v61  ;;  %v8767_v57 = vpop.eup %6149 }
 0x5ba   : > { %v3702_v39 = vmul.f32 %v6146_v7, %v3542_v62  ;;  %6159 = vrcp.f32 %v8538_v19  ;;  %v11861_v62 = vld [vmem:[#allocation21_spill] sm:$0xff] }
 0x5bb   : > { %v4080_v9 = vld [vmem:[#allocation4 + $0x81] sm:$0xff]  ;;  %6161 = vrcp.f32 %v8541_v0  ;;  %v8772_v7 = vpop.eup %6151 }
 0x5bc   : > { %4155 = vrot.lane.b32.xlu1 %v4080_v9, %s6274_s29  ;;  %v3734_v12 = vsub.f32 1.0, %v3702_v39  ;;  %11856 = vst [vmem:[#allocation13_spill] sm:$0xff] %v8772_v7  ;;  %6163 = vrcp.f32 %v8544_v40 }
 0x5bd   : > { %v8779_v20 = vpop.eup %6153  ;;  %6165 = vrcp.f32 %v8547_v38  ;;  %v2815_v38 = vsub.f32 1.0, %v2814_v63  ;;  %v11866_v63 = vand.u32 2147483648, %v8516_v8 }
 0x5be   : > { %11857 = vst [vmem:[#allocation62_spill] sm:$0xff] %v8779_v20  ;;  %v3798_v39 = vsub.f32 0.0, %v3734_v12  ;;  %v8785_v52 = vpop.eup %6155  ;;  %6167 = vrcp.f32 %v8552_v51 }
 0x5bf   : > { %11858 = vst [vmem:[#allocation63_spill] sm:$0xff] %v8785_v52  ;;  %v8791_v19 = vpop.eup %6157  ;;  %6169 = vrcp.f32 %v8555_v59  ;;  %v2816_v1 = vmul.f32 %v8757_v2, %v2815_v38  ;;  %v11868_v38 = vld [vmem:[#allocation67_spill] sm:$0xff] }
 0x5c0   : > { %11859 = vst [vmem:[#allocation36_spill] sm:$0xff] %v8791_v19  ;;  %v3830_v61 = vsel %vm3766_vm14, %v3734_v12, %v3798_v39  ;;  %v8798_v40 = vpop.eup %6159  ;;  %6171 = vrcp.f32 %v8558_v37  ;;  %v2825_v19 = vor.u32 1.1754944e-38, %v11866_v63  ;;  %v8895_v37 = vmul.f32 1.442695, %v8622_v27 }
 0x5c1   : > { %v3862_v22 = vadd.f32 1.0, %v3830_v61  ;;  %v8802_v0 = vpop.eup %6161  ;;  %6173 = vrcp.f32 %v8562_v49  ;;  %v8914_v27 = vmul.f32 1.442695, %v8649_v3  ;;  %v8933_v3 = vmul.f32 1.442695, %v8675_v60 }
 0x5c2   : > { %v8808_v39 = vpop.eup %6163  ;;  %6175 = vrcp.f32 %v8565_v56  ;;  %v2817_v56 = vadd.f32 %v8757_v2, %v2816_v1  ;;  %v11876_v1 = vld [vmem:[#allocation68_spill] sm:$0xff]  ;;  %v8951_v60 = vmul.f32 1.442695, %v8700_v11  ;;  %vm2984_vm14 = vweird.f32 %v8802_v0 }
 0x5c3   : > { %11860 = vst [vmem:[#allocation92_spill] sm:$0xff] %v8808_v39  ;;  %v3894_v9 = vmul.f32 %v3862_v22, %v11861_v62  ;;  %v8814_v33 = vpop.eup %6165  ;;  %6177 = vrcp.f32 %v8568_v35 }
 0x5c4   : > { %11862 = vst [vmem:[#allocation21_spill] sm:$0xff] %v8814_v33  ;;  %v8820_v12 = vpop.eup %6167  ;;  %6179 = vrcp.f32 %v8571_v14  ;;  %v8939_v14 = vmul.f32 1.442695, %v8685_v24  ;;  %v8957_v24 = vmul.f32 1.442695, %v8712_v16 }
 0x5c5   : > { %11863 = vst [vmem:[#allocation93_spill] sm:$0xff] %v8820_v12  ;;  %v8827_v61 = vpop.eup %6169  ;;  %6181 = vrcp.f32 %v8574_v6  ;;  %v11869_v6 = vand.u32 2147483647, %v8516_v8  ;;  %v8977_v16 = vmul.f32 1.442695, %v8737_v55 }
 0x5c6   : > { %3981 = vst.msk [vmem:[#allocation4 + $0x79] sm:$0xff] %vm11626_vm0, %v3894_v9  ;;  %v8833_v49 = vpop.eup %6171  ;;  %6183 = vrcp.f32 %v8577_v47  ;;  %v2821_v9 = vsel %vm2820_vm11, %v8757_v2, %v2817_v56  ;;  %v8898_v2 = vmul.f32 1.442695, %v8627_v34  ;;  %v8917_v34 = vmul.f32 1.442695, %v8654_v46 }
 0x5c7   : > { %11864 = vst [vmem:[#allocation94_spill] sm:$0xff] %v8827_v61  ;;  %v8844_v62 = vpop.eup %6173  ;;  %6185 = vrcp.f32 %v11868_v38  ;;  %vm2823_vm12 = vcmp.eq.f32.partialorder %v11869_v6, 8.507059e+37  ;;  %v8936_v46 = vmul.f32 1.442695, %v8680_v29  ;;  %v8954_v29 = vmul.f32 1.442695, %v8705_v17 }
 0x5c8   : > { %11865 = vst [vmem:[#allocation95_spill] sm:$0xff] %v8833_v49  ;;  %v8851_v22 = vpop.eup %6175  ;;  %v11871_v49 = vld [vmem:[#allocation89_spill] sm:$0xff]  ;;  %v8856_v63 = vsel %vm2823_vm12, %v2825_v19, %v2821_v9  ;;  %v8974_v17 = vmul.f32 1.442695, %v8732_v13  ;;  %v11894_v13 = vand.u32 2147483648, %v8523_v21  ;;  %vm2969_vm11 = vweird.f32 %v8798_v40 }
 0x5c9   : > { %11867 = vst [vmem:[#allocation96_spill] sm:$0xff] %v8844_v62  ;;  %v8858_v62 = vpop.eup %6177  ;;  %6187 = vrcp.f32 %v11871_v49  ;;  %v3279_v8 = vmul.f32 1.0614054, %v8856_v63 }
 0x5ca   : > { %11870 = vst [vmem:[#allocation97_spill] sm:$0xff] %v8851_v22  ;;  %v8864_v6 = vpop.eup %6179  ;;  %6189 = vrcp.f32 %v8589_v36  ;;  %v8996_v55 = vor.u32 1.1754944e-38, %v11894_v13 }
 0x5cb   : > { %11872 = vst [vmem:[#allocation98_spill] sm:$0xff] %v8858_v62  ;;  %v8870_v9 = vpop.eup %6181  ;;  %v3311_v49 = vadd.f32 -1.4531521, %v3279_v8  ;;  %v8887_v8 = vmul.f32 1.442695, %v8612_v48  ;;  %6191 = vrcp.f32 %v8592_v43 }
 0x5cc   : > { %11873 = vst [vmem:[#allocation99_spill] sm:$0xff] %v8870_v9  ;;  %v8875_v38 = vpop.eup %6183  ;;  %v3632_v9 = vmul.f32 1.442695, %v11876_v1  ;;  %6193 = vrcp.f32 %v8595_v54  ;;  %v8904_v48 = vmul.f32 1.442695, %v8632_v26 }
 0x5cd   : > { %v4079_v35 = vld [vmem:[#allocation4 + $0x79] sm:$0xff]  ;;  %11874 = vst [vmem:[#allocation100_spill] sm:$0xff] %v8875_v38  ;;  %v8882_v47 = vpop.eup %6185  ;;  %v3343_v56 = vmul.f32 %v3311_v49, %v8856_v63  ;;  %v8907_v49 = vmul.f32 1.442695, %v8638_v32  ;;  %6195 = vrcp.f32 %v8601_v31  ;;  %v8922_v26 = vmul.f32 1.442695, %v8659_v10 }
 0x5ce   : > { %4153 = vrot.lane.b32.xlu2 %v4079_v35, %s6274_s29  ;;  %11875 = vst [vmem:[#allocation101_spill] sm:$0xff] %v8882_v47  ;;  %v8892_v35 = vmul.f32 1.442695, %v8617_v50  ;;  %v8911_v50 = vmul.f32 1.442695, %v8643_v53  ;;  %6197 = vrcp.f32 %v8604_v28 }
 0x5cf   : > { %v8900_v19 = vpop.eup %6187  ;;  %v3375_v1 = vadd.f32 1.4214138, %v3343_v56  ;;  %v8925_v32 = vmul.f32 1.442695, %v8664_v5  ;;  %v8928_v56 = vmul.f32 1.442695, %v8670_v30  ;;  %6199 = vrcp.f32 %v8607_v44 }
 0x5d0   : > { %v8919_v36 = vpop.eup %6189  ;;  %11878 = vst [vmem:[#allocation102_spill] sm:$0xff] %v8933_v3  ;;  %v8943_v10 = vmul.f32 1.442695, %v8690_v18  ;;  %v8946_v5 = vmul.f32 1.442695, %v8695_v58  ;;  %6201 = vpow2.f32 %v3632_v9  ;;  %v11941_v3 = vld [vmem:[#allocation66_spill] sm:$0xff] }
 0x5d1   : > { %11877 = vst [vmem:[#allocation68_spill] sm:$0xff] %v8919_v36  ;;  %v3407_v53 = vmul.f32 %v3375_v1, %v8856_v63  ;;  %v8948_v1 = vpop.eup %6191  ;;  %v8962_v18 = vmul.f32 1.442695, %v8717_v15  ;;  %v8965_v58 = vmul.f32 1.442695, %v8722_v45  ;;  %v8984_v15 = vmul.f32 %v8767_v57, %v8519_v23 }
 0x5d2   : > { %11879 = vst [vmem:[#allocation103_spill] sm:$0xff] %v8936_v46  ;;  %v8980_v9 = vmul.f32 1.442695, %v8744_v4  ;;  %v11896_v4 = vld [vmem:[#allocation28_spill] sm:$0xff]  ;;  %6203 = vpow2.f32 %v8887_v8 }
 0x5d3   : > { %11880 = vst [vmem:[#allocation104_spill] sm:$0xff] %v8939_v14  ;;  %v3439_v30 = vadd.f32 -0.28449672, %v3407_v53  ;;  %v8959_v14 = vpop.eup %6193  ;;  %v8968_v53 = vmul.f32 1.442695, %v8727_v41  ;;  %v11892_v41 = vand.u32 2147483648, %v8519_v23  ;;  %6205 = vpow2.f32 %v8892_v35 }
 0x5d4   : > { %11881 = vst [vmem:[#allocation105_spill] sm:$0xff] %v8943_v10  ;;  %vm3759_vm13 = vcmp.ge.f32.partialorder %v11896_v4, 0.0  ;;  %6207 = vpow2.f32 %v8895_v37 }
 0x5d5   : > { %11882 = vst [vmem:[#allocation106_spill] sm:$0xff] %v8946_v5  ;;  %v3471_v11 = vmul.f32 %v3439_v30, %v8856_v63  ;;  %v8992_v30 = vmul.f32 %v8772_v7, %v8523_v21  ;;  %6209 = vpow2.f32 %v8898_v2 }
 0x5d6   : > { %11883 = vst [vmem:[#allocation107_spill] sm:$0xff] %v8951_v60  ;;  %v8971_v60 = vpop.eup %6195  ;;  %6211 = vpow2.f32 %v8904_v48 }
 0x5d7   : > { %11884 = vst [vmem:[#allocation108_spill] sm:$0xff] %v8954_v29  ;;  %v3503_v45 = vadd.f32 0.2548296, %v3471_v11  ;;  %v11897_v11 = vand.u32 2147483648, %v8526_v42  ;;  %6213 = vpow2.f32 %v8907_v49 }
 0x5d8   : > { %11885 = vst [vmem:[#allocation109_spill] sm:$0xff] %v8957_v24  ;;  %v11902_v24 = vld [vmem:[#allocation36_spill] sm:$0xff]  ;;  %6215 = vpow2.f32 %v8911_v50 }
 0x5d9   : > { %11886 = vst [vmem:[#allocation110_spill] sm:$0xff] %v8962_v18  ;;  %v11901_v18 = vld [vmem:[#allocation77_spill] sm:$0xff]  ;;  %6217 = vpow2.f32 %v8914_v27 }
 0x5da   : > { %11887 = vst [vmem:[#allocation111_spill] sm:$0xff] %v8965_v58  ;;  %v3535_v58 = vmul.f32 %v3503_v45, %v8856_v63  ;;  %v9022_v29 = vmul.f32 %v11902_v24, %v11901_v18  ;;  %6219 = vpow2.f32 %v8917_v34 }
 0x5db   : > { %11888 = vst [vmem:[#allocation112_spill] sm:$0xff] %v8968_v53  ;;  %v8988_v53 = vor.u32 1.1754944e-38, %v11892_v41  ;;  %v9007_v41 = vor.u32 1.1754944e-38, %v11897_v11  ;;  %6221 = vpow2.f32 %v8922_v26 }
 0x5dc   : > { %11889 = vst [vmem:[#allocation113_spill] sm:$0xff] %v8974_v17  ;;  %v9011_v17 = vmul.f32 %v8785_v52, %v8531_v25  ;;  %v11910_v52 = vld [vmem:[#allocation80_spill] sm:$0xff]  ;;  %6223 = vpow2.f32 %v8925_v32  ;;  %v11976_v32 = vld [vmem:[#allocation102_spill] sm:$0xff] }
 0x5dd   : > { %11890 = vst [vmem:[#allocation114_spill] sm:$0xff] %v8977_v16  ;;  %v8998_v16 = vpop.eup %6197  ;;  %6225 = vpow2.f32 %v8928_v56  ;;  %v11983_v56 = vld [vmem:[#allocation104_spill] sm:$0xff] }
 0x5de   : > { %11891 = vst [vmem:[#allocation115_spill] sm:$0xff] %v8980_v9  ;;  %v9003_v9 = vmul.f32 %v8779_v20, %v8526_v42  ;;  %v11903_v42 = vand.u32 2147483648, %v11901_v18  ;;  %v11911_v18 = vand.u32 2147483648, %v11910_v52  ;;  %v11913_v20 = vld [vmem:[#allocation81_spill] sm:$0xff]  ;;  %6227 = vpow2.f32 %v11976_v32 }
 0x5df   : > { %11893 = vst [vmem:[#allocation116_spill] sm:$0xff] %v8988_v53  ;;  %v11899_v53 = vand.u32 2147483648, %v8531_v25  ;;  %v11908_v25 = vld [vmem:[#allocation79_spill] sm:$0xff] }
 0x5e0   : > { %11895 = vst [vmem:[#allocation117_spill] sm:$0xff] %v8996_v55  ;;  %v9017_v55 = vpop.eup %6199  ;;  %v9026_v11 = vor.u32 1.1754944e-38, %v11903_v42  ;;  %v2979_v63 = vmul.f32 %v8802_v0, %v11908_v25  ;;  %v11909_v45 = vand.u32 2147483648, %v11908_v25  ;;  %v9044_v42 = vmul.f32 %v8808_v39, %v11910_v52 }
 0x5e1   : > { %11898 = vst [vmem:[#allocation28_spill] sm:$0xff] %v9007_v41  ;;  %v9015_v13 = vor.u32 1.1754944e-38, %v11899_v53  ;;  %v11905_v41 = vld [vmem:[#allocation78_spill] sm:$0xff]  ;;  %v6202_v5 = vpop.eup %6201  ;;  %v9048_v10 = vor.u32 1.1754944e-38, %v11911_v18  ;;  %v11916_v39 = vand.u32 2147483648, %v8552_v51  ;;  %v11918_v18 = vand.u32 2147483648, %v8555_v59 }
 0x5e2   : > { %11904 = vst [vmem:[#allocation119_spill] sm:$0xff] %v9026_v11  ;;  %v9030_v21 = vmul.f32 %v8798_v40, %v11905_v41  ;;  %v11906_v53 = vand.u32 2147483648, %v11905_v41  ;;  %v9040_v24 = vor.u32 1.1754944e-38, %v11909_v45  ;;  %v3695_v11 = vmul.f32 %v6202_v5, %v3535_v58  ;;  %v9242_v48 = vpop.eup %6203 }
 0x5e3   : > { %11900 = vst [vmem:[#allocation118_spill] sm:$0xff] %v9015_v13  ;;  %v9060_v45 = vmul.f32 %v8820_v12, %v8552_v51  ;;  %v9064_v7 = vor.u32 1.1754944e-38, %v11916_v39  ;;  %v9068_v5 = vmul.f32 %v8827_v61, %v8555_v59  ;;  %v9072_v58 = vor.u32 1.1754944e-38, %v11918_v18  ;;  %v11924_v39 = vld [vmem:[#allocation85_spill] sm:$0xff]  ;;  %v11928_v18 = vld [vmem:[#allocation86_spill] sm:$0xff]  ;;  %v9248_v49 = vpop.eup %6205 }
 0x5e4   : > { %v9034_v13 = vor.u32 1.1754944e-38, %v11906_v53  ;;  %11912 = vst [vmem:[#allocation79_spill] sm:$0xff] %v9048_v10  ;;  %v9052_v53 = vmul.f32 %v8814_v33, %v11913_v20  ;;  %v3727_v10 = vsub.f32 1.0, %v3695_v11  ;;  %v11926_v61 = vand.u32 2147483648, %v11924_v39  ;;  %v11931_v33 = vld [vmem:[#allocation87_spill] sm:$0xff] }
 0x5e5   : > { %11917 = vst [vmem:[#allocation121_spill] sm:$0xff] %v9064_v7  ;;  %v11925_v7 = vld [vmem:[#allocation96_spill] sm:$0xff]  ;;  %v9093_v11 = vmul.f32 %v8851_v22, %v11928_v18  ;;  %vm2983_vm15 = vweird.f32 %v11908_v25  ;;  %vm2968_vm12 = vweird.f32 %v11905_v41  ;;  %v2965_v37 = vsub.f32 1.0, %v9030_v21 }
 0x5e6   : > { %11907 = vst [vmem:[#allocation78_spill] sm:$0xff] %v9034_v13  ;;  %v11914_v13 = vand.u32 2147483648, %v11913_v20  ;;  %v9085_v12 = vmul.f32 %v11925_v7, %v11924_v39  ;;  %v9089_v59 = vor.u32 1.1754944e-38, %v11926_v61  ;;  %v11934_v61 = vld [vmem:[#allocation65_spill] sm:$0xff]  ;;  %v11967_v2 = vand.u32 2147483647, %v11905_v41 }
 0x5e7   : > { %11919 = vst [vmem:[#allocation122_spill] sm:$0xff] %v9072_v58  ;;  %v11929_v58 = vand.u32 2147483648, %v11928_v18  ;;  %v11935_v22 = vand.u32 2147483648, %v11934_v61 }
 0x5e8   : > { %v9056_v23 = vor.u32 1.1754944e-38, %v11914_v13  ;;  %v11920_v13 = vld [vmem:[#allocation84_spill] sm:$0xff]  ;;  %11927 = vst [vmem:[#allocation124_spill] sm:$0xff] %v9089_v59  ;;  %v9110_v59 = vmul.f32 %v8864_v6, %v11934_v61  ;;  %vm9230_vm10 = vcmp.eq.f32.partialorder %v11967_v2, 8.507059e+37  ;;  %v2966_v61 = vmul.f32 %v8798_v40, %v2965_v37 }
 0x5e9   : > { %v11922_v52 = vand.u32 2147483648, %v11920_v13  ;;  %v9114_v18 = vor.u32 1.1754944e-38, %v11935_v22  ;;  %11970 = vst [vmem:[#allocation137_spill] sm:$0xff] %v9242_v48 }
 0x5ea   : > { %11915 = vst [vmem:[#allocation120_spill] sm:$0xff] %v9056_v23  ;;  %v11921_v23 = vld [vmem:[#allocation95_spill] sm:$0xff]  ;;  %v2967_v37 = vadd.f32 %v8798_v40, %v2966_v61 }
 0x5eb   : > { %v9077_v20 = vmul.f32 %v11921_v23, %v11920_v13  ;;  %v9081_v51 = vor.u32 1.1754944e-38, %v11922_v52  ;;  %v9097_v23 = vor.u32 1.1754944e-38, %v11929_v58  ;;  %v9101_v52 = vmul.f32 %v8858_v62, %v11931_v33  ;;  %11936 = vst [vmem:[#allocation127_spill] sm:$0xff] %v9114_v18  ;;  %v11937_v58 = vld [vmem:[#allocation88_spill] sm:$0xff] }
 0x5ec   : > { %v11932_v13 = vand.u32 2147483648, %v11931_v33  ;;  %v11939_v62 = vand.u32 2147483648, %v11937_v58  ;;  %v11944_v18 = vand.u32 2147483647, %v11908_v25  ;;  %11971 = vst [vmem:[#allocation138_spill] sm:$0xff] %v9248_v49 }
 0x5ed   : > { %11923 = vst [vmem:[#allocation123_spill] sm:$0xff] %v9081_v51  ;;  %v3791_v51 = vsub.f32 0.0, %v3727_v10  ;;  %v11984_v35 = vld [vmem:[#allocation78_spill] sm:$0xff] }
 0x5ee   : > { %11930 = vst [vmem:[#allocation125_spill] sm:$0xff] %v9097_v23  ;;  %v9106_v39 = vor.u32 1.1754944e-38, %v11932_v13  ;;  %v11938_v23 = vld [vmem:[#allocation99_spill] sm:$0xff]  ;;  %v9122_v46 = vor.u32 1.1754944e-38, %v11939_v62  ;;  %v9126_v13 = vmul.f32 %v8875_v38, %v11941_v3  ;;  %vm9136_vm1 = vcmp.eq.f32.partialorder %v11944_v18, 8.507059e+37  ;;  %v11953_v18 = vld [vmem:[#allocation90_spill] sm:$0xff] }
 0x5ef   : > { %v9118_v7 = vmul.f32 %v11938_v23, %v11937_v58  ;;  %v3823_v22 = vsel %vm3759_vm13, %v3727_v10, %v3791_v51  ;;  %v11947_v58 = vld [vmem:[#allocation67_spill] sm:$0xff]  ;;  %vm2985_vm13 = vmor %vm2983_vm15, %vm2984_vm14  ;;  %vm2834_vm14 = vweird.f32 %v8767_v57 }
 0x5f0   : > { %11933 = vst [vmem:[#allocation126_spill] sm:$0xff] %v9106_v39  ;;  %v11942_v39 = vand.u32 2147483648, %v11941_v3  ;;  %v9142_v62 = vmul.f32 %v8882_v47, %v11947_v58  ;;  %v11950_v3 = vld [vmem:[#allocation89_spill] sm:$0xff]  ;;  %v3855_v4 = vadd.f32 1.0, %v3823_v22  ;;  %v11954_v47 = vand.u32 2147483648, %v11953_v18  ;;  %vm2970_vm15 = vmor %vm2968_vm12, %vm2969_vm11 }
 0x5f1   : > { %11940 = vst [vmem:[#allocation128_spill] sm:$0xff] %v9122_v46  ;;  %v11948_v46 = vand.u32 2147483648, %v11947_v58  ;;  %v11951_v51 = vand.u32 2147483648, %v11950_v3  ;;  %v9174_v22 = vmul.f32 %v8959_v14, %v8595_v54  ;;  %v2971_v61 = vsel %vm2970_vm15, %v8798_v40, %v2967_v37  ;;  %v11988_v37 = vld [vmem:[#allocation105_spill] sm:$0xff] }
 0x5f2   : > { %v9130_v33 = vor.u32 1.1754944e-38, %v11942_v39  ;;  %v9150_v39 = vmul.f32 %v8900_v19, %v11950_v3  ;;  %v9162_v23 = vor.u32 1.1754944e-38, %v11954_v47  ;;  %v9183_v47 = vmul.f32 %v8971_v60, %v8601_v31 }
 0x5f3   : > { %v9146_v38 = vor.u32 1.1754944e-38, %v11948_v46  ;;  %v9154_v10 = vor.u32 1.1754944e-38, %v11951_v51  ;;  %v9166_v46 = vmul.f32 %v8948_v1, %v8592_v43  ;;  %v2980_v51 = vsub.f32 1.0, %v2979_v63 }
 0x5f4   : > { %11943 = vst [vmem:[#allocation129_spill] sm:$0xff] %v9130_v33  ;;  %v9158_v33 = vmul.f32 %v8919_v36, %v11953_v18  ;;  %v11959_v36 = vand.u32 2147483648, %v8595_v54  ;;  %v11963_v63 = vand.u32 2147483648, %v8604_v28  ;;  %v9308_v40 = vsel %vm9230_vm10, %v11984_v35, %v2971_v61  ;;  %v11992_v35 = vld [vmem:[#allocation36_spill] sm:$0xff] }
 0x5f5   : > { %11949 = vst [vmem:[#allocation130_spill] sm:$0xff] %v9146_v38  ;;  %v11956_v38 = vand.u32 2147483648, %v8592_v43  ;;  %vm2954_vm15 = vweird.f32 %v11992_v35 }
 0x5f6   : > { %11952 = vst [vmem:[#allocation131_spill] sm:$0xff] %v9154_v10  ;;  %v11958_v10 = vld [vmem:[#allocation8_spill] sm:$0xff]  ;;  %v9179_v18 = vor.u32 1.1754944e-38, %v11959_v36  ;;  %v2981_v36 = vmul.f32 %v8802_v0, %v2980_v51 }
 0x5f7   : > { %11955 = vst [vmem:[#allocation132_spill] sm:$0xff] %v9162_v23  ;;  %v9170_v58 = vor.u32 1.1754944e-38, %v11956_v38  ;;  %v3887_v3 = vmul.f32 %v3855_v4, %v11958_v10  ;;  %v11961_v23 = vand.u32 2147483648, %v8601_v31  ;;  %v9191_v38 = vmul.f32 %v8998_v16, %v8604_v28  ;;  %v12022_v28 = vld [vmem:[#allocation81_spill] sm:$0xff]  ;;  %v12023_v31 = vld [vmem:[#allocation82_spill] sm:$0xff] }
 0x5f8   : > { %11960 = vst [vmem:[#allocation8_spill] sm:$0xff] %v9179_v18  ;;  %v11965_v4 = vand.u32 2147483648, %v8607_v44  ;;  %v2982_v8 = vadd.f32 %v8802_v0, %v2981_v36  ;;  %v12011_v18 = vld [vmem:[#allocation76_spill] sm:$0xff] }
 0x5f9   : > { %11957 = vst [vmem:[#allocation133_spill] sm:$0xff] %v9170_v58  ;;  %v9187_v43 = vor.u32 1.1754944e-38, %v11961_v23  ;;  %v9195_v58 = vor.u32 1.1754944e-38, %v11963_v63  ;;  %v9203_v23 = vmul.f32 %v9017_v55, %v8607_v44  ;;  %v11991_v63 = vsub.f32 1.0, %v9022_v29 }
 0x5fa   : > { %3974 = vst.msk [vmem:[#allocation4 + $0x21] sm:$0xff] %vm11626_vm0, %v3887_v3  ;;  %v9207_v10 = vor.u32 1.1754944e-38, %v11965_v4  ;;  %v2875_v3 = vsub.f32 1.0, %v8992_v30  ;;  %v2986_v30 = vsel %vm2985_vm13, %v8802_v0, %v2982_v8  ;;  %v9254_v0 = vpop.eup %6207  ;;  %v11982_v4 = vld [vmem:[#allocation73_spill] sm:$0xff]  ;;  %vm2908_vm4 = vweird.f32 %v12011_v18 }
 0x5fb   : > { %11962 = vst [vmem:[#allocation134_spill] sm:$0xff] %v9187_v43  ;;  %v9238_v21 = vsel %vm9136_vm1, %v9040_v24, %v2986_v30  ;;  %v9259_v36 = vpop.eup %6209  ;;  %vm2833_vm1 = vweird.f32 %v11982_v4  ;;  %v12010_v43 = vld [vmem:[#allocation75_spill] sm:$0xff] }
 0x5fc   : > { %11964 = vst [vmem:[#allocation135_spill] sm:$0xff] %v9195_v58  ;;  %v3290_v8 = vmul.f32 1.0614054, %v9238_v21  ;;  %v9266_v24 = vpop.eup %6211  ;;  %vm2893_vm5 = vweird.f32 %v12010_v43  ;;  %vm9463_vm6 = vmor %vm2833_vm1, %vm2834_vm14 }
 0x5fd   : > { %11966 = vst [vmem:[#allocation136_spill] sm:$0xff] %v9207_v10  ;;  %v9272_v2 = vpop.eup %6213  ;;  %v12008_v10 = vld [vmem:[#allocation94_spill] sm:$0xff] }
 0x5fe   : > { %11972 = vst [vmem:[#allocation139_spill] sm:$0xff] %v9254_v0  ;;  %v3322_v50 = vadd.f32 -1.4531521, %v3290_v8  ;;  %v9278_v30 = vpop.eup %6215  ;;  %v11979_v8 = vsub.f32 1.0, %v8984_v15  ;;  %v11985_v15 = vsub.f32 1.0, %v9003_v9  ;;  %v9328_v9 = vmul.f32 %v11992_v35, %v11991_v63 }
 0x5ff   : > { %11973 = vst [vmem:[#allocation140_spill] sm:$0xff] %v9259_v36  ;;  %v9288_v51 = vpop.eup %6217  ;;  %v12075_v36 = vmov 0 }
 0x600   : > { %11974 = vst [vmem:[#allocation141_spill] sm:$0xff] %v9266_v24  ;;  %v3354_v34 = vmul.f32 %v3322_v50, %v9238_v21  ;;  %v9295_v32 = vmul.f32 %v8767_v57, %v11979_v8  ;;  %v9300_v41 = vpop.eup %6219  ;;  %v11986_v8 = vld [vmem:[#allocation62_spill] sm:$0xff] }
 0x601   : > { %v4072_v25 = vld [vmem:[#allocation4 + $0x21] sm:$0xff]  ;;  %11975 = vst [vmem:[#allocation142_spill] sm:$0xff] %v9272_v2  ;;  %vm2894_vm12 = vweird.f32 %v11986_v8 }
 0x602   : > { %4139 = vrot.lane.b32.xlu0 %v4072_v25, %s6274_s29  ;;  %v3386_v50 = vadd.f32 1.4214138, %v3354_v34  ;;  %11977 = vst [vmem:[#allocation102_spill] sm:$0xff] %v9288_v51  ;;  %v11978_v25 = vld [vmem:[#allocation103_spill] sm:$0xff]  ;;  %v11980_v34 = vld [vmem:[#allocation13_spill] sm:$0xff]  ;;  %v12021_v2 = vld [vmem:[#allocation80_spill] sm:$0xff] }
 0x603   : > { %6229 = vpow2.f32 %v11978_v25  ;;  %v9298_v27 = vmul.f32 %v11980_v34, %v2875_v3  ;;  %11981 = vst [vmem:[#allocation103_spill] sm:$0xff] %v9300_v41  ;;  %v9313_v25 = vmul.f32 %v11986_v8, %v11985_v15  ;;  %v9315_v3 = vpop.eup %6221  ;;  %vm2879_vm11 = vweird.f32 %v11980_v34  ;;  %v11990_v51 = vld [vmem:[#allocation63_spill] sm:$0xff]  ;;  %v12003_v41 = vld [vmem:[#allocation74_spill] sm:$0xff] }
 0x604   : > { %6231 = vpow2.f32 %v11983_v56  ;;  %v3418_v26 = vmul.f32 %v3386_v50, %v9238_v21  ;;  %11987 = vst [vmem:[#allocation13_spill] sm:$0xff] %v9315_v3  ;;  %v3289_v56 = vmul.f32 1.0614054, %v9308_v40  ;;  %v11989_v50 = vsub.f32 1.0, %v9011_v17  ;;  %v9330_v61 = vpop.eup %6223  ;;  %v11997_v17 = vld [vmem:[#allocation106_spill] sm:$0xff]  ;;  %v12012_v3 = vld [vmem:[#allocation77_spill] sm:$0xff] }
 0x605   : > { %6233 = vpow2.f32 %v11988_v37  ;;  %11993 = vst [vmem:[#allocation73_spill] sm:$0xff] %v9330_v61  ;;  %v11994_v15 = vand.u32 2147483647, %v11982_v4  ;;  %vm2909_vm13 = vweird.f32 %v11990_v51  ;;  %v11998_v37 = vsub.f32 1.0, %v9044_v42  ;;  %v9352_v49 = vpop.eup %6225 }
 0x606   : > { %v9323_v24 = vmul.f32 %v11990_v51, %v11989_v50  ;;  %6235 = vpow2.f32 %v11997_v17  ;;  %v3450_v29 = vadd.f32 -0.28449672, %v3418_v26  ;;  %v11999_v50 = vld [vmem:[#allocation92_spill] sm:$0xff]  ;;  %v12000_v61 = vsub.f32 1.0, %v9052_v53  ;;  %12002 = vst [vmem:[#allocation104_spill] sm:$0xff] %v9352_v49  ;;  %v12004_v17 = vld [vmem:[#allocation93_spill] sm:$0xff]  ;;  %v9369_v58 = vpop.eup %6227 }
 0x607   : > { %vm9334_vm10 = vcmp.eq.f32.partialorder %v11994_v15, 8.507059e+37  ;;  %v9345_v63 = vmul.f32 %v11999_v50, %v11998_v37  ;;  %v12001_v15 = vld [vmem:[#allocation21_spill] sm:$0xff]  ;;  %vm2878_vm9 = vweird.f32 %v12003_v41  ;;  %vm2999_vm8 = vweird.f32 %v11999_v50  ;;  %v12005_v26 = vld [vmem:[#allocation107_spill] sm:$0xff]  ;;  %12009 = vst [vmem:[#allocation78_spill] sm:$0xff] %v9369_v58  ;;  %v12018_v58 = vld [vmem:[#allocation96_spill] sm:$0xff] }
 0x608   : > { %v9350_v0 = vmul.f32 %v12001_v15, %v12000_v61  ;;  %6237 = vpow2.f32 %v12005_v26  ;;  %v3321_v42 = vadd.f32 -1.4531521, %v3289_v56  ;;  %v12006_v37 = vsub.f32 1.0, %v9060_v45  ;;  %v12013_v56 = vld [vmem:[#allocation95_spill] sm:$0xff]  ;;  %v12014_v45 = vld [vmem:[#allocation108_spill] sm:$0xff] }
 0x609   : > { %v12007_v61 = vsub.f32 1.0, %v9068_v5  ;;  %vm2953_vm3 = vweird.f32 %v12012_v3  ;;  %6239 = vpow2.f32 %v12014_v45  ;;  %v3482_v26 = vmul.f32 %v3450_v29, %v9238_v21  ;;  %v9388_v44 = vpop.eup %6229  ;;  %v12024_v29 = vld [vmem:[#allocation109_spill] sm:$0xff] }
 0x60a   : > { %v9362_v53 = vmul.f32 %v12004_v17, %v12006_v37  ;;  %v12015_v5 = vsub.f32 1.0, %v9077_v20  ;;  %12020 = vst [vmem:[#allocation74_spill] sm:$0xff] %v9388_v44  ;;  %vm2998_vm2 = vweird.f32 %v12021_v2  ;;  %6241 = vpow2.f32 %v12024_v29  ;;  %v12029_v44 = vld [vmem:[#allocation98_spill] sm:$0xff] }
 0x60b   : > { %v9367_v49 = vmul.f32 %v12008_v10, %v12007_v61  ;;  %v12017_v61 = vsub.f32 1.0, %v9085_v12  ;;  %v3353_v20 = vmul.f32 %v3321_v42, %v9308_v40  ;;  %v12025_v45 = vsub.f32 1.0, %v9093_v11  ;;  %v12026_v12 = vld [vmem:[#allocation97_spill] sm:$0xff]  ;;  %v12034_v29 = vld [vmem:[#allocation110_spill] sm:$0xff] }
 0x60c   : > { %v9381_v37 = vmul.f32 %v12013_v56, %v12015_v5  ;;  %v12032_v56 = vld [vmem:[#allocation83_spill] sm:$0xff]  ;;  %6243 = vpow2.f32 %v12034_v29  ;;  %v3514_v42 = vadd.f32 0.2548296, %v3482_v26  ;;  %v12035_v11 = vsub.f32 1.0, %v9110_v59 }
 0x60d   : > { %v9386_v48 = vmul.f32 %v12018_v58, %v12017_v61  ;;  %v9399_v5 = vmul.f32 %v12026_v12, %v12025_v45  ;;  %v12028_v61 = vsub.f32 1.0, %v9101_v52  ;;  %v12037_v52 = vsub.f32 1.0, %v9118_v7  ;;  %v12043_v29 = vld [vmem:[#allocation111_spill] sm:$0xff] }
 0x60e   : > { %12016 = vst [vmem:[#allocation105_spill] sm:$0xff] %v9381_v37  ;;  %v12033_v37 = vld [vmem:[#allocation84_spill] sm:$0xff]  ;;  %v9415_v45 = vmul.f32 %v8864_v6, %v12035_v11  ;;  %6245 = vpow2.f32 %v12043_v29  ;;  %v3385_v26 = vadd.f32 1.4214138, %v3353_v20  ;;  %v12044_v59 = vsub.f32 1.0, %v9126_v13 }
 0x60f   : > { %12019 = vst [vmem:[#allocation106_spill] sm:$0xff] %v9386_v48  ;;  %v9404_v54 = vmul.f32 %v12029_v44, %v12028_v61  ;;  %v9406_v48 = vpop.eup %6231  ;;  %v12038_v61 = vld [vmem:[#allocation99_spill] sm:$0xff]  ;;  %v12045_v11 = vld [vmem:[#allocation100_spill] sm:$0xff]  ;;  %v12046_v7 = vsub.f32 1.0, %v9142_v62  ;;  %v3546_v58 = vmul.f32 %v3514_v42, %v9238_v21  ;;  %v12051_v20 = vsub.f32 1.0, %v9150_v39 }
 0x610   : > { %12027 = vst [vmem:[#allocation93_spill] sm:$0xff] %v9399_v5  ;;  %v12050_v5 = vld [vmem:[#allocation86_spill] sm:$0xff]  ;;  %v12052_v29 = vsub.f32 1.0, %v9158_v33  ;;  %v3417_v33 = vmul.f32 %v3385_v26, %v9308_v40  ;;  %v12059_v21 = vsub.f32 1.0, %v9166_v46  ;;  %v12060_v42 = vsub.f32 1.0, %v9174_v22 }
 0x611   : > { %12030 = vst [vmem:[#allocation107_spill] sm:$0xff] %v9404_v54  ;;  %v9420_v54 = vmul.f32 %v12038_v61, %v12037_v52  ;;  %v12047_v52 = vld [vmem:[#allocation101_spill] sm:$0xff]  ;;  %v9446_v13 = vmul.f32 %v8900_v19, %v12051_v20  ;;  %v3706_v46 = vmul.f32 %v9278_v30, %v3546_v58  ;;  %v12064_v26 = vsub.f32 1.0, %v9191_v38  ;;  %v12071_v30 = vld [vmem:[#allocation116_spill] sm:$0xff] }
 0x612   : > { %12031 = vst [vmem:[#allocation75_spill] sm:$0xff] %v9406_v48  ;;  %v9422_v48 = vpop.eup %6233  ;;  %v9476_v20 = vmul.f32 %v8959_v14, %v12060_v42  ;;  %v12068_v58 = vand.u32 2147483647, %v12023_v31  ;;  %vm12114_vm1 = vweird.f32 %v12033_v37 }
 0x613   : > { %12036 = vst [vmem:[#allocation76_spill] sm:$0xff] %v9415_v45  ;;  %v9431_v45 = vmul.f32 %v12045_v11, %v12044_v59  ;;  %v12053_v59 = vld [vmem:[#allocation68_spill] sm:$0xff]  ;;  %v9491_v22 = vmul.f32 %v8998_v16, %v12064_v26 }
 0x614   : > { %12039 = vst [vmem:[#allocation108_spill] sm:$0xff] %v9420_v54  ;;  %v9436_v54 = vmul.f32 %v12047_v52, %v12046_v7  ;;  %v9451_v62 = vmul.f32 %v12053_v59, %v12052_v29  ;;  %v2832_v7 = vadd.f32 %v8767_v57, %v9295_v32  ;;  %v9471_v32 = vmul.f32 %v8948_v1, %v12059_v21 }
 0x615   : > { %12040 = vst [vmem:[#allocation80_spill] sm:$0xff] %v9422_v48  ;;  %v9438_v48 = vpop.eup %6235  ;;  %v12061_v29 = vsub.f32 1.0, %v9183_v47  ;;  %v12065_v21 = vsub.f32 1.0, %v9203_v23  ;;  %vm9506_vm7 = vcmp.eq.f32.partialorder %v12068_v58, 8.507059e+37  ;;  %v3449_v23 = vadd.f32 -0.28449672, %v3417_v33 }
 0x616   : > { %12048 = vst [vmem:[#allocation81_spill] sm:$0xff] %v9436_v54  ;;  %v12056_v54 = vld [vmem:[#allocation87_spill] sm:$0xff]  ;;  %v2836_v42 = vsel %vm9463_vm6, %v8767_v57, %v2832_v7  ;;  %v9518_v57 = vadd.f32 %v11980_v34, %v9298_v27  ;;  %v9522_v7 = vadd.f32 %v11986_v8, %v9313_v25  ;;  %v3738_v33 = vsub.f32 1.0, %v3706_v46  ;;  %vm9569_vm6 = vmor %vm2953_vm3, %vm2954_vm15 }
 0x617   : > { %12049 = vst [vmem:[#allocation82_spill] sm:$0xff] %v9438_v48  ;;  %v9455_v48 = vpop.eup %6237  ;;  %v9481_v4 = vmul.f32 %v8971_v60, %v12061_v29  ;;  %v9496_v47 = vmul.f32 %v9017_v55, %v12065_v21  ;;  %v9514_v26 = vsel %vm9334_vm10, %v12071_v30, %v2836_v42  ;;  %v12074_v21 = vld [vmem:[#allocation66_spill] sm:$0xff]  ;;  %vm9532_vm10 = vmor %vm2878_vm9, %vm2879_vm11  ;;  %v9539_v25 = vadd.f32 %v11990_v51, %v9323_v24  ;;  %v12080_v46 = vld [vmem:[#allocation67_spill] sm:$0xff] }
 0x618   : > { %12054 = vst [vmem:[#allocation109_spill] sm:$0xff] %v9451_v62  ;;  %v12063_v62 = vld [vmem:[#allocation65_spill] sm:$0xff]  ;;  %v12076_v36 = vsel %vm9532_vm10, 4294967295, %v12075_v36  ;;  %v3280_v27 = vmul.f32 1.0614054, %v9514_v26  ;;  %v9543_v42 = vadd.f32 %v11992_v35, %v9328_v9  ;;  %vm9553_vm9 = vmor %vm2893_vm5, %vm2894_vm12  ;;  %v12083_v24 = vmov 0 }
 0x619   : > { %12055 = vst [vmem:[#allocation97_spill] sm:$0xff] %v9455_v48  ;;  %v9483_v48 = vpop.eup %6239  ;;  %vm9561_vm11 = vmor %vm2908_vm4, %vm2909_vm13  ;;  %v12086_v9 = vmov 0  ;;  %v12091_v35 = vld [vmem:[#allocation89_spill] sm:$0xff]  ;;  %v3802_v3 = vsub.f32 0.0, %v3738_v33  ;;  %vm12095_vm12 = vweird.f32 %v12001_v15  ;;  %vm12096_vm13 = vweird.f32 %v12022_v28 }
 0x61a   : > { %12062 = vst [vmem:[#allocation98_spill] sm:$0xff] %v9483_v48  ;;  %v9501_v29 = vpop.eup %6241  ;;  %v12067_v48 = vld [vmem:[#allocation88_spill] sm:$0xff]  ;;  %v12084_v24 = vsel %vm9561_vm11, 4294967295, %v12083_v24  ;;  %v12087_v9 = vsel %vm9569_vm6, 4294967295, %v12086_v9  ;;  %vm9590_vm5 = vmor %vm2998_vm2, %vm2999_vm8  ;;  %vm12099_vm4 = vweird.f32 %v12004_v17  ;;  %vm12100_vm3 = vweird.f32 %v12023_v31 }
 0x61b   : > { %12066 = vst [vmem:[#allocation110_spill] sm:$0xff] %v9501_v29  ;;  %v9524_v39 = vpop.eup %6243  ;;  %v9580_v29 = vadd.f32 %v12001_v15, %v9350_v0  ;;  %vm9598_vm15 = vmor %vm12096_vm13, %vm12095_vm12  ;;  %v12104_v15 = vld [vmem:[#allocation105_spill] sm:$0xff]  ;;  %vm12108_vm12 = vweird.f32 %v12008_v10  ;;  %v12110_v31 = vmov 0  ;;  %vm12187_vm10 = vweird.f32 %v12080_v46  ;;  %v12225_v0 = vld [vmem:[#allocation90_spill] sm:$0xff] }
 0x61c   : > { %12072 = vst [vmem:[#allocation99_spill] sm:$0xff] %v9522_v7  ;;  %v9545_v58 = vpop.eup %6245  ;;  %vm9606_vm14 = vmor %vm12100_vm3, %vm12099_vm4  ;;  %vm12109_vm4 = vweird.f32 %v12032_v56  ;;  %v12122_v56 = vld [vmem:[#allocation107_spill] sm:$0xff]  ;;  %vm12202_vm11 = vweird.f32 %v12091_v35  ;;  %v12212_v51 = vmov 0  ;;  %v12237_v8 = vmov 0 }
 0x61d   : > { %12073 = vst [vmem:[#allocation111_spill] sm:$0xff] %v9524_v39  ;;  %v9576_v39 = vadd.f32 %v11999_v50, %v9345_v63  ;;  %vm9624_vm3 = vmor %vm12109_vm4, %vm12108_vm12 }
 0x61e   : > { %12077 = vst [vmem:[#allocation100_spill] sm:$0xff] %v9539_v25  ;;  %v12111_v31 = vsel %vm9624_vm3, 4294967295, %v12110_v31 }
 0x61f   : > { %12078 = vst [vmem:[#allocation101_spill] sm:$0xff] %v9543_v42  ;;  %v3027_v42 = vadd.f32 %v12004_v17, %v9362_v53  ;;  %v3312_v53 = vadd.f32 -1.4531521, %v3280_v27  ;;  %v12118_v27 = vld [vmem:[#allocation106_spill] sm:$0xff] }
 0x620   : > { %12079 = vst [vmem:[#allocation86_spill] sm:$0xff] %v9545_v58  ;;  %v3481_v58 = vmul.f32 %v3449_v23, %v9308_v40  ;;  %v12092_v23 = vmov 0 }
 0x621   : > { %12085 = vst [vmem:[#allocation68_spill] sm:$0xff] %v12084_v24  ;;  %v12093_v23 = vsel %vm9590_vm5, 4294967295, %v12092_v23  ;;  %v12215_v24 = vld [vmem:[#allocation84_spill] sm:$0xff] }
 0x622   : > { %12088 = vst [vmem:[#allocation87_spill] sm:$0xff] %v12087_v9  ;;  %v12210_v9 = vld [vmem:[#allocation83_spill] sm:$0xff]  ;;  %v12216_v7 = vand.u32 2147483647, %v12215_v24 }
 0x623   : > { %12089 = vst [vmem:[#allocation65_spill] sm:$0xff] %v9576_v39  ;;  %v12211_v25 = vand.u32 2147483647, %v12210_v9  ;;  %v12230_v9 = vld [vmem:[#allocation94_spill] sm:$0xff] }
 0x624   : > { %12090 = vst [vmem:[#allocation88_spill] sm:$0xff] %v9580_v29  ;;  %v9612_v29 = vadd.f32 %v12008_v10, %v9367_v49  ;;  %v12115_v49 = vmov 0  ;;  %v12120_v10 = vld [vmem:[#allocation93_spill] sm:$0xff] }
 0x625   : > { %12094 = vst [vmem:[#allocation116_spill] sm:$0xff] %v12093_v23  ;;  %v12105_v23 = vld [vmem:[#allocation95_spill] sm:$0xff]  ;;  %v9642_v39 = vadd.f32 %v12026_v12, %v12120_v10 }
 0x626   : > { %12103 = vst [vmem:[#allocation66_spill] sm:$0xff] %v9612_v29  ;;  %v9616_v50 = vadd.f32 %v12105_v23, %v12104_v15  ;;  %vm12113_vm13 = vweird.f32 %v12105_v23  ;;  %v3513_v15 = vadd.f32 0.2548296, %v3481_v58  ;;  %v12135_v23 = vld [vmem:[#allocation108_spill] sm:$0xff] }
 0x627   : > { %12112 = vst [vmem:[#allocation89_spill] sm:$0xff] %v12111_v31  ;;  %vm9632_vm0 = vmor %vm12114_vm1, %vm12113_vm13  ;;  %v9646_v31 = vadd.f32 %v12029_v44, %v12122_v56  ;;  %v3344_v56 = vmul.f32 %v3312_v53, %v9514_v26  ;;  %v9668_v37 = vadd.f32 %v12038_v61, %v12135_v23  ;;  %v12143_v23 = vld [vmem:[#allocation81_spill] sm:$0xff]  ;;  %vm12146_vm1 = vweird.f32 %v12029_v44 }
 0x628   : > { %12106 = vst [vmem:[#allocation67_spill] sm:$0xff] %v9616_v50  ;;  %v12116_v49 = vsel %vm9632_vm0, 4294967295, %v12115_v49  ;;  %v12119_v50 = vld [vmem:[#allocation96_spill] sm:$0xff]  ;;  %v3545_v53 = vmul.f32 %v3513_v15, %v9308_v40  ;;  %v12151_v15 = vld [vmem:[#allocation109_spill] sm:$0xff] }
 0x629   : > { %12117 = vst [vmem:[#allocation105_spill] sm:$0xff] %v12116_v49  ;;  %v9638_v29 = vadd.f32 %v12119_v50, %v12118_v27  ;;  %v12126_v49 = vld [vmem:[#allocation39_spill] sm:$0xff]  ;;  %vm12128_vm8 = vweird.f32 %v12119_v50  ;;  %v12129_v27 = vld [vmem:[#allocation85_spill] sm:$0xff]  ;;  %v3376_v40 = vadd.f32 1.4214138, %v3344_v56  ;;  %v12157_v56 = vmov 0 }
 0x62a   : > { %12121 = vst [vmem:[#allocation106_spill] sm:$0xff] %v9642_v39  ;;  %vm12127_vm13 = vcmp.ge.f32.partialorder %v12126_v49, 0.0  ;;  %vm12130_vm2 = vweird.f32 %v12129_v27 }
 0x62b   : > { %12123 = vst [vmem:[#allocation96_spill] sm:$0xff] %v9646_v31  ;;  %v3834_v58 = vsel %vm12127_vm13, %v3738_v33, %v3802_v3  ;;  %vm9657_vm0 = vmor %vm12130_vm2, %vm12128_vm8  ;;  %v12133_v31 = vld [vmem:[#allocation76_spill] sm:$0xff]  ;;  %vm12138_vm2 = vweird.f32 %v12026_v12  ;;  %vm12139_vm8 = vweird.f32 %v12050_v5  ;;  %v12258_v33 = vand.u32 2147483647, %v12074_v21 }
 0x62c   : > { %v9664_v39 = vadd.f32 %v8864_v6, %v12133_v31  ;;  %12136 = vst [vmem:[#allocation107_spill] sm:$0xff] %v9668_v37  ;;  %v3866_v3 = vadd.f32 1.0, %v3834_v58  ;;  %vm9676_vm12 = vmor %vm12139_vm8, %vm12138_vm2  ;;  %v9683_v31 = vadd.f32 %v12045_v11, %v9431_v45  ;;  %v9687_v37 = vadd.f32 %v12047_v52, %v12143_v23 }
 0x62d   : > { %vm12147_vm2 = vweird.f32 %v12056_v54  ;;  %v12148_v58 = vmov 0  ;;  %v9701_v45 = vadd.f32 %v8900_v19, %v9446_v13  ;;  %v9705_v23 = vadd.f32 %v12053_v59, %v12151_v15  ;;  %v12159_v13 = vld [vmem:[#allocation142_spill] sm:$0xff] }
 0x62e   : > { %12134 = vst [vmem:[#allocation93_spill] sm:$0xff] %v9664_v39  ;;  %vm9695_vm8 = vmor %vm12147_vm2, %vm12146_vm1  ;;  %v12154_v39 = vld [vmem:[#allocation16_spill] sm:$0xff]  ;;  %vm12155_vm1 = vweird.f32 %v8864_v6  ;;  %vm12156_vm2 = vweird.f32 %v12063_v62  ;;  %v9724_v15 = vadd.f32 %v8959_v14, %v9476_v20  ;;  %v3408_v20 = vmul.f32 %v3376_v40, %v9514_v26 }
 0x62f   : > { %12142 = vst [vmem:[#allocation39_spill] sm:$0xff] %v9683_v31  ;;  %v12149_v58 = vsel %vm9695_vm8, 4294967295, %v12148_v58  ;;  %v12153_v31 = vld [vmem:[#allocation72_spill] sm:$0xff]  ;;  %v3898_v49 = vmul.f32 %v3866_v3, %v12154_v39  ;;  %vm9717_vm4 = vmor %vm12156_vm2, %vm12155_vm1  ;;  %v12161_v39 = vand.u32 2147483647, %v12022_v28  ;;  %v12162_v3 = vmov 0 }
 0x630   : > { %12144 = vst [vmem:[#allocation85_spill] sm:$0xff] %v9687_v37  ;;  %v9709_v37 = vadd.f32 %v8948_v1, %v9471_v32  ;;  %v12158_v56 = vsel %vm9717_vm4, 4294967295, %v12157_v56  ;;  %v3031_v32 = vsel %vm9606_vm14, %v12004_v17, %v3027_v42  ;;  %vm12164_vm1 = vweird.f32 %v12038_v61  ;;  %v12168_v42 = vld [vmem:[#allocation121_spill] sm:$0xff] }
 0x631   : > { %12150 = vst [vmem:[#allocation76_spill] sm:$0xff] %v9701_v45  ;;  %v3705_v45 = vmul.f32 %v12159_v13, %v3545_v53  ;;  %vm9732_vm8 = vcmp.eq.f32.partialorder %v12161_v39, 8.507059e+37  ;;  %vm12165_vm2 = vweird.f32 %v12067_v48  ;;  %v9747_v17 = vadd.f32 %v8971_v60, %v9481_v4 }
 0x632   : > { %12152 = vst [vmem:[#allocation108_spill] sm:$0xff] %v9709_v37  ;;  %v12160_v37 = vld [vmem:[#allocation91_spill] sm:$0xff]  ;;  %v12163_v3 = vsel %vm9732_vm8, 4294967295, %v12162_v3  ;;  %vm9740_vm4 = vmor %vm12165_vm2, %vm12164_vm1  ;;  %v9751_v28 = vadd.f32 %v8998_v16, %v9491_v22  ;;  %v9756_v63 = vsel %vm9506_vm7, %v12168_v42, %v3031_v32  ;;  %vm12169_vm14 = vcmask 64512   ;;  %v12250_v10 = vld [vmem:[#allocation96_spill] sm:$0xff] }
 0x633   : > { %3985 = vst.msk [vmem:[#allocation4 + $0xa9] sm:$0xff] %vm12169_vm14, %v3898_v49  ;;  %vm12170_vm1 = vweird.f32 %v12045_v11  ;;  %vm12171_vm2 = vweird.f32 %v12074_v21  ;;  %v3737_v4 = vsub.f32 1.0, %v3705_v45  ;;  %v9769_v22 = vadd.f32 %v9017_v55, %v9496_v47  ;;  %v12268_v21 = vld [vmem:[#allocation107_spill] sm:$0xff] }
 0x634   : > { %vm9763_vm13 = vmor %vm12171_vm2, %vm12170_vm1  ;;  %v3293_v13 = vmul.f32 1.0614054, %v9756_v63  ;;  %v12174_v49 = vand.u32 2147483647, %v12003_v41  ;;  %v12175_v32 = vmov 0  ;;  %v12179_v45 = vmov 0 }
 0x635   : > { %v12178_v39 = vand.u32 2147483647, %v12010_v43  ;;  %v12182_v47 = vand.u32 2147483647, %v12011_v18  ;;  %v12183_v42 = vmov 0  ;;  %vm12186_vm2 = vweird.f32 %v12047_v52 }
 0x636   : > { %vm9778_vm7 = vcmp.eq.f32.partialorder %v12174_v49, 8.507059e+37  ;;  %vm9798_vm8 = vmor %vm12187_vm10, %vm12186_vm2  ;;  %v3440_v49 = vadd.f32 -0.28449672, %v3408_v20  ;;  %v12197_v20 = vand.u32 2147483647, %v12021_v2  ;;  %v12198_v43 = vmov 0 }
 0x637   : > { %v12176_v32 = vsel %vm9778_vm7, 4294967295, %v12175_v32  ;;  %vm9784_vm14 = vcmp.eq.f32.partialorder %v12178_v39, 8.507059e+37  ;;  %vm9790_vm1 = vcmp.eq.f32.partialorder %v12182_v47, 8.507059e+37  ;;  %v3801_v38 = vsub.f32 0.0, %v3737_v4  ;;  %v12206_v39 = vld [vmem:[#allocation92_spill] sm:$0xff] }
 0x638   : > { %12177 = vst [vmem:[#allocation81_spill] sm:$0xff] %v12176_v32  ;;  %v12180_v45 = vsel %vm9784_vm14, 4294967295, %v12179_v45  ;;  %v12184_v42 = vsel %vm9790_vm1, 4294967295, %v12183_v42  ;;  %v12194_v32 = vmov 0  ;;  %vm9822_vm2 = vcmp.eq.f32.partialorder %v12197_v20, 8.507059e+37  ;;  %v12208_v2 = vld [vmem:[#allocation88_spill] sm:$0xff] }
 0x639   : > { %12181 = vst [vmem:[#allocation109_spill] sm:$0xff] %v12180_v45  ;;  %v12199_v43 = vsel %vm9822_vm2, 4294967295, %v12198_v43  ;;  %vm12201_vm1 = vweird.f32 %v8900_v19  ;;  %v12209_v20 = vld [vmem:[#allocation21_spill] sm:$0xff]  ;;  %vm9844_vm2 = vcmp.eq.f32.partialorder %v12211_v25, 8.507059e+37  ;;  %v12220_v47 = vand.u32 2147483647, %v12129_v27 }
 0x63a   : > { %12185 = vst [vmem:[#allocation72_spill] sm:$0xff] %v12184_v42  ;;  %v12192_v42 = vld [vmem:[#allocation77_spill] sm:$0xff]  ;;  %vm9830_vm14 = vmor %vm12202_vm11, %vm12201_vm1  ;;  %v12213_v51 = vsel %vm9844_vm2, 4294967295, %v12212_v51  ;;  %vm9850_vm11 = vcmp.eq.f32.partialorder %v12216_v7, 8.507059e+37  ;;  %vm12226_vm1 = vweird.f32 %v12225_v0  ;;  %v3472_v24 = vmul.f32 %v3440_v49, %v9514_v26  ;;  %v12229_v7 = vld [vmem:[#allocation66_spill] sm:$0xff] }
 0x63b   : > { %v12193_v45 = vand.u32 2147483647, %v12192_v42  ;;  %12200 = vst [vmem:[#allocation142_spill] sm:$0xff] %v12199_v43  ;;  %v3325_v42 = vadd.f32 -1.4531521, %v3293_v13  ;;  %v3016_v43 = vsel %vm9598_vm15, %v12209_v20, %v12208_v2  ;;  %v12217_v13 = vmov 0 }
 0x63c   : > { %12214 = vst [vmem:[#allocation91_spill] sm:$0xff] %v12213_v51  ;;  %v12218_v13 = vsel %vm9850_vm11, 4294967295, %v12217_v13  ;;  %vm12224_vm15 = vweird.f32 %v12053_v59  ;;  %v3046_v2 = vsel %vm9624_vm3, %v12230_v9, %v12229_v7  ;;  %v12232_v27 = vld [vmem:[#allocation67_spill] sm:$0xff]  ;;  %v12236_v51 = vand.u32 2147483647, %v12050_v5  ;;  %v12243_v9 = vld [vmem:[#allocation69_spill] sm:$0xff] }
 0x63d   : > { %vm9816_vm10 = vcmp.eq.f32.partialorder %v12193_v45, 8.507059e+37  ;;  %v12205_v45 = vld [vmem:[#allocation65_spill] sm:$0xff]  ;;  %12219 = vst [vmem:[#allocation121_spill] sm:$0xff] %v12218_v13  ;;  %v12233_v20 = vld [vmem:[#allocation95_spill] sm:$0xff]  ;;  %v3076_v13 = vsel %vm9657_vm0, %v12119_v50, %v9638_v29  ;;  %v12239_v49 = vand.u32 2147483647, %v12056_v54  ;;  %vm12242_vm3 = vweird.f32 %v8948_v1 }
 0x63e   : > { %v12195_v32 = vsel %vm9816_vm10, 4294967295, %v12194_v32  ;;  %vm9864_vm10 = vmor %vm12226_vm1, %vm12224_vm15  ;;  %vm9883_vm15 = vcmp.eq.f32.partialorder %v12236_v51, 8.507059e+37  ;;  %v12240_v7 = vmov 0  ;;  %v12247_v50 = vld [vmem:[#allocation38_spill] sm:$0xff]  ;;  %v3357_v5 = vmul.f32 %v3325_v42, %v9756_v63  ;;  %v12266_v42 = vld [vmem:[#allocation93_spill] sm:$0xff] }
 0x63f   : > { %12196 = vst [vmem:[#allocation16_spill] sm:$0xff] %v12195_v32  ;;  %v3001_v32 = vsel %vm9590_vm5, %v12206_v39, %v12205_v45  ;;  %vm9856_vm5 = vcmp.eq.f32.partialorder %v12220_v47, 8.507059e+37  ;;  %v12221_v39 = vmov 0  ;;  %v12234_v47 = vld [vmem:[#allocation105_spill] sm:$0xff]  ;;  %v12238_v8 = vsel %vm9883_vm15, 4294967295, %v12237_v8  ;;  %v12249_v29 = vld [vmem:[#allocation106_spill] sm:$0xff] }
 0x640   : > { %v12222_v39 = vsel %vm9856_vm5, 4294967295, %v12221_v39  ;;  %vm12235_vm11 = vnez %v12234_v47  ;;  %vm9889_vm1 = vcmp.eq.f32.partialorder %v12239_v49, 8.507059e+37  ;;  %vm12248_vm0 = vcmp.ge.f32.partialorder %v12247_v50, 0.0  ;;  %v4083_v40 = vld [vmem:[#allocation4 + $0xa9] sm:$0xff] }
 0x641   : > { %12223 = vst [vmem:[#allocation77_spill] sm:$0xff] %v12222_v39  ;;  %v3061_v39 = vsel %vm12235_vm11, %v12233_v20, %v12232_v27  ;;  %v12241_v7 = vsel %vm9889_vm1, 4294967295, %v12240_v7  ;;  %vm12244_vm11 = vweird.f32 %v12243_v9  ;;  %v3833_v51 = vsel %vm12248_vm0, %v3737_v4, %v3801_v38  ;;  %4161 = vrot.lane.b32.xlu1 %v4083_v40, %s6274_s29  ;;  %v12303_v45 = vld [vmem:[#allocation137_spill] sm:$0xff]  ;;  %v12320_v40 = vld [vmem:[#allocation100_spill] sm:$0xff] }
 0x642   : > { %vm9897_vm5 = vmor %vm12244_vm11, %vm12242_vm3  ;;  %v3091_v54 = vsel %vm9676_vm12, %v12026_v12, %v12249_v29  ;;  %vm12251_vm1 = vnez %v12149_v58  ;;  %v12252_v20 = vand.u32 2147483647, %v12063_v62  ;;  %v12253_v47 = vmov 0  ;;  %v12269_v29 = vld [vmem:[#allocation32_spill] sm:$0xff] }
 0x643   : > { %v3106_v27 = vsel %vm12251_vm1, %v12029_v44, %v12250_v10  ;;  %v12255_v4 = vand.u32 2147483647, %v12067_v48  ;;  %v12256_v38 = vmov 0  ;;  %vm9926_vm12 = vcmp.eq.f32.partialorder %v12258_v33, 8.507059e+37  ;;  %v12262_v44 = vld [vmem:[#allocation70_spill] sm:$0xff]  ;;  %v12283_v33 = vld [vmem:[#allocation76_spill] sm:$0xff] }
 0x644   : > { %vm9914_vm3 = vcmp.eq.f32.partialorder %v12252_v20, 8.507059e+37  ;;  %v12259_v12 = vmov 0  ;;  %vm12261_vm1 = vweird.f32 %v8959_v14  ;;  %vm12263_vm0 = vweird.f32 %v12262_v44 }
 0x645   : > { %v12254_v47 = vsel %vm9914_vm3, 4294967295, %v12253_v47  ;;  %vm9920_vm11 = vcmp.eq.f32.partialorder %v12255_v4, 8.507059e+37  ;;  %v12260_v12 = vsel %vm9926_vm12, 4294967295, %v12259_v12  ;;  %vm9934_vm15 = vmor %vm12263_vm0, %vm12261_vm1  ;;  %v3865_v58 = vadd.f32 1.0, %v3833_v51  ;;  %v12282_v4 = vld [vmem:[#allocation85_spill] sm:$0xff] }
 0x646   : > { %v12257_v38 = vsel %vm9920_vm11, 4294967295, %v12256_v38  ;;  %v3504_v48 = vadd.f32 0.2548296, %v3472_v24  ;;  %vm12267_vm11 = vnez %v12158_v56  ;;  %v3136_v50 = vsel %vm9740_vm4, %v12038_v61, %v12268_v21 }
 0x647   : > { %v3121_v49 = vsel %vm12267_vm11, %v8864_v6, %v12266_v42  ;;  %vm3760_vm12 = vcmp.ge.f32.partialorder %v12269_v29, 0.0  ;;  %v12270_v10 = vand.u32 2147483647, %v12080_v46  ;;  %v12273_v24 = vand.u32 2147483647, %v12091_v35  ;;  %v12277_v6 = vld [vmem:[#allocation71_spill] sm:$0xff] }
 0x648   : > { %vm12276_vm11 = vweird.f32 %v8971_v60  ;;  %vm12278_vm3 = vweird.f32 %v12277_v6  ;;  %v3389_v56 = vadd.f32 1.4214138, %v3357_v5  ;;  %v12281_v46 = vld [vmem:[#allocation39_spill] sm:$0xff]  ;;  %v3166_v35 = vsel %vm9798_vm8, %v12047_v52, %v12282_v4  ;;  %v12314_v4 = vld [vmem:[#allocation28_spill] sm:$0xff] }
 0x649   : > { %vm9949_vm1 = vcmp.eq.f32.partialorder %v12270_v10, 8.507059e+37  ;;  %vm9955_vm0 = vcmp.eq.f32.partialorder %v12273_v24, 8.507059e+37  ;;  %vm9963_vm2 = vmor %vm12278_vm3, %vm12276_vm11  ;;  %v3151_v53 = vsel %vm9763_vm13, %v12045_v11, %v12281_v46  ;;  %v3181_v42 = vsel %vm9830_vm14, %v8900_v19, %v12283_v33  ;;  %v12294_v19 = vld [vmem:[#allocation24_spill] sm:$0xff]  ;;  %v12312_v46 = vld [vmem:[#allocation99_spill] sm:$0xff] }
 0x64a   : > { %v12284_v21 = vand.u32 2147483647, %v12225_v0  ;;  %v12287_v5 = vand.u32 2147483647, %v12243_v9  ;;  %vm12290_vm13 = vweird.f32 %v8998_v16  ;;  %vm12291_vm8 = vweird.f32 %v12153_v31  ;;  %v12295_v9 = vld [vmem:[#allocation108_spill] sm:$0xff]  ;;  %v12315_v33 = vld [vmem:[#allocation109_spill] sm:$0xff] }
 0x64b   : > { %vm9995_vm11 = vmor %vm12291_vm8, %vm12290_vm13  ;;  %v3897_v41 = vmul.f32 %v3865_v58, %v12294_v19  ;;  %v3536_v18 = vmul.f32 %v3504_v48, %v9514_v26  ;;  %v3196_v0 = vsel %vm9864_vm10, %v12053_v59, %v9705_v23  ;;  %v3211_v24 = vsel %vm9897_vm5, %v8948_v1, %v12295_v9  ;;  %v12300_v23 = vld [vmem:[#allocation120_spill] sm:$0xff]  ;;  %v12369_v10 = vld [vmem:[#allocation13_spill] sm:$0xff] }
 0x64c   : > { %vm9981_vm4 = vcmp.eq.f32.partialorder %v12284_v21, 8.507059e+37  ;;  %vm9987_vm3 = vcmp.eq.f32.partialorder %v12287_v5, 8.507059e+37  ;;  %vm12296_vm14 = vweird.f32 %v9017_v55  ;;  %vm12297_vm13 = vweird.f32 %v12160_v37  ;;  %v12317_v5 = vld [vmem:[#allocation68_spill] sm:$0xff] }
 0x64d   : > { %vm10014_vm8 = vmor %vm12297_vm13, %vm12296_vm14  ;;  %v3421_v26 = vmul.f32 %v3389_v56, %v9756_v63  ;;  %v3226_v59 = vsel %vm9934_vm15, %v8959_v14, %v9724_v15  ;;  %v3241_v1 = vsel %vm9963_vm2, %v8971_v60, %v9747_v17  ;;  %vm12301_vm10 = vnez %v12163_v3  ;;  %v12311_v56 = vld [vmem:[#allocation62_spill] sm:$0xff]  ;;  %v12323_v52 = vld [vmem:[#allocation72_spill] sm:$0xff] }
 0x64e   : > { %v10030_v25 = vsel %vm12301_vm10, %v12300_v23, %v3016_v43  ;;  %vm12302_vm5 = vcmask 64512   ;;  %v3696_v48 = vmul.f32 %v12303_v45, %v3536_v18  ;;  %v3256_v62 = vsel %vm9995_vm11, %v8998_v16, %v9751_v28  ;;  %v12309_v16 = vld [vmem:[#allocation117_spill] sm:$0xff]  ;;  %v12329_v23 = vld [vmem:[#allocation36_spill] sm:$0xff] }
 0x64f   : > { %3984 = vst.msk [vmem:[#allocation4 + $0x99] sm:$0xff] %vm12302_vm5, %v3897_v41  ;;  %v3271_v14 = vsel %vm10014_vm8, %v9017_v55, %v9769_v22  ;;  %v3292_v60 = vmul.f32 1.0614054, %v10030_v25  ;;  %v12304_v15 = vand.u32 2147483647, %v12262_v44  ;;  %vm12307_vm15 = vnez %v12076_v36  ;;  %v12319_v36 = vld [vmem:[#allocation63_spill] sm:$0xff] }
 0x650   : > { %v3453_v17 = vadd.f32 -0.28449672, %v3421_v26  ;;  %v12308_v43 = vsel %vm12307_vm15, %v11980_v34, %v9518_v57  ;;  %v12313_v44 = vsel %vm9553_vm9, %v12311_v56, %v12312_v46  ;;  %vm12316_vm11 = vnez %v12315_v33  ;;  %v12322_v57 = vld [vmem:[#allocation118_spill] sm:$0xff]  ;;  %v12330_v45 = vld [vmem:[#allocation101_spill] sm:$0xff]  ;;  %v12335_v56 = vld [vmem:[#allocation79_spill] sm:$0xff] }
 0x651   : > { %vm10045_vm2 = vcmp.eq.f32.partialorder %v12304_v15, 8.507059e+37  ;;  %v10057_v61 = vsel %vm9778_vm7, %v12309_v16, %v12308_v43  ;;  %v10067_v21 = vsel %vm12316_vm11, %v12314_v4, %v12313_v44  ;;  %vm12318_vm14 = vnez %v12317_v5  ;;  %v12332_v43 = vld [vmem:[#allocation119_spill] sm:$0xff]  ;;  %v12333_v16 = vld [vmem:[#allocation16_spill] sm:$0xff]  ;;  %v12336_v46 = vld [vmem:[#allocation142_spill] sm:$0xff] }
 0x652   : > { %v12321_v34 = vsel %vm12318_vm14, %v12319_v36, %v12320_v40  ;;  %vm12324_vm13 = vnez %v12323_v52  ;;  %v12325_v30 = vand.u32 2147483647, %v12277_v6  ;;  %v3728_v18 = vsub.f32 1.0, %v3696_v48  ;;  %v12338_v4 = vld [vmem:[#allocation122_spill] sm:$0xff]  ;;  %v12339_v48 = vld [vmem:[#allocation91_spill] sm:$0xff]  ;;  %v12342_v5 = vld [vmem:[#allocation121_spill] sm:$0xff] }
 0x653   : > { %v10077_v19 = vsel %vm12324_vm13, %v12322_v57, %v12321_v34  ;;  %v3324_v9 = vadd.f32 -1.4531521, %v3292_v60  ;;  %v12331_v15 = vsel %vm9569_vm6, %v12329_v23, %v12330_v45  ;;  %vm12334_vm9 = vnez %v12333_v16  ;;  %v12341_v33 = vld [vmem:[#allocation123_spill] sm:$0xff]  ;;  %v12344_v40 = vld [vmem:[#allocation124_spill] sm:$0xff]  ;;  %v12345_v34 = vld [vmem:[#allocation77_spill] sm:$0xff] }
 0x654   : > { %vm10081_vm7 = vcmp.eq.f32.partialorder %v12325_v30, 8.507059e+37  ;;  %v10093_v28 = vsel %vm12334_vm9, %v12332_v43, %v12331_v15  ;;  %vm12337_vm10 = vnez %v12336_v46  ;;  %v3485_v44 = vmul.f32 %v3453_v17, %v9756_v63  ;;  %v12350_v30 = vld [vmem:[#allocation125_spill] sm:$0xff]  ;;  %v12357_v15 = vld [vmem:[#allocation127_spill] sm:$0xff]  ;;  %v12366_v46 = vld [vmem:[#allocation132_spill] sm:$0xff] }
 0x655   : > { %v10098_v6 = vsel %vm12337_vm10, %v12335_v56, %v3001_v32  ;;  %vm12340_vm5 = vnez %v12339_v48  ;;  %vm12343_vm6 = vnez %v12342_v5  ;;  %vm12346_vm15 = vnez %v12345_v34  ;;  %v12364_v56 = vld [vmem:[#allocation130_spill] sm:$0xff] }
 0x656   : > { %v10104_v60 = vsel %vm12340_vm5, %v12338_v4, %v3046_v2  ;;  %v10109_v36 = vsel %vm12343_vm6, %v12341_v33, %v3061_v39  ;;  %v10114_v57 = vsel %vm12346_vm15, %v12344_v40, %v3076_v13  ;;  %v12347_v32 = vand.u32 2147483647, %v12153_v31  ;;  %v12352_v39 = vld [vmem:[#allocation126_spill] sm:$0xff]  ;;  %v12370_v33 = vld [vmem:[#allocation8_spill] sm:$0xff] }
 0x657   : > { %v3792_v17 = vsub.f32 0.0, %v3728_v18  ;;  %v3356_v2 = vmul.f32 %v3324_v9, %v10030_v25  ;;  %vm12351_vm14 = vnez %v12238_v8  ;;  %vm12353_vm13 = vnez %v12241_v7  ;;  %v12359_v8 = vld [vmem:[#allocation128_spill] sm:$0xff]  ;;  %v12361_v7 = vld [vmem:[#allocation129_spill] sm:$0xff] }
 0x658   : > { %vm10118_vm11 = vcmp.eq.f32.partialorder %v12347_v32, 8.507059e+37  ;;  %v10126_v26 = vsel %vm12351_vm14, %v12350_v30, %v3091_v54  ;;  %v10131_v23 = vsel %vm12353_vm13, %v12352_v39, %v3106_v27  ;;  %v12354_v13 = vand.u32 2147483647, %v12160_v37  ;;  %v12363_v37 = vld [vmem:[#allocation42_spill] sm:$0xff] }
 0x659   : > { %v3517_v45 = vadd.f32 0.2548296, %v3485_v44  ;;  %vm12358_vm10 = vnez %v12254_v47  ;;  %vm12360_vm5 = vnez %v12257_v38  ;;  %vm12362_vm6 = vnez %v12260_v12  ;;  %v12368_v44 = vld [vmem:[#allocation11_spill] sm:$0xff] }
 0x65a   : > { %vm10135_vm9 = vcmp.eq.f32.partialorder %v12354_v13, 8.507059e+37  ;;  %v10142_v9 = vsel %vm12358_vm10, %v12357_v15, %v3121_v49  ;;  %v10147_v54 = vsel %vm12360_vm5, %v12359_v8, %v3136_v50  ;;  %v10152_v27 = vsel %vm12362_vm6, %v12361_v7, %v3151_v53  ;;  %v12365_v49 = vld [vmem:[#allocation131_spill] sm:$0xff] }
 0x65b   : > { %vm3773_vm15 = vcmp.ge.f32.partialorder %v12363_v37, 0.0  ;;  %v3824_v43 = vsel %vm3760_vm12, %v3728_v18, %v3792_v17  ;;  %v3388_v16 = vadd.f32 1.4214138, %v3356_v2  ;;  %v10160_v47 = vsel %vm9949_vm1, %v12364_v56, %v3166_v35  ;;  %v4082_v50 = vld [vmem:[#allocation4 + $0x99] sm:$0xff]  ;;  %v12367_v18 = vld [vmem:[#allocation133_spill] sm:$0xff]  ;;  %v12372_v17 = vld [vmem:[#allocation134_spill] sm:$0xff] }
 0x65c   : > { %v10165_v38 = vsel %vm9955_vm0, %v12365_v49, %v3181_v42  ;;  %v3856_v12 = vadd.f32 1.0, %v3824_v43  ;;  %v3549_v53 = vmul.f32 %v3517_v45, %v9756_v63  ;;  %v10171_v29 = vsel %vm9981_vm4, %v12366_v46, %v3196_v0  ;;  %4159 = vrot.lane.b32.xlu2 %v4082_v50, %s6274_s29  ;;  %v12373_v8 = vld [vmem:[#allocation135_spill] sm:$0xff]  ;;  %v12376_v46 = vld [vmem:[#allocation112_spill] sm:$0xff] }
 0x65d   : > { %v10176_v20 = vsel %vm9987_vm3, %v12367_v18, %v3211_v24  ;;  %v3420_v51 = vmul.f32 %v3388_v16, %v10030_v25  ;;  %v3283_v35 = vmul.f32 1.0614054, %v10057_v61  ;;  %v3284_v42 = vmul.f32 1.0614054, %v10067_v21  ;;  %v12374_v16 = vld [vmem:[#allocation136_spill] sm:$0xff] }
 0x65e   : > { %v3285_v63 = vmul.f32 1.0614054, %v10077_v19  ;;  %v3888_v4 = vmul.f32 %v3856_v12, %v12368_v44  ;;  %v3709_v0 = vmul.f32 %v12369_v10, %v3549_v53  ;;  %v3288_v48 = vmul.f32 1.0614054, %v10093_v28  ;;  %v12377_v44 = vld [vmem:[#allocation19_spill] sm:$0xff] }
 0x65f   : > { %v3291_v11 = vmul.f32 1.0614054, %v10098_v6  ;;  %v3452_v24 = vadd.f32 -0.28449672, %v3420_v51  ;;  %v10190_v5 = vsel %vm10045_vm2, %v12370_v33, %v3226_v59  ;;  %v3315_v40 = vadd.f32 -1.4531521, %v3283_v35 }
 0x660   : > { %v3294_v34 = vmul.f32 1.0614054, %v10104_v60  ;;  %vm12371_vm12 = vcmask 64512   ;;  %v3741_v32 = vsub.f32 1.0, %v3709_v0  ;;  %v10197_v2 = vsel %vm10081_vm7, %v12372_v17, %v3241_v1  ;;  %v12378_v10 = vld [vmem:[#allocation103_spill] sm:$0xff]  ;;  %v12379_v33 = vld [vmem:[#allocation113_spill] sm:$0xff] }
 0x661   : > { %3975 = vst.msk [vmem:[#allocation4 + $0x31] sm:$0xff] %vm12371_vm12, %v3888_v4  ;;  %v3295_v30 = vmul.f32 1.0614054, %v10109_v36  ;;  %v3296_v39 = vmul.f32 1.0614054, %v10114_v57  ;;  %v3484_v13 = vmul.f32 %v3452_v24, %v10030_v25  ;;  %v3347_v59 = vmul.f32 %v3315_v40, %v10057_v61  ;;  %vm12380_vm0 = vmmov %vm12371_vm12 }
 0x662   : > { %v3297_v3 = vmul.f32 1.0614054, %v10126_v26  ;;  %v3298_v45 = vmul.f32 1.0614054, %v10131_v23  ;;  %v3805_v15 = vsub.f32 0.0, %v3741_v32  ;;  %v10208_v7 = vsel %vm10118_vm11, %v12373_v8, %v3256_v62  ;;  %v12375_v62 = vld [vmem:[#allocation41_spill] sm:$0xff]  ;;  %vm12386_vm3 = vmmov %vm12380_vm0 }
 0x663   : > { %v3299_v1 = vmul.f32 1.0614054, %v10142_v9  ;;  %v3300_v41 = vmul.f32 1.0614054, %v10147_v54  ;;  %v3516_v43 = vadd.f32 0.2548296, %v3484_v13  ;;  %v10220_v56 = vsel %vm10135_vm9, %v12374_v16, %v3271_v14  ;;  %vm12391_vm7 = vmmov %vm12380_vm0 }
 0x664   : > { %v3379_v49 = vadd.f32 1.4214138, %v3347_v59  ;;  %v3301_v52 = vmul.f32 1.0614054, %v10152_v27  ;;  %vm3772_vm1 = vcmp.ge.f32.partialorder %v12375_v62, 0.0  ;;  %v3837_v50 = vsel %vm3773_vm15, %v3741_v32, %v3805_v15  ;;  %v12385_v62 = vld [vmem:[#allocation27_spill] sm:$0xff]  ;;  %vm12395_vm14 = vmmov %vm12380_vm0 }
 0x665   : > { %v3302_v12 = vmul.f32 1.0614054, %v10160_v47  ;;  %v3303_v58 = vmul.f32 1.0614054, %v10165_v38  ;;  %v3304_v53 = vmul.f32 1.0614054, %v10171_v29  ;;  %v3548_v22 = vmul.f32 %v3516_v43, %v10030_v25  ;;  %vm12399_vm9 = vmmov %vm12380_vm0 }
 0x666   : > { %v3869_v55 = vadd.f32 1.0, %v3837_v50  ;;  %v3411_v14 = vmul.f32 %v3379_v49, %v10057_v61  ;;  %v3305_v31 = vmul.f32 1.0614054, %v10176_v20  ;;  %6247 = vpow2.f32 %v12376_v46  ;;  %vm12403_vm5 = vmmov %vm12380_vm0 }
 0x667   : > { %v3306_v18 = vmul.f32 1.0614054, %v10190_v5  ;;  %v3307_v37 = vmul.f32 1.0614054, %v10197_v2  ;;  %v3308_v51 = vmul.f32 1.0614054, %v10208_v7  ;;  %v3708_v0 = vmul.f32 %v12378_v10, %v3548_v22  ;;  %vm12409_vm12 = vmmov %vm12380_vm0 }
 0x668   : > { %v4073_v35 = vld [vmem:[#allocation4 + $0x31] sm:$0xff]  ;;  %v3901_v4 = vmul.f32 %v3869_v55, %v12377_v44  ;;  %v3443_v24 = vadd.f32 -0.28449672, %v3411_v14  ;;  %v3309_v25 = vmul.f32 1.0614054, %v10220_v56  ;;  %6249 = vpow2.f32 %v12379_v33 }
 0x669   : > { %4141 = vrot.lane.b32.xlu0 %v4073_v35, %s6274_s29  ;;  %v3328_v40 = vadd.f32 -1.4531521, %v3296_v39  ;;  %v3316_v32 = vadd.f32 -1.4531521, %v3284_v42  ;;  %v3317_v17 = vadd.f32 -1.4531521, %v3285_v63 }
 0x66a   : > { %3988 = vst.msk [vmem:[#allocation4 + $0xc9] sm:$0xff] %vm12380_vm0, %v3901_v4  ;;  %v3740_v13 = vsub.f32 1.0, %v3708_v0  ;;  %v3475_v59 = vmul.f32 %v3443_v24, %v10057_v61  ;;  %v3320_v15 = vadd.f32 -1.4531521, %v3288_v48  ;;  %v3323_v8 = vadd.f32 -1.4531521, %v3291_v11 }
 0x66b   : > { %v3360_v43 = vmul.f32 %v3328_v40, %v10114_v57  ;;  %v3326_v16 = vadd.f32 -1.4531521, %v3294_v34  ;;  %v3327_v49 = vadd.f32 -1.4531521, %v3295_v30  ;;  %v3329_v50 = vadd.f32 -1.4531521, %v3297_v3 }
 0x66c   : > { %v12381_v55 = vld [vmem:[#allocation114_spill] sm:$0xff]  ;;  %v3804_v22 = vsub.f32 0.0, %v3740_v13  ;;  %v3507_v14 = vadd.f32 0.2548296, %v3475_v59  ;;  %v3330_v46 = vadd.f32 -1.4531521, %v3298_v45  ;;  %v10245_v39 = vpop.eup %6247 }
 0x66d   : > { %6251 = vpow2.f32 %v12381_v55  ;;  %v12382_v42 = vld [vmem:[#allocation31_spill] sm:$0xff]  ;;  %v3392_v35 = vadd.f32 1.4214138, %v3360_v43  ;;  %v3331_v44 = vadd.f32 -1.4531521, %v3299_v1  ;;  %v3359_v3 = vmul.f32 %v3327_v49, %v10109_v36  ;;  %v12384_v33 = vld [vmem:[#allocation138_spill] sm:$0xff] }
 0x66e   : > { %vm3763_vm4 = vcmp.ge.f32.partialorder %v12382_v42, 0.0  ;;  %v12383_v63 = vld [vmem:[#allocation115_spill] sm:$0xff]  ;;  %v3332_v48 = vadd.f32 -1.4531521, %v3300_v41  ;;  %v3836_v11 = vsel %vm3772_vm1, %v3740_v13, %v3804_v22  ;;  %v3539_v34 = vmul.f32 %v3507_v14, %v10057_v61  ;;  %v10253_v4 = vpop.eup %6249 }
 0x66f   : > { %6253 = vpow2.f32 %v12383_v63  ;;  %v3333_v30 = vadd.f32 -1.4531521, %v3301_v52  ;;  %v3868_v45 = vadd.f32 1.0, %v3836_v11  ;;  %v3424_v10 = vmul.f32 %v3392_v35, %v10114_v57 }
 0x670   : > { %v3334_v0 = vadd.f32 -1.4531521, %v3302_v12  ;;  %v3335_v24 = vadd.f32 -1.4531521, %v3303_v58  ;;  %v3699_v40 = vmul.f32 %v12384_v33, %v3539_v34  ;;  %v3336_v59 = vadd.f32 -1.4531521, %v3304_v53 }
 0x671   : > { %v3337_v1 = vadd.f32 -1.4531521, %v3305_v31  ;;  %v3338_v41 = vadd.f32 -1.4531521, %v3306_v18  ;;  %v4086_v43 = vld [vmem:[#allocation4 + $0xc9] sm:$0xff]  ;;  %v3900_v13 = vmul.f32 %v3868_v45, %v12385_v62  ;;  %v3348_v52 = vmul.f32 %v3316_v32, %v10067_v21 }
 0x672   : > { %v3456_v55 = vadd.f32 -0.28449672, %v3424_v10  ;;  %v3339_v61 = vadd.f32 -1.4531521, %v3307_v37  ;;  %4167 = vrot.lane.b32.xlu1 %v4086_v43, %s6274_s29  ;;  %v3731_v22 = vsub.f32 1.0, %v3699_v40  ;;  %v3349_v58 = vmul.f32 %v3317_v17, %v10077_v19  ;;  %v12387_v10 = vld [vmem:[#allocation45_spill] sm:$0xff] }
 0x673   : > { %v10259_v49 = vpop.eup %6251  ;;  %v3340_v14 = vadd.f32 -1.4531521, %v3308_v51  ;;  %v3391_v12 = vadd.f32 1.4214138, %v3359_v3  ;;  %3987 = vst.msk [vmem:[#allocation4 + $0xc1] sm:$0xff] %vm12386_vm3, %v3900_v13  ;;  %v3352_v18 = vmul.f32 %v3320_v15, %v10093_v28  ;;  %v3355_v37 = vmul.f32 %v3323_v8, %v10098_v6  ;;  %v12388_v62 = vld [vmem:[#allocation18_spill] sm:$0xff] }
 0x674   : > { %v3488_v53 = vmul.f32 %v3456_v55, %v10114_v57  ;;  %v3341_v31 = vadd.f32 -1.4531521, %v3309_v25  ;;  %v3795_v32 = vsub.f32 0.0, %v3731_v22  ;;  %v3358_v11 = vmul.f32 %v3326_v16, %v10104_v60 }
 0x675   : > { %v10263_v63 = vpop.eup %6253  ;;  %v3423_v35 = vmul.f32 %v3391_v12, %v10109_v36  ;;  %v3361_v51 = vmul.f32 %v3329_v50, %v10126_v26  ;;  %v3362_v17 = vmul.f32 %v3330_v46, %v10131_v23  ;;  %v3363_v3 = vmul.f32 %v3331_v44, %v10142_v9 }
 0x676   : > { %v3520_v34 = vadd.f32 0.2548296, %v3488_v53  ;;  %v3364_v45 = vmul.f32 %v3332_v48, %v10147_v54  ;;  %vm3776_vm8 = vcmp.ge.f32.partialorder %v12387_v10, 0.0  ;;  %v3827_v25 = vsel %vm3763_vm4, %v3731_v22, %v3795_v32  ;;  %v12390_v32 = vld [vmem:[#allocation44_spill] sm:$0xff] }
 0x677   : > { %v3455_v15 = vadd.f32 -0.28449672, %v3423_v35  ;;  %v3365_v8 = vmul.f32 %v3333_v30, %v10152_v27  ;;  %v3366_v33 = vmul.f32 %v3334_v0, %v10160_v47  ;;  %v3859_v16 = vadd.f32 1.0, %v3827_v25  ;;  %v12389_v30 = vld [vmem:[#allocation78_spill] sm:$0xff] }
 0x678   : > { %v3552_v50 = vmul.f32 %v3520_v34, %v10114_v57  ;;  %v3367_v40 = vmul.f32 %v3335_v24, %v10165_v38  ;;  %v3368_v46 = vmul.f32 %v3336_v59, %v10171_v29  ;;  %v3369_v48 = vmul.f32 %v3337_v1, %v10176_v20 }
 0x679   : > { %v3487_v44 = vmul.f32 %v3455_v15, %v10109_v36  ;;  %v3370_v43 = vmul.f32 %v3338_v41, %v10190_v5  ;;  %v3371_v42 = vmul.f32 %v3339_v61, %v10197_v2  ;;  %v3891_v13 = vmul.f32 %v3859_v16, %v12388_v62  ;;  %v12392_v16 = vld [vmem:[#allocation104_spill] sm:$0xff] }
 0x67a   : > { %v3712_v55 = vmul.f32 %v12389_v30, %v3552_v50  ;;  %v3380_v0 = vadd.f32 1.4214138, %v3348_v52  ;;  %v3381_v22 = vadd.f32 1.4214138, %v3349_v58  ;;  %v4085_v12 = vld [vmem:[#allocation4 + $0xc1] sm:$0xff]  ;;  %v3372_v24 = vmul.f32 %v3340_v14, %v10208_v7 }
 0x67b   : > { %v3519_v57 = vadd.f32 0.2548296, %v3487_v44  ;;  %v3373_v59 = vmul.f32 %v3341_v31, %v10220_v56  ;;  %v3384_v53 = vadd.f32 1.4214138, %v3352_v18  ;;  %vm3775_vm2 = vcmp.ge.f32.partialorder %v12390_v32, 0.0  ;;  %4165 = vrot.lane.b32.xlu2 %v4085_v12, %s6274_s29  ;;  %3978 = vst.msk [vmem:[#allocation4 + $0x51] sm:$0xff] %vm12391_vm7, %v3891_v13 }
 0x67c   : > { %v3744_v1 = vsub.f32 1.0, %v3712_v55  ;;  %v3412_v41 = vmul.f32 %v3380_v0, %v10067_v21  ;;  %v3387_v61 = vadd.f32 1.4214138, %v3355_v37  ;;  %v3390_v35 = vadd.f32 1.4214138, %v3358_v11 }
 0x67d   : > { %v3551_v52 = vmul.f32 %v3519_v57, %v10109_v36  ;;  %v3393_v58 = vadd.f32 1.4214138, %v3361_v51  ;;  %v3394_v34 = vadd.f32 1.4214138, %v3362_v17  ;;  %v3395_v25 = vadd.f32 1.4214138, %v3363_v3 }
 0x67e   : > { %v3808_v14 = vsub.f32 0.0, %v3744_v1  ;;  %v3444_v15 = vadd.f32 -0.28449672, %v3412_v41  ;;  %v3396_v31 = vadd.f32 1.4214138, %v3364_v45  ;;  %v3413_v18 = vmul.f32 %v3381_v22, %v10077_v19  ;;  %v12393_v57 = vld [vmem:[#allocation35_spill] sm:$0xff] }
 0x67f   : > { %v3711_v50 = vmul.f32 %v12392_v16, %v3551_v52  ;;  %v3397_v44 = vadd.f32 1.4214138, %v3365_v8  ;;  %v3398_v62 = vadd.f32 1.4214138, %v3366_v33  ;;  %v3399_v13 = vadd.f32 1.4214138, %v3367_v40 }
 0x680   : > { %v3840_v30 = vsel %vm3776_vm8, %v3744_v1, %v3808_v14  ;;  %v3476_v37 = vmul.f32 %v3444_v15, %v10067_v21  ;;  %v3400_v11 = vadd.f32 1.4214138, %v3368_v46  ;;  %v3401_v36 = vadd.f32 1.4214138, %v3369_v48  ;;  %v12394_v33 = vld [vmem:[#allocation22_spill] sm:$0xff]  ;;  %vm12417_vm8 = vmmov %vm12380_vm0 }
 0x681   : > { %v3872_v51 = vadd.f32 1.0, %v3840_v30  ;;  %v3743_v17 = vsub.f32 1.0, %v3711_v50  ;;  %v3402_v3 = vadd.f32 1.4214138, %v3370_v43  ;;  %v3403_v55 = vadd.f32 1.4214138, %v3371_v42 }
 0x682   : > { %v3508_v0 = vadd.f32 0.2548296, %v3476_v37  ;;  %v3404_v45 = vadd.f32 1.4214138, %v3372_v24  ;;  %v3405_v12 = vadd.f32 1.4214138, %v3373_v59  ;;  %v3427_v22 = vmul.f32 %v3395_v25, %v10142_v9 }
 0x683   : > { %vm3764_vm11 = vcmp.ge.f32.partialorder %v12393_v57, 0.0  ;;  %v4076_v8 = vld [vmem:[#allocation4 + $0x51] sm:$0xff]  ;;  %v3904_v40 = vmul.f32 %v3872_v51, %v12394_v33  ;;  %v3807_v10 = vsub.f32 0.0, %v3743_v17  ;;  %v3416_v1 = vmul.f32 %v3384_v53, %v10093_v28  ;;  %v12398_v37 = vld [vmem:[#allocation48_spill] sm:$0xff] }
 0x684   : > { %v3419_v46 = vmul.f32 %v3387_v61, %v10098_v6  ;;  %4147 = vrot.lane.b32.xlu0 %v4076_v8, %s6274_s29  ;;  %v3540_v48 = vmul.f32 %v3508_v0, %v10067_v21  ;;  %v3459_v43 = vadd.f32 -0.28449672, %v3427_v22  ;;  %v3422_v42 = vmul.f32 %v3390_v35, %v10104_v60  ;;  %v12396_v25 = vld [vmem:[#allocation139_spill] sm:$0xff]  ;;  %v12402_v57 = vld [vmem:[#allocation10_spill] sm:$0xff] }
 0x685   : > { %v3425_v24 = vmul.f32 %v3393_v58, %v10126_v26  ;;  %3991 = vst.msk [vmem:[#allocation4 + $0xf1] sm:$0xff] %vm12395_vm14, %v3904_v40  ;;  %v3839_v59 = vsel %vm3775_vm2, %v3743_v17, %v3807_v10  ;;  %v3426_v41 = vmul.f32 %v3394_v34, %v10131_v23  ;;  %v3428_v53 = vmul.f32 %v3396_v31, %v10147_v54  ;;  %v12397_v34 = vld [vmem:[#allocation30_spill] sm:$0xff]  ;;  %v12400_v10 = vld [vmem:[#allocation80_spill] sm:$0xff] }
 0x686   : > { %v3429_v61 = vmul.f32 %v3397_v44, %v10152_v27  ;;  %v3871_v52 = vadd.f32 1.0, %v3839_v59  ;;  %v3700_v14 = vmul.f32 %v12396_v25, %v3540_v48  ;;  %v3491_v21 = vmul.f32 %v3459_v43, %v10142_v9 }
 0x687   : > { %v3430_v35 = vmul.f32 %v3398_v62, %v10160_v47  ;;  %v3431_v58 = vmul.f32 %v3399_v13, %v10165_v38  ;;  %v3432_v15 = vmul.f32 %v3400_v11, %v10171_v29  ;;  %v3433_v32 = vmul.f32 %v3401_v36, %v10176_v20 }
 0x688   : > { %v3434_v16 = vmul.f32 %v3402_v3, %v10190_v5  ;;  %v3903_v50 = vmul.f32 %v3871_v52, %v12397_v34  ;;  %v3732_v31 = vsub.f32 1.0, %v3700_v14  ;;  %v3523_v30 = vadd.f32 0.2548296, %v3491_v21 }
 0x689   : > { %v3435_v44 = vmul.f32 %v3403_v55, %v10197_v2  ;;  %vm3779_vm13 = vcmp.ge.f32.partialorder %v12398_v37, 0.0  ;;  %v3436_v51 = vmul.f32 %v3404_v45, %v10208_v7  ;;  %v3437_v62 = vmul.f32 %v3405_v12, %v10220_v56 }
 0x68a   : > { %v3458_v17 = vadd.f32 -0.28449672, %v3426_v41  ;;  %v3445_v13 = vadd.f32 -0.28449672, %v3413_v18  ;;  %3990 = vst.msk [vmem:[#allocation4 + $0xe1] sm:$0xff] %vm12399_vm9, %v3903_v50  ;;  %v3796_v11 = vsub.f32 0.0, %v3732_v31  ;;  %v3555_v36 = vmul.f32 %v3523_v30, %v10142_v9 }
 0x68b   : > { %v3448_v3 = vadd.f32 -0.28449672, %v3416_v1  ;;  %v3451_v0 = vadd.f32 -0.28449672, %v3419_v46  ;;  %v3454_v8 = vadd.f32 -0.28449672, %v3422_v42 }
 0x68c   : > { %v3490_v22 = vmul.f32 %v3458_v17, %v10131_v23  ;;  %v3457_v33 = vadd.f32 -0.28449672, %v3425_v24  ;;  %v3460_v55 = vadd.f32 -0.28449672, %v3428_v53  ;;  %v4089_v40 = vld [vmem:[#allocation4 + $0xf1] sm:$0xff]  ;;  %v3828_v45 = vsel %vm3764_vm11, %v3732_v31, %v3796_v11 }
 0x68d   : > { %v3715_v12 = vmul.f32 %v12400_v10, %v3555_v36  ;;  %v3461_v48 = vadd.f32 -0.28449672, %v3429_v61  ;;  %v3462_v18 = vadd.f32 -0.28449672, %v3430_v35  ;;  %4173 = vrot.lane.b32.xlu1 %v4089_v40, %s6274_s29  ;;  %v3860_v43 = vadd.f32 1.0, %v3828_v45  ;;  %v12401_v46 = vld [vmem:[#allocation47_spill] sm:$0xff] }
 0x68e   : > { %v3522_v59 = vadd.f32 0.2548296, %v3490_v22  ;;  %v3463_v9 = vadd.f32 -0.28449672, %v3431_v58  ;;  %v3477_v1 = vmul.f32 %v3445_v13, %v10077_v19  ;;  %vm3778_vm10 = vcmp.ge.f32.partialorder %v12401_v46, 0.0  ;;  %v12404_v31 = vld [vmem:[#allocation75_spill] sm:$0xff] }
 0x68f   : > { %v3747_v42 = vsub.f32 1.0, %v3715_v12  ;;  %v3464_v24 = vadd.f32 -0.28449672, %v3432_v15  ;;  %v3465_v41 = vadd.f32 -0.28449672, %v3433_v32  ;;  %v3480_v53 = vmul.f32 %v3448_v3, %v10093_v28  ;;  %v12405_v13 = vld [vmem:[#allocation34_spill] sm:$0xff] }
 0x690   : > { %v3892_v52 = vmul.f32 %v3860_v43, %v12402_v57  ;;  %v3554_v25 = vmul.f32 %v3522_v59, %v10131_v23  ;;  %v3466_v61 = vadd.f32 -0.28449672, %v3434_v16  ;;  %v3467_v14 = vadd.f32 -0.28449672, %v3435_v44  ;;  %v12407_v45 = vld [vmem:[#allocation140_spill] sm:$0xff]  ;;  %v12411_v46 = vld [vmem:[#allocation98_spill] sm:$0xff] }
 0x691   : > { %v3811_v21 = vsub.f32 0.0, %v3747_v42  ;;  %v3468_v35 = vadd.f32 -0.28449672, %v3436_v51  ;;  %v3469_v34 = vadd.f32 -0.28449672, %v3437_v62  ;;  %v3483_v58 = vmul.f32 %v3451_v0, %v10098_v6  ;;  %v4088_v50 = vld [vmem:[#allocation4 + $0xe1] sm:$0xff] }
 0x692   : > { %3979 = vst.msk [vmem:[#allocation4 + $0x61] sm:$0xff] %vm12403_vm5, %v3892_v52  ;;  %v3714_v30 = vmul.f32 %v12404_v31, %v3554_v25  ;;  %v3509_v15 = vadd.f32 0.2548296, %v3477_v1  ;;  %v3486_v32 = vmul.f32 %v3454_v8, %v10104_v60  ;;  %v3489_v17 = vmul.f32 %v3457_v33, %v10126_v26  ;;  %4171 = vrot.lane.b32.xlu2 %v4088_v50, %s6274_s29  ;;  %v12406_v33 = vld [vmem:[#allocation25_spill] sm:$0xff]  ;;  %v12408_v59 = vld [vmem:[#allocation52_spill] sm:$0xff] }
 0x693   : > { %vm3765_vm6 = vcmp.ge.f32.partialorder %v12405_v13, 0.0  ;;  %v3843_v23 = vsel %vm3779_vm13, %v3747_v42, %v3811_v21  ;;  %v3492_v16 = vmul.f32 %v3460_v55, %v10147_v54  ;;  %v3493_v44 = vmul.f32 %v3461_v48, %v10152_v27  ;;  %vm12431_vm13 = vmmov %vm12380_vm0 }
 0x694   : > { %v3494_v51 = vmul.f32 %v3462_v18, %v10160_v47  ;;  %v3875_v62 = vadd.f32 1.0, %v3843_v23  ;;  %v3746_v11 = vsub.f32 1.0, %v3714_v30  ;;  %v3541_v36 = vmul.f32 %v3509_v15, %v10077_v19  ;;  %v12412_v15 = vld [vmem:[#allocation51_spill] sm:$0xff] }
 0x695   : > { %v3495_v3 = vmul.f32 %v3463_v9, %v10165_v38  ;;  %v3496_v0 = vmul.f32 %v3464_v24, %v10171_v29  ;;  %v3497_v22 = vmul.f32 %v3465_v41, %v10176_v20  ;;  %v3498_v8 = vmul.f32 %v3466_v61, %v10190_v5 }
 0x696   : > { %v3499_v37 = vmul.f32 %v3467_v14, %v10197_v2  ;;  %v3907_v55 = vmul.f32 %v3875_v62, %v12406_v33  ;;  %v3810_v40 = vsub.f32 0.0, %v3746_v11  ;;  %v3701_v10 = vmul.f32 %v12407_v45, %v3541_v36  ;;  %v12413_v62 = vld [vmem:[#allocation37_spill] sm:$0xff] }
 0x697   : > { %v3500_v12 = vmul.f32 %v3468_v35, %v10208_v7  ;;  %v3501_v48 = vmul.f32 %v3469_v34, %v10220_v56  ;;  %v3526_v19 = vadd.f32 0.2548296, %v3494_v51  ;;  %v3512_v18 = vadd.f32 0.2548296, %v3480_v53  ;;  %v12410_v34 = vld [vmem:[#allocation33_spill] sm:$0xff] }
 0x698   : > { %v3515_v43 = vadd.f32 0.2548296, %v3483_v58  ;;  %vm3782_vm15 = vcmp.ge.f32.partialorder %v12408_v59, 0.0  ;;  %3994 = vst.msk [vmem:[#allocation4 + $0x111] sm:$0xff] %vm12409_vm12, %v3907_v55  ;;  %v3842_v9 = vsel %vm3778_vm10, %v3746_v11, %v3810_v40  ;;  %v3733_v1 = vsub.f32 1.0, %v3701_v10  ;;  %v12415_v33 = vld [vmem:[#allocation97_spill] sm:$0xff] }
 0x699   : > { %v3518_v42 = vadd.f32 0.2548296, %v3486_v32  ;;  %v3521_v24 = vadd.f32 0.2548296, %v3489_v17  ;;  %v4077_v41 = vld [vmem:[#allocation4 + $0x61] sm:$0xff]  ;;  %v3874_v57 = vadd.f32 1.0, %v3842_v9  ;;  %v3558_v52 = vmul.f32 %v3526_v19, %v10160_v47 }
 0x69a   : > { %v3524_v25 = vadd.f32 0.2548296, %v3492_v16  ;;  %v3525_v61 = vadd.f32 0.2548296, %v3493_v44  ;;  %4149 = vrot.lane.b32.xlu0 %v4077_v41, %s6274_s29  ;;  %v3797_v53 = vsub.f32 0.0, %v3733_v1  ;;  %v3544_v35 = vmul.f32 %v3512_v18, %v10093_v28  ;;  %v12416_v40 = vld [vmem:[#allocation55_spill] sm:$0xff] }
 0x69b   : > { %v3527_v14 = vadd.f32 0.2548296, %v3495_v3  ;;  %v3528_v21 = vadd.f32 0.2548296, %v3496_v0  ;;  %v3906_v58 = vmul.f32 %v3874_v57, %v12410_v34  ;;  %v3718_v50 = vmul.f32 %v12411_v46, %v3558_v52  ;;  %v12418_v10 = vld [vmem:[#allocation141_spill] sm:$0xff]  ;;  %v12425_v57 = vld [vmem:[#allocation60_spill] sm:$0xff] }
 0x69c   : > { %v3529_v31 = vadd.f32 0.2548296, %v3497_v22  ;;  %v3530_v30 = vadd.f32 0.2548296, %v3498_v8  ;;  %vm3781_vm1 = vcmp.ge.f32.partialorder %v12412_v15, 0.0  ;;  %v3829_v47 = vsel %vm3765_vm6, %v3733_v1, %v3797_v53  ;;  %v12414_v22 = vld [vmem:[#allocation14_spill] sm:$0xff]  ;;  %vm12435_vm6 = vmmov %vm12380_vm0 }
 0x69d   : > { %v3531_v32 = vadd.f32 0.2548296, %v3499_v37  ;;  %v3532_v17 = vadd.f32 0.2548296, %v3500_v12  ;;  %v3533_v23 = vadd.f32 0.2548296, %v3501_v48  ;;  %v3557_v28 = vmul.f32 %v3525_v61, %v10152_v27 }
 0x69e   : > { %3993 = vst.msk [vmem:[#allocation4 + $0x109] sm:$0xff] %vm12380_vm0, %v3906_v58  ;;  %v3861_v16 = vadd.f32 1.0, %v3829_v47  ;;  %v3750_v44 = vsub.f32 1.0, %v3718_v50  ;;  %v3547_v51 = vmul.f32 %v3515_v43, %v10098_v6  ;;  %vm3768_vm4 = vcmp.ge.f32.partialorder %v12413_v62, 0.0  ;;  %v12422_v1 = vld [vmem:[#allocation82_spill] sm:$0xff]  ;;  %v12428_v34 = vld [vmem:[#allocation40_spill] sm:$0xff] }
 0x69f   : > { %v3550_v11 = vmul.f32 %v3518_v42, %v10104_v60  ;;  %v3553_v36 = vmul.f32 %v3521_v24, %v10126_v26  ;;  %v3556_v13 = vmul.f32 %v3524_v25, %v10147_v54  ;;  %v3559_v3 = vmul.f32 %v3527_v14, %v10165_v38  ;;  %v4092_v0 = vld [vmem:[#allocation4 + $0x111] sm:$0xff] }
 0x6a0   : > { %v3893_v8 = vmul.f32 %v3861_v16, %v12414_v22  ;;  %v3814_v37 = vsub.f32 0.0, %v3750_v44  ;;  %v3717_v55 = vmul.f32 %v12415_v33, %v3557_v28  ;;  %v3560_v27 = vmul.f32 %v3528_v21, %v10171_v29  ;;  %4179 = vrot.lane.b32.xlu1 %v4092_v0, %s6274_s29  ;;  %v12423_v42 = vld [vmem:[#allocation110_spill] sm:$0xff]  ;;  %v12426_v25 = vld [vmem:[#allocation111_spill] sm:$0xff]  ;;  %v12436_v28 = vld [vmem:[#allocation57_spill] sm:$0xff] }
 0x6a1   : > { %v3561_v6 = vmul.f32 %v3529_v31, %v10176_v20  ;;  %v3562_v60 = vmul.f32 %v3530_v30, %v10190_v5  ;;  %v3563_v26 = vmul.f32 %v3531_v32, %v10197_v2  ;;  %v3564_v54 = vmul.f32 %v3532_v17, %v10208_v7  ;;  %v12419_v20 = vld [vmem:[#allocation102_spill] sm:$0xff]  ;;  %v12420_v5 = vld [vmem:[#allocation73_spill] sm:$0xff]  ;;  %v12429_v58 = vld [vmem:[#allocation43_spill] sm:$0xff] }
 0x6a2   : > { %vm3785_vm3 = vcmp.ge.f32.partialorder %v12416_v40, 0.0  ;;  %3980 = vst.msk [vmem:[#allocation4 + $0x69] sm:$0xff] %vm12417_vm8, %v3893_v8  ;;  %v3846_v38 = vsel %vm3782_vm15, %v3750_v44, %v3814_v37  ;;  %v3749_v45 = vsub.f32 1.0, %v3717_v55  ;;  %v3565_v29 = vmul.f32 %v3533_v23, %v10220_v56  ;;  %v12421_v7 = vld [vmem:[#allocation74_spill] sm:$0xff]  ;;  %v10436_v47 = vld [vmem:[#allocation4 + $0x78] sm:$0xff]  ;;  %v12433_v17 = vld [vmem:[#allocation53_spill] sm:$0xff] }
 0x6a3   : > { %v3704_v12 = vmul.f32 %v12418_v10, %v3544_v35  ;;  %v3878_v48 = vadd.f32 1.0, %v3846_v38  ;;  %v10397_v19 = vmul.f32 %v12419_v20, %v3547_v51  ;;  %v10400_v2 = vmul.f32 %v12420_v5, %v3550_v11  ;;  %v12424_v56 = vld [vmem:[#allocation54_spill] sm:$0xff]  ;;  %v10420_v35 = vld [vmem:[#allocation4 + $0x38] sm:$0xff]  ;;  %v12434_v23 = vld [vmem:[#allocation56_spill] sm:$0xff]  ;;  %4047 = vst.msk [vmem:[#allocation5 + $0x50] sm:$0xff] %vm12380_vm0, %v10436_v47 }
 0x6a4   : > { %v10403_v18 = vmul.f32 %v12421_v7, %v3553_v36  ;;  %v3813_v43 = vsub.f32 0.0, %v3749_v45  ;;  %v10406_v59 = vmul.f32 %v12422_v1, %v3556_v13  ;;  %v10409_v24 = vmul.f32 %v12423_v42, %v3559_v3  ;;  %v12427_v53 = vld [vmem:[#allocation86_spill] sm:$0xff]  ;;  %4042 = vst.msk [vmem:[#allocation5 + $0x28] sm:$0xff] %vm12431_vm13, %v10420_v35  ;;  %v10446_v44 = vld [vmem:[#allocation4 + $0x48] sm:$0xff]  ;;  %v12438_v11 = vld [vmem:[#allocation59_spill] sm:$0xff] }
 0x6a5   : > { %v3736_v9 = vsub.f32 1.0, %v3704_v12  ;;  %vm3784_vm2 = vcmp.ge.f32.partialorder %v12424_v56, 0.0  ;;  %v4091_v41 = vld [vmem:[#allocation4 + $0x109] sm:$0xff]  ;;  %v3910_v52 = vmul.f32 %v3878_v48, %v12425_v57  ;;  %v10414_v61 = vmul.f32 %v12426_v25, %v3560_v27  ;;  %v10462_v27 = vld [vmem:[#allocation4 + $0xc0] sm:$0xff]  ;;  %vm12441_vm8 = vmmov %vm12380_vm0 }
 0x6a6   : > { %v3721_v14 = vmul.f32 %v12427_v53, %v3561_v6  ;;  %v10418_v21 = vmul.f32 %v10245_v39, %v3562_v60  ;;  %vm3771_vm7 = vcmp.ge.f32.partialorder %v12428_v34, 0.0  ;;  %vm3774_vm11 = vcmp.ge.f32.partialorder %v12429_v58, 0.0  ;;  %v12430_v46 = vld [vmem:[#allocation46_spill] sm:$0xff]  ;;  %4177 = vrot.lane.b32.xlu2 %v4091_v41, %s6274_s29  ;;  %v12439_v22 = vld [vmem:[#allocation49_spill] sm:$0xff]  ;;  %v10477_v12 = vld [vmem:[#allocation4 + $0x18] sm:$0xff] }
 0x6a7   : > { %vm3777_vm14 = vcmp.ge.f32.partialorder %v12430_v46, 0.0  ;;  %v3845_v50 = vsel %vm3781_vm1, %v3749_v45, %v3813_v43  ;;  %v3800_v31 = vsub.f32 0.0, %v3736_v9  ;;  %v10429_v30 = vmul.f32 %v10253_v4, %v3563_v26  ;;  %v12432_v32 = vld [vmem:[#allocation50_spill] sm:$0xff]  ;;  %3997 = vst.msk [vmem:[#allocation4 + $0x139] sm:$0xff] %vm12435_vm6, %v3910_v52  ;;  %vm12443_vm13 = vmmov %vm12380_vm0  ;;  %v12445_v1 = vld [vmem:[#allocation64_spill] sm:$0xff] }
 0x6a8   : > { %v10432_v39 = vmul.f32 %v10259_v49, %v3564_v54  ;;  %vm3780_vm9 = vcmp.ge.f32.partialorder %v12432_v32, 0.0  ;;  %vm3783_vm10 = vcmp.ge.f32.partialorder %v12433_v17, 0.0  ;;  %vm3786_vm5 = vcmp.ge.f32.partialorder %v12434_v23, 0.0  ;;  %v12437_v51 = vld [vmem:[#allocation58_spill] sm:$0xff]  ;;  %v12442_v54 = vld [vmem:[#allocation17_spill] sm:$0xff]  ;;  %4053 = vst.msk [vmem:[#allocation5 + $0x80] sm:$0xff] %vm12443_vm13, %v10462_v27  ;;  %vm12444_vm6 = vmmov %vm12380_vm0 }
 0x6a9   : > { %v3877_v15 = vadd.f32 1.0, %v3845_v50  ;;  %v10443_v4 = vmul.f32 %v10263_v63, %v3565_v29  ;;  %v3753_v16 = vsub.f32 1.0, %v3721_v14  ;;  %v3739_v49 = vsub.f32 1.0, %v10397_v19  ;;  %v10458_v0 = vld [vmem:[#allocation4 + $0x69] sm:$0xff]  ;;  %v10489_v57 = vld [vmem:[#allocation4 + $0x20] sm:$0xff]  ;;  %vm12469_vm13 = vmmov %vm12380_vm0 }
 0x6aa   : > { %vm3787_vm15 = vcmp.ge.f32.partialorder %v12436_v28, 0.0  ;;  %vm3788_vm12 = vcmp.ge.f32.partialorder %v12437_v51, 0.0  ;;  %vm3789_vm1 = vcmp.ge.f32.partialorder %v12438_v11, 0.0  ;;  %v3832_v36 = vsel %vm3768_vm4, %v3736_v9, %v3800_v31  ;;  %4151 = vrot.lane.b32.xlu0 %v10458_v0, %s6274_s29  ;;  %vm12440_vm4 = vmmov %vm12380_vm0  ;;  %v10500_v53 = vld [vmem:[#allocation4 + $0xa8] sm:$0xff]  ;;  %v12450_v17 = vld [vmem:[#allocation20_spill] sm:$0xff] }
 0x6ab   : > { %v3742_v13 = vsub.f32 1.0, %v10400_v2  ;;  %v3745_v3 = vsub.f32 1.0, %v10403_v18  ;;  %v3748_v63 = vsub.f32 1.0, %v10406_v59  ;;  %v3909_v8 = vmul.f32 %v3877_v15, %v12439_v22  ;;  %4043 = vst.msk [vmem:[#allocation5 + $0x30] sm:$0xff] %vm12440_vm4, %v10446_v44  ;;  %v10481_v2 = vld [vmem:[#allocation4 + $0x80] sm:$0xff]  ;;  %v12448_v50 = vld [vmem:[#allocation61_spill] sm:$0xff]  ;;  %vm12467_vm4 = vmmov %vm12380_vm0 }
 0x6ac   : > { %v3864_v37 = vadd.f32 1.0, %v3832_v36  ;;  %v3817_v33 = vsub.f32 0.0, %v3753_v16  ;;  %v3751_v55 = vsub.f32 1.0, %v10409_v24  ;;  %v3752_v62 = vsub.f32 1.0, %v10414_v61 }
 0x6ad   : > { %v3754_v6 = vsub.f32 1.0, %v10418_v21  ;;  %v3755_v60 = vsub.f32 1.0, %v10429_v30  ;;  %v3756_v26 = vsub.f32 1.0, %v10432_v39  ;;  %3996 = vst.msk [vmem:[#allocation4 + $0x129] sm:$0xff] %vm12441_vm8, %v3909_v8  ;;  %v3757_v29 = vsub.f32 1.0, %v10443_v4  ;;  %v12456_v8 = vld [vmem:[#allocation23_spill] sm:$0xff]  ;;  %vm12468_vm8 = vmmov %vm12380_vm0 }
 0x6ae   : > { %v3896_v38 = vmul.f32 %v3864_v37, %v12442_v54  ;;  %v3849_v45 = vsel %vm3785_vm3, %v3753_v16, %v3817_v33  ;;  %v3803_v10 = vsub.f32 0.0, %v3739_v49  ;;  %v3816_v20 = vsub.f32 0.0, %v3752_v62  ;;  %v4095_v9 = vld [vmem:[#allocation4 + $0x139] sm:$0xff]  ;;  %vm12446_vm3 = vmmov %vm12380_vm0  ;;  %v12457_v33 = vld [vmem:[#allocation26_spill] sm:$0xff] }
 0x6af   : > { %v3881_v48 = vadd.f32 1.0, %v3849_v45  ;;  %v3806_v19 = vsub.f32 0.0, %v3742_v13  ;;  %v3809_v5 = vsub.f32 0.0, %v3745_v3  ;;  %v3812_v7 = vsub.f32 0.0, %v3748_v63  ;;  %4039 = vst.msk [vmem:[#allocation5 + $0x10] sm:$0xff] %vm12446_vm3, %v10477_v12  ;;  %4185 = vrot.lane.b32.xlu1 %v4095_v9, %s6274_s29  ;;  %v12459_v54 = vld [vmem:[#allocation29_spill] sm:$0xff]  ;;  %vm12471_vm3 = vmmov %vm12380_vm0 }
 0x6b0   : > { %3983 = vst.msk [vmem:[#allocation4 + $0x91] sm:$0xff] %vm12444_vm6, %v3896_v38  ;;  %v3815_v18 = vsub.f32 0.0, %v3751_v55  ;;  %v3818_v40 = vsub.f32 0.0, %v3754_v6  ;;  %v3819_v43 = vsub.f32 0.0, %v3755_v60  ;;  %v3848_v42 = vsel %vm3784_vm2, %v3752_v62, %v3816_v20  ;;  %vm12447_vm2 = vmmov %vm12380_vm0  ;;  %v12458_v62 = vld [vmem:[#allocation12_spill] sm:$0xff]  ;;  %v12460_v45 = vld [vmem:[#allocation9_spill] sm:$0xff] }
 0x6b1   : > { %v3913_v59 = vmul.f32 %v3881_v48, %v12445_v1  ;;  %v3820_v24 = vsub.f32 0.0, %v3756_v26  ;;  %v3821_v41 = vsub.f32 0.0, %v3757_v29  ;;  %v3880_v52 = vadd.f32 1.0, %v3848_v42  ;;  %4048 = vst.msk [vmem:[#allocation5 + $0x58] sm:$0xff] %vm12447_vm2, %v10481_v2  ;;  %v12462_v48 = vld [vmem:[#allocation15_spill] sm:$0xff]  ;;  %v4261_v1 = vld [vmem:[#allocation4 + $0x2] sm:$0xff]  ;;  %vm12472_vm2 = vmmov %vm12380_vm0 }
 0x6b2   : > { %v3835_v25 = vsel %vm3771_vm7, %v3739_v49, %v3803_v10  ;;  %v3838_v61 = vsel %vm3774_vm11, %v3742_v13, %v3806_v19  ;;  %v3841_v56 = vsel %vm3777_vm14, %v3745_v3, %v3809_v5  ;;  %v3844_v21 = vsel %vm3780_vm9, %v3748_v63, %v3812_v7  ;;  %vm12449_vm7 = vmmov %vm12380_vm0  ;;  %v12452_v49 = vld [vmem:[#allocation7_spill] sm:$0xff]  ;;  %v12454_v13 = vld [vmem:[#allocation6_spill] sm:$0xff] }
 0x6b3   : > { %4000 = vst.msk [vmem:[#allocation4 + $0x159] sm:$0xff] %vm12380_vm0, %v3913_v59  ;;  %v3867_v14 = vadd.f32 1.0, %v3835_v25  ;;  %v3847_v34 = vsel %vm3783_vm10, %v3751_v55, %v3815_v18  ;;  %v3850_v58 = vsel %vm3786_vm5, %v3754_v6, %v3818_v40  ;;  %v3912_v46 = vmul.f32 %v3880_v52, %v12448_v50  ;;  %vm12451_vm11 = vmmov %vm12380_vm0  ;;  %v4144_v59 = vpop.permute.xlu2 %4143  ;;  %v10561_v52 = vld [vmem:[#allocation4 + $0xc8] sm:$0xff]  ;;  %v10586_v50 = vld [vmem:[#allocation4 + $0xf0] sm:$0xff] }
 0x6b4   : > { %v3851_v31 = vsel %vm3787_vm15, %v3755_v60, %v3819_v43  ;;  %v3852_v30 = vsel %vm3788_vm12, %v3756_v26, %v3820_v24  ;;  %v3853_v39 = vsel %vm3789_vm1, %v3757_v29, %v3821_v41  ;;  %4040 = vst.msk [vmem:[#allocation5 + $0x18] sm:$0xff] %vm12449_vm7, %v10489_v57  ;;  %v4094_v32 = vld [vmem:[#allocation4 + $0x129] sm:$0xff]  ;;  %v3870_v4 = vadd.f32 1.0, %v3838_v61  ;;  %vm12453_vm14 = vmmov %vm12380_vm0 }
 0x6b5   : > { %v3899_v15 = vmul.f32 %v3867_v14, %v12450_v17  ;;  %v3873_v23 = vadd.f32 1.0, %v3841_v56  ;;  %v3876_v16 = vadd.f32 1.0, %v3844_v21  ;;  %4051 = vst.msk [vmem:[#allocation5 + $0x70] sm:$0xff] %vm12451_vm11, %v10500_v53  ;;  %v2667_v28 = vmul.f32 0.5, %v12452_v49  ;;  %4183 = vrot.lane.b32.xlu2 %v4094_v32, %s6274_s29  ;;  %vm12455_vm9 = vmmov %vm12380_vm0  ;;  %v10552_v24 = vld [vmem:[#allocation4 + $0x108] sm:$0xff]  ;;  %v10556_v41 = vld [vmem:[#allocation4 + $0x30] sm:$0xff] }
 0x6b6   : > { %3999 = vst.msk [vmem:[#allocation4 + $0x151] sm:$0xff] %vm12453_vm14, %v3912_v46  ;;  %v3879_v51 = vadd.f32 1.0, %v3847_v34  ;;  %v3882_v11 = vadd.f32 1.0, %v3850_v58  ;;  %v3883_v36 = vadd.f32 1.0, %v3851_v31  ;;  %v2663_v3 = vmul.f32 0.5, %v12454_v13  ;;  %vm12461_vm10 = vmmov %vm12380_vm0  ;;  %v10571_v56 = vld [vmem:[#allocation4 + $0x50] sm:$0xff]  ;;  %v4134_v34 = vpop.permute.xlu0 %4133 }
 0x6b7   : > { %v4081_v63 = vld [vmem:[#allocation4 + $0x91] sm:$0xff]  ;;  %3986 = vst.msk [vmem:[#allocation4 + $0xb1] sm:$0xff] %vm12455_vm9, %v3899_v15  ;;  %v3884_v22 = vadd.f32 1.0, %v3852_v30  ;;  %v3902_v37 = vmul.f32 %v3870_v4, %v12456_v8  ;;  %v3905_v55 = vmul.f32 %v3873_v23, %v12457_v33  ;;  %v2666_v6 = vmul.f32 0.5, %v12458_v62  ;;  %vm12463_vm5 = vmmov %vm12380_vm0  ;;  %v4005_v21 = vld [vmem:[#allocation4] sm:$0xff] }
 0x6b8   : > { %4157 = vrot.lane.b32.xlu0 %v4081_v63, %s6274_s29  ;;  %v3885_v60 = vadd.f32 1.0, %v3853_v39  ;;  %v3915_v26 = vmul.f32 %v3883_v36, %v2667_v28  ;;  %v3908_v38 = vmul.f32 %v3876_v16, %v12459_v54  ;;  %v2668_v29 = vmul.f32 0.5, %v12460_v45  ;;  %vm12464_vm15 = vmmov %vm12380_vm0  ;;  %v10544_v9 = vld [vmem:[#allocation4 + $0x98] sm:$0xff]  ;;  %4059 = vst.msk [vmem:[#allocation5 + $0xb0] sm:$0xff] %vm12380_vm0, %v10552_v24  ;;  %v4264_v46 = vld [vmem:[#allocation4 + $0x22] sm:$0xff] }
 0x6b9   : > { %v3911_v10 = vmul.f32 %v3879_v51, %v2663_v3  ;;  %3989 = vst.msk [vmem:[#allocation4 + $0xd9] sm:$0xff] %vm12461_vm10, %v3902_v37  ;;  %v2669_v20 = vmul.f32 0.5, %v12462_v48  ;;  %v3914_v5 = vmul.f32 %v3882_v11, %v2666_v6  ;;  %vm12465_vm12 = vmmov %vm12380_vm0  ;;  %vm12470_vm6 = vcmask 130112   ;;  %v10593_v30 = vld [vmem:[#allocation4 + $0x60] sm:$0xff]  ;;  %v10597_v39 = vld [vmem:[#allocation4 + $0x110] sm:$0xff] }
 0x6ba   : > { %v4098_v19 = vld [vmem:[#allocation4 + $0x159] sm:$0xff]  ;;  %4002 = vst.msk [vmem:[#allocation4 + $0x171] sm:$0xff] %vm12463_vm5, %v3915_v26  ;;  %v3916_v7 = vmul.f32 %v3884_v22, %v2668_v29  ;;  %vm12466_vm1 = vmmov %vm12380_vm0  ;;  %v4006_v4 = vld [vmem:[#allocation4 + $0x8] sm:$0xff]  ;;  %v4146_v22 = vpop.permute.xlu1 %4145 }
 0x6bb   : > { %4191 = vrot.lane.b32.xlu1 %v4098_v19, %s6274_s29  ;;  %3992 = vst.msk [vmem:[#allocation4 + $0xf9] sm:$0xff] %vm12464_vm15, %v3905_v55  ;;  %v3917_v18 = vmul.f32 %v3885_v60, %v2669_v20  ;;  %vm12473_vm7 = vmmov %vm12380_vm0  ;;  %v4154_v58 = vpop.permute.xlu2 %4153  ;;  %v4263_v32 = vld [vmem:[#allocation4 + $0x1a] sm:$0xff]  ;;  %v10612_v49 = vld [vmem:[#allocation4 + $0x68] sm:$0xff] }
 0x6bc   : > { %3995 = vst.msk [vmem:[#allocation4 + $0x121] sm:$0xff] %vm12465_vm12, %v3908_v38  ;;  %vm12474_vm11 = vmmov %vm12380_vm0  ;;  %v4267_v28 = vld [vmem:[#allocation4 + $0x4a] sm:$0xff]  ;;  %v10615_v51 = vld [vmem:[#allocation4 + $0x138] sm:$0xff] }
 0x6bd   : > { %v4097_v40 = vld [vmem:[#allocation4 + $0x151] sm:$0xff]  ;;  %3998 = vst.msk [vmem:[#allocation4 + $0x141] sm:$0xff] %vm12466_vm1, %v3911_v10  ;;  %vm12475_vm14 = vmmov %vm12380_vm0  ;;  %v4266_v13 = vld [vmem:[#allocation4 + $0x3a] sm:$0xff] }
 0x6be   : > { %4189 = vrot.lane.b32.xlu2 %v4097_v40, %s6274_s29  ;;  %4001 = vst.msk [vmem:[#allocation4 + $0x169] sm:$0xff] %vm12467_vm4, %v3914_v5  ;;  %v10541_v43 = vld [vmem:[#allocation4 + $0xb1] sm:$0xff]  ;;  %vm12476_vm9 = vmmov %vm12380_vm0  ;;  %v4136_v23 = vpop.permute.xlu0 %4135  ;;  %v4269_v26 = vld [vmem:[#allocation4 + $0x62] sm:$0xff] }
 0x6bf   : > { %4003 = vst.msk [vmem:[#allocation4 + $0x181] sm:$0xff] %vm12468_vm8, %v3916_v7  ;;  %vm12477_vm10 = vmmov %vm12380_vm0  ;;  %v10589_v31 = vld [vmem:[#allocation4 + $0x150] sm:$0xff]  ;;  %v10623_v36 = vld [vmem:[#allocation4 + $0x158] sm:$0xff] }
 0x6c0   : > { %4163 = vrot.lane.b32.xlu0 %v10541_v43, %s6274_s29  ;;  %4004 = vst.msk [vmem:[#allocation4 + $0x189] sm:$0xff] %vm12469_vm13, %v3917_v18  ;;  %v10549_v42 = vld [vmem:[#allocation4 + $0xe0] sm:$0xff]  ;;  %vm12478_vm5 = vmmov %vm12470_vm6  ;;  %v10619_v11 = vld [vmem:[#allocation4 + $0x90] sm:$0xff] }
 0x6c1   : > { %4234 = vst.msk [vmem:[#allocation5 + $0x28] sm:$0xff] %vm12470_vm6, %v4144_v59  ;;  %v10567_v61 = vld [vmem:[#allocation4 + $0x171] sm:$0xff]  ;;  %v10577_v14 = vld [vmem:[#allocation4 + $0xd9] sm:$0xff]  ;;  %vm12479_vm15 = vmmov %vm12478_vm5 }
 0x6c2   : > { %4050 = vst.msk [vmem:[#allocation5 + $0x68] sm:$0xff] %vm12471_vm3, %v10544_v9  ;;  %vm12480_vm12 = vmmov %vm12380_vm0  ;;  %v4090_v15 = vld [vmem:[#allocation4 + $0xf9] sm:$0xff]  ;;  %v10627_v3 = vld [vmem:[#allocation4 + $0xb0] sm:$0xff]  ;;  %v4156_v45 = vpop.permute.xlu1 %4155 }
 0x6c3   : > { %4325 = vrot.lane.b32.xlu1 %v4261_v1, %s6275_s12  ;;  %4056 = vst.msk [vmem:[#allocation5 + $0x98] sm:$0xff] %vm12472_vm2, %v10549_v42  ;;  %v10565_v25 = vld [vmem:[#allocation4 + $0x128] sm:$0xff]  ;;  %vm12481_vm1 = vmmov %vm12380_vm0  ;;  %v4160_v16 = vpop.permute.xlu2 %4159  ;;  %v10637_v37 = vld [vmem:[#allocation4 + $0xd8] sm:$0xff] }
 0x6c4   : > { %4041 = vst.msk [vmem:[#allocation5 + $0x20] sm:$0xff] %vm12473_vm7, %v10556_v41  ;;  %vm12482_vm4 = vmmov %vm12380_vm0  ;;  %v4093_v63 = vld [vmem:[#allocation4 + $0x121] sm:$0xff]  ;;  %v4270_v33 = vld [vmem:[#allocation4 + $0x6a] sm:$0xff] }
 0x6c5   : > { %4054 = vst.msk [vmem:[#allocation5 + $0x88] sm:$0xff] %vm12474_vm11, %v10561_v52  ;;  %v10601_v17 = vld [vmem:[#allocation4 + $0x170] sm:$0xff]  ;;  %vm12483_vm8 = vmmov %vm12380_vm0  ;;  %v10641_v55 = vld [vmem:[#allocation4 + $0xf8] sm:$0xff] }
 0x6c6   : > { %4195 = vrot.lane.b32.xlu2 %v10567_v61, %s6274_s29  ;;  %4062 = vst.msk [vmem:[#allocation5 + $0xc8] sm:$0xff] %vm12475_vm14, %v10565_v25  ;;  %vm12484_vm13 = vmmov %vm12380_vm0  ;;  %v4138_v8 = vpop.permute.xlu0 %4137  ;;  %v10646_v6 = vld [vmem:[#allocation4 + $0x120] sm:$0xff]  ;;  %v10653_v54 = vld [vmem:[#allocation4 + $0x168] sm:$0xff] }
 0x6c7   : > { %4044 = vst.msk [vmem:[#allocation5 + $0x38] sm:$0xff] %vm12476_vm9, %v10571_v56  ;;  %vm12485_vm6 = vmmov %vm12380_vm0  ;;  %v10649_v60 = vld [vmem:[#allocation4 + $0x140] sm:$0xff]  ;;  %v4273_v10 = vld [vmem:[#allocation4 + $0x92] sm:$0xff] }
 0x6c8   : > { %4169 = vrot.lane.b32.xlu0 %v10577_v14, %s6274_s29  ;;  %4037 = vst.msk [vmem:[#allocation5] sm:$0xff] %vm12477_vm10, %v4005_v21  ;;  %vm12486_vm3 = vmmov %vm12478_vm5  ;;  %v4096_v38 = vld [vmem:[#allocation4 + $0x141] sm:$0xff]  ;;  %v10667_v20 = vld [vmem:[#allocation4 + $0x169] sm:$0xff] }
 0x6c9   : > { %4229 = vst.msk [vmem:[#allocation5] sm:$0xff] %vm12478_vm5, %v4134_v34  ;;  %vm12487_vm2 = vmmov %vm12486_vm3  ;;  %v4272_v48 = vld [vmem:[#allocation4 + $0x82] sm:$0xff]  ;;  %v10672_v7 = vld [vmem:[#allocation4 + $0xb2] sm:$0xff] }
 0x6ca   : > { %4239 = vst.msk [vmem:[#allocation5 + $0x50] sm:$0xff] %vm12479_vm15, %v4154_v58  ;;  %vm12488_vm7 = vmmov %vm12380_vm0  ;;  %v4162_v19 = vpop.permute.xlu1 %4161  ;;  %v10677_v18 = vld [vmem:[#allocation4 + $0xaa] sm:$0xff]  ;;  %v10683_v21 = vld [vmem:[#allocation4 + $0xda] sm:$0xff] }
 0x6cb   : > { %4331 = vrot.lane.b32.xlu1 %v4264_v46, %s6275_s12  ;;  %4057 = vst.msk [vmem:[#allocation5 + $0xa0] sm:$0xff] %vm12480_vm12, %v10586_v50  ;;  %vm12489_vm11 = vmmov %vm12380_vm0  ;;  %v4262_v40 = vld [vmem:[#allocation4 + $0xa] sm:$0xff]  ;;  %v4265_v58 = vld [vmem:[#allocation4 + $0x32] sm:$0xff] }
 0x6cc   : > { %4065 = vst.msk [vmem:[#allocation5 + $0xe0] sm:$0xff] %vm12481_vm1, %v10589_v31  ;;  %vm12490_vm14 = vmmov %vm12380_vm0  ;;  %v10688_v34 = vld [vmem:[#allocation4 + $0xca] sm:$0xff]  ;;  %v4282_v46 = vld [vmem:[#allocation4 + $0xfa] sm:$0xff] }
 0x6cd   : > { %4045 = vst.msk [vmem:[#allocation5 + $0x40] sm:$0xff] %vm12482_vm4, %v10593_v30  ;;  %vm12491_vm9 = vmmov %vm12380_vm0 }
 0x6ce   : > { %4329 = vrot.lane.b32.xlu2 %v4263_v32, %s6275_s12  ;;  %4060 = vst.msk [vmem:[#allocation5 + $0xb8] sm:$0xff] %vm12483_vm8, %v10597_v39  ;;  %vm12492_vm10 = vmmov %vm12487_vm2  ;;  %v4140_v29 = vpop.permute.xlu0 %4139 }
 0x6cf   : > { %4068 = vst.msk [vmem:[#allocation5 + $0xf8] sm:$0xff] %vm12484_vm13, %v10601_v17  ;;  %vm12493_vm5 = vmmov %vm12487_vm2 }
 0x6d0   : > { %4175 = vrot.lane.b32.xlu0 %v4090_v15, %s6274_s29  ;;  %4038 = vst.msk [vmem:[#allocation5 + $0x8] sm:$0xff] %vm12485_vm6, %v4006_v4  ;;  %vm12494_vm15 = vmmov %vm12380_vm0  ;;  %v4281_v15 = vld [vmem:[#allocation4 + $0xf2] sm:$0xff] }
 0x6d1   : > { %4230 = vst.msk [vmem:[#allocation5 + $0x8] sm:$0xff] %vm12486_vm3, %v4136_v23  ;;  %vm12495_vm12 = vmmov %vm12487_vm2  ;;  %v4268_v4 = vld [vmem:[#allocation4 + $0x52] sm:$0xff]  ;;  %v4285_v23 = vld [vmem:[#allocation4 + $0x122] sm:$0xff] }
 0x6d2   : > { %4242 = vst.msk [vmem:[#allocation5 + $0x68] sm:$0xff] %vm12487_vm2, %v4160_v16  ;;  %vm12496_vm1 = vmmov %vm12380_vm0 }
 0x6d3   : > { %4337 = vrot.lane.b32.xlu1 %v4267_v28, %s6275_s12  ;;  %4046 = vst.msk [vmem:[#allocation5 + $0x48] sm:$0xff] %vm12380_vm0, %v10612_v49  ;;  %vm12497_vm4 = vmmov %vm12380_vm0 }
 0x6d4   : > { %4063 = vst.msk [vmem:[#allocation5 + $0xd0] sm:$0xff] %vm12488_vm7, %v10615_v51  ;;  %vm12498_vm8 = vmmov %vm12380_vm0 }
 0x6d5   : > { %4049 = vst.msk [vmem:[#allocation5 + $0x60] sm:$0xff] %vm12489_vm11, %v10619_v11  ;;  %v4166_v62 = vpop.permute.xlu2 %4165  ;;  %vm12499_vm13 = vmmov %vm12380_vm0 }
 0x6d6   : > { %4335 = vrot.lane.b32.xlu2 %v4266_v13, %s6275_s12  ;;  %4066 = vst.msk [vmem:[#allocation5 + $0xe8] sm:$0xff] %vm12490_vm14, %v10623_v36  ;;  %vm12500_vm6 = vmmov %vm12487_vm2  ;;  %v4284_v13 = vld [vmem:[#allocation4 + $0x112] sm:$0xff] }
 0x6d7   : > { %4052 = vst.msk [vmem:[#allocation5 + $0x78] sm:$0xff] %vm12491_vm9, %v10627_v3  ;;  %vm12501_vm3 = vmmov %vm12487_vm2 }
 0x6d8   : > { %4181 = vrot.lane.b32.xlu0 %v4093_v63, %s6274_s29  ;;  %4235 = vst.msk [vmem:[#allocation5 + $0x30] sm:$0xff] %vm12492_vm10, %v4146_v22  ;;  %vm12502_vm0 = vmmov %vm12487_vm2  ;;  %v4271_v63 = vld [vmem:[#allocation4 + $0x7a] sm:$0xff]  ;;  %v10702_v22 = vld [vmem:[#allocation4 + $0x142] sm:$0xff] }
 0x6d9   : > { %4231 = vst.msk [vmem:[#allocation5 + $0x10] sm:$0xff] %vm12493_vm5, %v4138_v8  ;;  %vm12503_vm7 = vmmov %vm12502_vm0  ;;  %v10706_v8 = vld [vmem:[#allocation4 + $0x13a] sm:$0xff] }
 0x6da   : > { %4055 = vst.msk [vmem:[#allocation5 + $0x90] sm:$0xff] %vm12494_vm15, %v10637_v37  ;;  %vm12504_vm11 = vmmov %vm12502_vm0 }
 0x6db   : > { %4343 = vrot.lane.b32.xlu1 %v4270_v33, %s6275_s12  ;;  %4245 = vst.msk [vmem:[#allocation5 + $0x80] sm:$0xff] %vm12495_vm12, %v4166_v62  ;;  %v4142_v5 = vpop.permute.xlu0 %4141  ;;  %vm12505_vm14 = vmmov %vm12502_vm0  ;;  %v10710_v33 = vld [vmem:[#allocation4 + $0x9a] sm:$0xff] }
 0x6dc   : > { %4058 = vst.msk [vmem:[#allocation5 + $0xa8] sm:$0xff] %vm12496_vm1, %v10641_v55  ;;  %vm12506_vm9 = vmmov %vm12502_vm0 }
 0x6dd   : > { %4061 = vst.msk [vmem:[#allocation5 + $0xc0] sm:$0xff] %vm12497_vm4, %v10646_v6  ;;  %vm12507_vm10 = vmmov %vm12502_vm0 }
 0x6de   : > { %4341 = vrot.lane.b32.xlu2 %v4269_v26, %s6275_s12  ;;  %4064 = vst.msk [vmem:[#allocation5 + $0xd8] sm:$0xff] %vm12498_vm8, %v10649_v60  ;;  %vm12508_vm5 = vmmov %vm12502_vm0 }
 0x6df   : > { %4067 = vst.msk [vmem:[#allocation5 + $0xf0] sm:$0xff] %vm12499_vm13, %v10653_v54  ;;  %vm12509_vm15 = vmmov %vm12502_vm0 }
 0x6e0   : > { %4187 = vrot.lane.b32.xlu0 %v4096_v38, %s6274_s29  ;;  %4240 = vst.msk [vmem:[#allocation5 + $0x58] sm:$0xff] %vm12500_vm6, %v4156_v45  ;;  %v10715_v38 = vld [vmem:[#allocation4 + $0x16a] sm:$0xff]  ;;  %v10720_v45 = vld [vmem:[#allocation4 + $0x15a] sm:$0xff]  ;;  %vm12510_vm12 = vmmov %vm12502_vm0  ;;  %vm12515_vm6 = vcmask 195712  }
 0x6e1   : > { %4232 = vst.msk [vmem:[#allocation5 + $0x18] sm:$0xff] %vm12501_vm3, %v4140_v29  ;;  %vm12511_vm1 = vmmov %vm12502_vm0 }
 0x6e2   : > { %4243 = vst.msk [vmem:[#allocation5 + $0x70] sm:$0xff] %vm12487_vm2, %v4162_v19  ;;  %v10734_v19 = vld [vmem:[#allocation4 + $0xe2] sm:$0xff]  ;;  %vm12512_vm4 = vmmov %vm12502_vm0 }
 0x6e3   : > { %4349 = vrot.lane.b32.xlu1 %v4273_v10, %s6275_s12  ;;  %4233 = vst.msk [vmem:[#allocation5 + $0x20] sm:$0xff] %vm12502_vm0, %v4142_v5  ;;  %v10724_v10 = vld [vmem:[#allocation4 + $0xc2] sm:$0xff]  ;;  %vm12513_vm8 = vmmov %vm12502_vm0 }
 0x6e4   : > { %v4168_v1 = vpop.permute.xlu1 %4167  ;;  %vm12514_vm13 = vmmov %vm12502_vm0 }
 0x6e5   : > { %4246 = vst.msk [vmem:[#allocation5 + $0x88] sm:$0xff] %vm12503_vm7, %v4168_v1  ;;  %vm12516_vm3 = vmmov %vm12502_vm0 }
 0x6e6   : > { %4347 = vrot.lane.b32.xlu2 %v4272_v48, %s6275_s12  ;;  %vm12517_vm2 = vmmov %vm12502_vm0 }
 0x6e7   : > { %vm12518_vm0 = vmmov %vm12515_vm6 }
 0x6e8   : > { %4193 = vrot.lane.b32.xlu0 %v10667_v20, %s6274_s29  ;;  %vm12519_vm7 = vmmov %vm12511_vm1  ;;  %s325_s29 = scalar_lea.vmem %s11436_s8, %s6072_s11 }
 0x6eb   : > { %4355 = vrot.lane.b32.xlu1 %v10672_v7, %s6275_s12 }
 0x6ec   : > { %v4172_v59 = vpop.permute.xlu2 %4171 }
 0x6ed   : > { %4248 = vst.msk [vmem:[#allocation5 + $0x98] sm:$0xff] %vm12504_vm11, %v4172_v59  ;;  %vm12520_vm11 = vmmov %vm12518_vm0 }
 0x6ee   : > { %4353 = vrot.lane.b32.xlu2 %v10677_v18, %s6275_s12 }
 0x6f0   : > { %4327 = vrot.lane.b32.xlu0 %v4262_v40, %s6275_s12 }
 0x6f3   : > { %4361 = vrot.lane.b32.xlu1 %v10683_v21, %s6275_s12 }
 0x6f6   : > { %4359 = vrot.lane.b32.xlu2 %v10688_v34, %s6275_s12  ;;  %v4148_v32 = vpop.permute.xlu0 %4147 }
 0x6f7   : > { %4236 = vst.msk [vmem:[#allocation5 + $0x38] sm:$0xff] %vm12505_vm14, %v4148_v32  ;;  %vm12521_vm14 = vmmov %vm12518_vm0 }
 0x6f8   : > { %4333 = vrot.lane.b32.xlu0 %v4265_v58, %s6275_s12 }
 0x6fb   : > { %4367 = vrot.lane.b32.xlu1 %v4282_v46, %s6275_s12 }
 0x6fe   : > { %4365 = vrot.lane.b32.xlu2 %v4281_v15, %s6275_s12 }
 0x6ff   : > { %v4174_v28 = vpop.permute.xlu1 %4173 }
 0x700   : > { %4339 = vrot.lane.b32.xlu0 %v4268_v4, %s6275_s12  ;;  %v4178_v16 = vpop.permute.xlu2 %4177  ;;  %4249 = vst.msk [vmem:[#allocation5 + $0xa0] sm:$0xff] %vm12507_vm10, %v4174_v28  ;;  %vm12523_vm10 = vmmov %vm12518_vm0 }
 0x701   : > { %4251 = vst.msk [vmem:[#allocation5 + $0xb0] sm:$0xff] %vm12506_vm9, %v4178_v16  ;;  %vm12522_vm9 = vmmov %vm12511_vm1 }
 0x703   : > { %4373 = vrot.lane.b32.xlu1 %v4285_v23, %s6275_s12 }
 0x706   : > { %4371 = vrot.lane.b32.xlu2 %v4284_v13, %s6275_s12 }
 0x708   : > { %4345 = vrot.lane.b32.xlu0 %v4271_v63, %s6275_s12 }
 0x70b   : > { %4379 = vrot.lane.b32.xlu1 %v10702_v22, %s6275_s12 }
 0x70c   : > { %v4150_v26 = vpop.permute.xlu0 %4149 }
 0x70d   : > { %4237 = vst.msk [vmem:[#allocation5 + $0x40] sm:$0xff] %vm12509_vm15, %v4150_v26  ;;  %vm12525_vm15 = vmmov %vm12511_vm1 }
 0x70e   : > { %4377 = vrot.lane.b32.xlu2 %v10706_v8, %s6275_s12 }
 0x70f   : > { %v4184_v62 = vpop.permute.xlu2 %4183 }
 0x710   : > { %4351 = vrot.lane.b32.xlu0 %v10710_v33, %s6275_s12  ;;  %4254 = vst.msk [vmem:[#allocation5 + $0xc8] sm:$0xff] %vm12508_vm5, %v4184_v62  ;;  %vm12524_vm5 = vmmov %vm12518_vm0 }
 0x712   : > { %v4180_v29 = vpop.permute.xlu1 %4179 }
 0x713   : > { %4385 = vrot.lane.b32.xlu1 %v10715_v38, %s6275_s12  ;;  %4252 = vst.msk [vmem:[#allocation5 + $0xb8] sm:$0xff] %vm12510_vm12, %v4180_v29  ;;  %vm12526_vm12 = vmmov %vm12518_vm0  ;;  %v10825_v29 = vld [vmem:[#allocation4 + $0x188] sm:$0xff] }
 0x716   : > { %4383 = vrot.lane.b32.xlu2 %v10720_v45, %s6275_s12 }
 0x718   : > { %4357 = vrot.lane.b32.xlu0 %v10724_v10, %s6275_s12  ;;  %v4190_v48 = vpop.permute.xlu2 %4189 }
 0x719   : > { %4257 = vst.msk [vmem:[#allocation5 + $0xe0] sm:$0xff] %vm12511_vm1, %v4190_v48  ;;  %vm12527_vm1 = vmmov %vm12518_vm0  ;;  %v10830_v48 = vld [vmem:[#allocation4 + $0x180] sm:$0xff] }
 0x71b   : > { %4519 = vrot.lane.b32.xlu1 %v10489_v57, %s6276_s13 }
 0x71c   : > { %v4152_v5 = vpop.permute.xlu0 %4151 }
 0x71d   : > { %4238 = vst.msk [vmem:[#allocation5 + $0x48] sm:$0xff] %vm12512_vm4, %v4152_v5  ;;  %vm12528_vm4 = vmmov %vm12517_vm2 }
 0x71e   : > { %4517 = vrot.lane.b32.xlu2 %v10477_v12, %s6276_s13  ;;  %v4283_v12 = vld [vmem:[#allocation4 + $0x10a] sm:$0xff] }
 0x720   : > { %4363 = vrot.lane.b32.xlu0 %v10734_v19, %s6275_s12  ;;  %v4196_v40 = vpop.permute.xlu2 %4195 }
 0x721   : > { %4260 = vst.msk [vmem:[#allocation5 + $0xf8] sm:$0xff] %vm12513_vm8, %v4196_v40  ;;  %v4186_v1 = vpop.permute.xlu1 %4185  ;;  %vm12529_vm8 = vmmov %vm12518_vm0 }
 0x722   : > { %4255 = vst.msk [vmem:[#allocation5 + $0xd0] sm:$0xff] %vm12514_vm13, %v4186_v1  ;;  %vm12530_vm13 = vmmov %vm12518_vm0 }
 0x723   : > { %4525 = vrot.lane.b32.xlu1 %v10446_v44, %s6276_s13  ;;  %v10753_v44 = vld [vmem:[#allocation4 + $0x12a] sm:$0xff] }
 0x726   : > { %4523 = vrot.lane.b32.xlu2 %v10420_v35, %s6276_s13 }
 0x728   : > { %4369 = vrot.lane.b32.xlu0 %v4283_v12, %s6275_s12  ;;  %v4330_v57 = vpop.permute.xlu2 %4329  ;;  %v4647_v12 = vld [vmem:[#allocation4 + $0x31] sm:$0xff] }
 0x729   : > { %4423 = vst.msk [vmem:[#allocation5 + $0x10] sm:$0xff] %vm12515_vm6, %v4330_v57  ;;  %vm12531_vm6 = vmmov %vm12517_vm2  ;;  %v4646_v57 = vld [vmem:[#allocation4 + $0x21] sm:$0xff] }
 0x72a   : > { %v4158_v59 = vpop.permute.xlu0 %4157 }
 0x72b   : > { %4241 = vst.msk [vmem:[#allocation5 + $0x60] sm:$0xff] %vm12516_vm3, %v4158_v59  ;;  %4531 = vrot.lane.b32.xlu1 %v10612_v49, %s6276_s13  ;;  %vm12532_vm3 = vmmov %vm12518_vm0 }
 0x72d   : > { %v4192_v58 = vpop.permute.xlu1 %4191 }
 0x72e   : > { %4529 = vrot.lane.b32.xlu2 %v10593_v30, %s6276_s13  ;;  %4258 = vst.msk [vmem:[#allocation5 + $0xe8] sm:$0xff] %vm12517_vm2, %v4192_v58  ;;  %v10764_v30 = vld [vmem:[#allocation4 + $0x152] sm:$0xff]  ;;  %vm12533_vm2 = vmmov %vm12518_vm0 }
 0x730   : > { %4375 = vrot.lane.b32.xlu0 %v10753_v44, %s6275_s12  ;;  %v4336_v35 = vpop.permute.xlu2 %4335 }
 0x731   : > { %4426 = vst.msk [vmem:[#allocation5 + $0x28] sm:$0xff] %vm12518_vm0, %v4336_v35  ;;  %vm12534_vm0 = vmmov %vm12528_vm4 }
 0x732   : > { %v4164_v46 = vpop.permute.xlu0 %4163 }
 0x733   : > { %4244 = vst.msk [vmem:[#allocation5 + $0x78] sm:$0xff] %vm12519_vm7, %v4164_v46  ;;  %4537 = vrot.lane.b32.xlu1 %v10619_v11, %s6276_s13  ;;  %vm12535_vm7 = vmmov %vm12527_vm1  ;;  %v4650_v46 = vld [vmem:[#allocation4 + $0x51] sm:$0xff] }
 0x735   : > { %v4326_v49 = vpop.permute.xlu1 %4325 }
 0x736   : > { %4535 = vrot.lane.b32.xlu2 %v10481_v2, %s6276_s13  ;;  %4421 = vst.msk [vmem:[#allocation5] sm:$0xff] %vm12520_vm11, %v4326_v49  ;;  %v10775_v2 = vld [vmem:[#allocation4 + $0x172] sm:$0xff]  ;;  %vm12536_vm11 = vmmov %vm12527_vm1  ;;  %v4649_v49 = vld [vmem:[#allocation4 + $0x49] sm:$0xff] }
 0x738   : > { %4381 = vrot.lane.b32.xlu0 %v10764_v30, %s6275_s12  ;;  %v4342_v32 = vpop.permute.xlu2 %4341 }
 0x739   : > { %4429 = vst.msk [vmem:[#allocation5 + $0x40] sm:$0xff] %vm12521_vm14, %v4342_v32  ;;  %vm12537_vm14 = vmmov %vm12527_vm1 }
 0x73a   : > { %v4170_v15 = vpop.permute.xlu0 %4169 }
 0x73b   : > { %4247 = vst.msk [vmem:[#allocation5 + $0x90] sm:$0xff] %vm12522_vm9, %v4170_v15  ;;  %4543 = vrot.lane.b32.xlu1 %v10627_v3, %s6276_s13  ;;  %vm12538_vm9 = vmmov %vm12527_vm1 }
 0x73d   : > { %v4332_v11 = vpop.permute.xlu1 %4331 }
 0x73e   : > { %4541 = vrot.lane.b32.xlu2 %v10500_v53, %s6276_s13  ;;  %4424 = vst.msk [vmem:[#allocation5 + $0x18] sm:$0xff] %vm12523_vm10, %v4332_v11  ;;  %vm12539_vm10 = vmmov %vm12527_vm1  ;;  %v10852_v11 = vld [vmem:[#allocation4 + $0x79] sm:$0xff] }
 0x740   : > { %4387 = vrot.lane.b32.xlu0 %v10775_v2, %s6275_s12  ;;  %v4348_v4 = vpop.permute.xlu2 %4347 }
 0x741   : > { %4432 = vst.msk [vmem:[#allocation5 + $0x58] sm:$0xff] %vm12524_vm5, %v4348_v4  ;;  %vm12540_vm5 = vmmov %vm12527_vm1 }
 0x742   : > { %v4176_v23 = vpop.permute.xlu0 %4175 }
 0x743   : > { %4250 = vst.msk [vmem:[#allocation5 + $0xa8] sm:$0xff] %vm12525_vm15, %v4176_v23  ;;  %4549 = vrot.lane.b32.xlu1 %v10637_v37, %s6276_s13  ;;  %vm12541_vm15 = vmmov %vm12527_vm1  ;;  %v5061_v23 = vld [vmem:[#allocation4 + $0x1a0] sm:$0xff] }
 0x745   : > { %v4338_v16 = vpop.permute.xlu1 %4337 }
 0x746   : > { %4547 = vrot.lane.b32.xlu2 %v10561_v52, %s6276_s13  ;;  %4427 = vst.msk [vmem:[#allocation5 + $0x30] sm:$0xff] %vm12526_vm12, %v4338_v16  ;;  %vm12542_vm12 = vmmov %vm12527_vm1 }
 0x748   : > { %4521 = vrot.lane.b32.xlu0 %v10556_v41, %s6276_s13  ;;  %v4354_v28 = vpop.permute.xlu2 %4353 }
 0x749   : > { %4435 = vst.msk [vmem:[#allocation5 + $0x70] sm:$0xff] %vm12527_vm1, %v4354_v28  ;;  %v10865_v28 = vld [vmem:[#allocation4 + $0x18a] sm:$0xff] }
 0x74a   : > { %v4182_v13 = vpop.permute.xlu0 %4181 }
 0x74b   : > { %4253 = vst.msk [vmem:[#allocation5 + $0xc0] sm:$0xff] %vm12528_vm4, %v4182_v13  ;;  %4555 = vrot.lane.b32.xlu1 %v10641_v55, %s6276_s13  ;;  %vm12543_vm4 = vmmov %vm12527_vm1 }
 0x74d   : > { %v4344_v63 = vpop.permute.xlu1 %4343 }
 0x74e   : > { %4553 = vrot.lane.b32.xlu2 %v10586_v50, %s6276_s13  ;;  %4430 = vst.msk [vmem:[#allocation5 + $0x48] sm:$0xff] %vm12529_vm8, %v4344_v63  ;;  %vm12544_vm8 = vcmask 261312   ;;  %v5445_v63 = vld [vmem:[#allocation4 + $0x1a2] sm:$0xff] }
 0x750   : > { %4527 = vrot.lane.b32.xlu0 %v10571_v56, %s6276_s13  ;;  %v4360_v62 = vpop.permute.xlu2 %4359 }
 0x751   : > { %4438 = vst.msk [vmem:[#allocation5 + $0x88] sm:$0xff] %vm12530_vm13, %v4360_v62  ;;  %vm12545_vm13 = vmmov %vm12527_vm1 }
 0x752   : > { %v4188_v41 = vpop.permute.xlu0 %4187 }
 0x753   : > { %4256 = vst.msk [vmem:[#allocation5 + $0xd8] sm:$0xff] %vm12531_vm6, %v4188_v41  ;;  %4561 = vrot.lane.b32.xlu1 %v10646_v6, %s6276_s13  ;;  %vm12546_vm6 = vmmov %vm12527_vm1  ;;  %v10875_v41 = vld [vmem:[#allocation4 + $0x181] sm:$0xff] }
 0x755   : > { %v4350_v26 = vpop.permute.xlu1 %4349 }
 0x756   : > { %4559 = vrot.lane.b32.xlu2 %v10597_v39, %s6276_s13  ;;  %4433 = vst.msk [vmem:[#allocation5 + $0x60] sm:$0xff] %vm12532_vm3, %v4350_v26  ;;  %vm12547_vm3 = vmmov %vm12544_vm8 }
 0x758   : > { %4533 = vrot.lane.b32.xlu0 %v10436_v47, %s6276_s13  ;;  %v4366_v50 = vpop.permute.xlu2 %4365 }
 0x759   : > { %4441 = vst.msk [vmem:[#allocation5 + $0xa0] sm:$0xff] %vm12533_vm2, %v4366_v50  ;;  %vm12548_vm2 = vmmov %vm12527_vm1  ;;  %v4645_v50 = vld [vmem:[#allocation4 + $0x19] sm:$0xff] }
 0x75a   : > { %v4194_v56 = vpop.permute.xlu0 %4193 }
 0x75b   : > { %4259 = vst.msk [vmem:[#allocation5 + $0xf0] sm:$0xff] %vm12534_vm0, %v4194_v56  ;;  %4567 = vrot.lane.b32.xlu1 %v10649_v60, %s6276_s13  ;;  %vm12549_vm0 = vmmov %vm12527_vm1 }
 0x75d   : > { %v4356_v55 = vpop.permute.xlu1 %4355 }
 0x75e   : > { %4565 = vrot.lane.b32.xlu2 %v10615_v51, %s6276_s13  ;;  %4436 = vst.msk [vmem:[#allocation5 + $0x78] sm:$0xff] %vm12535_vm7, %v4356_v55  ;;  %vm12550_vm7 = vmmov %vm12547_vm3  ;;  %v5060_v55 = vld [vmem:[#allocation4 + $0x198] sm:$0xff] }
 0x760   : > { %4539 = vrot.lane.b32.xlu0 %v10544_v9, %s6276_s13  ;;  %v4372_v39 = vpop.permute.xlu2 %4371 }
 0x761   : > { %4444 = vst.msk [vmem:[#allocation5 + $0xb8] sm:$0xff] %vm12536_vm11, %v4372_v39  ;;  %vm12551_vm11 = vmmov %vm12549_vm0 }
 0x762   : > { %v4328_v47 = vpop.permute.xlu0 %4327 }
 0x763   : > { %4422 = vst.msk [vmem:[#allocation5 + $0x8] sm:$0xff] %vm12537_vm14, %v4328_v47  ;;  %4573 = vrot.lane.b32.xlu1 %v10653_v54, %s6276_s13  ;;  %vm12552_vm14 = vmmov %vm12547_vm3  ;;  %v10884_v47 = vld [vmem:[#allocation4 + $0xc9] sm:$0xff] }
 0x765   : > { %v4362_v6 = vpop.permute.xlu1 %4361 }
 0x766   : > { %4571 = vrot.lane.b32.xlu2 %v10623_v36, %s6276_s13  ;;  %4439 = vst.msk [vmem:[#allocation5 + $0x90] sm:$0xff] %vm12538_vm9, %v4362_v6  ;;  %vm12553_vm9 = vmmov %vm12547_vm3 }
 0x768   : > { %4545 = vrot.lane.b32.xlu0 %v10462_v27, %s6276_s13  ;;  %v4378_v51 = vpop.permute.xlu2 %4377 }
 0x769   : > { %4447 = vst.msk [vmem:[#allocation5 + $0xd0] sm:$0xff] %vm12539_vm10, %v4378_v51  ;;  %vm12554_vm10 = vmmov %vm12549_vm0  ;;  %v4648_v51 = vld [vmem:[#allocation4 + $0x39] sm:$0xff] }
 0x76a   : > { %v4334_v9 = vpop.permute.xlu0 %4333 }
 0x76b   : > { %4425 = vst.msk [vmem:[#allocation5 + $0x20] sm:$0xff] %vm12540_vm5, %v4334_v9  ;;  %4579 = vrot.lane.b32.xlu1 %v10825_v29, %s6276_s13  ;;  %vm12555_vm5 = vmmov %vm12547_vm3 }
 0x76d   : > { %v4368_v5 = vpop.permute.xlu1 %4367 }
 0x76e   : > { %4577 = vrot.lane.b32.xlu2 %v10830_v48, %s6276_s13  ;;  %4442 = vst.msk [vmem:[#allocation5 + $0xa8] sm:$0xff] %vm12541_vm15, %v4368_v5  ;;  %vm12556_vm15 = vmmov %vm12547_vm3 }
 0x770   : > { %4551 = vrot.lane.b32.xlu0 %v10549_v42, %s6276_s13  ;;  %v4384_v40 = vpop.permute.xlu2 %4383 }
 0x771   : > { %4450 = vst.msk [vmem:[#allocation5 + $0xe8] sm:$0xff] %vm12542_vm12, %v4384_v40  ;;  %vm12557_vm12 = vmmov %vm12549_vm0  ;;  %v5252_v40 = vld [vmem:[#allocation4 + $0x199] sm:$0xff] }
 0x772   : > { %v4340_v1 = vpop.permute.xlu0 %4339 }
 0x773   : > { %4428 = vst.msk [vmem:[#allocation5 + $0x38] sm:$0xff] %vm12527_vm1, %v4340_v1  ;;  %4713 = vrot.lane.b32.xlu1 %v4647_v12, %s6277_s14  ;;  %vm12558_vm1 = vmmov %vm12547_vm3  ;;  %v4651_v12 = vld [vmem:[#allocation4 + $0x61] sm:$0xff] }
 0x775   : > { %v4374_v59 = vpop.permute.xlu1 %4373 }
 0x776   : > { %4711 = vrot.lane.b32.xlu2 %v4646_v57, %s6277_s14  ;;  %4445 = vst.msk [vmem:[#allocation5 + $0xc0] sm:$0xff] %vm12543_vm4, %v4374_v59  ;;  %vm12559_vm4 = vmmov %vm12558_vm1 }
 0x778   : > { %4557 = vrot.lane.b32.xlu0 %v10552_v24, %s6276_s13  ;;  %v4518_v58 = vpop.permute.xlu2 %4517 }
 0x779   : > { %4613 = vst.msk [vmem:[#allocation5] sm:$0xff] %vm12544_vm8, %v4518_v58  ;;  %vm12560_vm8 = vmmov %vm12549_vm0  ;;  %v5444_v58 = vld [vmem:[#allocation4 + $0x19a] sm:$0xff] }
 0x77a   : > { %v4346_v35 = vpop.permute.xlu0 %4345 }
 0x77b   : > { %4431 = vst.msk [vmem:[#allocation5 + $0x50] sm:$0xff] %vm12545_vm13, %v4346_v35  ;;  %4719 = vrot.lane.b32.xlu1 %v4650_v46, %s6277_s14  ;;  %vm12561_vm13 = vmmov %vm12558_vm1  ;;  %v4676_v46 = vld [vmem:[#allocation4 + $0x189] sm:$0xff] }
 0x77d   : > { %v4380_v32 = vpop.permute.xlu1 %4379 }
 0x77e   : > { %4717 = vrot.lane.b32.xlu2 %v4649_v49, %s6277_s14  ;;  %4448 = vst.msk [vmem:[#allocation5 + $0xd8] sm:$0xff] %vm12546_vm6, %v4380_v32  ;;  %vm12562_vm6 = vmmov %vm12558_vm1 }
 0x780   : > { %4563 = vrot.lane.b32.xlu0 %v10565_v25, %s6276_s13  ;;  %v4524_v15 = vpop.permute.xlu2 %4523 }
 0x781   : > { %4616 = vst.msk [vmem:[#allocation5 + $0x18] sm:$0xff] %vm12547_vm3, %v4524_v15  ;;  %vm12563_vm3 = vmmov %vm12549_vm0  ;;  %v10908_v15 = vld [vmem:[#allocation4 + $0xc1] sm:$0xff] }
 0x782   : > { %v4352_v24 = vpop.permute.xlu0 %4351 }
 0x783   : > { %4434 = vst.msk [vmem:[#allocation5 + $0x68] sm:$0xff] %vm12548_vm2, %v4352_v24  ;;  %4725 = vrot.lane.b32.xlu1 %v10852_v11, %s6277_s14  ;;  %vm12564_vm2 = vmmov %vm12558_vm1  ;;  %v5253_v24 = vld [vmem:[#allocation4 + $0x1a1] sm:$0xff] }
 0x785   : > { %v4386_v4 = vpop.permute.xlu1 %4385 }
 0x786   : > { %4723 = vrot.lane.b32.xlu2 %v10458_v0, %s6277_s14  ;;  %4451 = vst.msk [vmem:[#allocation5 + $0xf0] sm:$0xff] %vm12549_vm0, %v4386_v4  ;;  %vm12565_vm0 = vmmov %vm12558_vm1 }
 0x788   : > { %4569 = vrot.lane.b32.xlu0 %v10589_v31, %s6276_s13  ;;  %v4530_v25 = vpop.permute.xlu2 %4529 }
 0x789   : > { %4619 = vst.msk [vmem:[#allocation5 + $0x30] sm:$0xff] %vm12550_vm7, %v4530_v25  ;;  %vm12566_vm7 = vmmov %vm12563_vm3 }
 0x78a   : > { %v4358_v16 = vpop.permute.xlu0 %4357 }
 0x78b   : > { %4437 = vst.msk [vmem:[#allocation5 + $0x80] sm:$0xff] %vm12551_vm11, %v4358_v16  ;;  %5156 = vrot.lane.b32.xlu1 %v5061_v23, %s6279_s16  ;;  %vm12567_vm11 = vmmov %vm12565_vm0  ;;  %v10920_v16 = vld [vmem:[#allocation4 + $0x182] sm:$0xff] }
 0x78d   : > { %v4520_v13 = vpop.permute.xlu1 %4519 }
 0x78e   : > { %4963 = vrot.lane.b32.xlu2 %v10865_v28, %s6278_s15  ;;  %4614 = vst.msk [vmem:[#allocation5 + $0x8] sm:$0xff] %vm12552_vm14, %v4520_v13  ;;  %vm12568_vm14 = vmmov %vm12565_vm0 }
 0x790   : > { %4575 = vrot.lane.b32.xlu0 %v10601_v17, %s6276_s13  ;;  %v4536_v0 = vpop.permute.xlu2 %4535 }
 0x791   : > { %4622 = vst.msk [vmem:[#allocation5 + $0x48] sm:$0xff] %vm12553_vm9, %v4536_v0  ;;  %vm12569_vm9 = vmmov %vm12565_vm0 }
 0x792   : > { %v4364_v62 = vpop.permute.xlu0 %4363 }
 0x793   : > { %4440 = vst.msk [vmem:[#allocation5 + $0x98] sm:$0xff] %vm12554_vm10, %v4364_v62  ;;  %5540 = vrot.lane.b32.xlu1 %v5445_v63, %s6281_s18  ;;  %vm12570_vm10 = vmmov %vm12565_vm0 }
 0x795   : > { %v4526_v26 = vpop.permute.xlu1 %4525 }
 0x796   : > { %4769 = vrot.lane.b32.xlu2 %v10875_v41, %s6277_s14  ;;  %4617 = vst.msk [vmem:[#allocation5 + $0x20] sm:$0xff] %vm12555_vm5, %v4526_v26  ;;  %vm12571_vm5 = vmmov %vm12565_vm0 }
 0x798   : > { %4709 = vrot.lane.b32.xlu0 %v4645_v50, %s6277_s14  ;;  %v4542_v56 = vpop.permute.xlu2 %4541 }
 0x799   : > { %4625 = vst.msk [vmem:[#allocation5 + $0x60] sm:$0xff] %vm12556_vm15, %v4542_v56  ;;  %vm12572_vm15 = vmmov %vm12565_vm0 }
 0x79a   : > { %v4370_v39 = vpop.permute.xlu0 %4369 }
 0x79b   : > { %4443 = vst.msk [vmem:[#allocation5 + $0xb0] sm:$0xff] %vm12557_vm12, %v4370_v39  ;;  %5154 = vrot.lane.b32.xlu1 %v5060_v55, %s6279_s16  ;;  %vm12573_vm12 = vmmov %vm12565_vm0 }
 0x79d   : > { %v4532_v6 = vpop.permute.xlu1 %4531 }
 0x79e   : > { %4739 = vrot.lane.b32.xlu2 %v10884_v47, %s6277_s14  ;;  %4620 = vst.msk [vmem:[#allocation5 + $0x38] sm:$0xff] %vm12558_vm1, %v4532_v6  ;;  %vm12574_vm1 = vmmov %vm12565_vm0 }
 0x7a0   : > { %4715 = vrot.lane.b32.xlu0 %v4648_v51, %s6277_s14  ;;  %v4548_v9 = vpop.permute.xlu2 %4547 }
 0x7a1   : > { %4628 = vst.msk [vmem:[#allocation5 + $0x78] sm:$0xff] %vm12559_vm4, %v4548_v9  ;;  %vm12575_vm4 = vmmov %vm12565_vm0  ;;  %v10984_v9 = vld [vmem:[#allocation4 + $0x151] sm:$0xff] }
 0x7a2   : > { %v4376_v5 = vpop.permute.xlu0 %4375 }
 0x7a3   : > { %4446 = vst.msk [vmem:[#allocation5 + $0xc8] sm:$0xff] %vm12560_vm8, %v4376_v5  ;;  %4767 = vrot.lane.b32.xlu1 %v10567_v61, %s6277_s14  ;;  %vm12576_vm8 = vmmov %vm12565_vm0 }
 0x7a5   : > { %v4538_v1 = vpop.permute.xlu1 %4537 }
 0x7a6   : > { %5346 = vrot.lane.b32.xlu2 %v5252_v40, %s6280_s17  ;;  %4623 = vst.msk [vmem:[#allocation5 + $0x50] sm:$0xff] %vm12561_vm13, %v4538_v1  ;;  %vm12577_vm13 = vcmask 326912  }
 0x7a8   : > { %4721 = vrot.lane.b32.xlu0 %v4651_v12, %s6277_s14  ;;  %v4554_v57 = vpop.permute.xlu2 %4553 }
 0x7a9   : > { %4631 = vst.msk [vmem:[#allocation5 + $0x90] sm:$0xff] %vm12562_vm6, %v4554_v57  ;;  %vm12578_vm6 = vmmov %vm12565_vm0 }
 0x7aa   : > { %v4382_v59 = vpop.permute.xlu0 %4381 }
 0x7ab   : > { %4449 = vst.msk [vmem:[#allocation5 + $0xe0] sm:$0xff] %vm12563_vm3, %v4382_v59  ;;  %4959 = vrot.lane.b32.xlu1 %v10775_v2, %s6278_s15  ;;  %vm12579_vm3 = vmmov %vm12565_vm0 }
 0x7ad   : > { %v4544_v35 = vpop.permute.xlu1 %4543 }
 0x7ae   : > { %5538 = vrot.lane.b32.xlu2 %v5444_v58, %s6281_s18  ;;  %4626 = vst.msk [vmem:[#allocation5 + $0x68] sm:$0xff] %vm12564_vm2, %v4544_v35  ;;  %vm12580_vm2 = vmmov %vm12577_vm13 }
 0x7b0   : > { %4771 = vrot.lane.b32.xlu0 %v4676_v46, %s6277_s14  ;;  %v4560_v49 = vpop.permute.xlu2 %4559 }
 0x7b1   : > { %4634 = vst.msk [vmem:[#allocation5 + $0xa8] sm:$0xff] %vm12565_vm0, %v4560_v49 }
 0x7b2   : > { %v4388_v32 = vpop.permute.xlu0 %4387 }
 0x7b3   : > { %4452 = vst.msk [vmem:[#allocation5 + $0xf8] sm:$0xff] %vm12566_vm7, %v4388_v32  ;;  %5152 = vrot.lane.b32.xlu1 %v10825_v29, %s6279_s16  ;;  %vm12581_vm7 = vmmov %vm12565_vm0  ;;  %v11039_v32 = vld [vmem:[#allocation4 + $0x92] sm:$0xff] }
 0x7b5   : > { %v4550_v4 = vpop.permute.xlu1 %4549 }
 0x7b6   : > { %4737 = vrot.lane.b32.xlu2 %v10908_v15, %s6277_s14  ;;  %4629 = vst.msk [vmem:[#allocation5 + $0x80] sm:$0xff] %vm12567_vm11, %v4550_v4  ;;  %vm12582_vm11 = vmmov %vm12580_vm2 }
 0x7b8   : > { %5348 = vrot.lane.b32.xlu0 %v5253_v24, %s6280_s17  ;;  %v4566_v25 = vpop.permute.xlu2 %4565  ;;  %v5425_v24 = vld [vmem:[#allocation4 + $0xb2] sm:$0xff] }
 0x7b9   : > { %4637 = vst.msk [vmem:[#allocation5 + $0xc0] sm:$0xff] %vm12568_vm14, %v4566_v25  ;;  %vm12583_vm14 = vmmov %vm12565_vm0 }
 0x7ba   : > { %v4522_v23 = vpop.permute.xlu0 %4521 }
 0x7bb   : > { %4615 = vst.msk [vmem:[#allocation5 + $0x10] sm:$0xff] %vm12569_vm9, %v4522_v23  ;;  %5344 = vrot.lane.b32.xlu1 %v4676_v46, %s6280_s17  ;;  %vm12584_vm9 = vmmov %vm12580_vm2  ;;  %v11029_v46 = vld [vmem:[#allocation4 + $0x91] sm:$0xff]  ;;  %v11056_v23 = vld [vmem:[#allocation4 + $0x139] sm:$0xff] }
 0x7bd   : > { %v4556_v29 = vpop.permute.xlu1 %4555 }
 0x7be   : > { %4929 = vrot.lane.b32.xlu2 %v10724_v10, %s6278_s15  ;;  %4632 = vst.msk [vmem:[#allocation5 + $0x98] sm:$0xff] %vm12570_vm10, %v4556_v29  ;;  %vm12585_vm10 = vmmov %vm12565_vm0 }
 0x7c0   : > { %4961 = vrot.lane.b32.xlu0 %v10920_v16, %s6278_s15  ;;  %v4572_v13 = vpop.permute.xlu2 %4571 }
 0x7c1   : > { %4640 = vst.msk [vmem:[#allocation5 + $0xd8] sm:$0xff] %vm12571_vm5, %v4572_v13  ;;  %vm12586_vm5 = vmmov %vm12580_vm2 }
 0x7c2   : > { %v4528_v0 = vpop.permute.xlu0 %4527 }
 0x7c3   : > { %4618 = vst.msk [vmem:[#allocation5 + $0x28] sm:$0xff] %vm12572_vm15, %v4528_v0  ;;  %5536 = vrot.lane.b32.xlu1 %v10865_v28, %s6281_s18  ;;  %vm12587_vm15 = vmmov %vm12580_vm2 }
 0x7c5   : > { %v4562_v63 = vpop.permute.xlu1 %4561 }
 0x7c6   : > { %5122 = vrot.lane.b32.xlu2 %v10637_v37, %s6279_s16  ;;  %4635 = vst.msk [vmem:[#allocation5 + $0xb0] sm:$0xff] %vm12573_vm12, %v4562_v63  ;;  %vm12588_vm12 = vmmov %vm12565_vm0 }
 0x7c8   : > { %4931 = vrot.lane.b32.xlu0 %v10688_v34, %s6278_s15  ;;  %v4578_v62 = vpop.permute.xlu2 %4577 }
 0x7c9   : > { %4643 = vst.msk [vmem:[#allocation5 + $0xf0] sm:$0xff] %vm12574_vm1, %v4578_v62  ;;  %vm12589_vm1 = vmmov %vm12580_vm2  ;;  %v5424_v62 = vld [vmem:[#allocation4 + $0xaa] sm:$0xff] }
 0x7ca   : > { %v4534_v26 = vpop.permute.xlu0 %4533 }
 0x7cb   : > { %4621 = vst.msk [vmem:[#allocation5 + $0x40] sm:$0xff] %vm12575_vm4, %v4534_v26  ;;  %4735 = vrot.lane.b32.xlu1 %v10541_v43, %s6277_s14  ;;  %v10949_v43 = vld [vmem:[#allocation4 + $0xe1] sm:$0xff]  ;;  %vm12590_vm4 = vmmov %vm12589_vm1 }
 0x7cd   : > { %v4568_v50 = vpop.permute.xlu1 %4567 }
 0x7ce   : > { %5314 = vrot.lane.b32.xlu2 %v10577_v14, %s6280_s17  ;;  %4638 = vst.msk [vmem:[#allocation5 + $0xc8] sm:$0xff] %vm12576_vm8, %v4568_v50  ;;  %vm12591_vm8 = vmmov %vm12565_vm0 }
 0x7d0   : > { %5124 = vrot.lane.b32.xlu0 %v10549_v42, %s6279_s16  ;;  %v4712_v37 = vpop.permute.xlu2 %4711 }
 0x7d1   : > { %4806 = vst.msk [vmem:[#allocation5 + $0x8] sm:$0xff] %vm12577_vm13, %v4712_v37  ;;  %vm12592_vm13 = vmmov %vm12565_vm0 }
 0x7d2   : > { %v4540_v28 = vpop.permute.xlu0 %4539 }
 0x7d3   : > { %4624 = vst.msk [vmem:[#allocation5 + $0x58] sm:$0xff] %vm12578_vm6, %v4540_v28  ;;  %4927 = vrot.lane.b32.xlu1 %v10672_v7, %s6278_s15  ;;  %v10957_v7 = vld [vmem:[#allocation4 + $0x159] sm:$0xff]  ;;  %vm12593_vm6 = vmmov %vm12589_vm1 }
 0x7d5   : > { %v4574_v56 = vpop.permute.xlu1 %4573 }
 0x7d6   : > { %5506 = vrot.lane.b32.xlu2 %v10683_v21, %s6281_s18  ;;  %4641 = vst.msk [vmem:[#allocation5 + $0xe0] sm:$0xff] %vm12579_vm3, %v4574_v56  ;;  %vm12594_vm3 = vmmov %vm12589_vm1  ;;  %v11086_v56 = vld [vmem:[#allocation4 + $0x129] sm:$0xff] }
 0x7d8   : > { %5316 = vrot.lane.b32.xlu0 %v10949_v43, %s6280_s17  ;;  %v4718_v42 = vpop.permute.xlu2 %4717 }
 0x7d9   : > { %4809 = vst.msk [vmem:[#allocation5 + $0x20] sm:$0xff] %vm12580_vm2, %v4718_v42  ;;  %vm12595_vm2 = vmmov %vm12589_vm1 }
 0x7da   : > { %v4546_v14 = vpop.permute.xlu0 %4545 }
 0x7db   : > { %4627 = vst.msk [vmem:[#allocation5 + $0x70] sm:$0xff] %vm12565_vm0, %v4546_v14  ;;  %5120 = vrot.lane.b32.xlu1 %v10561_v52, %s6279_s16  ;;  %vm12596_vm0 = vmmov %vm12589_vm1 }
 0x7dd   : > { %v4580_v55 = vpop.permute.xlu1 %4579 }
 0x7de   : > { %4763 = vrot.lane.b32.xlu2 %v10957_v7, %s6277_s14  ;;  %4644 = vst.msk [vmem:[#allocation5 + $0xf8] sm:$0xff] %vm12581_vm7, %v4580_v55  ;;  %vm12597_vm7 = vcmask 392512  }
 0x7e0   : > { %5508 = vrot.lane.b32.xlu0 %v10734_v19, %s6281_s18  ;;  %v4724_v21 = vpop.permute.xlu2 %4723 }
 0x7e1   : > { %4812 = vst.msk [vmem:[#allocation5 + $0x38] sm:$0xff] %vm12582_vm11, %v4724_v21  ;;  %vm12598_vm11 = vmmov %vm12596_vm0  ;;  %v5423_v21 = vld [vmem:[#allocation4 + $0x9a] sm:$0xff] }
 0x7e2   : > { %v4552_v39 = vpop.permute.xlu0 %4551 }
 0x7e3   : > { %4630 = vst.msk [vmem:[#allocation5 + $0x88] sm:$0xff] %vm12583_vm14, %v4552_v39  ;;  %5312 = vrot.lane.b32.xlu1 %v10884_v47, %s6280_s17  ;;  %vm12599_vm14 = vmmov %vm12597_vm7 }
 0x7e5   : > { %v4714_v52 = vpop.permute.xlu1 %4713 }
 0x7e6   : > { %4955 = vrot.lane.b32.xlu2 %v10720_v45, %s6278_s15  ;;  %4807 = vst.msk [vmem:[#allocation5 + $0x10] sm:$0xff] %vm12584_vm9, %v4714_v52  ;;  %vm12600_vm9 = vcmask 458112  }
 0x7e8   : > { %4765 = vrot.lane.b32.xlu0 %v10667_v20, %s6277_s14  ;;  %v10973_v6 = vpop.permute.xlu2 %4963 }
 0x7ea   : > { %v4558_v19 = vpop.permute.xlu0 %4557 }
 0x7eb   : > { %4633 = vst.msk [vmem:[#allocation5 + $0xa0] sm:$0xff] %vm12585_vm10, %v4558_v19  ;;  %5504 = vrot.lane.b32.xlu1 %v10688_v34, %s6281_s18  ;;  %vm12601_vm10 = vmmov %vm12596_vm0 }
 0x7ed   : > { %v4720_v51 = vpop.permute.xlu1 %4719 }
 0x7ee   : > { %5148 = vrot.lane.b32.xlu2 %v10601_v17, %s6279_s16  ;;  %4810 = vst.msk [vmem:[#allocation5 + $0x28] sm:$0xff] %vm12586_vm5, %v4720_v51  ;;  %vm12602_vm5 = vmmov %vm12597_vm7  ;;  %v11122_v51 = vld [vmem:[#allocation4 + $0x81] sm:$0xff] }
 0x7f0   : > { %4957 = vrot.lane.b32.xlu0 %v10715_v38, %s6278_s15  ;;  %v4770_v45 = vpop.permute.xlu2 %4769 }
 0x7f1   : > { %4835 = vst.msk [vmem:[#allocation5 + $0xf0] sm:$0xff] %vm12587_vm15, %v4770_v45  ;;  %vm12603_vm15 = vmmov %vm12600_vm9 }
 0x7f2   : > { %v4564_v47 = vpop.permute.xlu0 %4563 }
 0x7f3   : > { %4636 = vst.msk [vmem:[#allocation5 + $0xb8] sm:$0xff] %vm12588_vm12, %v4564_v47  ;;  %4761 = vrot.lane.b32.xlu1 %v10984_v9, %s6277_s14  ;;  %vm12604_vm12 = vmmov %vm12600_vm9 }
 0x7f5   : > { %v4726_v34 = vpop.permute.xlu1 %4725 }
 0x7f6   : > { %5340 = vrot.lane.b32.xlu2 %v10567_v61, %s6280_s17  ;;  %4813 = vst.msk [vmem:[#allocation5 + $0x40] sm:$0xff] %vm12589_vm1, %v4726_v34  ;;  %vm12605_vm1 = vcmask 523712   ;;  %v5437_v34 = vld [vmem:[#allocation4 + $0x142] sm:$0xff] }
 0x7f8   : > { %5150 = vrot.lane.b32.xlu0 %v10830_v48, %s6279_s16  ;;  %v4740_v17 = vpop.permute.xlu2 %4739  ;;  %v11007_v48 = vld [vmem:[#allocation4 + $0x99] sm:$0xff] }
 0x7f9   : > { %4820 = vst.msk [vmem:[#allocation5 + $0x78] sm:$0xff] %vm12590_vm4, %v4740_v17  ;;  %vm12606_vm4 = vmmov %vm12605_vm1 }
 0x7fa   : > { %v4570_v5 = vpop.permute.xlu0 %4569 }
 0x7fb   : > { %4639 = vst.msk [vmem:[#allocation5 + $0xd0] sm:$0xff] %vm12591_vm8, %v4570_v5  ;;  %4953 = vrot.lane.b32.xlu1 %v10764_v30, %s6278_s15  ;;  %vm12607_vm8 = vcmask 589312  }
 0x7fd   : > { %v5157_v40 = vpop.permute.xlu1 %5156 }
 0x7fe   : > { %5532 = vrot.lane.b32.xlu2 %v10775_v2, %s6281_s18 }
 0x800   : > { %5342 = vrot.lane.b32.xlu0 %v10875_v41, %s6280_s17  ;;  %v11002_v61 = vpop.permute.xlu2 %5346 }
 0x802   : > { %v4576_v1 = vpop.permute.xlu0 %4575 }
 0x803   : > { %4642 = vst.msk [vmem:[#allocation5 + $0xe8] sm:$0xff] %vm12592_vm13, %v4576_v1  ;;  %5146 = vrot.lane.b32.xlu1 %v10653_v54, %s6279_s16  ;;  %v4657_v54 = vld [vmem:[#allocation4 + $0xa9] sm:$0xff]  ;;  %vm12608_vm13 = vmmov %vm12605_vm1 }
 0x805   : > { %v5541_v12 = vpop.permute.xlu1 %5540 }
 0x806   : > { %4731 = vrot.lane.b32.xlu2 %v11007_v48, %s6277_s14 }
 0x808   : > { %5534 = vrot.lane.b32.xlu0 %v10920_v16, %s6281_s18  ;;  %v5539_v2 = vpop.permute.xlu2 %5538 }
 0x80a   : > { %v4710_v57 = vpop.permute.xlu0 %4709 }
 0x80b   : > { %4805 = vst.msk [vmem:[#allocation5] sm:$0xff] %vm12593_vm6, %v4710_v57  ;;  %5338 = vrot.lane.b32.xlu1 %v10667_v20, %s6280_s17  ;;  %vm12609_vm6 = vmmov %vm12607_vm8  ;;  %v5039_v57 = vld [vmem:[#allocation4 + $0x98] sm:$0xff] }
 0x80d   : > { %v5155_v41 = vpop.permute.xlu1 %5154 }
 0x80e   : > { %4923 = vrot.lane.b32.xlu2 %v10710_v33, %s6278_s15 }
 0x810   : > { %4733 = vrot.lane.b32.xlu0 %v4657_v54, %s6277_s14  ;;  %v4738_v59 = vpop.permute.xlu2 %4737 }
 0x811   : > { %4819 = vst.msk [vmem:[#allocation5 + $0x70] sm:$0xff] %vm12594_vm3, %v4738_v59  ;;  %vm12610_vm3 = vmmov %vm12602_vm5  ;;  %v11144_v59 = vld [vmem:[#allocation4 + $0x111] sm:$0xff] }
 0x812   : > { %v4716_v58 = vpop.permute.xlu0 %4715 }
 0x813   : > { %4808 = vst.msk [vmem:[#allocation5 + $0x18] sm:$0xff] %vm12595_vm2, %v4716_v58  ;;  %5530 = vrot.lane.b32.xlu1 %v10715_v38, %s6281_s18  ;;  %v5233_v38 = vld [vmem:[#allocation4 + $0xb1] sm:$0xff]  ;;  %vm12611_vm2 = vmmov %vm12600_vm9 }
 0x815   : > { %v4768_v35 = vpop.permute.xlu1 %4767 }
 0x816   : > { %5116 = vrot.lane.b32.xlu2 %v10627_v3, %s6279_s16  ;;  %4834 = vst.msk [vmem:[#allocation5 + $0xe8] sm:$0xff] %vm12596_vm0, %v4768_v35  ;;  %vm12612_vm0 = vcmask 588800  }
 0x818   : > { %4925 = vrot.lane.b32.xlu0 %v10677_v18, %s6278_s15  ;;  %v4930_v20 = vpop.permute.xlu2 %4929 }
 0x819   : > { %5011 = vst.msk [vmem:[#allocation5 + $0x70] sm:$0xff] %vm12597_vm7, %v4930_v20  ;;  %vm12613_vm7 = vmmov %vm12605_vm1 }
 0x81a   : > { %v4722_v33 = vpop.permute.xlu0 %4721 }
 0x81b   : > { %4811 = vst.msk [vmem:[#allocation5 + $0x30] sm:$0xff] %vm12598_vm11, %v4722_v33  ;;  %4729 = vrot.lane.b32.xlu1 %v11029_v46, %s6277_s14  ;;  %vm12614_vm11 = vmmov %vm12609_vm6  ;;  %v11155_v33 = vld [vmem:[#allocation4 + $0x112] sm:$0xff] }
 0x81d   : > { %v4960_v49 = vpop.permute.xlu1 %4959 }
 0x81e   : > { %5308 = vrot.lane.b32.xlu2 %v5233_v38, %s6280_s17  ;;  %5026 = vst.msk [vmem:[#allocation5 + $0xe8] sm:$0xff] %vm12599_vm14, %v4960_v49  ;;  %vm12615_vm14 = vmmov %vm12609_vm6  ;;  %v5436_v38 = vld [vmem:[#allocation4 + $0x13a] sm:$0xff] }
 0x820   : > { %5118 = vrot.lane.b32.xlu0 %v10462_v27, %s6279_s16  ;;  %v5123_v3 = vpop.permute.xlu2 %5122 }
 0x821   : > { %5204 = vst.msk [vmem:[#allocation5 + $0x70] sm:$0xff] %vm12600_vm9, %v5123_v3  ;;  %vm12616_vm9 = vmmov %vm12601_vm10  ;;  %v4845_v3 = vld [vmem:[#allocation4 + $0x7a] sm:$0xff] }
 0x822   : > { %v4772_v18 = vpop.permute.xlu0 %4771 }
 0x823   : > { %4836 = vst.msk [vmem:[#allocation5 + $0xf8] sm:$0xff] %vm12601_vm10, %v4772_v18  ;;  %4921 = vrot.lane.b32.xlu1 %v11039_v32, %s6278_s15  ;;  %vm12617_vm10 = vmmov %vm12610_vm3 }
 0x824   : > { %5028 = vst.msk [vmem:[#allocation5 + $0xf8] sm:$0xff] %vm12602_vm5, %v10973_v6  ;;  %vm12618_vm5 = vmmov %vm12612_vm0  ;;  %v11113_v6 = vld [vmem:[#allocation4 + $0x121] sm:$0xff] }
 0x825   : > { %5221 = vst.msk [vmem:[#allocation5 + $0xf8] sm:$0xff] %vm12603_vm15, %v5157_v40  ;;  %v5153_v4 = vpop.permute.xlu1 %5152  ;;  %vm12619_vm15 = vmmov %vm12616_vm9  ;;  %v4846_v40 = vld [vmem:[#allocation4 + $0x82] sm:$0xff] }
 0x826   : > { %5500 = vrot.lane.b32.xlu2 %v5425_v24, %s6281_s18  ;;  %5219 = vst.msk [vmem:[#allocation5 + $0xe8] sm:$0xff] %vm12604_vm12, %v5153_v4  ;;  %vm12620_vm12 = vmmov %vm12610_vm3  ;;  %v5051_v24 = vld [vmem:[#allocation4 + $0x128] sm:$0xff] }
 0x828   : > { %5310 = vrot.lane.b32.xlu0 %v10908_v15, %s6280_s17  ;;  %v5315_v27 = vpop.permute.xlu2 %5314 }
 0x829   : > { %5396 = vst.msk [vmem:[#allocation5 + $0x70] sm:$0xff] %vm12605_vm1, %v5315_v27  ;;  %vm12621_vm1 = vmmov %vm12612_vm0 }
 0x82a   : > { %v5349_v25 = vpop.permute.xlu0 %5348 }
 0x82b   : > { %5413 = vst.msk [vmem:[#allocation5 + $0xf8] sm:$0xff] %vm12606_vm4, %v5349_v25  ;;  %5114 = vrot.lane.b32.xlu1 %v10500_v53, %s6279_s16  ;;  %vm12622_vm4 = vmmov %vm12611_vm2  ;;  %v5038_v25 = vld [vmem:[#allocation4 + $0x90] sm:$0xff] }
 0x82c   : > { %5605 = vst.msk [vmem:[#allocation5 + $0xf8] sm:$0xff] %vm12607_vm8, %v5541_v12  ;;  %vm12623_vm8 = vmmov %vm12610_vm3  ;;  %v5052_v12 = vld [vmem:[#allocation4 + $0x138] sm:$0xff] }
 0x82d   : > { %v5345_v29 = vpop.permute.xlu1 %5344 }
 0x82e   : > { %4757 = vrot.lane.b32.xlu2 %v11056_v23, %s6277_s14  ;;  %5411 = vst.msk [vmem:[#allocation5 + $0xe8] sm:$0xff] %vm12608_vm13, %v5345_v29  ;;  %vm12624_vm13 = vmmov %vm12611_vm2 }
 0x830   : > { %5502 = vrot.lane.b32.xlu0 %v10724_v10, %s6281_s18  ;;  %v5507_v15 = vpop.permute.xlu2 %5506  ;;  %v4670_v10 = vld [vmem:[#allocation4 + $0x141] sm:$0xff] }
 0x831   : > { %5588 = vst.msk [vmem:[#allocation5 + $0x70] sm:$0xff] %vm12609_vm6, %v5507_v15  ;;  %vm12625_vm6 = vmmov %vm12613_vm7  ;;  %v11172_v15 = vld [vmem:[#allocation4 + $0x109] sm:$0xff] }
 0x832   : > { %v4962_v16 = vpop.permute.xlu0 %4961 }
 0x833   : > { %5027 = vst.msk [vmem:[#allocation5 + $0xf0] sm:$0xff] %vm12610_vm3, %v4962_v16  ;;  %5306 = vrot.lane.b32.xlu1 %v4657_v54, %s6280_s17  ;;  %v5638_v53 = vld [vmem:[#allocation5 + $0xf8] sm:$0xff]  ;;  %vm12626_vm3 = vmmov %vm12611_vm2 }
 0x834   : > { %5220 = vst.msk [vmem:[#allocation5 + $0xf0] sm:$0xff] %vm12611_vm2, %v5155_v41  ;;  %6052 = vmatpush.xpose.msk.msra.mxu2 %vm12612_vm0, %v5638_v53  ;;  %vm12627_vm2 = vmmov %vm12625_vm6 }
 0x835   : > { %5412 = vst.msk [vmem:[#allocation5 + $0xf0] sm:$0xff] %vm12613_vm7, %v11002_v61  ;;  %v5537_v13 = vpop.permute.xlu1 %5536  ;;  %vm12628_vm0 = vmmov %vm12614_vm11 }
 0x836   : > { %5604 = vst.msk [vmem:[#allocation5 + $0xf0] sm:$0xff] %vm12614_vm11, %v5539_v2  ;;  %4949 = vrot.lane.b32.xlu2 %v10706_v8, %s6278_s15  ;;  %vm12629_vm7 = vmmov %vm12627_vm2 }
 0x837   : > { %5603 = vst.msk [vmem:[#allocation5 + $0xe8] sm:$0xff] %vm12615_vm14, %v5537_v13  ;;  %vm12630_vm11 = vmmov %vm12628_vm0 }
 0x838   : > { %4759 = vrot.lane.b32.xlu0 %v4670_v10, %s6277_s14  ;;  %v4764_v0 = vpop.permute.xlu2 %4763  ;;  %vm12631_vm14 = vmmov %vm12616_vm9  ;;  %v5621_v19 = vld [vmem:[#allocation5 + $0x70] sm:$0xff] }
 0x839   : > { %4832 = vst.msk [vmem:[#allocation5 + $0xd8] sm:$0xff] %vm12616_vm9, %v4764_v0  ;;  %vm12632_vm9 = vmmov %vm12621_vm1  ;;  %v11184_v0 = vld [vmem:[#allocation4 + $0x10a] sm:$0xff] }
 0x83a   : > { %v4932_v63 = vpop.permute.xlu0 %4931 }
 0x83b   : > { %5012 = vst.msk [vmem:[#allocation5 + $0x78] sm:$0xff] %vm12617_vm10, %v4932_v63  ;;  %5498 = vrot.lane.b32.xlu1 %v5424_v62, %s6281_s18  ;;  %vm12633_vm10 = vmmov %vm12628_vm0  ;;  %v5435_v63 = vld [vmem:[#allocation4 + $0x12a] sm:$0xff] }
 0x83d   : > { %v5637_v26 = vld [vmem:[#allocation5 + $0xf0] sm:$0xff]  ;;  %v4736_v50 = vpop.permute.xlu1 %4735 }
 0x83e   : > { %6053 = vmatpush.xpose.msk.msra.mxu2 %vm12618_vm5, %v5637_v26  ;;  %5142 = vrot.lane.b32.xlu2 %v10589_v31, %s6279_s16  ;;  %4818 = vst.msk [vmem:[#allocation5 + $0x68] sm:$0xff] %vm12619_vm15, %v4736_v50  ;;  %v5636_v8 = vld [vmem:[#allocation5 + $0xe8] sm:$0xff]  ;;  %vm12634_vm5 = vmmov %vm12621_vm1  ;;  %v4844_v26 = vld [vmem:[#allocation4 + $0x6a] sm:$0xff] }
 0x83f   : > { %vm12635_vm15 = vmmov %vm12631_vm14 }
 0x840   : > { %4951 = vrot.lane.b32.xlu0 %v10702_v22, %s6278_s15  ;;  %v4956_v37 = vpop.permute.xlu2 %4955 }
 0x841   : > { %5024 = vst.msk [vmem:[#allocation5 + $0xd8] sm:$0xff] %vm12620_vm12, %v4956_v37  ;;  %vm12636_vm12 = vmmov %vm12623_vm8 }
 0x842   : > { %v5125_v28 = vpop.permute.xlu0 %5124  ;;  %6054 = vmatpush.xpose.msk.msra.mxu2 %vm12621_vm1, %v5636_v8  ;;  %vm12637_vm1 = vmmov %vm12631_vm14  ;;  %v5050_v8 = vld [vmem:[#allocation4 + $0x120] sm:$0xff] }
 0x843   : > { %5205 = vst.msk [vmem:[#allocation5 + $0x78] sm:$0xff] %vm12622_vm4, %v5125_v28  ;;  %4755 = vrot.lane.b32.xlu1 %v11086_v56, %s6277_s14  ;;  %vm12638_vm4 = vmmov %vm12634_vm5  ;;  %v5037_v28 = vld [vmem:[#allocation4 + $0x80] sm:$0xff] }
 0x845   : > { %v4928_v31 = vpop.permute.xlu1 %4927 }
 0x846   : > { %5334 = vrot.lane.b32.xlu2 %v10984_v9, %s6280_s17  ;;  %5010 = vst.msk [vmem:[#allocation5 + $0x68] sm:$0xff] %vm12623_vm8, %v4928_v31  ;;  %v11127_v9 = vld [vmem:[#allocation4 + $0x122] sm:$0xff] }
 0x848   : > { %5144 = vrot.lane.b32.xlu0 %v10623_v36, %s6279_s16  ;;  %v5149_v22 = vpop.permute.xlu2 %5148 }
 0x849   : > { %5217 = vst.msk [vmem:[#allocation5 + $0xd8] sm:$0xff] %vm12624_vm13, %v5149_v22  ;;  %vm12639_vm13 = vmmov %vm12626_vm3  ;;  %v11199_v22 = vld [vmem:[#allocation4 + $0xf9] sm:$0xff] }
 0x84a   : > { %v5317_v42 = vpop.permute.xlu0 %5316 }
 0x84b   : > { %5397 = vst.msk [vmem:[#allocation5 + $0x78] sm:$0xff] %vm12625_vm6, %v5317_v42  ;;  %4947 = vrot.lane.b32.xlu1 %v10753_v44, %s6278_s15  ;;  %v5439_v44 = vld [vmem:[#allocation4 + $0x15a] sm:$0xff]  ;;  %vm12640_vm6 = vmmov %vm12623_vm8 }
 0x84d   : > { %v5121_v14 = vpop.permute.xlu1 %5120 }
 0x84e   : > { %5526 = vrot.lane.b32.xlu2 %v10764_v30, %s6281_s18  ;;  %5203 = vst.msk [vmem:[#allocation5 + $0x68] sm:$0xff] %vm12626_vm3, %v5121_v14 }
 0x850   : > { %5336 = vrot.lane.b32.xlu0 %v10957_v7, %s6280_s17  ;;  %v5341_v55 = vpop.permute.xlu2 %5340 }
 0x851   : > { %5409 = vst.msk [vmem:[#allocation5 + $0xd8] sm:$0xff] %vm12627_vm2, %v5341_v55 }
 0x852   : > { %v5509_v36 = vpop.permute.xlu0 %5508 }
 0x853   : > { %5589 = vst.msk [vmem:[#allocation5 + $0x78] sm:$0xff] %vm12628_vm0, %v5509_v36  ;;  %5496 = vrot.lane.b32.xlu1 %v5423_v21, %s6281_s18  ;;  %vm12641_vm0 = vmmov %vm12626_vm3  ;;  %v11210_v21 = vld [vmem:[#allocation4 + $0xfa] sm:$0xff] }
 0x855   : > { %v5313_v39 = vpop.permute.xlu1 %5312 }
 0x856   : > { %5140 = vrot.lane.b32.xlu2 %v10649_v60, %s6279_s16  ;;  %5395 = vst.msk [vmem:[#allocation5 + $0x68] sm:$0xff] %vm12629_vm7, %v5313_v39  ;;  %vm12642_vm7 = vmmov %vm12627_vm2 }
 0x858   : > { %5528 = vrot.lane.b32.xlu0 %v5439_v44, %s6281_s18  ;;  %v5533_v30 = vpop.permute.xlu2 %5532 }
 0x859   : > { %5601 = vst.msk [vmem:[#allocation5 + $0xd8] sm:$0xff] %vm12630_vm11, %v5533_v30  ;;  %vm12643_vm11 = vmmov %vm12633_vm10  ;;  %v4843_v30 = vld [vmem:[#allocation4 + $0x62] sm:$0xff] }
 0x85a   : > { %v4766_v7 = vpop.permute.xlu0 %4765  ;;  %v5622_v52 = vld [vmem:[#allocation5 + $0x78] sm:$0xff] }
 0x85b   : > { %4833 = vst.msk [vmem:[#allocation5 + $0xe0] sm:$0xff] %vm12631_vm14, %v4766_v7  ;;  %6035 = vmatpush.xpose.msk.msrb.mxu1 %vm12632_vm9, %v5622_v52  ;;  %4753 = vrot.lane.b32.xlu1 %v11113_v6, %s6277_s14  ;;  %vm12644_vm14 = vmmov %vm12627_vm2 }
 0x85c   : > { %vm12645_vm9 = vmmov %vm12633_vm10 }
 0x85d   : > { %v5505_v60 = vpop.permute.xlu1 %5504 }
 0x85e   : > { %5332 = vrot.lane.b32.xlu2 %v4670_v10, %s6280_s17  ;;  %5587 = vst.msk [vmem:[#allocation5 + $0x68] sm:$0xff] %vm12633_vm10, %v5505_v60  ;;  %vm12646_vm10 = vmmov %vm12637_vm1 }
 0x85f   : > { %6036 = vmatpush.xpose.msk.msrb.mxu1 %vm12634_vm5, %v5621_v19  ;;  %vm12647_vm5 = vmmov %vm12638_vm4 }
 0x860   : > { %4727 = vrot.lane.b32.xlu0 %v11122_v51, %s6277_s14  ;;  %v4732_v45 = vpop.permute.xlu2 %4731  ;;  %v5634_v27 = vld [vmem:[#allocation5 + $0xd8] sm:$0xff] }
 0x861   : > { %4816 = vst.msk [vmem:[#allocation5 + $0x58] sm:$0xff] %vm12635_vm15, %v4732_v45  ;;  %vm12648_vm15 = vmmov %vm12645_vm9 }
 0x862   : > { %v4958_v47 = vpop.permute.xlu0 %4957 }
 0x863   : > { %5025 = vst.msk [vmem:[#allocation5 + $0xe0] sm:$0xff] %vm12636_vm12, %v4958_v47  ;;  %4945 = vrot.lane.b32.xlu1 %v11127_v9, %s6278_s15  ;;  %vm12649_vm12 = vmmov %vm12638_vm4 }
 0x865   : > { %v4762_v17 = vpop.permute.xlu1 %4761  ;;  %v5620_v5 = vld [vmem:[#allocation5 + $0x68] sm:$0xff] }
 0x866   : > { %5524 = vrot.lane.b32.xlu2 %v5437_v34, %s6281_s18  ;;  %4831 = vst.msk [vmem:[#allocation5 + $0xd0] sm:$0xff] %vm12637_vm1, %v4762_v17  ;;  %6037 = vmatpush.xpose.msk.msrb.mxu1 %vm12638_vm4, %v5620_v5  ;;  %vm12650_vm4 = vmmov %vm12640_vm6 }
 0x868   : > { %4919 = vrot.lane.b32.xlu0 %v4846_v40, %s6278_s15  ;;  %v4924_v61 = vpop.permute.xlu2 %4923 }
 0x869   : > { %5008 = vst.msk [vmem:[#allocation5 + $0x58] sm:$0xff] %vm12623_vm8, %v4924_v61  ;;  %vm12651_vm8 = vmmov %vm12637_vm1 }
 0x86a   : > { %v5151_v1 = vpop.permute.xlu0 %5150 }
 0x86b   : > { %5218 = vst.msk [vmem:[#allocation5 + $0xe0] sm:$0xff] %vm12639_vm13, %v5151_v1  ;;  %5494 = vrot.lane.b32.xlu1 %v11039_v32, %s6281_s18  ;;  %vm12652_vm13 = vmmov %vm12647_vm5  ;;  %v4842_v1 = vld [vmem:[#allocation4 + $0x52] sm:$0xff] }
 0x86d   : > { %v4954_v2 = vpop.permute.xlu1 %4953 }
 0x86e   : > { %5138 = vrot.lane.b32.xlu2 %v5052_v12, %s6279_s16  ;;  %5023 = vst.msk [vmem:[#allocation5 + $0xd0] sm:$0xff] %vm12640_vm6, %v4954_v2  ;;  %vm12653_vm6 = vmmov %vm12650_vm4  ;;  %v5048_v2 = vld [vmem:[#allocation4 + $0x108] sm:$0xff] }
 0x870   : > { %5112 = vrot.lane.b32.xlu0 %v5039_v57, %s6279_s16  ;;  %v5117_v41 = vpop.permute.xlu2 %5116 }
 0x871   : > { %5201 = vst.msk [vmem:[#allocation5 + $0x58] sm:$0xff] %vm12626_vm3, %v5117_v41  ;;  %vm12654_vm3 = vmmov %vm12641_vm0  ;;  %v5035_v41 = vld [vmem:[#allocation4 + $0x68] sm:$0xff] }
 0x872   : > { %v5343_v54 = vpop.permute.xlu0 %5342 }
 0x873   : > { %5410 = vst.msk [vmem:[#allocation5 + $0xe0] sm:$0xff] %vm12627_vm2, %v5343_v54  ;;  %4751 = vrot.lane.b32.xlu1 %v11144_v59, %s6277_s14  ;;  %vm12655_vm2 = vmmov %vm12650_vm4 }
 0x875   : > { %v5147_v58 = vpop.permute.xlu1 %5146 }
 0x876   : > { %5330 = vrot.lane.b32.xlu2 %v11056_v23, %s6280_s17  ;;  %5216 = vst.msk [vmem:[#allocation5 + $0xd0] sm:$0xff] %vm12641_vm0, %v5147_v58 }
 0x878   : > { %5304 = vrot.lane.b32.xlu0 %v11007_v48, %s6280_s17  ;;  %v5309_v35 = vpop.permute.xlu2 %5308 }
 0x879   : > { %5393 = vst.msk [vmem:[#allocation5 + $0x58] sm:$0xff] %vm12642_vm7, %v5309_v35 }
 0x87a   : > { %v5535_v20 = vpop.permute.xlu0 %5534 }
 0x87b   : > { %5602 = vst.msk [vmem:[#allocation5 + $0xe0] sm:$0xff] %vm12643_vm11, %v5535_v20  ;;  %4943 = vrot.lane.b32.xlu1 %v11155_v33, %s6278_s15  ;;  %vm12656_vm11 = vmmov %vm12641_vm0 }
 0x87d   : > { %v5339_v49 = vpop.permute.xlu1 %5338 }
 0x87e   : > { %5522 = vrot.lane.b32.xlu2 %v5436_v38, %s6281_s18  ;;  %5408 = vst.msk [vmem:[#allocation5 + $0xd0] sm:$0xff] %vm12644_vm14, %v5339_v49  ;;  %vm12657_vm14 = vmmov %vm12642_vm7 }
 0x880   : > { %4917 = vrot.lane.b32.xlu0 %v4845_v3, %s6278_s15  ;;  %v5501_v48 = vpop.permute.xlu2 %5500 }
 0x881   : > { %5585 = vst.msk [vmem:[#allocation5 + $0x58] sm:$0xff] %vm12645_vm9, %v5501_v48 }
 0x882   : > { %v4734_v18 = vpop.permute.xlu0 %4733  ;;  %v5635_v32 = vld [vmem:[#allocation5 + $0xe0] sm:$0xff] }
 0x883   : > { %4817 = vst.msk [vmem:[#allocation5 + $0x60] sm:$0xff] %vm12646_vm10, %v4734_v18  ;;  %6055 = vmatpush.xpose.msk.msra.mxu2 %vm12647_vm5, %v5635_v32  ;;  %5492 = vrot.lane.b32.xlu1 %v4846_v40, %s6281_s18  ;;  %vm12658_vm10 = vmmov %vm12642_vm7  ;;  %v11240_v40 = vld [vmem:[#allocation4 + $0xf2] sm:$0xff]  ;;  %v4841_v18 = vld [vmem:[#allocation4 + $0x4a] sm:$0xff] }
 0x884   : > { %vm12659_vm5 = vmmov %vm12645_vm9 }
 0x885   : > { %v5531_v4 = vpop.permute.xlu1 %5530 }
 0x886   : > { %5136 = vrot.lane.b32.xlu2 %v5051_v24, %s6279_s16  ;;  %5600 = vst.msk [vmem:[#allocation5 + $0xd0] sm:$0xff] %vm12648_vm15, %v5531_v4  ;;  %vm12660_vm15 = vmmov %vm12637_vm1 }
 0x887   : > { %6056 = vmatpush.xpose.msk.msra.mxu2 %vm12649_vm12, %v5634_v27  ;;  %v5047_v27 = vld [vmem:[#allocation4 + $0xf8] sm:$0xff] }
 0x888   : > { %5110 = vrot.lane.b32.xlu0 %v5038_v25, %s6279_s16  ;;  %v4758_v23 = vpop.permute.xlu2 %4757  ;;  %v5618_v44 = vld [vmem:[#allocation5 + $0x58] sm:$0xff] }
 0x889   : > { %4829 = vst.msk [vmem:[#allocation5 + $0xc0] sm:$0xff] %vm12637_vm1, %v4758_v23  ;;  %vm12661_vm1 = vmmov %vm12659_vm5  ;;  %v5034_v23 = vld [vmem:[#allocation4 + $0x60] sm:$0xff] }
 0x88a   : > { %v4926_v29 = vpop.permute.xlu0 %4925 }
 0x88b   : > { %5009 = vst.msk [vmem:[#allocation5 + $0x60] sm:$0xff] %vm12650_vm4, %v4926_v29  ;;  %4749 = vrot.lane.b32.xlu1 %v11172_v15, %s6277_s14  ;;  %vm12662_vm4 = vmmov %vm12649_vm12 }
 0x88d   : > { %v4730_v16 = vpop.permute.xlu1 %4729  ;;  %v5633_v53 = vld [vmem:[#allocation5 + $0xd0] sm:$0xff] }
 0x88e   : > { %5328 = vrot.lane.b32.xlu2 %v11086_v56, %s6280_s17  ;;  %4815 = vst.msk [vmem:[#allocation5 + $0x50] sm:$0xff] %vm12651_vm8, %v4730_v16  ;;  %6057 = vmatpush.xpose.msk.msra.mxu2 %vm12652_vm13, %v5633_v53  ;;  %vm12663_vm8 = vmmov %vm12655_vm2  ;;  %v4661_v16 = vld [vmem:[#allocation4 + $0xd9] sm:$0xff] }
 0x88f   : > { %vm12664_vm13 = vmmov %vm12660_vm15 }
 0x890   : > { %5302 = vrot.lane.b32.xlu0 %v11029_v46, %s6280_s17  ;;  %v4950_v13 = vpop.permute.xlu2 %4949 }
 0x891   : > { %5021 = vst.msk [vmem:[#allocation5 + $0xc0] sm:$0xff] %vm12653_vm6, %v4950_v13  ;;  %vm12665_vm6 = vmmov %vm12662_vm4  ;;  %v5226_v13 = vld [vmem:[#allocation4 + $0x61] sm:$0xff] }
 0x892   : > { %v5119_v10 = vpop.permute.xlu0 %5118 }
 0x893   : > { %5202 = vst.msk [vmem:[#allocation5 + $0x60] sm:$0xff] %vm12654_vm3, %v5119_v10  ;;  %4941 = vrot.lane.b32.xlu1 %v11184_v0, %s6278_s15  ;;  %vm12666_vm3 = vmmov %vm12641_vm0 }
 0x895   : > { %v4922_v62 = vpop.permute.xlu1 %4921 }
 0x896   : > { %5520 = vrot.lane.b32.xlu2 %v5435_v63, %s6281_s18  ;;  %5007 = vst.msk [vmem:[#allocation5 + $0x50] sm:$0xff] %vm12655_vm2, %v4922_v62  ;;  %v4853_v63 = vld [vmem:[#allocation4 + $0xda] sm:$0xff] }
 0x898   : > { %4915 = vrot.lane.b32.xlu0 %v4844_v26, %s6278_s15  ;;  %v5143_v46 = vpop.permute.xlu2 %5142 }
 0x899   : > { %5214 = vst.msk [vmem:[#allocation5 + $0xc0] sm:$0xff] %vm12641_vm0, %v5143_v46  ;;  %v4840_v46 = vld [vmem:[#allocation4 + $0x3a] sm:$0xff] }
 0x89a   : > { %v5311_v50 = vpop.permute.xlu0 %5310 }
 0x89b   : > { %5394 = vst.msk [vmem:[#allocation5 + $0x60] sm:$0xff] %vm12642_vm7, %v5311_v50  ;;  %5490 = vrot.lane.b32.xlu1 %v4845_v3, %s6281_s18  ;;  %v4854_v3 = vld [vmem:[#allocation4 + $0xe2] sm:$0xff] }
 0x89d   : > { %v5115_v37 = vpop.permute.xlu1 %5114 }
 0x89e   : > { %5134 = vrot.lane.b32.xlu2 %v5050_v8, %s6279_s16  ;;  %5200 = vst.msk [vmem:[#allocation5 + $0x50] sm:$0xff] %vm12656_vm11, %v5115_v37  ;;  %vm12667_vm11 = vmmov %vm12661_vm1 }
 0x8a0   : > { %5108 = vrot.lane.b32.xlu0 %v5037_v28, %s6279_s16  ;;  %v5335_v56 = vpop.permute.xlu2 %5334  ;;  %v5046_v28 = vld [vmem:[#allocation4 + $0xf0] sm:$0xff] }
 0x8a1   : > { %5406 = vst.msk [vmem:[#allocation5 + $0xc0] sm:$0xff] %vm12657_vm14, %v5335_v56  ;;  %vm12668_vm14 = vmmov %vm12642_vm7 }
 0x8a2   : > { %v5503_v31 = vpop.permute.xlu0 %5502 }
 0x8a3   : > { %5586 = vst.msk [vmem:[#allocation5 + $0x60] sm:$0xff] %vm12645_vm9, %v5503_v31  ;;  %4747 = vrot.lane.b32.xlu1 %v11199_v22, %s6277_s14  ;;  %vm12669_vm9 = vmmov %vm12661_vm1  ;;  %v5033_v31 = vld [vmem:[#allocation4 + $0x50] sm:$0xff] }
 0x8a5   : > { %v5307_v42 = vpop.permute.xlu1 %5306 }
 0x8a6   : > { %5326 = vrot.lane.b32.xlu2 %v11113_v6, %s6280_s17  ;;  %5392 = vst.msk [vmem:[#allocation5 + $0x50] sm:$0xff] %vm12658_vm10, %v5307_v42  ;;  %v5049_v6 = vld [vmem:[#allocation4 + $0x110] sm:$0xff]  ;;  %vm12670_vm10 = vmmov %vm12664_vm13 }
 0x8a8   : > { %5300 = vrot.lane.b32.xlu0 %v11122_v51, %s6280_s17  ;;  %v5527_v14 = vpop.permute.xlu2 %5526  ;;  %v5036_v51 = vld [vmem:[#allocation4 + $0x78] sm:$0xff] }
 0x8a9   : > { %5598 = vst.msk [vmem:[#allocation5 + $0xc0] sm:$0xff] %vm12659_vm5, %v5527_v14  ;;  %vm12671_vm5 = vmmov %vm12670_vm10  ;;  %v5031_v14 = vld [vmem:[#allocation4 + $0x38] sm:$0xff] }
 0x8aa   : > { %v4760_v55 = vpop.permute.xlu0 %4759  ;;  %v5619_v36 = vld [vmem:[#allocation5 + $0x60] sm:$0xff] }
 0x8ab   : > { %4830 = vst.msk [vmem:[#allocation5 + $0xc8] sm:$0xff] %vm12660_vm15, %v4760_v55  ;;  %6038 = vmatpush.xpose.msk.msrb.mxu1 %vm12649_vm12, %v5619_v36  ;;  %4939 = vrot.lane.b32.xlu1 %v11210_v21, %s6278_s15  ;;  %vm12672_vm15 = vmmov %vm12662_vm4  ;;  %v5225_v36 = vld [vmem:[#allocation4 + $0x51] sm:$0xff] }
 0x8ac   : > { %vm12673_vm12 = vmmov %vm12655_vm2 }
 0x8ad   : > { %v5499_v39 = vpop.permute.xlu1 %5498 }
 0x8ae   : > { %5518 = vrot.lane.b32.xlu2 %v11127_v9, %s6281_s18  ;;  %5584 = vst.msk [vmem:[#allocation5 + $0x50] sm:$0xff] %vm12661_vm1, %v5499_v39  ;;  %v11227_v9 = vld [vmem:[#allocation4 + $0xf1] sm:$0xff]  ;;  %vm12674_vm1 = vmmov %vm12662_vm4 }
 0x8af   : > { %6039 = vmatpush.xpose.msk.msrb.mxu1 %vm12662_vm4, %v5618_v44  ;;  %vm12675_vm4 = vmmov %vm12641_vm0 }
 0x8b0   : > { %4913 = vrot.lane.b32.xlu0 %v4843_v30, %s6278_s15  ;;  %v5141_v7 = vpop.permute.xlu2 %5140  ;;  %v5631_v20 = vld [vmem:[#allocation5 + $0xc0] sm:$0xff] }
 0x8b2   : > { %v4952_v52 = vpop.permute.xlu0 %4951 }
 0x8b3   : > { %5022 = vst.msk [vmem:[#allocation5 + $0xc8] sm:$0xff] %vm12663_vm8, %v4952_v52  ;;  %5488 = vrot.lane.b32.xlu1 %v4844_v26, %s6281_s18  ;;  %vm12676_vm8 = vmmov %vm12642_vm7  ;;  %v4839_v52 = vld [vmem:[#allocation4 + $0x32] sm:$0xff] }
 0x8b5   : > { %v4756_v60 = vpop.permute.xlu1 %4755  ;;  %v5617_v19 = vld [vmem:[#allocation5 + $0x50] sm:$0xff] }
 0x8b6   : > { %5132 = vrot.lane.b32.xlu2 %v5049_v6, %s6279_s16  ;;  %4828 = vst.msk [vmem:[#allocation5 + $0xb8] sm:$0xff] %vm12664_vm13, %v4756_v60  ;;  %6040 = vmatpush.xpose.msk.msrb.mxu1 %vm12665_vm6, %v5617_v19  ;;  %vm12677_vm13 = vmmov %vm12669_vm9 }
 0x8b7   : > { %vm12678_vm6 = vmmov %vm12655_vm2 }
 0x8b8   : > { %5106 = vrot.lane.b32.xlu0 %v5036_v51, %s6279_s16  ;;  %v5333_v45 = vpop.permute.xlu2 %5332  ;;  %v5222_v51 = vld [vmem:[#allocation4 + $0x31] sm:$0xff] }
 0x8ba   : > { %v5145_v47 = vpop.permute.xlu0 %5144 }
 0x8bb   : > { %5215 = vst.msk [vmem:[#allocation5 + $0xc8] sm:$0xff] %vm12666_vm3, %v5145_v47  ;;  %4745 = vrot.lane.b32.xlu1 %v11227_v9, %s6277_s14  ;;  %vm12679_vm3 = vmmov %vm12674_vm1 }
 0x8bd   : > { %v4948_v34 = vpop.permute.xlu1 %4947 }
 0x8be   : > { %5324 = vrot.lane.b32.xlu2 %v11144_v59, %s6280_s17  ;;  %5020 = vst.msk [vmem:[#allocation5 + $0xb8] sm:$0xff] %vm12655_vm2, %v4948_v34  ;;  %vm12680_vm2 = vmmov %vm12674_vm1 }
 0x8bf   : > { %5213 = vst.msk [vmem:[#allocation5 + $0xb8] sm:$0xff] %vm12641_vm0, %v5141_v7 }
 0x8c0   : > { %5298 = vrot.lane.b32.xlu0 %v10852_v11, %s6280_s17  ;;  %5405 = vst.msk [vmem:[#allocation5 + $0xb8] sm:$0xff] %vm12642_vm7, %v5333_v45  ;;  %v5525_v17 = vpop.permute.xlu2 %5524  ;;  %vm12681_vm7 = vmmov %vm12671_vm5  ;;  %v5030_v45 = vld [vmem:[#allocation4 + $0x30] sm:$0xff] }
 0x8c1   : > { %5597 = vst.msk [vmem:[#allocation5 + $0xb8] sm:$0xff] %vm12667_vm11, %v5525_v17  ;;  %vm12682_vm11 = vmmov %vm12676_vm8 }
 0x8c2   : > { %v5337_v5 = vpop.permute.xlu0 %5336 }
 0x8c3   : > { %5407 = vst.msk [vmem:[#allocation5 + $0xc8] sm:$0xff] %vm12668_vm14, %v5337_v5  ;;  %4937 = vrot.lane.b32.xlu1 %v11240_v40, %s6278_s15  ;;  %vm12683_vm14 = vmmov %vm12669_vm9 }
 0x8c5   : > { %v5497_v61 = vpop.permute.xlu1 %5496 }
 0x8c6   : > { %5516 = vrot.lane.b32.xlu2 %v11155_v33, %s6281_s18  ;;  %v5227_v33 = vld [vmem:[#allocation4 + $0x69] sm:$0xff] }
 0x8c8   : > { %4911 = vrot.lane.b32.xlu0 %v4842_v1, %s6278_s15  ;;  %v5139_v11 = vpop.permute.xlu2 %5138  ;;  %v5630_v49 = vld [vmem:[#allocation5 + $0xb8] sm:$0xff] }
 0x8ca   : > { %v5529_v12 = vpop.permute.xlu0 %5528 }
 0x8cb   : > { %5599 = vst.msk [vmem:[#allocation5 + $0xc8] sm:$0xff] %vm12669_vm9, %v5529_v12  ;;  %5486 = vrot.lane.b32.xlu1 %v4843_v30, %s6281_s18  ;;  %vm12684_vm9 = vmmov %vm12678_vm6  ;;  %v5223_v30 = vld [vmem:[#allocation4 + $0x39] sm:$0xff] }
 0x8cd   : > { %v4754_v57 = vpop.permute.xlu1 %4753 }
 0x8ce   : > { %5130 = vrot.lane.b32.xlu2 %v5048_v2, %s6279_s16  ;;  %4827 = vst.msk [vmem:[#allocation5 + $0xb0] sm:$0xff] %vm12670_vm10, %v4754_v57  ;;  %vm12685_vm10 = vmmov %vm12641_vm0  ;;  %v4838_v57 = vld [vmem:[#allocation4 + $0x22] sm:$0xff] }
 0x8d0   : > { %5104 = vrot.lane.b32.xlu0 %v5035_v41, %s6279_s16  ;;  %v5331_v54 = vpop.permute.xlu2 %5330 }
 0x8d2   : > { %v4728_v59 = vpop.permute.xlu0 %4727  ;;  %v5632_v58 = vld [vmem:[#allocation5 + $0xc8] sm:$0xff] }
 0x8d3   : > { %4814 = vst.msk [vmem:[#allocation5 + $0x48] sm:$0xff] %vm12671_vm5, %v4728_v59  ;;  %6058 = vmatpush.xpose.msk.msra.mxu2 %vm12672_vm15, %v5632_v58  ;;  %4743 = vrot.lane.b32.xlu1 %v10949_v43, %s6277_s14  ;;  %vm12686_vm5 = vmmov %vm12676_vm8 }
 0x8d4   : > { %vm12687_vm15 = vmmov %vm12677_vm13 }
 0x8d5   : > { %v4946_v35 = vpop.permute.xlu1 %4945 }
 0x8d6   : > { %5322 = vrot.lane.b32.xlu2 %v11172_v15, %s6280_s17  ;;  %5019 = vst.msk [vmem:[#allocation5 + $0xb0] sm:$0xff] %vm12673_vm12, %v4946_v35  ;;  %vm12688_vm12 = vmmov %vm12678_vm6 }
 0x8d7   : > { %6059 = vmatpush.xpose.msk.msra.mxu2 %vm12674_vm1, %v5631_v20  ;;  %5212 = vst.msk [vmem:[#allocation5 + $0xb0] sm:$0xff] %vm12675_vm4, %v5139_v11  ;;  %vm12689_vm4 = vmmov %vm12674_vm1 }
 0x8d8   : > { %5296 = vrot.lane.b32.xlu0 %v5227_v33, %s6280_s17  ;;  %5404 = vst.msk [vmem:[#allocation5 + $0xb0] sm:$0xff] %vm12676_vm8, %v5331_v54  ;;  %v5523_v38 = vpop.permute.xlu2 %5522  ;;  %vm12690_vm8 = vmmov %vm12641_vm0 }
 0x8d9   : > { %5596 = vst.msk [vmem:[#allocation5 + $0xb0] sm:$0xff] %vm12677_vm13, %v5523_v38  ;;  %vm12691_vm13 = vmmov %vm12681_vm7  ;;  %v4837_v38 = vld [vmem:[#allocation4 + $0x1a] sm:$0xff] }
 0x8da   : > { %v4920_v43 = vpop.permute.xlu0 %4919 }
 0x8db   : > { %5006 = vst.msk [vmem:[#allocation5 + $0x48] sm:$0xff] %vm12678_vm6, %v4920_v43  ;;  %6060 = vmatpush.xpose.msk.msra.mxu2 %vm12679_vm3, %v5630_v49  ;;  %4935 = vrot.lane.b32.xlu1 %v4854_v3, %s6278_s15  ;;  %vm12692_vm6 = vmmov %vm12686_vm5 }
 0x8dc   : > { %vm12693_vm3 = vmmov %vm12683_vm14 }
 0x8dd   : > { %v5495_v48 = vpop.permute.xlu1 %5494 }
 0x8de   : > { %5514 = vrot.lane.b32.xlu2 %v11184_v0, %s6281_s18 }
 0x8e0   : > { %4909 = vrot.lane.b32.xlu0 %v4841_v18, %s6278_s15  ;;  %v5137_v32 = vpop.permute.xlu2 %5136  ;;  %v5629_v24 = vld [vmem:[#allocation5 + $0xb0] sm:$0xff] }
 0x8e1   : > { %6061 = vmatpush.xpose.msk.msra.mxu2 %vm12680_vm2, %v5629_v24  ;;  %vm12694_vm2 = vmmov %vm12684_vm9 }
 0x8e2   : > { %v5113_v4 = vpop.permute.xlu0 %5112 }
 0x8e3   : > { %5199 = vst.msk [vmem:[#allocation5 + $0x48] sm:$0xff] %vm12641_vm0, %v5113_v4  ;;  %5484 = vrot.lane.b32.xlu1 %v4842_v1, %s6281_s18 }
 0x8e5   : > { %v4752_v25 = vpop.permute.xlu1 %4751 }
 0x8e6   : > { %5128 = vrot.lane.b32.xlu2 %v5047_v27, %s6279_s16  ;;  %4826 = vst.msk [vmem:[#allocation5 + $0xa8] sm:$0xff] %vm12681_vm7, %v4752_v25  ;;  %vm12695_vm7 = vmmov %vm12686_vm5 }
 0x8e8   : > { %5102 = vrot.lane.b32.xlu0 %v5034_v23, %s6279_s16  ;;  %v5329_v29 = vpop.permute.xlu2 %5328 }
 0x8ea   : > { %v5305_v15 = vpop.permute.xlu0 %5304 }
 0x8eb   : > { %5391 = vst.msk [vmem:[#allocation5 + $0x48] sm:$0xff] %vm12682_vm11, %v5305_v15  ;;  %4741 = vrot.lane.b32.xlu1 %v4661_v16, %s6277_s14  ;;  %vm12696_vm11 = vmmov %vm12693_vm3 }
 0x8ec   : > { %5583 = vst.msk [vmem:[#allocation5 + $0x48] sm:$0xff] %vm12683_vm14, %v5497_v61  ;;  %vm12697_vm14 = vmmov %vm12694_vm2  ;;  %v5224_v61 = vld [vmem:[#allocation4 + $0x49] sm:$0xff] }
 0x8ed   : > { %v4944_v53 = vpop.permute.xlu1 %4943 }
 0x8ee   : > { %5320 = vrot.lane.b32.xlu2 %v11199_v22, %s6280_s17  ;;  %5018 = vst.msk [vmem:[#allocation5 + $0xa8] sm:$0xff] %vm12684_vm9, %v4944_v53  ;;  %vm12698_vm9 = vmmov %vm12674_vm1 }
 0x8ef   : > { %5211 = vst.msk [vmem:[#allocation5 + $0xa8] sm:$0xff] %vm12685_vm10, %v5137_v32  ;;  %vm12699_vm10 = vmmov %vm12674_vm1 }
 0x8f0   : > { %5294 = vrot.lane.b32.xlu0 %v5226_v13, %s6280_s17  ;;  %5403 = vst.msk [vmem:[#allocation5 + $0xa8] sm:$0xff] %vm12686_vm5, %v5329_v29  ;;  %v5521_v10 = vpop.permute.xlu2 %5520  ;;  %vm12700_vm5 = vmmov %vm12641_vm0 }
 0x8f1   : > { %5595 = vst.msk [vmem:[#allocation5 + $0xa8] sm:$0xff] %vm12687_vm15, %v5521_v10  ;;  %vm12701_vm15 = vmmov %vm12691_vm13 }
 0x8f2   : > { %v4918_v0 = vpop.permute.xlu0 %4917 }
 0x8f3   : > { %5005 = vst.msk [vmem:[#allocation5 + $0x40] sm:$0xff] %vm12688_vm12, %v4918_v0  ;;  %v5616_v62 = vld [vmem:[#allocation5 + $0x48] sm:$0xff]  ;;  %4933 = vrot.lane.b32.xlu1 %v4853_v63, %s6278_s15  ;;  %vm12702_vm12 = vmmov %vm12692_vm6 }
 0x8f4   : > { %6041 = vmatpush.xpose.msk.msrb.mxu1 %vm12674_vm1, %v5616_v62  ;;  %vm12703_vm1 = vmmov %vm12693_vm3 }
 0x8f5   : > { %v5493_v26 = vpop.permute.xlu1 %5492 }
 0x8f6   : > { %5512 = vrot.lane.b32.xlu2 %v11210_v21, %s6281_s18 }
 0x8f8   : > { %4907 = vrot.lane.b32.xlu0 %v4840_v46, %s6278_s15  ;;  %v5135_v50 = vpop.permute.xlu2 %5134  ;;  %v5628_v8 = vld [vmem:[#allocation5 + $0xa8] sm:$0xff] }
 0x8f9   : > { %6062 = vmatpush.xpose.msk.msra.mxu2 %vm12689_vm4, %v5628_v8  ;;  %vm12704_vm4 = vmmov %vm12694_vm2 }
 0x8fa   : > { %v5111_v37 = vpop.permute.xlu0 %5110 }
 0x8fb   : > { %5198 = vst.msk [vmem:[#allocation5 + $0x40] sm:$0xff] %vm12690_vm8, %v5111_v37  ;;  %5482 = vrot.lane.b32.xlu1 %v4841_v18, %s6281_s18  ;;  %vm12705_vm8 = vmmov %vm12641_vm0 }
 0x8fd   : > { %v4750_v56 = vpop.permute.xlu1 %4749 }
 0x8fe   : > { %5126 = vrot.lane.b32.xlu2 %v5046_v28, %s6279_s16  ;;  %4825 = vst.msk [vmem:[#allocation5 + $0xa0] sm:$0xff] %vm12691_vm13, %v4750_v56  ;;  %vm12706_vm13 = vmmov %vm12692_vm6 }
 0x900   : > { %5100 = vrot.lane.b32.xlu0 %v5033_v31, %s6279_s16  ;;  %v5327_v22 = vpop.permute.xlu2 %5326 }
 0x902   : > { %v5303_v42 = vpop.permute.xlu0 %5302 }
 0x903   : > { %5390 = vst.msk [vmem:[#allocation5 + $0x40] sm:$0xff] %vm12692_vm6, %v5303_v42  ;;  %5096 = vrot.lane.b32.xlu1 %v5031_v14, %s6279_s16  ;;  %vm12707_vm6 = vmmov %vm12703_vm1 }
 0x904   : > { %5582 = vst.msk [vmem:[#allocation5 + $0x40] sm:$0xff] %vm12693_vm3, %v5495_v48  ;;  %vm12708_vm3 = vmmov %vm12694_vm2 }
 0x905   : > { %v4942_v55 = vpop.permute.xlu1 %4941 }
 0x906   : > { %5318 = vrot.lane.b32.xlu2 %v11227_v9, %s6280_s17  ;;  %5017 = vst.msk [vmem:[#allocation5 + $0xa0] sm:$0xff] %vm12694_vm2, %v4942_v55  ;;  %v5032_v9 = vld [vmem:[#allocation4 + $0x48] sm:$0xff]  ;;  %vm12709_vm2 = vmmov %vm12698_vm9 }
 0x907   : > { %5210 = vst.msk [vmem:[#allocation5 + $0xa0] sm:$0xff] %vm12641_vm0, %v5135_v50  ;;  %vm12710_vm0 = vmmov %vm12709_vm2 }
 0x908   : > { %5292 = vrot.lane.b32.xlu0 %v5225_v36, %s6280_s17  ;;  %5402 = vst.msk [vmem:[#allocation5 + $0xa0] sm:$0xff] %vm12695_vm7, %v5327_v22  ;;  %v5519_v21 = vpop.permute.xlu2 %5518  ;;  %vm12711_vm7 = vmmov %vm12700_vm5 }
 0x909   : > { %5594 = vst.msk [vmem:[#allocation5 + $0xa0] sm:$0xff] %vm12696_vm11, %v5519_v21  ;;  %vm12712_vm11 = vmmov %vm12701_vm15 }
 0x90a   : > { %v4916_v39 = vpop.permute.xlu0 %4915 }
 0x90b   : > { %5004 = vst.msk [vmem:[#allocation5 + $0x38] sm:$0xff] %vm12697_vm14, %v4916_v39  ;;  %v5615_v44 = vld [vmem:[#allocation5 + $0x40] sm:$0xff]  ;;  %5480 = vrot.lane.b32.xlu1 %v4840_v46, %s6281_s18  ;;  %vm12713_vm14 = vmmov %vm12702_vm12 }
 0x90c   : > { %6042 = vmatpush.xpose.msk.msrb.mxu1 %vm12698_vm9, %v5615_v44  ;;  %vm12714_vm9 = vmmov %vm12703_vm1 }
 0x90d   : > { %v5491_v7 = vpop.permute.xlu1 %5490 }
 0x90e   : > { %5288 = vrot.lane.b32.xlu2 %v5223_v30, %s6280_s17 }
 0x910   : > { %4905 = vrot.lane.b32.xlu0 %v4839_v52, %s6278_s15  ;;  %v5133_v6 = vpop.permute.xlu2 %5132  ;;  %v5627_v60 = vld [vmem:[#allocation5 + $0xa0] sm:$0xff] }
 0x911   : > { %6063 = vmatpush.xpose.msk.msra.mxu2 %vm12699_vm10, %v5627_v60  ;;  %vm12715_vm10 = vmmov %vm12708_vm3  ;;  %v5606_v60 = vld [vmem:[%s11433_s5] sm:$0xff] }
 0x912   : > { %v5109_v19 = vpop.permute.xlu0 %5108 }
 0x913   : > { %5197 = vst.msk [vmem:[#allocation5 + $0x38] sm:$0xff] %vm12700_vm5, %v5109_v19  ;;  %5286 = vrot.lane.b32.xlu1 %v5222_v51, %s6280_s17 }
 0x915   : > { %v4748_v47 = vpop.permute.xlu1 %4747 }
 0x916   : > { %5094 = vrot.lane.b32.xlu2 %v5030_v45, %s6279_s16  ;;  %4824 = vst.msk [vmem:[#allocation5 + $0x98] sm:$0xff] %vm12701_vm15, %v4748_v47  ;;  %vm12716_vm15 = vmmov %vm12702_vm12 }
 0x918   : > { %5098 = vrot.lane.b32.xlu0 %v5032_v9, %s6279_s16  ;;  %v5325_v34 = vpop.permute.xlu2 %5324 }
 0x91a   : > { %v5301_v17 = vpop.permute.xlu0 %5300 }
 0x91b   : > { %5389 = vst.msk [vmem:[#allocation5 + $0x38] sm:$0xff] %vm12702_vm12, %v5301_v17  ;;  %vm12717_vm12 = vmmov %vm12703_vm1 }
 0x91c   : > { %5581 = vst.msk [vmem:[#allocation5 + $0x38] sm:$0xff] %vm12703_vm1, %v5493_v26  ;;  %vm12718_vm1 = vmmov %vm12708_vm3 }
 0x91d   : > { %v4940_v5 = vpop.permute.xlu1 %4939 }
 0x91e   : > { %5016 = vst.msk [vmem:[#allocation5 + $0x98] sm:$0xff] %vm12704_vm4, %v4940_v5  ;;  %vm12719_vm4 = vmmov %vm12710_vm0 }
 0x91f   : > { %5209 = vst.msk [vmem:[#allocation5 + $0x98] sm:$0xff] %vm12705_vm8, %v5133_v6  ;;  %vm12720_vm8 = vmmov %vm12710_vm0 }
 0x920   : > { %5290 = vrot.lane.b32.xlu0 %v5224_v61, %s6280_s17  ;;  %5401 = vst.msk [vmem:[#allocation5 + $0x98] sm:$0xff] %vm12706_vm13, %v5325_v34  ;;  %v5517_v1 = vpop.permute.xlu2 %5516  ;;  %vm12721_vm13 = vmmov %vm12700_vm5 }
 0x921   : > { %5593 = vst.msk [vmem:[#allocation5 + $0x98] sm:$0xff] %vm12707_vm6, %v5517_v1  ;;  %vm12722_vm6 = vmmov %vm12712_vm11  ;;  %v6282_v1 = vmov 0  }
 0x922   : > { %v4914_v11 = vpop.permute.xlu0 %4913  ;;  %6122 = vset.pattern.permute.xlu0 %v6282_v1 }
 0x923   : > { %5003 = vst.msk [vmem:[#allocation5 + $0x30] sm:$0xff] %vm12708_vm3, %v4914_v11  ;;  %v5614_v12 = vld [vmem:[#allocation5 + $0x38] sm:$0xff]  ;;  %vm12723_vm3 = vmmov %vm12713_vm14  ;;  %v5823_v11 = vld [vmem:[%s11434_s6] sm:$0xff] }
 0x924   : > { %6043 = vmatpush.xpose.msk.msrb.mxu1 %vm12709_vm2, %v5614_v12  ;;  %vm12724_vm2 = vmmov %vm12714_vm9  ;;  %v5831_v12 = vld [vmem:[%s11435_s7] sm:$0xff] }
 0x925   : > { %v5489_v2 = vpop.permute.xlu1 %5488 }
 0x928   : > { %4903 = vrot.lane.b32.xlu0 %v4838_v57, %s6278_s15  ;;  %v5131_v41 = vpop.permute.xlu2 %5130  ;;  %v5626_v54 = vld [vmem:[#allocation5 + $0x98] sm:$0xff] }
 0x929   : > { %6064 = vmatpush.xpose.msk.msra.mxu2 %vm12710_vm0, %v5626_v54  ;;  %vm12725_vm0 = vmmov %vm12718_vm1 }
 0x92a   : > { %v5107_v59 = vpop.permute.xlu0 %5106 }
 0x92b   : > { %5196 = vst.msk [vmem:[#allocation5 + $0x30] sm:$0xff] %vm12711_vm7, %v5107_v59  ;;  %vm12726_vm7 = vmmov %vm12700_vm5 }
 0x92d   : > { %v4746_v58 = vpop.permute.xlu1 %4745 }
 0x92e   : > { %4823 = vst.msk [vmem:[#allocation5 + $0x90] sm:$0xff] %vm12712_vm11, %v4746_v58  ;;  %vm12727_vm11 = vmmov %vm12723_vm3 }
 0x930   : > { %5510 = vrot.lane.b32.xlu0 %v11240_v40, %s6281_s18  ;;  %v5323_v35 = vpop.permute.xlu2 %5322 }
 0x932   : > { %v5299_v20 = vpop.permute.xlu0 %5298 }
 0x933   : > { %5388 = vst.msk [vmem:[#allocation5 + $0x30] sm:$0xff] %vm12713_vm14, %v5299_v20  ;;  %vm12728_vm14 = vmmov %vm12724_vm2 }
 0x934   : > { %5580 = vst.msk [vmem:[#allocation5 + $0x30] sm:$0xff] %vm12714_vm9, %v5491_v7  ;;  %vm12729_vm9 = vmmov %vm12725_vm0 }
 0x935   : > { %v4938_v33 = vpop.permute.xlu1 %4937 }
 0x936   : > { %5015 = vst.msk [vmem:[#allocation5 + $0x90] sm:$0xff] %vm12715_vm10, %v4938_v33  ;;  %vm12730_vm10 = vmmov %vm12719_vm4 }
 0x937   : > { %5208 = vst.msk [vmem:[#allocation5 + $0x90] sm:$0xff] %vm12700_vm5, %v5131_v41  ;;  %vm12731_vm5 = vmmov %vm12719_vm4 }
 0x938   : > { %4901 = vrot.lane.b32.xlu0 %v4837_v38, %s6278_s15  ;;  %5400 = vst.msk [vmem:[#allocation5 + $0x90] sm:$0xff] %vm12716_vm15, %v5323_v35  ;;  %v5515_v43 = vpop.permute.xlu2 %5514  ;;  %vm12732_vm15 = vmmov %vm12726_vm7 }
 0x939   : > { %5592 = vst.msk [vmem:[#allocation5 + $0x90] sm:$0xff] %vm12717_vm12, %v5515_v43  ;;  %vm12733_vm12 = vmmov %vm12722_vm6 }
 0x93a   : > { %v4912_v40 = vpop.permute.xlu0 %4911 }
 0x93b   : > { %5002 = vst.msk [vmem:[#allocation5 + $0x28] sm:$0xff] %vm12718_vm1, %v4912_v40  ;;  %v5613_v49 = vld [vmem:[#allocation5 + $0x30] sm:$0xff]  ;;  %vm12734_vm1 = vmmov %vm12723_vm3 }
 0x93c   : > { %6044 = vmatpush.xpose.msk.msrb.mxu1 %vm12719_vm4, %v5613_v49  ;;  %vm12735_vm4 = vmmov %vm12724_vm2 }
 0x93d   : > { %v5487_v3 = vpop.permute.xlu1 %5486 }
 0x940   : > { %5478 = vrot.lane.b32.xlu0 %v4839_v52, %s6281_s18  ;;  %v5129_v48 = vpop.permute.xlu2 %5128  ;;  %v5625_v18 = vld [vmem:[#allocation5 + $0x90] sm:$0xff] }
 0x941   : > { %6065 = vmatpush.xpose.msk.msra.mxu2 %vm12720_vm8, %v5625_v18  ;;  %vm12736_vm8 = vmmov %vm12725_vm0 }
 0x942   : > { %v5105_v32 = vpop.permute.xlu0 %5104 }
 0x943   : > { %5195 = vst.msk [vmem:[#allocation5 + $0x28] sm:$0xff] %vm12721_vm13, %v5105_v32  ;;  %vm12737_vm13 = vmmov %vm12726_vm7 }
 0x945   : > { %v4744_v24 = vpop.permute.xlu1 %4743 }
 0x946   : > { %4822 = vst.msk [vmem:[#allocation5 + $0x88] sm:$0xff] %vm12722_vm6, %v4744_v24  ;;  %vm12738_vm6 = vmmov %vm12734_vm1 }
 0x948   : > { %v5321_v4 = vpop.permute.xlu2 %5320  ;;  %5826 = vperm.xlu0 %6122, %v5823_v11  }
 0x94a   : > { %v5297_v27 = vpop.permute.xlu0 %5296 }
 0x94b   : > { %5387 = vst.msk [vmem:[#allocation5 + $0x28] sm:$0xff] %vm12723_vm3, %v5297_v27  ;;  %vm12739_vm3 = vmmov %vm12725_vm0 }
 0x94c   : > { %5579 = vst.msk [vmem:[#allocation5 + $0x28] sm:$0xff] %vm12724_vm2, %v5489_v2  ;;  %vm12740_vm2 = vmmov %vm12731_vm5 }
 0x94d   : > { %v4936_v25 = vpop.permute.xlu1 %4935 }
 0x94e   : > { %5014 = vst.msk [vmem:[#allocation5 + $0x88] sm:$0xff] %vm12725_vm0, %v4936_v25  ;;  %vm12741_vm0 = vmmov %vm12726_vm7 }
 0x94f   : > { %5207 = vst.msk [vmem:[#allocation5 + $0x88] sm:$0xff] %vm12726_vm7, %v5129_v48  ;;  %vm12742_vm7 = vmmov %vm12734_vm1 }
 0x950   : > { %5399 = vst.msk [vmem:[#allocation5 + $0x88] sm:$0xff] %vm12727_vm11, %v5321_v4  ;;  %v5513_v23 = vpop.permute.xlu2 %5512  ;;  %vm12743_vm11 = vmmov %vm12735_vm4  ;;  %5834 = vperm.xlu0 %6122, %v5831_v12  }
 0x951   : > { %5591 = vst.msk [vmem:[#allocation5 + $0x88] sm:$0xff] %vm12728_vm14, %v5513_v23  ;;  %vm12744_vm14 = vmmov %vm12739_vm3 }
 0x952   : > { %v4910_v29 = vpop.permute.xlu0 %4909 }
 0x953   : > { %5001 = vst.msk [vmem:[#allocation5 + $0x20] sm:$0xff] %vm12729_vm9, %v4910_v29  ;;  %v5612_v15 = vld [vmem:[#allocation5 + $0x28] sm:$0xff]  ;;  %vm12745_vm9 = vmmov %vm12740_vm2 }
 0x954   : > { %6045 = vmatpush.xpose.msk.msrb.mxu1 %vm12730_vm10, %v5612_v15  ;;  %vm12746_vm10 = vmmov %vm12741_vm0 }
 0x955   : > { %v5485_v16 = vpop.permute.xlu1 %5484 }
 0x958   : > { %v5624_v53 = vld [vmem:[#allocation5 + $0x88] sm:$0xff]  ;;  %v5127_v10 = vpop.permute.xlu2 %5126 }
 0x959   : > { %6066 = vmatpush.xpose.msk.msra.mxu2 %vm12731_vm5, %v5624_v53  ;;  %vm12747_vm5 = vmmov %vm12734_vm1 }
 0x95a   : > { %v5103_v13 = vpop.permute.xlu0 %5102 }
 0x95b   : > { %5194 = vst.msk [vmem:[#allocation5 + $0x20] sm:$0xff] %vm12732_vm15, %v5103_v13  ;;  %vm12748_vm15 = vmmov %vm12735_vm4 }
 0x95d   : > { %v4742_v0 = vpop.permute.xlu1 %4741 }
 0x95e   : > { %4821 = vst.msk [vmem:[#allocation5 + $0x80] sm:$0xff] %vm12733_vm12, %v4742_v0  ;;  %vm12749_vm12 = vmmov %vm12739_vm3 }
 0x960   : > { %v5319_v26 = vpop.permute.xlu2 %5318 }
 0x962   : > { %v5295_v63 = vpop.permute.xlu0 %5294 }
 0x963   : > { %5386 = vst.msk [vmem:[#allocation5 + $0x20] sm:$0xff] %vm12734_vm1, %v5295_v63  ;;  %vm12750_vm1 = vmmov %vm12741_vm0 }
 0x964   : > { %5578 = vst.msk [vmem:[#allocation5 + $0x20] sm:$0xff] %vm12735_vm4, %v5487_v3  ;;  %vm12751_vm4 = vmmov %vm12740_vm2 }
 0x965   : > { %v4934_v62 = vpop.permute.xlu1 %4933 }
 0x966   : > { %5013 = vst.msk [vmem:[#allocation5 + $0x80] sm:$0xff] %vm12736_vm8, %v4934_v62  ;;  %vm12752_vm8 = vmmov %vm12747_vm5 }
 0x967   : > { %5206 = vst.msk [vmem:[#allocation5 + $0x80] sm:$0xff] %vm12737_vm13, %v5127_v10  ;;  %vm12753_vm13 = vmmov %vm12743_vm11 }
 0x968   : > { %5398 = vst.msk [vmem:[#allocation5 + $0x80] sm:$0xff] %vm12738_vm6, %v5319_v26  ;;  %v5289_v21 = vpop.permute.xlu2 %5288  ;;  %vm12754_vm6 = vmmov %vm12743_vm11 }
 0x96a   : > { %v4908_v46 = vpop.permute.xlu0 %4907 }
 0x96b   : > { %5000 = vst.msk [vmem:[#allocation5 + $0x18] sm:$0xff] %vm12739_vm3, %v4908_v46  ;;  %v5611_v50 = vld [vmem:[#allocation5 + $0x20] sm:$0xff]  ;;  %vm12755_vm3 = vmmov %vm12740_vm2 }
 0x96c   : > { %6046 = vmatpush.xpose.msk.msrb.mxu1 %vm12740_vm2, %v5611_v50  ;;  %vm12756_vm2 = vmmov %vm12749_vm12  ;;  %v5839_v46 = vld [vmem:[%s320_s22] sm:$0xff]  ;;  %v5840_v50 = vld [vmem:[%s320_s22 + $0x8] sm:$0xff] }
 0x96d   : > { %v5483_v31 = vpop.permute.xlu1 %5482 }
 0x970   : > { %v5095_v6 = vpop.permute.xlu2 %5094 }
 0x972   : > { %v5101_v8 = vpop.permute.xlu0 %5100 }
 0x973   : > { %5193 = vst.msk [vmem:[#allocation5 + $0x18] sm:$0xff] %vm12741_vm0, %v5101_v8  ;;  %vm12757_vm0 = vmmov %vm12755_vm3 }
 0x975   : > { %v5097_v14 = vpop.permute.xlu1 %5096 }
 0x97a   : > { %v5293_v37 = vpop.permute.xlu0 %5292 }
 0x97b   : > { %5385 = vst.msk [vmem:[#allocation5 + $0x18] sm:$0xff] %vm12742_vm7, %v5293_v37  ;;  %vm12758_vm7 = vmmov %vm12750_vm1 }
 0x97c   : > { %5577 = vst.msk [vmem:[#allocation5 + $0x18] sm:$0xff] %vm12743_vm11, %v5485_v16  ;;  %vm12759_vm11 = vmmov %vm12747_vm5 }
 0x97d   : > { %v5481_v39 = vpop.permute.xlu1 %5480 }
 0x982   : > { %v4906_v28 = vpop.permute.xlu0 %4905 }
 0x983   : > { %4999 = vst.msk [vmem:[#allocation5 + $0x10] sm:$0xff] %vm12744_vm14, %v4906_v28  ;;  %v5610_v56 = vld [vmem:[#allocation5 + $0x18] sm:$0xff]  ;;  %vm12760_vm14 = vmmov %vm12757_vm0 }
 0x984   : > { %6047 = vmatpush.xpose.msk.msrb.mxu1 %vm12745_vm9, %v5610_v56  ;;  %vm12761_vm9 = vmmov %vm12754_vm6 }
 0x985   : > { %v5287_v19 = vpop.permute.xlu1 %5286 }
 0x98a   : > { %v5099_v22 = vpop.permute.xlu0 %5098 }
 0x98b   : > { %5192 = vst.msk [vmem:[#allocation5 + $0x10] sm:$0xff] %vm12746_vm10, %v5099_v22  ;;  %vm12762_vm10 = vmmov %vm12757_vm0 }
 0x992   : > { %v5291_v42 = vpop.permute.xlu0 %5290 }
 0x993   : > { %5384 = vst.msk [vmem:[#allocation5 + $0x10] sm:$0xff] %vm12747_vm5, %v5291_v42  ;;  %vm12763_vm5 = vmmov %vm12757_vm0 }
 0x994   : > { %5576 = vst.msk [vmem:[#allocation5 + $0x10] sm:$0xff] %vm12748_vm15, %v5483_v31 }
 0x99a   : > { %v4904_v55 = vpop.permute.xlu0 %4903 }
 0x99b   : > { %4998 = vst.msk [vmem:[#allocation5 + $0x8] sm:$0xff] %vm12749_vm12, %v4904_v55  ;;  %v5609_v36 = vld [vmem:[#allocation5 + $0x10] sm:$0xff] }
 0x99c   : > { %5191 = vst.msk [vmem:[#allocation5 + $0x8] sm:$0xff] %vm12750_vm1, %v5097_v14  ;;  %6048 = vmatpush.xpose.msk.msrb.mxu1 %vm12751_vm4, %v5609_v36 }
 0x99d   : > { %5383 = vst.msk [vmem:[#allocation5 + $0x8] sm:$0xff] %vm12752_vm8, %v5289_v21 }
 0x99e   : > { %5575 = vst.msk [vmem:[#allocation5 + $0x8] sm:$0xff] %vm12753_vm13, %v5481_v39 }
 0x9a2   : > { %v5511_v44 = vpop.permute.xlu0 %5510 }
 0x9a3   : > { %5590 = vst.msk [vmem:[#allocation5 + $0x80] sm:$0xff] %vm12754_vm6, %v5511_v44 }
 0x9a5   : > { %v5608_v30 = vld [vmem:[#allocation5 + $0x8] sm:$0xff] }
 0x9a6   : > { %6049 = vmatpush.xpose.msk.msrb.mxu1 %vm12755_vm3, %v5608_v30 }
 0x9aa   : > { %v4902_v7 = vpop.permute.xlu0 %4901  ;;  %v5623_v52 = vld [vmem:[#allocation5 + $0x80] sm:$0xff] }
 0x9ab   : > { %4997 = vst.msk [vmem:[#allocation5] sm:$0xff] %vm12756_vm2, %v4902_v7  ;;  %6067 = vmatpush.xpose.msk.msra.mxu2 %vm12757_vm0, %v5623_v52 }
 0x9ac   : > { %5190 = vst.msk [vmem:[#allocation5] sm:$0xff] %vm12758_vm7, %v5095_v6 }
 0x9ad   : > { %5382 = vst.msk [vmem:[#allocation5] sm:$0xff] %vm12759_vm11, %v5287_v19 }
 0x9ae   : > { %6068 = vmatmul.msk.f32.vlgmr.msra.gmra.mxu2 %vm12760_vm14, %v5606_v60 }
 0x9b2   : > { %v5479_v51 = vpop.permute.xlu0 %5478 }
 0x9b3   : > { %5574 = vst.msk [vmem:[#allocation5] sm:$0xff] %vm12761_vm9, %v5479_v51 }
 0x9ba   : > { %v5607_v45 = vld [vmem:[#allocation5] sm:$0xff]  ;;  %v5827_v29 = vpop.permute.xlu0 %5826 }
 0x9bb   : > { %6050 = vmatpush.xpose.msk.msrb.mxu1 %vm12762_vm10, %v5607_v45 }
 0x9be   : > { %6051 = vmatmul.msk.f32.vlgmr.msrb.gmra.mxu1 %vm12763_vm5, %v5606_v60 }
 0x9c2   : > { %v5835_v26 = vpop.permute.xlu0 %5834 }
 0xa31   : > { %v5775_v47 = vpop.f32.mrf.mxu2 }
 0xa32   : > { %v5790_v9 = vmul.f32 %v5775_v47, %v5775_v47 }
 0xa3b   : > { %v5755_v34 = vpop.f32.mrf.mxu1 }
 0xa3c   : > { %v5789_v17 = vmul.f32 %v5755_v34, %v5755_v34  ;;  %v5778_v5 = vadd.f32 %v5775_v47, %v5755_v34 }
 0xa3e   : > { %v5791_v61 = vadd.f32 %v5790_v9, %v5789_v17  ;;  %5779 = vadd.xlane.f32.xlu2 %v5778_v5 }
 0xa40   : > { %5792 = vadd.xlane.f32.xlu1 %v5791_v61 }
 0xab1   : > { %v5780_v2 = vpop.xlane.xlu2 %5779 }
 0xab2   : > { %v5781_v57 = vrot.slane %v5780_v2, 4 }
 0xab3   : > { %v5793_v41 = vpop.xlane.xlu1 %5792 }
 0xab4   : > { %v5782_v54 = vadd.f32 %v5781_v57, %v5780_v2  ;;  %v5794_v59 = vrot.slane %v5793_v41, 4 }
 0xab6   : > { %v5783_v58 = vrot.slane %v5782_v54, 2  ;;  %v5795_v35 = vadd.f32 %v5794_v59, %v5793_v41 }
 0xab8   : > { %v5784_v20 = vadd.f32 %v5783_v58, %v5782_v54  ;;  %v5796_v33 = vrot.slane %v5795_v35, 2 }
 0xaba   : > { %v5797_v38 = vadd.f32 %v5796_v33, %v5795_v35  ;;  %v5785_v43 = vrot.slane %v5784_v20, 1 }
 0xabc   : > { %v5786_v40 = vadd.f32 %v5785_v43, %v5784_v20  ;;  %v5798_v49 = vrot.slane %v5797_v38, 1 }
 0xabe   : > { %6098 = vpush %v5786_v40  ;;  %v5799_v3 = vadd.f32 %v5798_v49, %v5797_v38 }
 0xac0   : > { %6100 = vpush %v5799_v3 }
 0xaef   : > { %s6099_s17 = spop %6098 }
 0xaf0   : > { %s5788_s18 = smul.f32 0.00048828125, %s6099_s17 }
 0xaf1   : > { %s6101_s25 = spop %6100 }
 0xaf2   : > { %s5802_s26 = smul.f32 %s5788_s18, %s5788_s18  ;;  %v5804_v15 = vstv %s5788_s18 }
 0xaf3   : > { %s5801_s30 = smul.f32 0.00048828125, %s6101_s25  ;;  %v5805_v16 = vsub.f32 %v5755_v34, %v5804_v15  ;;  %v5806_v53 = vsub.f32 %v5775_v47, %v5804_v15 }
 0xaf5   : > { %s5803_s9 = ssub.f32 %s5801_s30, %s5802_s26 }
 0xaf7   : > { %s5807_s10 = sadd.f32 1e-05, %s5803_s9 }
 0xaf9   : > { %v5808_v48 = vstv %s5807_s10 }
 0xafa   : > { %6255 = vrsqrt.f32 %v5808_v48  ;;  %vm5815_vm12 = vweird.f32 %v5808_v48 }
 0xb00   : > { %v6256_v18 = vpop.eup %6255 }
 0xb01   : > { %v5810_v32 = vmul.f32 %v6256_v18, %v5808_v48  ;;  %vm5816_vm15 = vweird.f32 %v6256_v18 }
 0xb02   : > { %vm5817_vm1 = vmor %vm5815_vm12, %vm5816_vm15 }
 0xb03   : > { %v5811_v24 = vmul.f32 %v6256_v18, %v5810_v32 }
 0xb05   : > { %v5812_v4 = vmul.f32 0.5, %v5811_v24 }
 0xb07   : > { %v5813_v27 = vsub.f32 1.5, %v5812_v4 }
 0xb09   : > { %v5814_v25 = vmul.f32 %v6256_v18, %v5813_v27 }
 0xb0b   : > { %v5818_v23 = vsel %vm5817_vm1, %v6256_v18, %v5814_v25 }
 0xb0c   : > { %6102 = vpush %v5818_v23 }
 0xb3d   : > { %s6103_s19 = spop %6102 }
 0xb3e   : > { %v5820_v13 = vstv %s6103_s19 }
 0xb3f   : > { %v5821_v10 = vmul.f32 %v5820_v13, %v5805_v16  ;;  %v5822_v0 = vmul.f32 %v5820_v13, %v5806_v53 }
 0xb41   : > { %v5829_v63 = vmul.f32 %v5827_v29, %v5821_v10  ;;  %v5830_v62 = vmul.f32 %v5827_v29, %v5822_v0 }
 0xb43   : > { %v5837_v8 = vadd.f32 %v5835_v26, %v5829_v63  ;;  %v5838_v37 = vadd.f32 %v5835_v26, %v5830_v62 }
 0xb45   : > { %v11404_v28 = vadd.f32 %v5839_v46, %v5837_v8  ;;  %v11406_v56 = vadd.f32 %v5840_v50, %v5838_v37 }
 0xb47   : > { %v11409_v31 = vmul.f32 0.70710677, %v11404_v28  ;;  %v11412_v22 = vmul.f32 0.70710677, %v11406_v56  ;;  %v5843_v37 = vmul.f32 0.5, %v11404_v28 }
 0xb49   : > { %v5847_v42 = vand.u32 2147483647, %v11409_v31  ;;  %v5848_v14 = vand.u32 2147483647, %v11412_v22  ;;  %vm5913_vm11 = vcmp.ge.f32.partialorder %v11409_v31, 0.0  ;;  %vm5914_vm14 = vcmp.ge.f32.partialorder %v11412_v22, 0.0 }
 0xb4b   : > { %v5849_v55 = vmul.f32 0.3275911, %v5847_v42  ;;  %v5850_v36 = vmul.f32 0.3275911, %v5848_v14  ;;  %v5901_v57 = vsub.f32 0.0, %v5847_v42  ;;  %v5902_v59 = vsub.f32 0.0, %v5848_v14 }
 0xb4d   : > { %v5851_v21 = vadd.f32 1.0, %v5849_v55  ;;  %v5852_v39 = vadd.f32 1.0, %v5850_v36  ;;  %v5903_v33 = vmul.f32 %v5901_v57, %v5847_v42  ;;  %v5904_v43 = vmul.f32 %v5902_v59, %v5848_v14 }
 0xb4e   : > { %v5844_v55 = vmul.f32 0.5, %v11406_v56 }
 0xb4f   : > { %6257 = vrcp.f32 %v5851_v21  ;;  %v5864_v60 = vand.u32 2147483648, %v5851_v21  ;;  %v5862_v45 = vand.u32 2147483647, %v5851_v21  ;;  %v5879_v47 = vand.u32 2147483648, %v5852_v39 }
 0xb50   : > { %6259 = vrcp.f32 %v5852_v39  ;;  %v5877_v34 = vand.u32 2147483647, %v5852_v39  ;;  %vm5858_vm13 = vweird.f32 %v5851_v21  ;;  %vm5873_vm3 = vweird.f32 %v5852_v39 }
 0xb51   : > { %v5865_v5 = vor.u32 1.1754944e-38, %v5864_v60  ;;  %vm5863_vm2 = vcmp.eq.f32.partialorder %v5862_v45, 8.507059e+37  ;;  %v5880_v11 = vor.u32 1.1754944e-38, %v5879_v47  ;;  %v5905_v48 = vmul.f32 1.442695, %v5903_v33 }
 0xb52   : > { %vm5878_vm7 = vcmp.eq.f32.partialorder %v5877_v34, 8.507059e+37  ;;  %v5907_v32 = vmul.f32 1.442695, %v5904_v43 }
 0xb53   : > { %6261 = vpow2.f32 %v5905_v48 }
 0xb54   : > { %6263 = vpow2.f32 %v5907_v32 }
 0xb55   : > { %v6258_v44 = vpop.eup %6257 }
 0xb56   : > { %v6260_v30 = vpop.eup %6259  ;;  %v5854_v7 = vmul.f32 %v6258_v44, %v5851_v21  ;;  %vm5859_vm4 = vweird.f32 %v6258_v44 }
 0xb57   : > { %v5869_v52 = vmul.f32 %v6260_v30, %v5852_v39  ;;  %vm5874_vm8 = vweird.f32 %v6260_v30  ;;  %vm5860_vm6 = vmor %vm5858_vm13, %vm5859_vm4 }
 0xb58   : > { %v5855_v6 = vsub.f32 1.0, %v5854_v7  ;;  %vm5875_vm0 = vmor %vm5873_vm3, %vm5874_vm8 }
 0xb59   : > { %v5870_v19 = vsub.f32 1.0, %v5869_v52  ;;  %v6262_v53 = vpop.eup %6261 }
 0xb5a   : > { %v5856_v51 = vmul.f32 %v6258_v44, %v5855_v6  ;;  %v6264_v10 = vpop.eup %6263 }
 0xb5b   : > { %v5871_v9 = vmul.f32 %v6260_v30, %v5870_v19 }
 0xb5c   : > { %v5857_v17 = vadd.f32 %v6258_v44, %v5856_v51 }
 0xb5d   : > { %v5872_v61 = vadd.f32 %v6260_v30, %v5871_v9 }
 0xb5e   : > { %v5861_v1 = vsel %vm5860_vm6, %v6258_v44, %v5857_v17 }
 0xb5f   : > { %v5866_v12 = vsel %vm5863_vm2, %v5865_v5, %v5861_v1  ;;  %v5876_v2 = vsel %vm5875_vm0, %v6260_v30, %v5872_v61 }
 0xb60   : > { %v5881_v41 = vsel %vm5878_vm7, %v5880_v11, %v5876_v2  ;;  %v5883_v54 = vmul.f32 1.0614054, %v5866_v12 }
 0xb61   : > { %v5884_v58 = vmul.f32 1.0614054, %v5881_v41 }
 0xb62   : > { %v5885_v35 = vadd.f32 -1.4531521, %v5883_v54 }
 0xb63   : > { %v5886_v20 = vadd.f32 -1.4531521, %v5884_v58 }
 0xb64   : > { %v5887_v38 = vmul.f32 %v5885_v35, %v5866_v12 }
 0xb65   : > { %v5888_v40 = vmul.f32 %v5886_v20, %v5881_v41 }
 0xb66   : > { %v5889_v49 = vadd.f32 1.4214138, %v5887_v38 }
 0xb67   : > { %v5890_v3 = vadd.f32 1.4214138, %v5888_v40 }
 0xb68   : > { %v5891_v18 = vmul.f32 %v5889_v49, %v5866_v12 }
 0xb69   : > { %v5892_v24 = vmul.f32 %v5890_v3, %v5881_v41 }
 0xb6a   : > { %v5893_v4 = vadd.f32 -0.28449672, %v5891_v18 }
 0xb6b   : > { %v5894_v27 = vadd.f32 -0.28449672, %v5892_v24 }
 0xb6c   : > { %v5895_v25 = vmul.f32 %v5893_v4, %v5866_v12 }
 0xb6d   : > { %v5896_v23 = vmul.f32 %v5894_v27, %v5881_v41 }
 0xb6e   : > { %v5897_v29 = vadd.f32 0.2548296, %v5895_v25 }
 0xb6f   : > { %v5898_v15 = vadd.f32 0.2548296, %v5896_v23 }
 0xb70   : > { %v5899_v16 = vmul.f32 %v5897_v29, %v5866_v12 }
 0xb71   : > { %v5900_v13 = vmul.f32 %v5898_v15, %v5881_v41 }
 0xb72   : > { %v5909_v0 = vmul.f32 %v6262_v53, %v5899_v16 }
 0xb73   : > { %v5910_v63 = vmul.f32 %v6264_v10, %v5900_v13 }
 0xb74   : > { %v5911_v62 = vsub.f32 1.0, %v5909_v0 }
 0xb75   : > { %v5912_v26 = vsub.f32 1.0, %v5910_v63 }
 0xb76   : > { %v5915_v46 = vsub.f32 0.0, %v5911_v62 }
 0xb77   : > { %v5916_v50 = vsub.f32 0.0, %v5912_v26 }
 0xb78   : > { %v5917_v8 = vsel %vm5913_vm11, %v5911_v62, %v5915_v46 }
 0xb79   : > { %v5918_v42 = vsel %vm5914_vm14, %v5912_v26, %v5916_v50  ;;  %v5919_v14 = vadd.f32 1.0, %v5917_v8 }
 0xb7a   : > { %v5920_v36 = vadd.f32 1.0, %v5918_v42 }
 0xb7b   : > { %v5921_v21 = vmul.f32 %v5919_v14, %v5843_v37 }
 0xb7c   : > { %v5922_v39 = vmul.f32 %v5920_v36, %v5844_v55 }
 0xb7d   : > { %5923 = vst [vmem:[%s325_s29] sm:$0xff] %v5921_v21 }
 0xb7e   : > { %5924 = vst [vmem:[%s325_s29 + $0x8] sm:$0xff] %v5922_v39 }
 0xb7f PF: > { %s18_s27 = sadd.s32 1, %s6271_s27  }
 0xb80   : > { %p15_p4 = scmp.ge.s32.totalorder %s18_s27, 4  }
 0xb82   :  { %17 = sbr.rel (!%p15_p4) target bundleno = 1 (0x1), region = 89 }

</bundles_post_ra>
